<compile_context>
chip_gen: v7x
topology: tpu7x:2x2x1
jax: 0.10.0
libtpu: 0.0.40
codegen_flags: <defaults>
</compile_context>

<pallas_src>
import jax
import jax.numpy as jnp
from jax.experimental import pallas as pl
from jax.experimental.pallas import tpu as pltpu


def _mlp_adjust_kernel(pos_ref, x_ref,
                       w1_ref, b1_ref, w2_ref, b2_ref, w3_ref, b3_ref,
                       out_ref):
    """out(tile, 2) = pos + (relu(relu(x@w1+b1)@w2+b2)@w3 + b3)."""
    h1 = jnp.dot(x_ref[...], w1_ref[...], preferred_element_type=jnp.float32)
    h1 = jnp.maximum(h1 + b1_ref[...], 0.0)

    h2 = jnp.dot(h1, w2_ref[...], preferred_element_type=jnp.float32)
    h2 = jnp.maximum(h2 + b2_ref[...], 0.0)

    delta = jnp.dot(h2, w3_ref[...], preferred_element_type=jnp.float32)
    out_ref[...] = (pos_ref[...] + delta + b3_ref[...]).astype(out_ref.dtype)


def downsample_adjust_forward(pos, x, params, *, row_tile=2048):
    """
    pos: (B, N, 2) float32
    x:   (B, N, d) float32   (d = feature_dim, divisible by 4)
    params: w1 (d, d//2), b1 (d//2,), w2 (d//2, d//4), b2 (d//4,),
            w3 (d//4, 2), b3 (2,)
    returns (idx=None, pos_out (B, N, 2), x unchanged)
    """
    B, N, P = pos.shape
    D = x.shape[-1]
    rows = B * N
    d1 = params["w1"].shape[1]
    d2 = params["w2"].shape[1]
    p_out = params["w3"].shape[1]
    assert P == p_out, "pos last dim must match the MLP output dim (2)"

    # Row-major views straight into the kernel: no transpose / pad / cast.
    pos2 = pos.reshape(rows, P)
    x2 = x.reshape(rows, D)

    w1, w2, w3 = params["w1"], params["w2"], params["w3"]
    b1 = params["b1"].reshape(1, d1)
    b2 = params["b2"].reshape(1, d2)
    b3 = params["b3"].reshape(1, p_out)

    # Tile selection: sublane-aligned (multiple of 8); best-effort even step
    # count when >1 so v7x's two TensorCores each get half the "parallel" grid.
    n_steps = pl.cdiv(rows, max(row_tile, 8))
    if n_steps > 1:
        n_steps = 2 * pl.cdiv(n_steps, 2)
    tile = pl.cdiv(pl.cdiv(rows, n_steps), 8) * 8
    grid = (pl.cdiv(rows, tile),)      # last block may be ragged -- safe (no row reduction)

    tile_map = lambda i: (i, 0)        # tiled along the row axis
    full_map = lambda i: (0, 0)        # weights/biases: same whole block every step

    out2 = pl.pallas_call(
        _mlp_adjust_kernel,
        out_shape=jax.ShapeDtypeStruct((rows, p_out), jnp.float32),
        grid_spec=pltpu.PrefetchScalarGridSpec(
            num_scalar_prefetch=0,
            grid=grid,
            in_specs=[
                pl.BlockSpec((tile, P), tile_map),     # pos tile
                pl.BlockSpec((tile, D), tile_map),     # x tile
                pl.BlockSpec((D, d1), full_map),       # w1
                pl.BlockSpec((1, d1), full_map),       # b1
                pl.BlockSpec((d1, d2), full_map),      # w2
                pl.BlockSpec((1, d2), full_map),       # b2
                pl.BlockSpec((d2, p_out), full_map),   # w3
                pl.BlockSpec((1, p_out), full_map),    # b3
            ],
            out_specs=pl.BlockSpec((tile, p_out), tile_map),
        ),
        compiler_params=pltpu.CompilerParams(
            dimension_semantics=("parallel",)),        # megacore-shardable (v7x)
    )(pos2, x2, w1, b1, w2, b2, w3, b3)

    pos_out = out2.reshape(B, N, p_out).astype(pos.dtype)
    idx = None   # pre_filter path: module returns idx=None and x unchanged
    return idx, pos_out, x


def init_params(key, feature_dim):
    """Deterministic synthetic weights matching the module's __init__ shapes."""
    d = feature_dim
    d1, d2, dout = d // 2, d // 4, 2
    ks = jax.random.split(key, 6)
    scale = lambda fan_in: 1.0 / jnp.sqrt(fan_in)
    return {
        "w1": jax.random.normal(ks[0], (d, d1), jnp.float32) * scale(d),
        "b1": jax.random.normal(ks[1], (d1,), jnp.float32) * 0.01,
        "w2": jax.random.normal(ks[2], (d1, d2), jnp.float32) * scale(d1),
        "b2": jax.random.normal(ks[3], (d2,), jnp.float32) * 0.01,
        "w3": jax.random.normal(ks[4], (d2, dout), jnp.float32) * scale(d2),
        "b3": jax.random.normal(ks[5], (dout,), jnp.float32) * 0.01,
    }


def _reference(pos, x, p):
    h = jnp.maximum(x @ p["w1"] + p["b1"], 0.0)
    h = jnp.maximum(h @ p["w2"] + p["b2"], 0.0)
    delta = h @ p["w3"] + p["b3"]
    return pos + delta


if __name__ == "__main__":
    key = jax.random.PRNGKey(0)
    kpos, kx, kparam = jax.random.split(key, 3)

    # MapTR-ish small shape: B=2, N = 50 vectors * 20 pts = 1000, feature_dim=32.
    B, N, D = 2, 1000, 32
    pos = jax.random.normal(kpos, (B, N, 2), jnp.float32)
    x = jax.random.normal(kx, (B, N, D), jnp.float32)
    params = init_params(kparam, D)

    ref = _reference(pos, x, params)

    # Default tile: rows=2000 fits in a single 2000-row block.
    idx, pos_out, x_out = downsample_adjust_forward(pos, x, params)
    pos_out = jax.block_until_ready(pos_out)
    assert idx is None
    assert pos_out.shape == (B, N, 2)
    assert x_out.shape == (B, N, D)
    assert jnp.allclose(pos_out, ref, atol=1e-4, rtol=1e-4), \
        float(jnp.max(jnp.abs(pos_out - ref)))
    assert jnp.array_equal(x_out, x)

    # Small tile: multi-step grid with a ragged last block (exercises Pallas's
    # implicit partial-block handling with no wrapper pad).
    _, pos_out_small, _ = downsample_adjust_forward(pos, x, params, row_tile=384)
    pos_out_small = jax.block_until_ready(pos_out_small)
    assert jnp.allclose(pos_out_small, ref, atol=1e-4, rtol=1e-4), \
        float(jnp.max(jnp.abs(pos_out_small - ref)))

    print("KERNEL_OK")
</pallas_src>

<mosaic_0001>
module attributes {stable_mosaic.version = 11 : i64} {
  func.func @_mlp_adjust_kernel(%arg0: i32, %arg1: memref<2000x2xf32, #tpu.memory_space<vmem>>, %arg2: memref<2000x32xf32, #tpu.memory_space<vmem>>, %arg3: memref<32x16xf32, #tpu.memory_space<vmem>>, %arg4: memref<1x16xf32, #tpu.memory_space<vmem>>, %arg5: memref<16x8xf32, #tpu.memory_space<vmem>>, %arg6: memref<1x8xf32, #tpu.memory_space<vmem>>, %arg7: memref<8x2xf32, #tpu.memory_space<vmem>>, %arg8: memref<1x2xf32, #tpu.memory_space<vmem>>, %arg9: memref<2000x2xf32, #tpu.memory_space<vmem>>) attributes {dimension_semantics = [#tpu.dimension_semantics<parallel>], iteration_bounds = array<i64: 1>, scalar_prefetch = 0 : i64, scratch_operands = 0 : i64, tpu.core_type = #tpu.core_type<tc>, window_params = [{transform_indices = @transform_0, window_bounds = array<i64: 2000, 2>}, {transform_indices = @transform_1, window_bounds = array<i64: 2000, 32>}, {pipeline_mode = #tpu.pipeline_mode<synchronous>, transform_indices = @transform_2, window_bounds = array<i64: 32, 16>}, {pipeline_mode = #tpu.pipeline_mode<synchronous>, transform_indices = @transform_3, window_bounds = array<i64: 1, 16>}, {pipeline_mode = #tpu.pipeline_mode<synchronous>, transform_indices = @transform_4, window_bounds = array<i64: 16, 8>}, {pipeline_mode = #tpu.pipeline_mode<synchronous>, transform_indices = @transform_5, window_bounds = array<i64: 1, 8>}, {pipeline_mode = #tpu.pipeline_mode<synchronous>, transform_indices = @transform_6, window_bounds = array<i64: 8, 2>}, {pipeline_mode = #tpu.pipeline_mode<synchronous>, transform_indices = @transform_7, window_bounds = array<i64: 1, 2>}, {transform_indices = @transform_8, window_bounds = array<i64: 2000, 2>}]} {
    %c0 = arith.constant 0 : index
    %c0_0 = arith.constant 0 : index
    %0 = vector.load %arg2[%c0, %c0_0] : memref<2000x32xf32, #tpu.memory_space<vmem>>, vector<2000x32xf32>
    %c0_1 = arith.constant 0 : index
    %c0_2 = arith.constant 0 : index
    %1 = vector.load %arg3[%c0_1, %c0_2] : memref<32x16xf32, #tpu.memory_space<vmem>>, vector<32x16xf32>
    %cst = arith.constant dense<0.000000e+00> : vector<2000x16xf32>
    %2 = tpu.matmul %0, %1, %cst {dimension_numbers = #tpu.dot_dimension_numbers<[1], [0], [0], [1], [0, 0, 1, 1], [], []>} : vector<2000x32xf32>, vector<32x16xf32>, vector<2000x16xf32> -> vector<2000x16xf32>
    %c0_3 = arith.constant 0 : index
    %c0_4 = arith.constant 0 : index
    %3 = vector.load %arg4[%c0_3, %c0_4] : memref<1x16xf32, #tpu.memory_space<vmem>>, vector<1x16xf32>
    %4 = vector.broadcast %3 : vector<1x16xf32> to vector<2000x16xf32>
    %5 = arith.addf %2, %4 : vector<2000x16xf32>
    %cst_5 = arith.constant 0.000000e+00 : f32
    %6 = vector.broadcast %cst_5 : f32 to vector<2000x16xf32>
    %7 = arith.maximumf %5, %6 : vector<2000x16xf32>
    %c0_6 = arith.constant 0 : index
    %c0_7 = arith.constant 0 : index
    %8 = vector.load %arg5[%c0_6, %c0_7] : memref<16x8xf32, #tpu.memory_space<vmem>>, vector<16x8xf32>
    %cst_8 = arith.constant dense<0.000000e+00> : vector<2000x8xf32>
    %9 = tpu.matmul %7, %8, %cst_8 {dimension_numbers = #tpu.dot_dimension_numbers<[1], [0], [0], [1], [0, 0, 1, 1], [], []>} : vector<2000x16xf32>, vector<16x8xf32>, vector<2000x8xf32> -> vector<2000x8xf32>
    %c0_9 = arith.constant 0 : index
    %c0_10 = arith.constant 0 : index
    %10 = vector.load %arg6[%c0_9, %c0_10] : memref<1x8xf32, #tpu.memory_space<vmem>>, vector<1x8xf32>
    %11 = vector.broadcast %10 : vector<1x8xf32> to vector<2000x8xf32>
    %12 = arith.addf %9, %11 : vector<2000x8xf32>
    %cst_11 = arith.constant 0.000000e+00 : f32
    %13 = vector.broadcast %cst_11 : f32 to vector<2000x8xf32>
    %14 = arith.maximumf %12, %13 : vector<2000x8xf32>
    %c0_12 = arith.constant 0 : index
    %c0_13 = arith.constant 0 : index
    %15 = vector.load %arg7[%c0_12, %c0_13] : memref<8x2xf32, #tpu.memory_space<vmem>>, vector<8x2xf32>
    %cst_14 = arith.constant dense<0.000000e+00> : vector<2000x2xf32>
    %16 = tpu.matmul %14, %15, %cst_14 {dimension_numbers = #tpu.dot_dimension_numbers<[1], [0], [0], [1], [0, 0, 1, 1], [], []>} : vector<2000x8xf32>, vector<8x2xf32>, vector<2000x2xf32> -> vector<2000x2xf32>
    %c0_15 = arith.constant 0 : index
    %c0_16 = arith.constant 0 : index
    %17 = vector.load %arg1[%c0_15, %c0_16] : memref<2000x2xf32, #tpu.memory_space<vmem>>, vector<2000x2xf32>
    %18 = arith.addf %17, %16 : vector<2000x2xf32>
    %c0_17 = arith.constant 0 : index
    %c0_18 = arith.constant 0 : index
    %19 = vector.load %arg8[%c0_17, %c0_18] : memref<1x2xf32, #tpu.memory_space<vmem>>, vector<1x2xf32>
    %20 = vector.broadcast %19 : vector<1x2xf32> to vector<2000x2xf32>
    %21 = arith.addf %18, %20 : vector<2000x2xf32>
    %c0_19 = arith.constant 0 : index
    %c0_20 = arith.constant 0 : index
    %22 = vector.load %arg9[%c0_19, %c0_20] : memref<2000x2xf32, #tpu.memory_space<vmem>>, vector<2000x2xf32>
    tpu.vector_store %arg9[%c0_19, %c0_20], %21 {strides = array<i32>} : memref<2000x2xf32, #tpu.memory_space<vmem>>, vector<2000x2xf32>,
    return
  }
  func.func @transform_0(%arg0: i32) -> (i32, i32) {
    %c0_i32 = arith.constant 0 : i32
    %c0_i32_0 = arith.constant 0 : i32
    return %arg0, %c0_i32 : i32, i32
  }
  func.func @transform_1(%arg0: i32) -> (i32, i32) {
    %c0_i32 = arith.constant 0 : i32
    %c0_i32_0 = arith.constant 0 : i32
    return %arg0, %c0_i32 : i32, i32
  }
  func.func @transform_2(%arg0: i32) -> (i32, i32) {
    %c0_i32 = arith.constant 0 : i32
    %c0_i32_0 = arith.constant 0 : i32
    %c0_i32_1 = arith.constant 0 : i32
    return %c0_i32, %c0_i32_0 : i32, i32
  }
  func.func @transform_3(%arg0: i32) -> (i32, i32) {
    %c0_i32 = arith.constant 0 : i32
    %c0_i32_0 = arith.constant 0 : i32
    %c0_i32_1 = arith.constant 0 : i32
    return %c0_i32, %c0_i32_0 : i32, i32
  }
  func.func @transform_4(%arg0: i32) -> (i32, i32) {
    %c0_i32 = arith.constant 0 : i32
    %c0_i32_0 = arith.constant 0 : i32
    %c0_i32_1 = arith.constant 0 : i32
    return %c0_i32, %c0_i32_0 : i32, i32
  }
  func.func @transform_5(%arg0: i32) -> (i32, i32) {
    %c0_i32 = arith.constant 0 : i32
    %c0_i32_0 = arith.constant 0 : i32
    %c0_i32_1 = arith.constant 0 : i32
    return %c0_i32, %c0_i32_0 : i32, i32
  }
  func.func @transform_6(%arg0: i32) -> (i32, i32) {
    %c0_i32 = arith.constant 0 : i32
    %c0_i32_0 = arith.constant 0 : i32
    %c0_i32_1 = arith.constant 0 : i32
    return %c0_i32, %c0_i32_0 : i32, i32
  }
  func.func @transform_7(%arg0: i32) -> (i32, i32) {
    %c0_i32 = arith.constant 0 : i32
    %c0_i32_0 = arith.constant 0 : i32
    %c0_i32_1 = arith.constant 0 : i32
    return %c0_i32, %c0_i32_0 : i32, i32
  }
  func.func @transform_8(%arg0: i32) -> (i32, i32) {
    %c0_i32 = arith.constant 0 : i32
    %c0_i32_0 = arith.constant 0 : i32
    return %arg0, %c0_i32 : i32, i32
  }
}

</mosaic_0001>

<bundles_post_ra>
// kernel: tpu_custom_call.1
= control target key start
LH: loop header
LB: loop body
LE: loop exit
PB: predicated region body
PF: predicated region fallthrough
CT: control target
= control target key end

     0   :  { %vm290_vm0 = vcmask 261120   ;;  %vm2615_vm1 = vcmask 130048   ;;  %vm4932_vm2 = vcmask 64512   ;;  %vm7755_vm3 = vcmask 15360   ;;  %s15550_s2 = inlined_call_operand.vmem [shape: f32[32,16], index: 2, kind: input, shape index: {}]   ;;  %s15551_s1 = inlined_call_operand.vmem [shape: f32[2000,32], index: 1, kind: input, shape index: {}]   ;;  %s15552_s4 = inlined_call_operand.vmem [shape: f32[16,8], index: 4, kind: input, shape index: {}]   ;;  %s15553_s6 = inlined_call_operand.vmem [shape: f32[8,2], index: 6, kind: input, shape index: {}]   ;;  %s15554_s3 = inlined_call_operand.vmem [shape: f32[1,16], index: 3, kind: input, shape index: {}]   ;;  %s15555_s5 = inlined_call_operand.vmem [shape: f32[1,8], index: 5, kind: input, shape index: {}]   ;;  %s15556_s0 = inlined_call_operand.vmem [shape: f32[2000,2], index: 0, kind: input, shape index: {}]   ;;  %s15557_s7 = inlined_call_operand.vmem [shape: f32[1,2], index: 7, kind: input, shape index: {}]   ;;  %s15558_s8 = inlined_call_operand.vmem [shape: f32[2000,2], index: 8, kind: output, shape index: {}]  }
   0x1   :  { %v279_v0 = vld [vmem:[%s15550_s2] sm:$0xff]  ;;  %v280_v1 = vld [vmem:[%s15550_s2 + $0x8] sm:$0xff]  ;;  %v281_v2 = vld [vmem:[%s15550_s2 + $0x10] sm:$0xff] }
   0x2   :  { %v10659_v3 = vpack.c.bf16 %v280_v1, %v279_v0  ;;  %v282_v4 = vld [vmem:[%s15550_s2 + $0x18] sm:$0xff]  ;;  %v29_v5 = vld [vmem:[%s15551_s1] sm:$0xff]  ;;  %v2607_v8 = vld [vmem:[%s15552_s4 + $0x8] sm:$0xff] }
   0x3   :  { %v10663_v6 = vpack.c.bf16 %v282_v4, %v281_v2  ;;  %9528 = vmatprep.mubr.msk.f32.mxu0 %vm290_vm0, %v29_v5  ;;  %v2606_v7 = vld [vmem:[%s15552_s4] sm:$0xff]  ;;  %v30_v10 = vld [vmem:[%s15551_s1 + $0x8] sm:$0xff]  ;;  %v31_v11 = vld [vmem:[%s15551_s1 + $0x10] sm:$0xff] }
   0x4   :  { %10660 = vmatprep.subr.bf16.mxu0 %v10659_v3  ;;  %v10667_v9 = vpack.c.bf16 %v2607_v8, %v2606_v7  ;;  %v32_v12 = vld [vmem:[%s15551_s1 + $0x18] sm:$0xff]  ;;  %v33_v13 = vld [vmem:[%s15551_s1 + $0x20] sm:$0xff]  ;;  %v34_v14 = vld [vmem:[%s15551_s1 + $0x28] sm:$0xff] }
   0x5   :  { %10662 = vmatpush3.bf16.msra.mxu0 %v10659_v3  ;;  %v35_v15 = vld [vmem:[%s15551_s1 + $0x30] sm:$0xff]  ;;  %v36_v16 = vld [vmem:[%s15551_s1 + $0x38] sm:$0xff]  ;;  %v37_v17 = vld [vmem:[%s15551_s1 + $0x40] sm:$0xff] }
   0x6   :  { %10664 = vmatprep.subr.bf16.mxu0 %v10663_v6  ;;  %10671 = vmatprep.subr.bf16.mxu1 %v10667_v9  ;;  %v38_v18 = vld [vmem:[%s15551_s1 + $0x48] sm:$0xff]  ;;  %v39_v19 = vld [vmem:[%s15551_s1 + $0x50] sm:$0xff]  ;;  %v40_v20 = vld [vmem:[%s15551_s1 + $0x58] sm:$0xff] }
   0x7   :  { %10672 = vmatpush3.bf16.msra.mxu1 %v10667_v9  ;;  %v41_v21 = vld [vmem:[%s15551_s1 + $0x60] sm:$0xff]  ;;  %v42_v22 = vld [vmem:[%s15551_s1 + $0x68] sm:$0xff]  ;;  %v43_v23 = vld [vmem:[%s15551_s1 + $0x70] sm:$0xff] }
   0x8   :  { %v44_v24 = vld [vmem:[%s15551_s1 + $0x78] sm:$0xff]  ;;  %v45_v25 = vld [vmem:[%s15551_s1 + $0x80] sm:$0xff]  ;;  %v46_v26 = vld [vmem:[%s15551_s1 + $0x88] sm:$0xff] }
   0x9   :  { %10666 = vmatpush3.bf16.msra.mxu0 %v10663_v6  ;;  %v47_v27 = vld [vmem:[%s15551_s1 + $0x90] sm:$0xff]  ;;  %v48_v28 = vld [vmem:[%s15551_s1 + $0x98] sm:$0xff]  ;;  %v49_v29 = vld [vmem:[%s15551_s1 + $0xa0] sm:$0xff] }
   0xa   :  { %10668 = vmatprep.subr.bf16.mxu0 %v10667_v9  ;;  %v50_v30 = vld [vmem:[%s15551_s1 + $0xa8] sm:$0xff]  ;;  %v51_v31 = vld [vmem:[%s15551_s1 + $0xb0] sm:$0xff]  ;;  %v52_v32 = vld [vmem:[%s15551_s1 + $0xb8] sm:$0xff] }
   0xb   :  { %v53_v33 = vld [vmem:[%s15551_s1 + $0xc0] sm:$0xff]  ;;  %v54_v34 = vld [vmem:[%s15551_s1 + $0xc8] sm:$0xff]  ;;  %v55_v35 = vld [vmem:[%s15551_s1 + $0xd0] sm:$0xff] }
   0xc   :  { %9529 = vmatmul.mubr.msk.f32.vlgmr.msra.gmra.mrb[0].mxu0 %vm290_vm0, %v30_v10  ;;  %v56_v36 = vld [vmem:[%s15551_s1 + $0xd8] sm:$0xff]  ;;  %v57_v37 = vld [vmem:[%s15551_s1 + $0xe0] sm:$0xff]  ;;  %v58_v38 = vld [vmem:[%s15551_s1 + $0xe8] sm:$0xff] }
   0xd   :  { %10670 = vmatpush3.bf16.msra.mxu0 %v10667_v9  ;;  %9531 = vmatprep.mubr.msk.f32.mxu0 %vm290_vm0, %v31_v11  ;;  %v59_v39 = vld [vmem:[%s15551_s1 + $0xf0] sm:$0xff]  ;;  %v60_v40 = vld [vmem:[%s15551_s1 + $0xf8] sm:$0xff]  ;;  %v61_v41 = vld [vmem:[%s15551_s1 + $0x100] sm:$0xff] }
   0xe   :  { %v62_v42 = vld [vmem:[%s15551_s1 + $0x108] sm:$0xff]  ;;  %v63_v43 = vld [vmem:[%s15551_s1 + $0x110] sm:$0xff]  ;;  %v64_v44 = vld [vmem:[%s15551_s1 + $0x118] sm:$0xff] }
   0xf   :  { %v65_v45 = vld [vmem:[%s15551_s1 + $0x120] sm:$0xff]  ;;  %v66_v46 = vld [vmem:[%s15551_s1 + $0x128] sm:$0xff]  ;;  %v67_v47 = vld [vmem:[%s15551_s1 + $0x130] sm:$0xff] }
  0x10   :  { %9532 = vmatmul.mubr.msk.f32.gmra.mrb[2].mxu0 %vm290_vm0, %v32_v12  ;;  %v68_v48 = vld [vmem:[%s15551_s1 + $0x138] sm:$0xff]  ;;  %v69_v49 = vld [vmem:[%s15551_s1 + $0x140] sm:$0xff]  ;;  %v70_v50 = vld [vmem:[%s15551_s1 + $0x148] sm:$0xff] }
  0x11   :  { %9534 = vmatprep.mubr.msk.f32.mxu0 %vm290_vm0, %v33_v13  ;;  %v71_v51 = vld [vmem:[%s15551_s1 + $0x150] sm:$0xff]  ;;  %v72_v52 = vld [vmem:[%s15551_s1 + $0x158] sm:$0xff]  ;;  %v73_v53 = vld [vmem:[%s15551_s1 + $0x160] sm:$0xff] }
  0x12   :  { %v74_v54 = vld [vmem:[%s15551_s1 + $0x168] sm:$0xff]  ;;  %v75_v55 = vld [vmem:[%s15551_s1 + $0x170] sm:$0xff]  ;;  %v76_v56 = vld [vmem:[%s15551_s1 + $0x178] sm:$0xff] }
  0x13   :  { %v77_v57 = vld [vmem:[%s15551_s1 + $0x180] sm:$0xff]  ;;  %v78_v58 = vld [vmem:[%s15551_s1 + $0x188] sm:$0xff]  ;;  %v79_v59 = vld [vmem:[%s15551_s1 + $0x190] sm:$0xff] }
  0x14   :  { %9535 = vmatmul.mubr.msk.f32.gmra.mrb[4].mxu0 %vm290_vm0, %v34_v14  ;;  %v80_v60 = vld [vmem:[%s15551_s1 + $0x198] sm:$0xff]  ;;  %v81_v61 = vld [vmem:[%s15551_s1 + $0x1a0] sm:$0xff]  ;;  %v82_v62 = vld [vmem:[%s15551_s1 + $0x1a8] sm:$0xff] }
  0x15   :  { %9537 = vmatprep.mubr.msk.f32.mxu0 %vm290_vm0, %v35_v15  ;;  %v83_v63 = vld [vmem:[%s15551_s1 + $0x1b0] sm:$0xff]  ;;  %v84_v0 = vld [vmem:[%s15551_s1 + $0x1b8] sm:$0xff]  ;;  %v85_v1 = vld [vmem:[%s15551_s1 + $0x1c0] sm:$0xff] }
  0x16   :  { %v86_v2 = vld [vmem:[%s15551_s1 + $0x1c8] sm:$0xff]  ;;  %v87_v3 = vld [vmem:[%s15551_s1 + $0x1d0] sm:$0xff]  ;;  %v88_v4 = vld [vmem:[%s15551_s1 + $0x1d8] sm:$0xff] }
  0x17   :  { %v89_v5 = vld [vmem:[%s15551_s1 + $0x1e0] sm:$0xff]  ;;  %v90_v6 = vld [vmem:[%s15551_s1 + $0x1e8] sm:$0xff]  ;;  %v91_v7 = vld [vmem:[%s15551_s1 + $0x1f0] sm:$0xff] }
  0x18   :  { %9538 = vmatmul.mubr.msk.f32.gmra.mrb[6].mxu0 %vm290_vm0, %v36_v16  ;;  %v92_v8 = vld [vmem:[%s15551_s1 + $0x1f8] sm:$0xff]  ;;  %v93_v9 = vld [vmem:[%s15551_s1 + $0x200] sm:$0xff]  ;;  %v94_v10 = vld [vmem:[%s15551_s1 + $0x208] sm:$0xff] }
  0x19   :  { %9540 = vmatprep.mubr.msk.f32.mxu0 %vm290_vm0, %v37_v17  ;;  %v95_v11 = vld [vmem:[%s15551_s1 + $0x210] sm:$0xff]  ;;  %v96_v12 = vld [vmem:[%s15551_s1 + $0x218] sm:$0xff]  ;;  %v97_v13 = vld [vmem:[%s15551_s1 + $0x220] sm:$0xff] }
  0x1a   :  { %v98_v14 = vld [vmem:[%s15551_s1 + $0x228] sm:$0xff]  ;;  %v99_v15 = vld [vmem:[%s15551_s1 + $0x230] sm:$0xff]  ;;  %v100_v16 = vld [vmem:[%s15551_s1 + $0x238] sm:$0xff] }
  0x1b   :  { %v101_v17 = vld [vmem:[%s15551_s1 + $0x240] sm:$0xff] }
  0x1c   :  { %9541 = vmatmul.mubr.msk.f32.gmra.mrb[8].mxu0 %vm290_vm0, %v38_v18  ;;  %v102_v18 = vld [vmem:[%s15551_s1 + $0x248] sm:$0xff] }
  0x1d   :  { %9543 = vmatprep.mubr.msk.f32.mxu0 %vm290_vm0, %v39_v19  ;;  %v103_v19 = vld [vmem:[%s15551_s1 + $0x250] sm:$0xff] }
  0x20   :  { %9544 = vmatmul.mubr.msk.f32.gmra.mrb[10].mxu0 %vm290_vm0, %v40_v20  ;;  %v104_v20 = vld [vmem:[%s15551_s1 + $0x258] sm:$0xff] }
  0x21   :  { %9546 = vmatprep.mubr.msk.f32.mxu0 %vm290_vm0, %v41_v21  ;;  %v105_v21 = vld [vmem:[%s15551_s1 + $0x260] sm:$0xff] }
  0x24   :  { %9547 = vmatmul.mubr.msk.f32.gmra.mrb[12].mxu0 %vm290_vm0, %v42_v22  ;;  %v106_v22 = vld [vmem:[%s15551_s1 + $0x268] sm:$0xff] }
  0x25   :  { %9549 = vmatprep.mubr.msk.f32.mxu0 %vm290_vm0, %v43_v23  ;;  %v107_v23 = vld [vmem:[%s15551_s1 + $0x270] sm:$0xff] }
  0x28   :  { %9550 = vmatmul.mubr.msk.f32.gmra.mrb[14].mxu0 %vm290_vm0, %v44_v24  ;;  %v108_v24 = vld [vmem:[%s15551_s1 + $0x278] sm:$0xff] }
  0x29   :  { %9552 = vmatprep.mubr.msk.f32.mxu0 %vm290_vm0, %v45_v25  ;;  %v109_v25 = vld [vmem:[%s15551_s1 + $0x280] sm:$0xff] }
  0x2c   :  { %9553 = vmatmul.mubr.msk.f32.gmra.mrb[16].mxu0 %vm290_vm0, %v46_v26  ;;  %v110_v26 = vld [vmem:[%s15551_s1 + $0x288] sm:$0xff] }
  0x2d   :  { %9555 = vmatprep.mubr.msk.f32.mxu0 %vm290_vm0, %v47_v27  ;;  %v111_v27 = vld [vmem:[%s15551_s1 + $0x290] sm:$0xff] }
  0x30   :  { %9556 = vmatmul.mubr.msk.f32.gmra.mrb[18].mxu0 %vm290_vm0, %v48_v28  ;;  %v112_v28 = vld [vmem:[%s15551_s1 + $0x298] sm:$0xff] }
  0x31   :  { %9558 = vmatprep.mubr.msk.f32.mxu0 %vm290_vm0, %v49_v29  ;;  %v113_v29 = vld [vmem:[%s15551_s1 + $0x2a0] sm:$0xff] }
  0x34   :  { %9559 = vmatmul.mubr.msk.f32.gmra.mrb[20].mxu0 %vm290_vm0, %v50_v30  ;;  %v114_v30 = vld [vmem:[%s15551_s1 + $0x2a8] sm:$0xff] }
  0x35   :  { %9561 = vmatprep.mubr.msk.f32.mxu0 %vm290_vm0, %v51_v31  ;;  %v115_v31 = vld [vmem:[%s15551_s1 + $0x2b0] sm:$0xff] }
  0x38   :  { %9562 = vmatmul.mubr.msk.f32.gmra.mrb[22].mxu0 %vm290_vm0, %v52_v32  ;;  %v116_v32 = vld [vmem:[%s15551_s1 + $0x2b8] sm:$0xff] }
  0x39   :  { %9564 = vmatprep.mubr.msk.f32.mxu0 %vm290_vm0, %v53_v33  ;;  %v117_v33 = vld [vmem:[%s15551_s1 + $0x2c0] sm:$0xff] }
  0x3c   :  { %9565 = vmatmul.mubr.msk.f32.gmra.mrb[24].mxu0 %vm290_vm0, %v54_v34  ;;  %v118_v34 = vld [vmem:[%s15551_s1 + $0x2c8] sm:$0xff] }
  0x3d   :  { %9567 = vmatprep.mubr.msk.f32.mxu0 %vm290_vm0, %v55_v35  ;;  %v119_v35 = vld [vmem:[%s15551_s1 + $0x2d0] sm:$0xff] }
  0x40   :  { %9568 = vmatmul.mubr.msk.f32.gmra.mrb[26].mxu0 %vm290_vm0, %v56_v36  ;;  %v120_v36 = vld [vmem:[%s15551_s1 + $0x2d8] sm:$0xff] }
  0x41   :  { %9570 = vmatprep.mubr.msk.f32.mxu0 %vm290_vm0, %v57_v37  ;;  %v121_v37 = vld [vmem:[%s15551_s1 + $0x2e0] sm:$0xff] }
  0x44   :  { %9571 = vmatmul.mubr.msk.f32.gmra.mrb[28].mxu0 %vm290_vm0, %v58_v38  ;;  %v122_v38 = vld [vmem:[%s15551_s1 + $0x2e8] sm:$0xff] }
  0x45   :  { %9573 = vmatprep.mubr.msk.f32.mxu0 %vm290_vm0, %v59_v39  ;;  %v123_v39 = vld [vmem:[%s15551_s1 + $0x2f0] sm:$0xff] }
  0x48   :  { %9574 = vmatmul.mubr.msk.f32.gmra.mrb[30].mxu0 %vm290_vm0, %v60_v40  ;;  %v124_v40 = vld [vmem:[%s15551_s1 + $0x2f8] sm:$0xff] }
  0x49   :  { %9576 = vmatprep.mubr.msk.f32.mxu0 %vm290_vm0, %v61_v41  ;;  %v125_v41 = vld [vmem:[%s15551_s1 + $0x300] sm:$0xff] }
  0x4c   :  { %9577 = vmatmul.mubr.msk.f32.gmra.mrb[32].mxu0 %vm290_vm0, %v62_v42  ;;  %v126_v42 = vld [vmem:[%s15551_s1 + $0x308] sm:$0xff] }
  0x4d   :  { %9579 = vmatprep.mubr.msk.f32.mxu0 %vm290_vm0, %v63_v43  ;;  %v127_v43 = vld [vmem:[%s15551_s1 + $0x310] sm:$0xff] }
  0x50   :  { %9580 = vmatmul.mubr.msk.f32.gmra.mrb[34].mxu0 %vm290_vm0, %v64_v44  ;;  %v128_v44 = vld [vmem:[%s15551_s1 + $0x318] sm:$0xff] }
  0x51   :  { %9582 = vmatprep.mubr.msk.f32.mxu0 %vm290_vm0, %v65_v45  ;;  %v129_v45 = vld [vmem:[%s15551_s1 + $0x320] sm:$0xff] }
  0x54   :  { %9583 = vmatmul.mubr.msk.f32.gmra.mrb[36].mxu0 %vm290_vm0, %v66_v46  ;;  %v130_v46 = vld [vmem:[%s15551_s1 + $0x328] sm:$0xff] }
  0x55   :  { %9585 = vmatprep.mubr.msk.f32.mxu0 %vm290_vm0, %v67_v47  ;;  %v131_v47 = vld [vmem:[%s15551_s1 + $0x330] sm:$0xff] }
  0x58   :  { %9586 = vmatmul.mubr.msk.f32.gmra.mrb[38].mxu0 %vm290_vm0, %v68_v48  ;;  %v132_v48 = vld [vmem:[%s15551_s1 + $0x338] sm:$0xff] }
  0x59   :  { %9588 = vmatprep.mubr.msk.f32.mxu0 %vm290_vm0, %v69_v49  ;;  %v133_v49 = vld [vmem:[%s15551_s1 + $0x340] sm:$0xff] }
  0x5c   :  { %9589 = vmatmul.mubr.msk.f32.gmra.mrb[40].mxu0 %vm290_vm0, %v70_v50  ;;  %v134_v50 = vld [vmem:[%s15551_s1 + $0x348] sm:$0xff] }
  0x5d   :  { %9591 = vmatprep.mubr.msk.f32.mxu0 %vm290_vm0, %v71_v51  ;;  %v135_v51 = vld [vmem:[%s15551_s1 + $0x350] sm:$0xff] }
  0x60   :  { %9592 = vmatmul.mubr.msk.f32.gmra.mrb[42].mxu0 %vm290_vm0, %v72_v52  ;;  %v136_v52 = vld [vmem:[%s15551_s1 + $0x358] sm:$0xff] }
  0x61   :  { %9594 = vmatprep.mubr.msk.f32.mxu0 %vm290_vm0, %v73_v53  ;;  %v137_v53 = vld [vmem:[%s15551_s1 + $0x360] sm:$0xff] }
  0x64   :  { %9595 = vmatmul.mubr.msk.f32.gmra.mrb[44].mxu0 %vm290_vm0, %v74_v54 }
  0x65   :  { %9597 = vmatprep.mubr.msk.f32.mxu0 %vm290_vm0, %v75_v55 }
  0x68   :  { %9598 = vmatmul.mubr.msk.f32.gmra.mrb[46].mxu0 %vm290_vm0, %v76_v56  ;;  %v138_v56 = vld [vmem:[%s15551_s1 + $0x368] sm:$0xff] }
  0x69   :  { %9600 = vmatprep.mubr.msk.f32.mxu0 %vm290_vm0, %v77_v57  ;;  %v139_v57 = vld [vmem:[%s15551_s1 + $0x370] sm:$0xff] }
  0x6c   :  { %9601 = vmatmul.mubr.msk.f32.gmra.mrb[48].mxu0 %vm290_vm0, %v78_v58 }
  0x6d   :  { %9603 = vmatprep.mubr.msk.f32.mxu0 %vm290_vm0, %v79_v59 }
  0x70   :  { %9604 = vmatmul.mubr.msk.f32.gmra.mrb[50].mxu0 %vm290_vm0, %v80_v60  ;;  %v140_v60 = vld [vmem:[%s15551_s1 + $0x378] sm:$0xff] }
  0x71   :  { %9606 = vmatprep.mubr.msk.f32.mxu0 %vm290_vm0, %v81_v61  ;;  %v141_v61 = vld [vmem:[%s15551_s1 + $0x380] sm:$0xff] }
  0x74   :  { %9607 = vmatmul.mubr.msk.f32.gmra.mrb[52].mxu0 %vm290_vm0, %v82_v62 }
  0x75   :  { %9609 = vmatprep.mubr.msk.f32.mxu0 %vm290_vm0, %v83_v63 }
  0x78   :  { %9610 = vmatmul.mubr.msk.f32.gmra.mrb[54].mxu0 %vm290_vm0, %v84_v0  ;;  %v142_v0 = vld [vmem:[%s15551_s1 + $0x388] sm:$0xff] }
  0x79   :  { %9612 = vmatprep.mubr.msk.f32.mxu0 %vm290_vm0, %v85_v1  ;;  %v143_v1 = vld [vmem:[%s15551_s1 + $0x390] sm:$0xff] }
  0x7c   :  { %9613 = vmatmul.mubr.msk.f32.gmra.mrb[56].mxu0 %vm290_vm0, %v86_v2 }
  0x7d   :  { %9615 = vmatprep.mubr.msk.f32.mxu0 %vm290_vm0, %v87_v3 }
  0x80   :  { %9616 = vmatmul.mubr.msk.f32.gmra.mrb[58].mxu0 %vm290_vm0, %v88_v4  ;;  %v144_v4 = vld [vmem:[%s15551_s1 + $0x398] sm:$0xff] }
  0x81   :  { %9618 = vmatprep.mubr.msk.f32.mxu0 %vm290_vm0, %v89_v5  ;;  %v145_v5 = vld [vmem:[%s15551_s1 + $0x3a0] sm:$0xff] }
  0x84   :  { %9619 = vmatmul.mubr.msk.f32.gmra.mrb[60].mxu0 %vm290_vm0, %v90_v6 }
  0x85   :  { %9621 = vmatprep.mubr.msk.f32.mxu0 %vm290_vm0, %v91_v7 }
  0x88   :  { %9622 = vmatmul.mubr.msk.f32.gmra.mrb[62].mxu0 %vm290_vm0, %v92_v8  ;;  %v146_v8 = vld [vmem:[%s15551_s1 + $0x3a8] sm:$0xff] }
  0x89   :  { %9624 = vmatprep.mubr.msk.f32.mxu0 %vm290_vm0, %v93_v9  ;;  %v147_v9 = vld [vmem:[%s15551_s1 + $0x3b0] sm:$0xff] }
  0x8c   :  { %9625 = vmatmul.mubr.msk.f32.gmra.mrb[64].mxu0 %vm290_vm0, %v94_v10 }
  0x8d   :  { %9627 = vmatprep.mubr.msk.f32.mxu0 %vm290_vm0, %v95_v11 }
  0x90   :  { %9628 = vmatmul.mubr.msk.f32.gmra.mrb[66].mxu0 %vm290_vm0, %v96_v12  ;;  %v148_v12 = vld [vmem:[%s15551_s1 + $0x3b8] sm:$0xff] }
  0x91   :  { %9630 = vmatprep.mubr.msk.f32.mxu0 %vm290_vm0, %v97_v13  ;;  %v149_v13 = vld [vmem:[%s15551_s1 + $0x3c0] sm:$0xff] }
  0x94   :  { %9631 = vmatmul.mubr.msk.f32.gmra.mrb[68].mxu0 %vm290_vm0, %v98_v14 }
  0x95   :  { %9633 = vmatprep.mubr.msk.f32.mxu0 %vm290_vm0, %v99_v15 }
  0x98   :  { %9634 = vmatmul.mubr.msk.f32.gmra.mrb[70].mxu0 %vm290_vm0, %v100_v16  ;;  %v150_v16 = vld [vmem:[%s15551_s1 + $0x3c8] sm:$0xff] }
  0x99   :  { %9636 = vmatprep.mubr.msk.f32.mxu0 %vm290_vm0, %v101_v17  ;;  %v151_v17 = vld [vmem:[%s15551_s1 + $0x3d0] sm:$0xff] }
  0x9c   :  { %9637 = vmatmul.mubr.msk.f32.gmra.mrb[72].mxu0 %vm290_vm0, %v102_v18 }
  0x9d   :  { %9639 = vmatprep.mubr.msk.f32.mxu0 %vm290_vm0, %v103_v19 }
  0xa0   :  { %9640 = vmatmul.mubr.msk.f32.gmra.mrb[74].mxu0 %vm290_vm0, %v104_v20  ;;  %v152_v20 = vld [vmem:[%s15551_s1 + $0x3d8] sm:$0xff] }
  0xa1   :  { %9642 = vmatprep.mubr.msk.f32.mxu0 %vm290_vm0, %v105_v21  ;;  %v153_v21 = vld [vmem:[%s15551_s1 + $0x3e0] sm:$0xff] }
  0xa4   :  { %9643 = vmatmul.mubr.msk.f32.gmra.mrb[76].mxu0 %vm290_vm0, %v106_v22 }
  0xa5   :  { %9645 = vmatprep.mubr.msk.f32.mxu0 %vm290_vm0, %v107_v23 }
  0xa8   :  { %9646 = vmatmul.mubr.msk.f32.gmra.mrb[78].mxu0 %vm290_vm0, %v108_v24  ;;  %v154_v24 = vld [vmem:[%s15551_s1 + $0x3e8] sm:$0xff] }
  0xa9   :  { %9648 = vmatprep.mubr.msk.f32.mxu0 %vm290_vm0, %v109_v25  ;;  %v155_v25 = vld [vmem:[%s15551_s1 + $0x3f0] sm:$0xff] }
  0xac   :  { %9649 = vmatmul.mubr.msk.f32.gmra.mrb[80].mxu0 %vm290_vm0, %v110_v26 }
  0xad   :  { %9651 = vmatprep.mubr.msk.f32.mxu0 %vm290_vm0, %v111_v27 }
  0xb0   :  { %9652 = vmatmul.mubr.msk.f32.gmra.mrb[82].mxu0 %vm290_vm0, %v112_v28  ;;  %v156_v28 = vld [vmem:[%s15551_s1 + $0x3f8] sm:$0xff] }
  0xb1   :  { %9654 = vmatprep.mubr.msk.f32.mxu0 %vm290_vm0, %v113_v29  ;;  %v157_v29 = vld [vmem:[%s15551_s1 + $0x400] sm:$0xff] }
  0xb4   :  { %9655 = vmatmul.mubr.msk.f32.gmra.mrb[84].mxu0 %vm290_vm0, %v114_v30 }
  0xb5   :  { %9657 = vmatprep.mubr.msk.f32.mxu0 %vm290_vm0, %v115_v31 }
  0xb8   :  { %9658 = vmatmul.mubr.msk.f32.gmra.mrb[86].mxu0 %vm290_vm0, %v116_v32  ;;  %v158_v32 = vld [vmem:[%s15551_s1 + $0x408] sm:$0xff] }
  0xb9   :  { %9660 = vmatprep.mubr.msk.f32.mxu0 %vm290_vm0, %v117_v33  ;;  %v159_v33 = vld [vmem:[%s15551_s1 + $0x410] sm:$0xff] }
  0xbc   :  { %9661 = vmatmul.mubr.msk.f32.gmra.mrb[88].mxu0 %vm290_vm0, %v118_v34 }
  0xbd   :  { %9663 = vmatprep.mubr.msk.f32.mxu0 %vm290_vm0, %v119_v35 }
  0xc0   :  { %9664 = vmatmul.mubr.msk.f32.gmra.mrb[90].mxu0 %vm290_vm0, %v120_v36  ;;  %v160_v36 = vld [vmem:[%s15551_s1 + $0x418] sm:$0xff] }
  0xc1   :  { %9666 = vmatprep.mubr.msk.f32.mxu0 %vm290_vm0, %v121_v37  ;;  %v161_v37 = vld [vmem:[%s15551_s1 + $0x420] sm:$0xff] }
  0xc4   :  { %9667 = vmatmul.mubr.msk.f32.gmra.mrb[92].mxu0 %vm290_vm0, %v122_v38 }
  0xc5   :  { %9669 = vmatprep.mubr.msk.f32.mxu0 %vm290_vm0, %v123_v39 }
  0xc8   :  { %9670 = vmatmul.mubr.msk.f32.gmra.mrb[94].mxu0 %vm290_vm0, %v124_v40  ;;  %v162_v40 = vld [vmem:[%s15551_s1 + $0x428] sm:$0xff] }
  0xc9   :  { %9672 = vmatprep.mubr.msk.f32.mxu0 %vm290_vm0, %v125_v41  ;;  %v163_v41 = vld [vmem:[%s15551_s1 + $0x430] sm:$0xff] }
  0xcc   :  { %9673 = vmatmul.mubr.msk.f32.gmra.mrb[96].mxu0 %vm290_vm0, %v126_v42 }
  0xcd   :  { %9675 = vmatprep.mubr.msk.f32.mxu0 %vm290_vm0, %v127_v43 }
  0xd0   :  { %9676 = vmatmul.mubr.msk.f32.gmra.mrb[98].mxu0 %vm290_vm0, %v128_v44  ;;  %v164_v44 = vld [vmem:[%s15551_s1 + $0x438] sm:$0xff] }
  0xd1   :  { %9678 = vmatprep.mubr.msk.f32.mxu0 %vm290_vm0, %v129_v45  ;;  %v165_v45 = vld [vmem:[%s15551_s1 + $0x440] sm:$0xff] }
  0xd4   :  { %9679 = vmatmul.mubr.msk.f32.gmra.mrb[100].mxu0 %vm290_vm0, %v130_v46 }
  0xd5   :  { %9681 = vmatprep.mubr.msk.f32.mxu0 %vm290_vm0, %v131_v47 }
  0xd8   :  { %9682 = vmatmul.mubr.msk.f32.gmra.mrb[102].mxu0 %vm290_vm0, %v132_v48  ;;  %v166_v48 = vld [vmem:[%s15551_s1 + $0x448] sm:$0xff] }
  0xd9   :  { %9684 = vmatprep.mubr.msk.f32.mxu0 %vm290_vm0, %v133_v49  ;;  %v167_v49 = vld [vmem:[%s15551_s1 + $0x450] sm:$0xff] }
  0xdc   :  { %9685 = vmatmul.mubr.msk.f32.gmra.mrb[104].mxu0 %vm290_vm0, %v134_v50 }
  0xdd   :  { %9687 = vmatprep.mubr.msk.f32.mxu0 %vm290_vm0, %v135_v51 }
  0xdf   :  { %v11177_v54 = vpop.f32.mrb[0].mxu0 }
  0xe0   :  { %v11179_v55 = vpop.f32.mrb[1].mxu0  ;;  %9688 = vmatmul.mubr.msk.f32.gmra.mrb[106].mxu0 %vm290_vm0, %v136_v52  ;;  %v168_v52 = vld [vmem:[%s15551_s1 + $0x458] sm:$0xff] }
  0xe1   :  { %9690 = vmatprep.mubr.msk.f32.mxu0 %vm290_vm0, %v137_v53  ;;  %v169_v53 = vld [vmem:[%s15551_s1 + $0x460] sm:$0xff] }
  0xe3   :  { %v11189_v58 = vpop.f32.mrb[2].mxu0 }
  0xe4   :  { %v11191_v59 = vpop.f32.mrb[3].mxu0  ;;  %9691 = vmatmul.mubr.msk.f32.gmra.mrb[108].mxu0 %vm290_vm0, %v138_v56 }
  0xe5   :  { %9693 = vmatprep.mubr.msk.f32.mxu0 %vm290_vm0, %v139_v57 }
  0xe7   :  { %v11201_v62 = vpop.f32.mrb[4].mxu0 }
  0xe8   :  { %v11203_v63 = vpop.f32.mrb[5].mxu0  ;;  %9694 = vmatmul.mubr.msk.f32.gmra.mrb[110].mxu0 %vm290_vm0, %v140_v60  ;;  %v170_v60 = vld [vmem:[%s15551_s1 + $0x468] sm:$0xff] }
  0xe9   :  { %9696 = vmatprep.mubr.msk.f32.mxu0 %vm290_vm0, %v141_v61  ;;  %v171_v61 = vld [vmem:[%s15551_s1 + $0x470] sm:$0xff] }
  0xeb   :  { %v11213_v2 = vpop.f32.mrb[6].mxu0 }
  0xec   :  { %v11215_v3 = vpop.f32.mrb[7].mxu0  ;;  %9697 = vmatmul.mubr.msk.f32.gmra.mrb[112].mxu0 %vm290_vm0, %v142_v0 }
  0xed   :  { %9699 = vmatprep.mubr.msk.f32.mxu0 %vm290_vm0, %v143_v1 }
  0xef   :  { %v11225_v6 = vpop.f32.mrb[8].mxu0 }
  0xf0   :  { %v11227_v7 = vpop.f32.mrb[9].mxu0  ;;  %9700 = vmatmul.mubr.msk.f32.gmra.mrb[114].mxu0 %vm290_vm0, %v144_v4  ;;  %v172_v4 = vld [vmem:[%s15551_s1 + $0x478] sm:$0xff] }
  0xf1   :  { %9702 = vmatprep.mubr.msk.f32.mxu0 %vm290_vm0, %v145_v5  ;;  %v173_v5 = vld [vmem:[%s15551_s1 + $0x480] sm:$0xff] }
  0xf3   :  { %v11237_v10 = vpop.f32.mrb[10].mxu0 }
  0xf4   :  { %v11239_v11 = vpop.f32.mrb[11].mxu0  ;;  %9703 = vmatmul.mubr.msk.f32.gmra.mrb[116].mxu0 %vm290_vm0, %v146_v8 }
  0xf5   :  { %9705 = vmatprep.mubr.msk.f32.mxu0 %vm290_vm0, %v147_v9 }
  0xf7   :  { %v11249_v14 = vpop.f32.mrb[12].mxu0 }
  0xf8   :  { %v11251_v15 = vpop.f32.mrb[13].mxu0  ;;  %9706 = vmatmul.mubr.msk.f32.gmra.mrb[118].mxu0 %vm290_vm0, %v148_v12  ;;  %v174_v12 = vld [vmem:[%s15551_s1 + $0x488] sm:$0xff] }
  0xf9   :  { %9708 = vmatprep.mubr.msk.f32.mxu0 %vm290_vm0, %v149_v13  ;;  %v175_v13 = vld [vmem:[%s15551_s1 + $0x490] sm:$0xff] }
  0xfb   :  { %v11261_v18 = vpop.f32.mrb[14].mxu0 }
  0xfc   :  { %v11263_v19 = vpop.f32.mrb[15].mxu0  ;;  %9709 = vmatmul.mubr.msk.f32.gmra.mrb[120].mxu0 %vm290_vm0, %v150_v16 }
  0xfd   :  { %9711 = vmatprep.mubr.msk.f32.mxu0 %vm290_vm0, %v151_v17 }
  0xff   :  { %v11273_v22 = vpop.f32.mrb[16].mxu0 }
 0x100   :  { %v11275_v23 = vpop.f32.mrb[17].mxu0  ;;  %9712 = vmatmul.mubr.msk.f32.gmra.mrb[122].mxu0 %vm290_vm0, %v152_v20  ;;  %v176_v20 = vld [vmem:[%s15551_s1 + $0x498] sm:$0xff] }
 0x101   :  { %9714 = vmatprep.mubr.msk.f32.mxu0 %vm290_vm0, %v153_v21  ;;  %v177_v21 = vld [vmem:[%s15551_s1 + $0x4a0] sm:$0xff] }
 0x103   :  { %v11285_v26 = vpop.f32.mrb[18].mxu0 }
 0x104   :  { %v11287_v27 = vpop.f32.mrb[19].mxu0  ;;  %9715 = vmatmul.mubr.msk.f32.gmra.mrb[124].mxu0 %vm290_vm0, %v154_v24 }
 0x105   :  { %9717 = vmatprep.mubr.msk.f32.mxu0 %vm290_vm0, %v155_v25 }
 0x107   :  { %v11297_v30 = vpop.f32.mrb[20].mxu0 }
 0x108   :  { %v11299_v31 = vpop.f32.mrb[21].mxu0  ;;  %9718 = vmatmul.mubr.msk.f32.gmra.mrb[126].mxu0 %vm290_vm0, %v156_v28  ;;  %v178_v28 = vld [vmem:[%s15551_s1 + $0x4a8] sm:$0xff] }
 0x109   :  { %9720 = vmatprep.mubr.msk.f32.mxu0 %vm290_vm0, %v157_v29  ;;  %v179_v29 = vld [vmem:[%s15551_s1 + $0x4b0] sm:$0xff] }
 0x10b   :  { %v11309_v34 = vpop.f32.mrb[22].mxu0 }
 0x10c   :  { %v11311_v35 = vpop.f32.mrb[23].mxu0  ;;  %9721 = vmatmul.mubr.msk.f32.gmra.mrb[128].mxu0 %vm290_vm0, %v158_v32 }
 0x10d   :  { %9723 = vmatprep.mubr.msk.f32.mxu0 %vm290_vm0, %v159_v33 }
 0x10f   :  { %v11321_v38 = vpop.f32.mrb[24].mxu0 }
 0x110   :  { %v11323_v39 = vpop.f32.mrb[25].mxu0  ;;  %9724 = vmatmul.mubr.msk.f32.gmra.mrb[130].mxu0 %vm290_vm0, %v160_v36  ;;  %v180_v36 = vld [vmem:[%s15551_s1 + $0x4b8] sm:$0xff] }
 0x111   :  { %9726 = vmatprep.mubr.msk.f32.mxu0 %vm290_vm0, %v161_v37  ;;  %v181_v37 = vld [vmem:[%s15551_s1 + $0x4c0] sm:$0xff] }
 0x113   :  { %v11333_v42 = vpop.f32.mrb[26].mxu0 }
 0x114   :  { %v11335_v43 = vpop.f32.mrb[27].mxu0  ;;  %9727 = vmatmul.mubr.msk.f32.gmra.mrb[132].mxu0 %vm290_vm0, %v162_v40 }
 0x115   :  { %9729 = vmatprep.mubr.msk.f32.mxu0 %vm290_vm0, %v163_v41 }
 0x117   :  { %v11345_v46 = vpop.f32.mrb[28].mxu0 }
 0x118   :  { %v11347_v47 = vpop.f32.mrb[29].mxu0  ;;  %9730 = vmatmul.mubr.msk.f32.gmra.mrb[134].mxu0 %vm290_vm0, %v164_v44  ;;  %v182_v44 = vld [vmem:[%s15551_s1 + $0x4c8] sm:$0xff] }
 0x119   :  { %9732 = vmatprep.mubr.msk.f32.mxu0 %vm290_vm0, %v165_v45  ;;  %v183_v45 = vld [vmem:[%s15551_s1 + $0x4d0] sm:$0xff] }
 0x11b   :  { %v11357_v50 = vpop.f32.mrb[30].mxu0 }
 0x11c   :  { %v11359_v51 = vpop.f32.mrb[31].mxu0  ;;  %9733 = vmatmul.mubr.msk.f32.gmra.mrb[136].mxu0 %vm290_vm0, %v166_v48 }
 0x11d   :  { %9735 = vmatprep.mubr.msk.f32.mxu0 %vm290_vm0, %v167_v49 }
 0x11f   :  { %v11369_v56 = vpop.f32.mrb[32].mxu0 }
 0x120   :  { %v11371_v57 = vpop.f32.mrb[33].mxu0  ;;  %9736 = vmatmul.mubr.msk.f32.gmra.mrb[138].mxu0 %vm290_vm0, %v168_v52  ;;  %v184_v52 = vld [vmem:[%s15551_s1 + $0x4d8] sm:$0xff] }
 0x121   :  { %9738 = vmatprep.mubr.msk.f32.mxu0 %vm290_vm0, %v169_v53  ;;  %v185_v53 = vld [vmem:[%s15551_s1 + $0x4e0] sm:$0xff] }
 0x123   :  { %v11381_v0 = vpop.f32.mrb[34].mxu0 }
 0x124   :  { %v11383_v1 = vpop.f32.mrb[35].mxu0  ;;  %9739 = vmatmul.mubr.msk.f32.gmra.mrb[140].mxu0 %vm290_vm0, %v170_v60 }
 0x125   :  { %9741 = vmatprep.mubr.msk.f32.mxu0 %vm290_vm0, %v171_v61 }
 0x127   :  { %v11393_v8 = vpop.f32.mrb[36].mxu0 }
 0x128   :  { %v11395_v9 = vpop.f32.mrb[37].mxu0  ;;  %9742 = vmatmul.mubr.msk.f32.gmra.mrb[142].mxu0 %vm290_vm0, %v172_v4  ;;  %v186_v4 = vld [vmem:[%s15551_s1 + $0x4e8] sm:$0xff] }
 0x129   :  { %9744 = vmatprep.mubr.msk.f32.mxu0 %vm290_vm0, %v173_v5  ;;  %v187_v5 = vld [vmem:[%s15551_s1 + $0x4f0] sm:$0xff] }
 0x12b   :  { %v11405_v16 = vpop.f32.mrb[38].mxu0 }
 0x12c   :  { %v11407_v17 = vpop.f32.mrb[39].mxu0  ;;  %9745 = vmatmul.mubr.msk.f32.gmra.mrb[144].mxu0 %vm290_vm0, %v174_v12 }
 0x12d   :  { %9747 = vmatprep.mubr.msk.f32.mxu0 %vm290_vm0, %v175_v13 }
 0x12f   :  { %v11417_v24 = vpop.f32.mrb[40].mxu0 }
 0x130   :  { %v11419_v25 = vpop.f32.mrb[41].mxu0  ;;  %9748 = vmatmul.mubr.msk.f32.gmra.mrb[146].mxu0 %vm290_vm0, %v176_v20  ;;  %v188_v20 = vld [vmem:[%s15551_s1 + $0x4f8] sm:$0xff] }
 0x131   :  { %9750 = vmatprep.mubr.msk.f32.mxu0 %vm290_vm0, %v177_v21  ;;  %v189_v21 = vld [vmem:[%s15551_s1 + $0x500] sm:$0xff] }
 0x133   :  { %v11429_v32 = vpop.f32.mrb[42].mxu0 }
 0x134   :  { %v11431_v33 = vpop.f32.mrb[43].mxu0  ;;  %9751 = vmatmul.mubr.msk.f32.gmra.mrb[148].mxu0 %vm290_vm0, %v178_v28 }
 0x135   :  { %9753 = vmatprep.mubr.msk.f32.mxu0 %vm290_vm0, %v179_v29 }
 0x137   :  { %v11441_v40 = vpop.f32.mrb[44].mxu0 }
 0x138   :  { %v11443_v41 = vpop.f32.mrb[45].mxu0  ;;  %9754 = vmatmul.mubr.msk.f32.gmra.mrb[150].mxu0 %vm290_vm0, %v180_v36  ;;  %v190_v36 = vld [vmem:[%s15551_s1 + $0x508] sm:$0xff] }
 0x139   :  { %9756 = vmatprep.mubr.msk.f32.mxu0 %vm290_vm0, %v181_v37  ;;  %v191_v37 = vld [vmem:[%s15551_s1 + $0x510] sm:$0xff] }
 0x13b   :  { %v11453_v48 = vpop.f32.mrb[46].mxu0 }
 0x13c   :  { %v11455_v49 = vpop.f32.mrb[47].mxu0  ;;  %9757 = vmatmul.mubr.msk.f32.gmra.mrb[152].mxu0 %vm290_vm0, %v182_v44 }
 0x13d   :  { %9759 = vmatprep.mubr.msk.f32.mxu0 %vm290_vm0, %v183_v45 }
 0x13f   :  { %v11465_v60 = vpop.f32.mrb[48].mxu0 }
 0x140   :  { %v11467_v61 = vpop.f32.mrb[49].mxu0  ;;  %9760 = vmatmul.mubr.msk.f32.gmra.mrb[154].mxu0 %vm290_vm0, %v184_v52  ;;  %v192_v52 = vld [vmem:[%s15551_s1 + $0x518] sm:$0xff] }
 0x141   :  { %9762 = vmatprep.mubr.msk.f32.mxu0 %vm290_vm0, %v185_v53  ;;  %v193_v53 = vld [vmem:[%s15551_s1 + $0x520] sm:$0xff] }
 0x143   :  { %v11477_v12 = vpop.f32.mrb[50].mxu0 }
 0x144   :  { %15559 = vst [vmem:[#allocation2_spill] sm:$0xff] %v11477_v12  ;;  %v11479_v13 = vpop.f32.mrb[51].mxu0  ;;  %9763 = vmatmul.mubr.msk.f32.gmra.mrb[156].mxu0 %vm290_vm0, %v186_v4 }
 0x145   :  { %15560 = vst [vmem:[#allocation3_spill] sm:$0xff] %v11479_v13  ;;  %9765 = vmatprep.mubr.msk.f32.mxu0 %vm290_vm0, %v187_v5 }
 0x147   :  { %v11489_v28 = vpop.f32.mrb[52].mxu0 }
 0x148   :  { %15561 = vst [vmem:[#allocation4_spill] sm:$0xff] %v11489_v28  ;;  %v11491_v29 = vpop.f32.mrb[53].mxu0  ;;  %9766 = vmatmul.mubr.msk.f32.gmra.mrb[158].mxu0 %vm290_vm0, %v188_v20  ;;  %v194_v20 = vld [vmem:[%s15551_s1 + $0x528] sm:$0xff] }
 0x149   :  { %15562 = vst [vmem:[#allocation5_spill] sm:$0xff] %v11491_v29  ;;  %9768 = vmatprep.mubr.msk.f32.mxu0 %vm290_vm0, %v189_v21  ;;  %v195_v21 = vld [vmem:[%s15551_s1 + $0x530] sm:$0xff] }
 0x14b   :  { %v11501_v44 = vpop.f32.mrb[54].mxu0 }
 0x14c   :  { %15563 = vst [vmem:[#allocation6_spill] sm:$0xff] %v11501_v44  ;;  %v11503_v45 = vpop.f32.mrb[55].mxu0  ;;  %9769 = vmatmul.mubr.msk.f32.gmra.mrb[160].mxu0 %vm290_vm0, %v190_v36 }
 0x14d   :  { %15564 = vst [vmem:[#allocation7_spill] sm:$0xff] %v11503_v45  ;;  %9771 = vmatprep.mubr.msk.f32.mxu0 %vm290_vm0, %v191_v37  ;;  %v263_v45 = vld [vmem:[%s15551_s1 + $0x750] sm:$0xff] }
 0x14f   :  { %v11513_v4 = vpop.f32.mrb[56].mxu0 }
 0x150   :  { %15565 = vst [vmem:[#allocation8_spill] sm:$0xff] %v11513_v4  ;;  %v11515_v5 = vpop.f32.mrb[57].mxu0  ;;  %9772 = vmatmul.mubr.msk.f32.gmra.mrb[162].mxu0 %vm290_vm0, %v192_v52  ;;  %v196_v52 = vld [vmem:[%s15551_s1 + $0x538] sm:$0xff] }
 0x151   :  { %15566 = vst [vmem:[#allocation9_spill] sm:$0xff] %v11515_v5  ;;  %9774 = vmatprep.mubr.msk.f32.mxu0 %vm290_vm0, %v193_v53  ;;  %v197_v53 = vld [vmem:[%s15551_s1 + $0x540] sm:$0xff] }
 0x153   :  { %v11525_v36 = vpop.f32.mrb[58].mxu0 }
 0x154   :  { %15567 = vst [vmem:[#allocation10_spill] sm:$0xff] %v11525_v36  ;;  %v11527_v37 = vpop.f32.mrb[59].mxu0  ;;  %9775 = vmatmul.mubr.msk.f32.gmra.mrb[164].mxu0 %vm290_vm0, %v194_v20  ;;  %v198_v20 = vld [vmem:[%s15551_s1 + $0x548] sm:$0xff] }
 0x155   :  { %15568 = vst [vmem:[#allocation11_spill] sm:$0xff] %v11527_v37  ;;  %9777 = vmatprep.mubr.msk.f32.mxu0 %vm290_vm0, %v195_v21  ;;  %v199_v21 = vld [vmem:[%s15551_s1 + $0x550] sm:$0xff] }
 0x157   :  { %v11537_v4 = vpop.f32.mrb[60].mxu0 }
 0x158   :  { %15569 = vst [vmem:[#allocation12_spill] sm:$0xff] %v11537_v4  ;;  %v11539_v5 = vpop.f32.mrb[61].mxu0  ;;  %9778 = vmatmul.mubr.msk.f32.gmra.mrb[166].mxu0 %vm290_vm0, %v196_v52  ;;  %v200_v52 = vld [vmem:[%s15551_s1 + $0x558] sm:$0xff] }
 0x159   :  { %15570 = vst [vmem:[#allocation13_spill] sm:$0xff] %v11539_v5  ;;  %9780 = vmatprep.mubr.msk.f32.mxu0 %vm290_vm0, %v197_v53  ;;  %v201_v53 = vld [vmem:[%s15551_s1 + $0x560] sm:$0xff] }
 0x15b   :  { %v11549_v36 = vpop.f32.mrb[62].mxu0 }
 0x15c   :  { %15571 = vst [vmem:[#allocation14_spill] sm:$0xff] %v11549_v36  ;;  %v11551_v37 = vpop.f32.mrb[63].mxu0  ;;  %9781 = vmatmul.mubr.msk.f32.gmra.mrb[168].mxu0 %vm290_vm0, %v198_v20  ;;  %v11569_v20 = vld [vmem:[%s15553_s6] sm:$0xff] }
 0x15d   :  { %15572 = vst [vmem:[#allocation15_spill] sm:$0xff] %v11551_v37  ;;  %9783 = vmatprep.mubr.msk.f32.mxu0 %vm290_vm0, %v199_v21  ;;  %v202_v21 = vld [vmem:[%s15551_s1 + $0x568] sm:$0xff]  ;;  %10282 = vmatprep.subr.mxu1 %v11569_v20  ;;  %v205_v36 = vld [vmem:[%s15551_s1 + $0x580] sm:$0xff] }
 0x15f   :  { %v11561_v4 = vpop.f32.mrb[64].mxu0 }
 0x160   :  { %15573 = vst [vmem:[#allocation16_spill] sm:$0xff] %v11561_v4  ;;  %v11563_v5 = vpop.f32.mrb[65].mxu0  ;;  %9784 = vmatmul.mubr.msk.f32.gmra.mrb[170].mxu0 %vm290_vm0, %v200_v52  ;;  %v203_v4 = vld [vmem:[%s15551_s1 + $0x570] sm:$0xff] }
 0x161   :  { %15574 = vst [vmem:[#allocation17_spill] sm:$0xff] %v11563_v5  ;;  %9786 = vmatprep.mubr.msk.f32.mxu0 %vm290_vm0, %v201_v53  ;;  %v204_v53 = vld [vmem:[%s15551_s1 + $0x578] sm:$0xff] }
 0x163   :  { %v11579_v5 = vpop.f32.mrb[66].mxu0 }
 0x164   :  { %15575 = vst [vmem:[#allocation18_spill] sm:$0xff] %v11579_v5  ;;  %v11581_v52 = vpop.f32.mrb[67].mxu0  ;;  %9787 = vmatmul.mubr.msk.f32.gmra.mrb[172].mxu0 %vm290_vm0, %v202_v21  ;;  %v207_v21 = vld [vmem:[%s15551_s1 + $0x590] sm:$0xff] }
 0x165   :  { %15576 = vst [vmem:[#allocation19_spill] sm:$0xff] %v11581_v52  ;;  %9789 = vmatprep.mubr.msk.f32.mxu0 %vm290_vm0, %v203_v4  ;;  %v206_v4 = vld [vmem:[%s15551_s1 + $0x588] sm:$0xff] }
 0x167   :  { %v11591_v37 = vpop.f32.mrb[68].mxu0 }
 0x168   :  { %15577 = vst [vmem:[#allocation20_spill] sm:$0xff] %v11591_v37  ;;  %v11593_v44 = vpop.f32.mrb[69].mxu0  ;;  %9790 = vmatmul.mubr.msk.f32.gmra.mrb[174].mxu0 %vm290_vm0, %v204_v53  ;;  %v209_v53 = vld [vmem:[%s15551_s1 + $0x5a0] sm:$0xff] }
 0x169   :  { %15578 = vst [vmem:[#allocation21_spill] sm:$0xff] %v11593_v44  ;;  %9792 = vmatprep.mubr.msk.f32.mxu0 %vm290_vm0, %v205_v36  ;;  %v208_v36 = vld [vmem:[%s15551_s1 + $0x598] sm:$0xff] }
 0x16b   :  { %v11603_v5 = vpop.f32.mrb[70].mxu0 }
 0x16c   :  { %15579 = vst [vmem:[#allocation22_spill] sm:$0xff] %v11603_v5  ;;  %v11605_v52 = vpop.f32.mrb[71].mxu0  ;;  %9793 = vmatmul.mubr.msk.f32.gmra.mrb[176].mxu0 %vm290_vm0, %v206_v4  ;;  %v210_v4 = vld [vmem:[%s15551_s1 + $0x5a8] sm:$0xff] }
 0x16d   :  { %15580 = vst [vmem:[#allocation23_spill] sm:$0xff] %v11605_v52  ;;  %9795 = vmatprep.mubr.msk.f32.mxu0 %vm290_vm0, %v207_v21  ;;  %v211_v21 = vld [vmem:[%s15551_s1 + $0x5b0] sm:$0xff] }
 0x16f   :  { %v11615_v37 = vpop.f32.mrb[72].mxu0 }
 0x170   :  { %15581 = vst [vmem:[#allocation24_spill] sm:$0xff] %v11615_v37  ;;  %v11617_v44 = vpop.f32.mrb[73].mxu0  ;;  %9796 = vmatmul.mubr.msk.f32.gmra.mrb[178].mxu0 %vm290_vm0, %v208_v36  ;;  %v212_v36 = vld [vmem:[%s15551_s1 + $0x5b8] sm:$0xff] }
 0x171   :  { %15582 = vst [vmem:[#allocation25_spill] sm:$0xff] %v11617_v44  ;;  %9798 = vmatprep.mubr.msk.f32.mxu0 %vm290_vm0, %v209_v53  ;;  %v213_v53 = vld [vmem:[%s15551_s1 + $0x5c0] sm:$0xff] }
 0x173   :  { %v11627_v5 = vpop.f32.mrb[74].mxu0 }
 0x174   :  { %15583 = vst [vmem:[#allocation26_spill] sm:$0xff] %v11627_v5  ;;  %v11629_v52 = vpop.f32.mrb[75].mxu0  ;;  %9799 = vmatmul.mubr.msk.f32.gmra.mrb[180].mxu0 %vm290_vm0, %v210_v4  ;;  %v214_v4 = vld [vmem:[%s15551_s1 + $0x5c8] sm:$0xff] }
 0x175   :  { %15584 = vst [vmem:[#allocation27_spill] sm:$0xff] %v11629_v52  ;;  %9801 = vmatprep.mubr.msk.f32.mxu0 %vm290_vm0, %v211_v21  ;;  %v215_v21 = vld [vmem:[%s15551_s1 + $0x5d0] sm:$0xff] }
 0x177   :  { %v11639_v37 = vpop.f32.mrb[76].mxu0 }
 0x178   :  { %15585 = vst [vmem:[#allocation28_spill] sm:$0xff] %v11639_v37  ;;  %v11641_v44 = vpop.f32.mrb[77].mxu0  ;;  %9802 = vmatmul.mubr.msk.f32.gmra.mrb[182].mxu0 %vm290_vm0, %v212_v36  ;;  %v216_v36 = vld [vmem:[%s15551_s1 + $0x5d8] sm:$0xff] }
 0x179   :  { %15586 = vst [vmem:[#allocation29_spill] sm:$0xff] %v11641_v44  ;;  %9804 = vmatprep.mubr.msk.f32.mxu0 %vm290_vm0, %v213_v53  ;;  %v217_v53 = vld [vmem:[%s15551_s1 + $0x5e0] sm:$0xff] }
 0x17b   :  { %v11651_v5 = vpop.f32.mrb[78].mxu0 }
 0x17c   :  { %15587 = vst [vmem:[#allocation30_spill] sm:$0xff] %v11651_v5  ;;  %v11653_v52 = vpop.f32.mrb[79].mxu0  ;;  %9805 = vmatmul.mubr.msk.f32.gmra.mrb[184].mxu0 %vm290_vm0, %v214_v4  ;;  %v218_v4 = vld [vmem:[%s15551_s1 + $0x5e8] sm:$0xff] }
 0x17d   :  { %15588 = vst [vmem:[#allocation31_spill] sm:$0xff] %v11653_v52  ;;  %9807 = vmatprep.mubr.msk.f32.mxu0 %vm290_vm0, %v215_v21  ;;  %v219_v21 = vld [vmem:[%s15551_s1 + $0x5f0] sm:$0xff] }
 0x17f   :  { %v11663_v37 = vpop.f32.mrb[80].mxu0 }
 0x180   :  { %15589 = vst [vmem:[#allocation32_spill] sm:$0xff] %v11663_v37  ;;  %v11665_v44 = vpop.f32.mrb[81].mxu0  ;;  %9808 = vmatmul.mubr.msk.f32.gmra.mrb[186].mxu0 %vm290_vm0, %v216_v36  ;;  %v220_v36 = vld [vmem:[%s15551_s1 + $0x5f8] sm:$0xff] }
 0x181   :  { %15590 = vst [vmem:[#allocation33_spill] sm:$0xff] %v11665_v44  ;;  %9810 = vmatprep.mubr.msk.f32.mxu0 %vm290_vm0, %v217_v53  ;;  %v221_v53 = vld [vmem:[%s15551_s1 + $0x600] sm:$0xff] }
 0x183   :  { %v11675_v5 = vpop.f32.mrb[82].mxu0 }
 0x184   :  { %15591 = vst [vmem:[#allocation34_spill] sm:$0xff] %v11675_v5  ;;  %v11677_v52 = vpop.f32.mrb[83].mxu0  ;;  %9811 = vmatmul.mubr.msk.f32.gmra.mrb[188].mxu0 %vm290_vm0, %v218_v4  ;;  %v222_v4 = vld [vmem:[%s15551_s1 + $0x608] sm:$0xff] }
 0x185   :  { %15592 = vst [vmem:[#allocation35_spill] sm:$0xff] %v11677_v52  ;;  %9813 = vmatprep.mubr.msk.f32.mxu0 %vm290_vm0, %v219_v21  ;;  %v223_v21 = vld [vmem:[%s15551_s1 + $0x610] sm:$0xff] }
 0x187   :  { %v11687_v37 = vpop.f32.mrb[84].mxu0 }
 0x188   :  { %15593 = vst [vmem:[#allocation36_spill] sm:$0xff] %v11687_v37  ;;  %v11689_v44 = vpop.f32.mrb[85].mxu0  ;;  %9814 = vmatmul.mubr.msk.f32.gmra.mrb[190].mxu0 %vm290_vm0, %v220_v36  ;;  %v224_v36 = vld [vmem:[%s15551_s1 + $0x618] sm:$0xff] }
 0x189   :  { %15594 = vst [vmem:[#allocation37_spill] sm:$0xff] %v11689_v44  ;;  %9816 = vmatprep.mubr.msk.f32.mxu0 %vm290_vm0, %v221_v53  ;;  %v225_v53 = vld [vmem:[%s15551_s1 + $0x620] sm:$0xff] }
 0x18b   :  { %v11699_v5 = vpop.f32.mrb[86].mxu0 }
 0x18c   :  { %15595 = vst [vmem:[#allocation38_spill] sm:$0xff] %v11699_v5  ;;  %v11701_v52 = vpop.f32.mrb[87].mxu0  ;;  %9817 = vmatmul.mubr.msk.f32.gmra.mrb[192].mxu0 %vm290_vm0, %v222_v4  ;;  %v226_v4 = vld [vmem:[%s15551_s1 + $0x628] sm:$0xff] }
 0x18d   :  { %15596 = vst [vmem:[#allocation39_spill] sm:$0xff] %v11701_v52  ;;  %9819 = vmatprep.mubr.msk.f32.mxu0 %vm290_vm0, %v223_v21  ;;  %v227_v21 = vld [vmem:[%s15551_s1 + $0x630] sm:$0xff] }
 0x18f   :  { %v11711_v37 = vpop.f32.mrb[88].mxu0 }
 0x190   :  { %15597 = vst [vmem:[#allocation40_spill] sm:$0xff] %v11711_v37  ;;  %v11713_v44 = vpop.f32.mrb[89].mxu0  ;;  %9820 = vmatmul.mubr.msk.f32.gmra.mrb[194].mxu0 %vm290_vm0, %v224_v36  ;;  %v228_v36 = vld [vmem:[%s15551_s1 + $0x638] sm:$0xff] }
 0x191   :  { %15598 = vst [vmem:[#allocation41_spill] sm:$0xff] %v11713_v44  ;;  %9822 = vmatprep.mubr.msk.f32.mxu0 %vm290_vm0, %v225_v53  ;;  %v229_v53 = vld [vmem:[%s15551_s1 + $0x640] sm:$0xff] }
 0x193   :  { %v11723_v5 = vpop.f32.mrb[90].mxu0 }
 0x194   :  { %15599 = vst [vmem:[#allocation42_spill] sm:$0xff] %v11723_v5  ;;  %v11725_v52 = vpop.f32.mrb[91].mxu0  ;;  %9823 = vmatmul.mubr.msk.f32.gmra.mrb[196].mxu0 %vm290_vm0, %v226_v4  ;;  %v230_v4 = vld [vmem:[%s15551_s1 + $0x648] sm:$0xff] }
 0x195   :  { %15600 = vst [vmem:[#allocation43_spill] sm:$0xff] %v11725_v52  ;;  %9825 = vmatprep.mubr.msk.f32.mxu0 %vm290_vm0, %v227_v21  ;;  %v231_v21 = vld [vmem:[%s15551_s1 + $0x650] sm:$0xff] }
 0x197   :  { %v11735_v37 = vpop.f32.mrb[92].mxu0 }
 0x198   :  { %15601 = vst [vmem:[#allocation44_spill] sm:$0xff] %v11735_v37  ;;  %v11737_v44 = vpop.f32.mrb[93].mxu0  ;;  %9826 = vmatmul.mubr.msk.f32.gmra.mrb[198].mxu0 %vm290_vm0, %v228_v36  ;;  %v232_v36 = vld [vmem:[%s15551_s1 + $0x658] sm:$0xff] }
 0x199   :  { %15602 = vst [vmem:[#allocation45_spill] sm:$0xff] %v11737_v44  ;;  %9828 = vmatprep.mubr.msk.f32.mxu0 %vm290_vm0, %v229_v53  ;;  %v233_v53 = vld [vmem:[%s15551_s1 + $0x660] sm:$0xff] }
 0x19b   :  { %v11747_v5 = vpop.f32.mrb[94].mxu0 }
 0x19c   :  { %15603 = vst [vmem:[#allocation46_spill] sm:$0xff] %v11747_v5  ;;  %v11749_v52 = vpop.f32.mrb[95].mxu0  ;;  %9829 = vmatmul.mubr.msk.f32.gmra.mrb[200].mxu0 %vm290_vm0, %v230_v4  ;;  %v234_v4 = vld [vmem:[%s15551_s1 + $0x668] sm:$0xff] }
 0x19d   :  { %15604 = vst [vmem:[#allocation47_spill] sm:$0xff] %v11749_v52  ;;  %9831 = vmatprep.mubr.msk.f32.mxu0 %vm290_vm0, %v231_v21  ;;  %v235_v21 = vld [vmem:[%s15551_s1 + $0x670] sm:$0xff] }
 0x19f   :  { %v11759_v37 = vpop.f32.mrb[96].mxu0 }
 0x1a0   :  { %15605 = vst [vmem:[#allocation48_spill] sm:$0xff] %v11759_v37  ;;  %v11761_v44 = vpop.f32.mrb[97].mxu0  ;;  %9832 = vmatmul.mubr.msk.f32.gmra.mrb[202].mxu0 %vm290_vm0, %v232_v36  ;;  %v236_v36 = vld [vmem:[%s15551_s1 + $0x678] sm:$0xff] }
 0x1a1   :  { %15606 = vst [vmem:[#allocation49_spill] sm:$0xff] %v11761_v44  ;;  %9834 = vmatprep.mubr.msk.f32.mxu0 %vm290_vm0, %v233_v53  ;;  %v237_v53 = vld [vmem:[%s15551_s1 + $0x680] sm:$0xff] }
 0x1a3   :  { %v11771_v5 = vpop.f32.mrb[98].mxu0 }
 0x1a4   :  { %15607 = vst [vmem:[#allocation50_spill] sm:$0xff] %v11771_v5  ;;  %v11773_v52 = vpop.f32.mrb[99].mxu0  ;;  %9835 = vmatmul.mubr.msk.f32.gmra.mrb[204].mxu0 %vm290_vm0, %v234_v4  ;;  %v238_v4 = vld [vmem:[%s15551_s1 + $0x688] sm:$0xff] }
 0x1a5   :  { %15608 = vst [vmem:[#allocation51_spill] sm:$0xff] %v11773_v52  ;;  %9837 = vmatprep.mubr.msk.f32.mxu0 %vm290_vm0, %v235_v21  ;;  %v239_v21 = vld [vmem:[%s15551_s1 + $0x690] sm:$0xff] }
 0x1a7   :  { %v11783_v37 = vpop.f32.mrb[100].mxu0 }
 0x1a8   :  { %15609 = vst [vmem:[#allocation52_spill] sm:$0xff] %v11783_v37  ;;  %v11785_v44 = vpop.f32.mrb[101].mxu0  ;;  %9838 = vmatmul.mubr.msk.f32.gmra.mrb[206].mxu0 %vm290_vm0, %v236_v36  ;;  %v240_v36 = vld [vmem:[%s15551_s1 + $0x698] sm:$0xff] }
 0x1a9   :  { %15610 = vst [vmem:[#allocation53_spill] sm:$0xff] %v11785_v44  ;;  %9840 = vmatprep.mubr.msk.f32.mxu0 %vm290_vm0, %v237_v53  ;;  %v241_v53 = vld [vmem:[%s15551_s1 + $0x6a0] sm:$0xff] }
 0x1ab   :  { %v11795_v5 = vpop.f32.mrb[102].mxu0 }
 0x1ac   :  { %15611 = vst [vmem:[#allocation54_spill] sm:$0xff] %v11795_v5  ;;  %v11797_v52 = vpop.f32.mrb[103].mxu0  ;;  %9841 = vmatmul.mubr.msk.f32.gmra.mrb[208].mxu0 %vm290_vm0, %v238_v4  ;;  %v242_v4 = vld [vmem:[%s15551_s1 + $0x6a8] sm:$0xff] }
 0x1ad   :  { %15612 = vst [vmem:[#allocation55_spill] sm:$0xff] %v11797_v52  ;;  %9843 = vmatprep.mubr.msk.f32.mxu0 %vm290_vm0, %v239_v21  ;;  %v243_v21 = vld [vmem:[%s15551_s1 + $0x6b0] sm:$0xff] }
 0x1af   :  { %v11807_v37 = vpop.f32.mrb[104].mxu0 }
 0x1b0   :  { %15613 = vst [vmem:[#allocation56_spill] sm:$0xff] %v11807_v37  ;;  %v11809_v44 = vpop.f32.mrb[105].mxu0  ;;  %9844 = vmatmul.mubr.msk.f32.gmra.mrb[210].mxu0 %vm290_vm0, %v240_v36  ;;  %v244_v36 = vld [vmem:[%s15551_s1 + $0x6b8] sm:$0xff] }
 0x1b1   :  { %15614 = vst [vmem:[#allocation57_spill] sm:$0xff] %v11809_v44  ;;  %9846 = vmatprep.mubr.msk.f32.mxu0 %vm290_vm0, %v241_v53  ;;  %v245_v53 = vld [vmem:[%s15551_s1 + $0x6c0] sm:$0xff] }
 0x1b3   :  { %v11819_v5 = vpop.f32.mrb[106].mxu0 }
 0x1b4   :  { %15615 = vst [vmem:[#allocation58_spill] sm:$0xff] %v11819_v5  ;;  %v11821_v52 = vpop.f32.mrb[107].mxu0  ;;  %9847 = vmatmul.mubr.msk.f32.gmra.mrb[212].mxu0 %vm290_vm0, %v242_v4  ;;  %v246_v4 = vld [vmem:[%s15551_s1 + $0x6c8] sm:$0xff] }
 0x1b5   :  { %15616 = vst [vmem:[#allocation59_spill] sm:$0xff] %v11821_v52  ;;  %9849 = vmatprep.mubr.msk.f32.mxu0 %vm290_vm0, %v243_v21  ;;  %v247_v21 = vld [vmem:[%s15551_s1 + $0x6d0] sm:$0xff] }
 0x1b7   :  { %v11831_v37 = vpop.f32.mrb[108].mxu0 }
 0x1b8   :  { %15617 = vst [vmem:[#allocation60_spill] sm:$0xff] %v11831_v37  ;;  %v11833_v44 = vpop.f32.mrb[109].mxu0  ;;  %9850 = vmatmul.mubr.msk.f32.gmra.mrb[214].mxu0 %vm290_vm0, %v244_v36  ;;  %v248_v36 = vld [vmem:[%s15551_s1 + $0x6d8] sm:$0xff] }
 0x1b9   :  { %15618 = vst [vmem:[#allocation61_spill] sm:$0xff] %v11833_v44  ;;  %9852 = vmatprep.mubr.msk.f32.mxu0 %vm290_vm0, %v245_v53  ;;  %v249_v53 = vld [vmem:[%s15551_s1 + $0x6e0] sm:$0xff] }
 0x1bb   :  { %v11843_v5 = vpop.f32.mrb[110].mxu0 }
 0x1bc   :  { %15619 = vst [vmem:[#allocation62_spill] sm:$0xff] %v11843_v5  ;;  %v11845_v52 = vpop.f32.mrb[111].mxu0  ;;  %9853 = vmatmul.mubr.msk.f32.gmra.mrb[216].mxu0 %vm290_vm0, %v246_v4  ;;  %v250_v4 = vld [vmem:[%s15551_s1 + $0x6e8] sm:$0xff] }
 0x1bd   :  { %15620 = vst [vmem:[#allocation63_spill] sm:$0xff] %v11845_v52  ;;  %9855 = vmatprep.mubr.msk.f32.mxu0 %vm290_vm0, %v247_v21  ;;  %v251_v21 = vld [vmem:[%s15551_s1 + $0x6f0] sm:$0xff] }
 0x1bf   :  { %v11855_v37 = vpop.f32.mrb[112].mxu0 }
 0x1c0   :  { %15621 = vst [vmem:[#allocation64_spill] sm:$0xff] %v11855_v37  ;;  %v11857_v44 = vpop.f32.mrb[113].mxu0  ;;  %9856 = vmatmul.mubr.msk.f32.gmra.mrb[218].mxu0 %vm290_vm0, %v248_v36  ;;  %v252_v36 = vld [vmem:[%s15551_s1 + $0x6f8] sm:$0xff] }
 0x1c1   :  { %15622 = vst [vmem:[#allocation65_spill] sm:$0xff] %v11857_v44  ;;  %9858 = vmatprep.mubr.msk.f32.mxu0 %vm290_vm0, %v249_v53  ;;  %v253_v53 = vld [vmem:[%s15551_s1 + $0x700] sm:$0xff] }
 0x1c3   :  { %v11867_v5 = vpop.f32.mrb[114].mxu0 }
 0x1c4   :  { %15623 = vst [vmem:[#allocation66_spill] sm:$0xff] %v11867_v5  ;;  %v11869_v52 = vpop.f32.mrb[115].mxu0  ;;  %9859 = vmatmul.mubr.msk.f32.gmra.mrb[220].mxu0 %vm290_vm0, %v250_v4  ;;  %v254_v4 = vld [vmem:[%s15551_s1 + $0x708] sm:$0xff] }
 0x1c5   :  { %15624 = vst [vmem:[#allocation67_spill] sm:$0xff] %v11869_v52  ;;  %9861 = vmatprep.mubr.msk.f32.mxu0 %vm290_vm0, %v251_v21  ;;  %v255_v21 = vld [vmem:[%s15551_s1 + $0x710] sm:$0xff] }
 0x1c7   :  { %v11879_v37 = vpop.f32.mrb[116].mxu0 }
 0x1c8   :  { %15625 = vst [vmem:[#allocation68_spill] sm:$0xff] %v11879_v37  ;;  %v11881_v44 = vpop.f32.mrb[117].mxu0  ;;  %9862 = vmatmul.mubr.msk.f32.gmra.mrb[222].mxu0 %vm290_vm0, %v252_v36  ;;  %v256_v36 = vld [vmem:[%s15551_s1 + $0x718] sm:$0xff] }
 0x1c9   :  { %15626 = vst [vmem:[#allocation69_spill] sm:$0xff] %v11881_v44  ;;  %9864 = vmatprep.mubr.msk.f32.mxu0 %vm290_vm0, %v253_v53  ;;  %v257_v53 = vld [vmem:[%s15551_s1 + $0x720] sm:$0xff] }
 0x1cb   :  { %v11891_v5 = vpop.f32.mrb[118].mxu0 }
 0x1cc   :  { %15627 = vst [vmem:[#allocation70_spill] sm:$0xff] %v11891_v5  ;;  %v11893_v52 = vpop.f32.mrb[119].mxu0  ;;  %9865 = vmatmul.mubr.msk.f32.gmra.mrb[224].mxu0 %vm290_vm0, %v254_v4  ;;  %v258_v4 = vld [vmem:[%s15551_s1 + $0x728] sm:$0xff] }
 0x1cd   :  { %15628 = vst [vmem:[#allocation71_spill] sm:$0xff] %v11893_v52  ;;  %9867 = vmatprep.mubr.msk.f32.mxu0 %vm290_vm0, %v255_v21  ;;  %v259_v21 = vld [vmem:[%s15551_s1 + $0x730] sm:$0xff] }
 0x1cf   :  { %v11903_v37 = vpop.f32.mrb[120].mxu0 }
 0x1d0   :  { %15629 = vst [vmem:[#allocation72_spill] sm:$0xff] %v11903_v37  ;;  %v11905_v44 = vpop.f32.mrb[121].mxu0  ;;  %9868 = vmatmul.mubr.msk.f32.gmra.mrb[226].mxu0 %vm290_vm0, %v256_v36  ;;  %v260_v36 = vld [vmem:[%s15551_s1 + $0x738] sm:$0xff]  ;;  %v11930_v37 = vld [vmem:[%s15554_s3] ss:$0 sm:$0xff] }
 0x1d1   :  { %15630 = vst [vmem:[#allocation73_spill] sm:$0xff] %v11905_v44  ;;  %9870 = vmatprep.mubr.msk.f32.mxu0 %vm290_vm0, %v257_v53  ;;  %v261_v53 = vld [vmem:[%s15551_s1 + $0x740] sm:$0xff] }
 0x1d3   :  { %v11915_v5 = vpop.f32.mrb[122].mxu0 }
 0x1d4   :  { %15631 = vst [vmem:[#allocation74_spill] sm:$0xff] %v11915_v5  ;;  %v11917_v52 = vpop.f32.mrb[123].mxu0  ;;  %9871 = vmatmul.mubr.msk.f32.gmra.mrb[228].mxu0 %vm290_vm0, %v258_v4 }
 0x1d5   :  { %15632 = vst [vmem:[#allocation75_spill] sm:$0xff] %v11917_v52  ;;  %9873 = vmatprep.mubr.msk.f32.mxu0 %vm290_vm0, %v259_v21  ;;  %v262_v21 = vld [vmem:[%s15551_s1 + $0x748] sm:$0xff] }
 0x1d7   :  { %v9716_v5 = vpop.f32.mrb[124].mxu0 }
 0x1d8   :  { %v1733_v52 = vadd.f32 %v9716_v5, %v11930_v37  ;;  %v1727_v44 = vpop.f32.mrb[125].mxu0  ;;  %9874 = vmatmul.mubr.msk.f32.gmra.mrb[230].mxu0 %vm290_vm0, %v260_v36  ;;  %v264_v36 = vld [vmem:[%s15551_s1 + $0x758] sm:$0xff] }
 0x1d9   :  { %v1728_v4 = vadd.f32 %v11930_v37, %v1727_v44  ;;  %9876 = vmatprep.mubr.msk.f32.mxu0 %vm290_vm0, %v261_v53 }
 0x1da   :  { %v2481_v12 = vmax.f32 %v1733_v52, 0.0  ;;  %v265_v52 = vld [vmem:[%s15551_s1 + $0x760] sm:$0xff] }
 0x1db   :  { %v2480_v28 = vmax.f32 %v1728_v4, 0.0  ;;  %v9719_v29 = vpop.f32.mrb[126].mxu0 }
 0x1dc   :  { %v1743_v5 = vadd.f32 %v9719_v29, %v11930_v37  ;;  %v1737_v13 = vpop.f32.mrb[127].mxu0  ;;  %9877 = vmatmul.mubr.msk.f32.gmra.mrb[232].mxu0 %vm290_vm0, %v262_v21 }
 0x1dd   :  { %v1738_v44 = vadd.f32 %v11930_v37, %v1737_v13  ;;  %10093 = vmatprep.mubr.msk.f32.mxu1 %vm2615_vm1, %v2480_v28  ;;  %9879 = vmatprep.mubr.msk.f32.mxu0 %vm290_vm0, %v263_v45 }
 0x1de   :  { %10094 = vmatmul.mubr.msk.f32.vlgmr.msra.gmra.mrb[0].mxu1 %vm2615_vm1, %v2481_v12  ;;  %v2483_v4 = vmax.f32 %v1743_v5, 0.0  ;;  %v266_v12 = vld [vmem:[%s15551_s1 + $0x768] sm:$0xff] }
 0x1df   :  { %v2482_v29 = vmax.f32 %v1738_v44, 0.0  ;;  %v9722_v53 = vpop.f32.mrb[128].mxu0  ;;  %10283 = vmatpush3.msra.mxu1 %v11569_v20  ;;  %v267_v20 = vld [vmem:[%s15551_s1 + $0x770] sm:$0xff] }
 0x1e0   :  { %v1753_v13 = vadd.f32 %v9722_v53, %v11930_v37  ;;  %v1747_v28 = vpop.f32.mrb[129].mxu0  ;;  %9880 = vmatmul.mubr.msk.f32.gmra.mrb[234].mxu0 %vm290_vm0, %v264_v36 }
 0x1e1   :  { %v1748_v45 = vadd.f32 %v11930_v37, %v1747_v28  ;;  %10096 = vmatprep.mubr.msk.f32.mxu1 %vm2615_vm1, %v2482_v29  ;;  %9882 = vmatprep.mubr.msk.f32.mxu0 %vm290_vm0, %v265_v52  ;;  %v268_v29 = vld [vmem:[%s15551_s1 + $0x778] sm:$0xff] }
 0x1e2   :  { %10097 = vmatmul.mubr.msk.f32.gmra.mrb[2].mxu1 %vm2615_vm1, %v2483_v4  ;;  %v2485_v44 = vmax.f32 %v1753_v13, 0.0  ;;  %v269_v4 = vld [vmem:[%s15551_s1 + $0x780] sm:$0xff] }
 0x1e3   :  { %v2484_v21 = vmax.f32 %v1748_v45, 0.0  ;;  %v9725_v5 = vpop.f32.mrb[130].mxu0 }
 0x1e4   :  { %v1763_v36 = vadd.f32 %v9725_v5, %v11930_v37  ;;  %v1757_v53 = vpop.f32.mrb[131].mxu0  ;;  %9883 = vmatmul.mubr.msk.f32.gmra.mrb[236].mxu0 %vm290_vm0, %v266_v12 }
 0x1e5   :  { %v1758_v52 = vadd.f32 %v11930_v37, %v1757_v53  ;;  %10099 = vmatprep.mubr.msk.f32.mxu1 %vm2615_vm1, %v2484_v21  ;;  %9885 = vmatprep.mubr.msk.f32.mxu0 %vm290_vm0, %v267_v20  ;;  %v270_v21 = vld [vmem:[%s15551_s1 + $0x788] sm:$0xff] }
 0x1e6   :  { %10100 = vmatmul.mubr.msk.f32.gmra.mrb[4].mxu1 %vm2615_vm1, %v2485_v44  ;;  %v2487_v45 = vmax.f32 %v1763_v36, 0.0  ;;  %v271_v44 = vld [vmem:[%s15551_s1 + $0x790] sm:$0xff] }
 0x1e7   :  { %v2486_v13 = vmax.f32 %v1758_v52, 0.0  ;;  %v9728_v28 = vpop.f32.mrb[132].mxu0 }
 0x1e8   :  { %v1773_v12 = vadd.f32 %v9728_v28, %v11930_v37  ;;  %v1767_v5 = vpop.f32.mrb[133].mxu0  ;;  %9886 = vmatmul.mubr.msk.f32.gmra.mrb[238].mxu0 %vm290_vm0, %v268_v29 }
 0x1e9   :  { %v1768_v20 = vadd.f32 %v11930_v37, %v1767_v5  ;;  %10102 = vmatprep.mubr.msk.f32.mxu1 %vm2615_vm1, %v2486_v13  ;;  %9888 = vmatprep.mubr.msk.f32.mxu0 %vm290_vm0, %v269_v4  ;;  %v272_v13 = vld [vmem:[%s15551_s1 + $0x798] sm:$0xff] }
 0x1ea   :  { %10103 = vmatmul.mubr.msk.f32.gmra.mrb[6].mxu1 %vm2615_vm1, %v2487_v45  ;;  %v2489_v52 = vmax.f32 %v1773_v12, 0.0  ;;  %v273_v45 = vld [vmem:[%s15551_s1 + $0x7a0] sm:$0xff] }
 0x1eb   :  { %v2488_v36 = vmax.f32 %v1768_v20, 0.0  ;;  %v9731_v53 = vpop.f32.mrb[134].mxu0 }
 0x1ec   :  { %v1783_v29 = vadd.f32 %v9731_v53, %v11930_v37  ;;  %v1777_v28 = vpop.f32.mrb[135].mxu0  ;;  %9889 = vmatmul.mubr.msk.f32.gmra.mrb[240].mxu0 %vm290_vm0, %v270_v21 }
 0x1ed   :  { %v1778_v4 = vadd.f32 %v11930_v37, %v1777_v28  ;;  %10105 = vmatprep.mubr.msk.f32.mxu1 %vm2615_vm1, %v2488_v36  ;;  %9891 = vmatprep.mubr.msk.f32.mxu0 %vm290_vm0, %v271_v44  ;;  %v274_v36 = vld [vmem:[%s15551_s1 + $0x7a8] sm:$0xff] }
 0x1ee   :  { %10106 = vmatmul.mubr.msk.f32.gmra.mrb[8].mxu1 %vm2615_vm1, %v2489_v52  ;;  %v2491_v20 = vmax.f32 %v1783_v29, 0.0  ;;  %v275_v52 = vld [vmem:[%s15551_s1 + $0x7b0] sm:$0xff] }
 0x1ef   :  { %v2490_v12 = vmax.f32 %v1778_v4, 0.0  ;;  %v9734_v5 = vpop.f32.mrb[136].mxu0 }
 0x1f0   :  { %v1793_v21 = vadd.f32 %v9734_v5, %v11930_v37  ;;  %v1787_v53 = vpop.f32.mrb[137].mxu0  ;;  %9892 = vmatmul.mubr.msk.f32.gmra.mrb[242].mxu0 %vm290_vm0, %v272_v13 }
 0x1f1   :  { %v1788_v44 = vadd.f32 %v11930_v37, %v1787_v53  ;;  %10108 = vmatprep.mubr.msk.f32.mxu1 %vm2615_vm1, %v2490_v12  ;;  %9894 = vmatprep.mubr.msk.f32.mxu0 %vm290_vm0, %v273_v45  ;;  %v276_v12 = vld [vmem:[%s15551_s1 + $0x7b8] sm:$0xff] }
 0x1f2   :  { %10109 = vmatmul.mubr.msk.f32.gmra.mrb[10].mxu1 %vm2615_vm1, %v2491_v20  ;;  %v2493_v4 = vmax.f32 %v1793_v21, 0.0  ;;  %v277_v20 = vld [vmem:[%s15551_s1 + $0x7c0] sm:$0xff]  ;;  %v1108_v21 = vadd.f32 %v11930_v37, %v11179_v55  ;;  %v1113_v55 = vadd.f32 %v11177_v54, %v11930_v37 }
 0x1f3   :  { %v2492_v29 = vmax.f32 %v1788_v44, 0.0  ;;  %v9737_v28 = vpop.f32.mrb[138].mxu0 }
 0x1f4   :  { %v1803_v13 = vadd.f32 %v9737_v28, %v11930_v37  ;;  %v1797_v5 = vpop.f32.mrb[139].mxu0  ;;  %9895 = vmatmul.mubr.msk.f32.gmra.mrb[244].mxu0 %vm290_vm0, %v274_v36  ;;  %v2357_v54 = vmax.f32 %v1113_v55, 0.0  ;;  %v1133_v55 = vadd.f32 %v11201_v62, %v11930_v37 }
 0x1f5   :  { %v1798_v45 = vadd.f32 %v11930_v37, %v1797_v5  ;;  %10111 = vmatprep.mubr.msk.f32.mxu1 %vm2615_vm1, %v2492_v29  ;;  %9897 = vmatprep.mubr.msk.f32.mxu0 %vm290_vm0, %v275_v52  ;;  %v1118_v5 = vadd.f32 %v11930_v37, %v11191_v59 }
 0x1f6   :  { %10112 = vmatmul.mubr.msk.f32.gmra.mrb[12].mxu1 %vm2615_vm1, %v2493_v4  ;;  %v2495_v36 = vmax.f32 %v1803_v13, 0.0  ;;  %v278_v4 = vld [vmem:[%s15551_s1 + $0x7c8] sm:$0xff]  ;;  %v2356_v13 = vmax.f32 %v1108_v21, 0.0  ;;  %v1123_v21 = vadd.f32 %v11189_v58, %v11930_v37  ;;  %v2361_v62 = vmax.f32 %v1133_v55, 0.0 }
 0x1f7   :  { %v2494_v53 = vmax.f32 %v1798_v45, 0.0  ;;  %v9740_v44 = vpop.f32.mrb[140].mxu0  ;;  %v2358_v59 = vmax.f32 %v1118_v5, 0.0  ;;  %v1138_v5 = vadd.f32 %v11930_v37, %v11215_v3  ;;  %v1158_v55 = vadd.f32 %v11930_v37, %v11239_v11 }
 0x1f8   :  { %v1813_v29 = vadd.f32 %v9740_v44, %v11930_v37  ;;  %v1807_v28 = vpop.f32.mrb[141].mxu0  ;;  %9898 = vmatmul.mubr.msk.f32.gmra.mrb[246].mxu0 %vm290_vm0, %v276_v12  ;;  %v2359_v58 = vmax.f32 %v1123_v21, 0.0  ;;  %v1143_v21 = vadd.f32 %v11213_v2, %v11930_v37 }
 0x1f9   :  { %v1808_v52 = vadd.f32 %v11930_v37, %v1807_v28  ;;  %10114 = vmatprep.mubr.msk.f32.mxu1 %vm2615_vm1, %v2494_v53  ;;  %9900 = vmatprep.mubr.msk.f32.mxu0 %vm290_vm0, %v277_v20  ;;  %v2362_v3 = vmax.f32 %v1138_v5, 0.0  ;;  %v2366_v11 = vmax.f32 %v1158_v55, 0.0 }
 0x1fa   :  { %10115 = vmatmul.mubr.msk.f32.gmra.mrb[14].mxu1 %vm2615_vm1, %v2495_v36  ;;  %v2497_v44 = vmax.f32 %v1813_v29, 0.0  ;;  %v1128_v36 = vadd.f32 %v11930_v37, %v11203_v63  ;;  %v2363_v2 = vmax.f32 %v1143_v21, 0.0 }
 0x1fb   :  { %v2496_v45 = vmax.f32 %v1808_v52, 0.0  ;;  %v9743_v12 = vpop.f32.mrb[142].mxu0 }
 0x1fc   :  { %v1823_v53 = vadd.f32 %v9743_v12, %v11930_v37  ;;  %v1817_v28 = vpop.f32.mrb[143].mxu0  ;;  %9901 = vmatmul.mubr.msk.f32.gmra.mrb[248].mxu0 %vm290_vm0, %v278_v4  ;;  %v2360_v63 = vmax.f32 %v1128_v36, 0.0  ;;  %v1148_v36 = vadd.f32 %v11930_v37, %v11227_v7 }
 0x1fd   :  { %v1818_v20 = vadd.f32 %v11930_v37, %v1817_v28  ;;  %9907 = vmatprep.mubr.msk.f32.mxu0 %vm2615_vm1, %v2356_v13  ;;  %10117 = vmatprep.mubr.msk.f32.mxu1 %vm2615_vm1, %v2496_v45 }
 0x1fe   :  { %10118 = vmatmul.mubr.msk.f32.gmra.mrb[16].mxu1 %vm2615_vm1, %v2497_v44  ;;  %v2499_v12 = vmax.f32 %v1823_v53, 0.0  ;;  %v2364_v7 = vmax.f32 %v1148_v36, 0.0 }
 0x1ff   :  { %v2498_v29 = vmax.f32 %v1818_v20, 0.0  ;;  %v9746_v52 = vpop.f32.mrb[144].mxu0 }
 0x200   :  { %v1833_v4 = vadd.f32 %v9746_v52, %v11930_v37  ;;  %v1827_v28 = vpop.f32.mrb[145].mxu0  ;;  %9908 = vmatmul.mubr.msk.f32.vlgmr.msra.gmra.mrb[250].mxu0 %vm2615_vm1, %v2357_v54 }
 0x201   :  { %v1828_v13 = vadd.f32 %v11930_v37, %v1827_v28  ;;  %9910 = vmatprep.mubr.msk.f32.mxu0 %vm2615_vm1, %v2358_v59  ;;  %10120 = vmatprep.mubr.msk.f32.mxu1 %vm2615_vm1, %v2498_v29 }
 0x202   :  { %10121 = vmatmul.mubr.msk.f32.gmra.mrb[18].mxu1 %vm2615_vm1, %v2499_v12  ;;  %v2501_v53 = vmax.f32 %v1833_v4, 0.0 }
 0x203   :  { %v2500_v45 = vmax.f32 %v1828_v13, 0.0  ;;  %v9749_v44 = vpop.f32.mrb[146].mxu0 }
 0x204   :  { %v1843_v20 = vadd.f32 %v9749_v44, %v11930_v37  ;;  %v1837_v54 = vpop.f32.mrb[147].mxu0  ;;  %9911 = vmatmul.mubr.msk.f32.gmra.mrb[252].mxu0 %vm2615_vm1, %v2359_v58  ;;  %v1153_v58 = vadd.f32 %v11225_v6, %v11930_v37 }
 0x205   :  { %v1838_v59 = vadd.f32 %v11930_v37, %v1837_v54  ;;  %9913 = vmatprep.mubr.msk.f32.mxu0 %vm2615_vm1, %v2360_v63  ;;  %10123 = vmatprep.mubr.msk.f32.mxu1 %vm2615_vm1, %v2500_v45  ;;  %v1163_v54 = vadd.f32 %v11237_v10, %v11930_v37 }
 0x206   :  { %10124 = vmatmul.mubr.msk.f32.gmra.mrb[20].mxu1 %vm2615_vm1, %v2501_v53  ;;  %v2503_v12 = vmax.f32 %v1843_v20, 0.0  ;;  %v2365_v6 = vmax.f32 %v1153_v58, 0.0 }
 0x207   :  { %v2502_v29 = vmax.f32 %v1838_v59, 0.0  ;;  %v9752_v52 = vpop.f32.mrb[148].mxu0  ;;  %v1168_v59 = vadd.f32 %v11930_v37, %v11251_v15  ;;  %v2367_v10 = vmax.f32 %v1163_v54, 0.0 }
 0x208   :  { %v1853_v4 = vadd.f32 %v9752_v52, %v11930_v37  ;;  %v1847_v28 = vpop.f32.mrb[149].mxu0  ;;  %9914 = vmatmul.mubr.msk.f32.gmra.mrb[254].mxu0 %vm2615_vm1, %v2361_v62 }
 0x209   :  { %v1848_v13 = vadd.f32 %v11930_v37, %v1847_v28  ;;  %9916 = vmatprep.mubr.msk.f32.mxu0 %vm2615_vm1, %v2362_v3  ;;  %10126 = vmatprep.mubr.msk.f32.mxu1 %vm2615_vm1, %v2502_v29  ;;  %v2368_v15 = vmax.f32 %v1168_v59, 0.0  ;;  %v1198_v59 = vadd.f32 %v11930_v37, %v11287_v27 }
 0x20a   :  { %10127 = vmatmul.mubr.msk.f32.gmra.mrb[22].mxu1 %vm2615_vm1, %v2503_v12  ;;  %v2505_v45 = vmax.f32 %v1853_v4, 0.0  ;;  %v1173_v12 = vadd.f32 %v11249_v14, %v11930_v37  ;;  %v1178_v4 = vadd.f32 %v11930_v37, %v11263_v19 }
 0x20b   :  { %v2504_v63 = vmax.f32 %v1848_v13, 0.0  ;;  %v9755_v5 = vpop.f32.mrb[150].mxu0  ;;  %v2374_v27 = vmax.f32 %v1198_v59, 0.0 }
 0x20c   :  { %v1863_v44 = vadd.f32 %v9755_v5, %v11930_v37  ;;  %v1857_v53 = vpop.f32.mrb[151].mxu0  ;;  %9917 = vmatmul.mubr.msk.f32.gmra.mrb[0].mxu0 %vm2615_vm1, %v2363_v2  ;;  %v2369_v14 = vmax.f32 %v1173_v12, 0.0  ;;  %v2370_v19 = vmax.f32 %v1178_v4, 0.0  ;;  %v1188_v5 = vadd.f32 %v11930_v37, %v11275_v23 }
 0x20d   :  { %v1858_v20 = vadd.f32 %v11930_v37, %v1857_v53  ;;  %9919 = vmatprep.mubr.msk.f32.mxu0 %vm2615_vm1, %v2364_v7  ;;  %10129 = vmatprep.mubr.msk.f32.mxu1 %vm2615_vm1, %v2504_v63  ;;  %v1183_v63 = vadd.f32 %v11261_v18, %v11930_v37  ;;  %v1208_v12 = vadd.f32 %v11930_v37, %v11299_v31 }
 0x20e   :  { %10130 = vmatmul.mubr.msk.f32.gmra.mrb[24].mxu1 %vm2615_vm1, %v2505_v45  ;;  %v2507_v3 = vmax.f32 %v1863_v44, 0.0  ;;  %v2372_v23 = vmax.f32 %v1188_v5, 0.0 }
 0x20f   :  { %v2506_v62 = vmax.f32 %v1858_v20, 0.0  ;;  %v9758_v21 = vpop.f32.mrb[152].mxu0  ;;  %v2371_v18 = vmax.f32 %v1183_v63, 0.0  ;;  %v2376_v31 = vmax.f32 %v1208_v12, 0.0  ;;  %v1248_v12 = vadd.f32 %v11930_v37, %v11347_v47 }
 0x210   :  { %v1873_v36 = vadd.f32 %v9758_v21, %v11930_v37  ;;  %v1867_v29 = vpop.f32.mrb[153].mxu0  ;;  %9920 = vmatmul.mubr.msk.f32.gmra.mrb[2].mxu0 %vm2615_vm1, %v2365_v6 }
 0x211   :  { %v1868_v52 = vadd.f32 %v11930_v37, %v1867_v29  ;;  %9922 = vmatprep.mubr.msk.f32.mxu0 %vm2615_vm1, %v2366_v11  ;;  %10132 = vmatprep.mubr.msk.f32.mxu1 %vm2615_vm1, %v2506_v62  ;;  %v1193_v11 = vadd.f32 %v11273_v22, %v11930_v37  ;;  %v2384_v47 = vmax.f32 %v1248_v12, 0.0  ;;  %v1298_v12 = vadd.f32 %v11930_v37, %v11407_v17 }
 0x212   :  { %10133 = vmatmul.mubr.msk.f32.gmra.mrb[26].mxu1 %vm2615_vm1, %v2507_v3  ;;  %v2509_v2 = vmax.f32 %v1873_v36, 0.0 }
 0x213   :  { %v2508_v28 = vmax.f32 %v1868_v52, 0.0  ;;  %v9761_v13 = vpop.f32.mrb[154].mxu0  ;;  %v2373_v22 = vmax.f32 %v1193_v11, 0.0  ;;  %v2394_v17 = vmax.f32 %v1298_v12, 0.0 }
 0x214   :  { %v1883_v58 = vadd.f32 %v9761_v13, %v11930_v37  ;;  %v1877_v7 = vpop.f32.mrb[155].mxu0  ;;  %9923 = vmatmul.mubr.msk.f32.gmra.mrb[4].mxu0 %vm2615_vm1, %v2367_v10  ;;  %v1203_v10 = vadd.f32 %v11285_v26, %v11930_v37 }
 0x215   :  { %v1878_v55 = vadd.f32 %v11930_v37, %v1877_v7  ;;  %9925 = vmatprep.mubr.msk.f32.mxu0 %vm2615_vm1, %v2368_v15  ;;  %10135 = vmatprep.mubr.msk.f32.mxu1 %vm2615_vm1, %v2508_v28  ;;  %v1213_v7 = vadd.f32 %v11297_v30, %v11930_v37 }
 0x216   :  { %10136 = vmatmul.mubr.msk.f32.gmra.mrb[28].mxu1 %vm2615_vm1, %v2509_v2  ;;  %v2511_v53 = vmax.f32 %v1883_v58, 0.0  ;;  %v2375_v26 = vmax.f32 %v1203_v10, 0.0 }
 0x217   :  { %v2510_v45 = vmax.f32 %v1878_v55, 0.0  ;;  %v9764_v44 = vpop.f32.mrb[156].mxu0  ;;  %v1218_v55 = vadd.f32 %v11930_v37, %v11311_v35  ;;  %v2377_v30 = vmax.f32 %v1213_v7, 0.0  ;;  %v1258_v7 = vadd.f32 %v11930_v37, %v11359_v51 }
 0x218   :  { %v1893_v20 = vadd.f32 %v9764_v44, %v11930_v37  ;;  %v1887_v6 = vpop.f32.mrb[157].mxu0  ;;  %9926 = vmatmul.mubr.msk.f32.gmra.mrb[6].mxu0 %vm2615_vm1, %v2369_v14 }
 0x219   :  { %v1888_v54 = vadd.f32 %v11930_v37, %v1887_v6  ;;  %9928 = vmatprep.mubr.msk.f32.mxu0 %vm2615_vm1, %v2370_v19  ;;  %10138 = vmatprep.mubr.msk.f32.mxu1 %vm2615_vm1, %v2510_v45  ;;  %v2378_v35 = vmax.f32 %v1218_v55, 0.0  ;;  %v2386_v51 = vmax.f32 %v1258_v7, 0.0 }
 0x21a   :  { %10139 = vmatmul.mubr.msk.f32.gmra.mrb[30].mxu1 %vm2615_vm1, %v2511_v53  ;;  %v2513_v3 = vmax.f32 %v1893_v20, 0.0  ;;  %v1223_v53 = vadd.f32 %v11309_v34, %v11930_v37  ;;  %v1228_v20 = vadd.f32 %v11930_v37, %v11323_v39 }
 0x21b   :  { %v2512_v62 = vmax.f32 %v1888_v54, 0.0  ;;  %v9767_v21 = vpop.f32.mrb[158].mxu0 }
 0x21c   :  { %v1903_v36 = vadd.f32 %v9767_v21, %v11930_v37  ;;  %v1897_v29 = vpop.f32.mrb[159].mxu0  ;;  %9929 = vmatmul.mubr.msk.f32.gmra.mrb[8].mxu0 %vm2615_vm1, %v2371_v18  ;;  %v2379_v34 = vmax.f32 %v1223_v53, 0.0  ;;  %v2380_v39 = vmax.f32 %v1228_v20, 0.0  ;;  %v1238_v21 = vadd.f32 %v11930_v37, %v11335_v43 }
 0x21d   :  { %v1898_v52 = vadd.f32 %v11930_v37, %v1897_v29  ;;  %9931 = vmatprep.mubr.msk.f32.mxu0 %vm2615_vm1, %v2372_v23  ;;  %10141 = vmatprep.mubr.msk.f32.mxu1 %vm2615_vm1, %v2512_v62  ;;  %v1233_v62 = vadd.f32 %v11321_v38, %v11930_v37 }
 0x21e   :  { %10142 = vmatmul.mubr.msk.f32.gmra.mrb[32].mxu1 %vm2615_vm1, %v2513_v3  ;;  %v2515_v28 = vmax.f32 %v1903_v36, 0.0  ;;  %v2382_v43 = vmax.f32 %v1238_v21, 0.0 }
 0x21f   :  { %v2514_v15 = vmax.f32 %v1898_v52, 0.0  ;;  %v9770_v4 = vpop.f32.mrb[160].mxu0  ;;  %v2381_v38 = vmax.f32 %v1233_v62, 0.0 }
 0x220   :  { %v1913_v13 = vadd.f32 %v9770_v4, %v11930_v37  ;;  %v1907_v2 = vpop.f32.mrb[161].mxu0  ;;  %9932 = vmatmul.mubr.msk.f32.gmra.mrb[10].mxu0 %vm2615_vm1, %v2373_v22 }
 0x221   :  { %v1908_v58 = vadd.f32 %v11930_v37, %v1907_v2  ;;  %9934 = vmatprep.mubr.msk.f32.mxu0 %vm2615_vm1, %v2374_v27  ;;  %10144 = vmatprep.mubr.msk.f32.mxu1 %vm2615_vm1, %v2514_v15  ;;  %v1243_v27 = vadd.f32 %v11333_v42, %v11930_v37 }
 0x222   :  { %10145 = vmatmul.mubr.msk.f32.gmra.mrb[34].mxu1 %vm2615_vm1, %v2515_v28  ;;  %v2517_v19 = vmax.f32 %v1913_v13, 0.0 }
 0x223   :  { %v2516_v14 = vmax.f32 %v1908_v58, 0.0  ;;  %v9773_v63 = vpop.f32.mrb[162].mxu0  ;;  %v2383_v42 = vmax.f32 %v1243_v27, 0.0 }
 0x224   :  { %v1923_v5 = vadd.f32 %v9773_v63, %v11930_v37  ;;  %v1917_v45 = vpop.f32.mrb[163].mxu0  ;;  %9935 = vmatmul.mubr.msk.f32.gmra.mrb[12].mxu0 %vm2615_vm1, %v2375_v26  ;;  %v1253_v26 = vadd.f32 %v11345_v46, %v11930_v37 }
 0x225   :  { %v1918_v44 = vadd.f32 %v11930_v37, %v1917_v45  ;;  %9937 = vmatprep.mubr.msk.f32.mxu0 %vm2615_vm1, %v2376_v31  ;;  %10147 = vmatprep.mubr.msk.f32.mxu1 %vm2615_vm1, %v2516_v14  ;;  %v1263_v45 = vadd.f32 %v11357_v50, %v11930_v37 }
 0x226   :  { %10148 = vmatmul.mubr.msk.f32.gmra.mrb[36].mxu1 %vm2615_vm1, %v2517_v19  ;;  %v2519_v18 = vmax.f32 %v1923_v5, 0.0  ;;  %v2385_v46 = vmax.f32 %v1253_v26, 0.0  ;;  %v1308_v26 = vadd.f32 %v11930_v37, %v11419_v25 }
 0x227   :  { %v2518_v6 = vmax.f32 %v1918_v44, 0.0  ;;  %v9776_v54 = vpop.f32.mrb[164].mxu0  ;;  %v1268_v44 = vadd.f32 %v11930_v37, %v11371_v57  ;;  %v2387_v50 = vmax.f32 %v1263_v45, 0.0 }
 0x228   :  { %v1933_v11 = vadd.f32 %v9776_v54, %v11930_v37  ;;  %v1927_v23 = vpop.f32.mrb[165].mxu0  ;;  %9938 = vmatmul.mubr.msk.f32.gmra.mrb[14].mxu0 %vm2615_vm1, %v2377_v30  ;;  %v2396_v25 = vmax.f32 %v1308_v26, 0.0 }
 0x229   :  { %v1928_v59 = vadd.f32 %v11930_v37, %v1927_v23  ;;  %9940 = vmatprep.mubr.msk.f32.mxu0 %vm2615_vm1, %v2378_v35  ;;  %10150 = vmatprep.mubr.msk.f32.mxu1 %vm2615_vm1, %v2518_v6  ;;  %v2388_v57 = vmax.f32 %v1268_v44, 0.0 }
 0x22a   :  { %10151 = vmatmul.mubr.msk.f32.gmra.mrb[38].mxu1 %vm2615_vm1, %v2519_v18  ;;  %v2521_v29 = vmax.f32 %v1933_v11, 0.0  ;;  %v1273_v18 = vadd.f32 %v11369_v56, %v11930_v37  ;;  %v1278_v11 = vadd.f32 %v11930_v37, %v11383_v1 }
 0x22b   :  { %v2520_v3 = vmax.f32 %v1928_v59, 0.0  ;;  %v9779_v36 = vpop.f32.mrb[166].mxu0 }
 0x22c   :  { %v1943_v52 = vadd.f32 %v9779_v36, %v11930_v37  ;;  %v1937_v22 = vpop.f32.mrb[167].mxu0  ;;  %9941 = vmatmul.mubr.msk.f32.gmra.mrb[16].mxu0 %vm2615_vm1, %v2379_v34  ;;  %v2389_v56 = vmax.f32 %v1273_v18, 0.0  ;;  %v2390_v1 = vmax.f32 %v1278_v11, 0.0  ;;  %v1288_v36 = vadd.f32 %v11930_v37, %v11395_v9 }
 0x22d   :  { %v1938_v10 = vadd.f32 %v11930_v37, %v1937_v22  ;;  %9943 = vmatprep.mubr.msk.f32.mxu0 %vm2615_vm1, %v2380_v39  ;;  %10153 = vmatprep.mubr.msk.f32.mxu1 %vm2615_vm1, %v2520_v3  ;;  %v1283_v3 = vadd.f32 %v11381_v0, %v11930_v37 }
 0x22e   :  { %10154 = vmatmul.mubr.msk.f32.gmra.mrb[40].mxu1 %vm2615_vm1, %v2521_v29  ;;  %v2523_v28 = vmax.f32 %v1943_v52, 0.0  ;;  %v2392_v9 = vmax.f32 %v1288_v36, 0.0  ;;  %v1348_v36 = vadd.f32 %v11930_v37, %v11467_v61 }
 0x22f   :  { %v2522_v15 = vmax.f32 %v1938_v10, 0.0  ;;  %v9782_v4 = vpop.f32.mrb[168].mxu0  ;;  %v2391_v0 = vmax.f32 %v1283_v3, 0.0 }
 0x230   :  { %v1953_v13 = vadd.f32 %v9782_v4, %v11930_v37  ;;  %v1947_v2 = vpop.f32.mrb[169].mxu0  ;;  %9944 = vmatmul.mubr.msk.f32.gmra.mrb[18].mxu0 %vm2615_vm1, %v2381_v38  ;;  %v2404_v61 = vmax.f32 %v1348_v36, 0.0 }
 0x231   :  { %v1948_v58 = vadd.f32 %v11930_v37, %v1947_v2  ;;  %9946 = vmatprep.mubr.msk.f32.mxu0 %vm2615_vm1, %v2382_v43  ;;  %10156 = vmatprep.mubr.msk.f32.mxu1 %vm2615_vm1, %v2522_v15  ;;  %v1293_v43 = vadd.f32 %v11393_v8, %v11930_v37 }
 0x232   :  { %10157 = vmatmul.mubr.msk.f32.gmra.mrb[42].mxu1 %vm2615_vm1, %v2523_v28  ;;  %v2525_v14 = vmax.f32 %v1953_v13, 0.0 }
 0x233   :  { %v2524_v31 = vmax.f32 %v1948_v58, 0.0  ;;  %v9785_v55 = vpop.f32.mrb[170].mxu0  ;;  %v2393_v8 = vmax.f32 %v1293_v43, 0.0  ;;  %v15633_v43 = vld [vmem:[#allocation3_spill] sm:$0xff] }
 0x234   :  { %v1963_v63 = vadd.f32 %v9785_v55, %v11930_v37  ;;  %v1957_v19 = vpop.f32.mrb[171].mxu0  ;;  %9947 = vmatmul.mubr.msk.f32.gmra.mrb[20].mxu0 %vm2615_vm1, %v2383_v42  ;;  %v1303_v42 = vadd.f32 %v11405_v16, %v11930_v37 }
 0x235   :  { %v1958_v5 = vadd.f32 %v11930_v37, %v1957_v19  ;;  %9949 = vmatprep.mubr.msk.f32.mxu0 %vm2615_vm1, %v2384_v47  ;;  %10159 = vmatprep.mubr.msk.f32.mxu1 %vm2615_vm1, %v2524_v31  ;;  %v1313_v19 = vadd.f32 %v11417_v24, %v11930_v37 }
 0x236   :  { %10160 = vmatmul.mubr.msk.f32.gmra.mrb[44].mxu1 %vm2615_vm1, %v2525_v14  ;;  %v2527_v35 = vmax.f32 %v1963_v63, 0.0  ;;  %v2395_v16 = vmax.f32 %v1303_v42, 0.0 }
 0x237   :  { %v2526_v30 = vmax.f32 %v1958_v5, 0.0  ;;  %v9788_v53 = vpop.f32.mrb[172].mxu0  ;;  %v1318_v5 = vadd.f32 %v11930_v37, %v11431_v33  ;;  %v2397_v24 = vmax.f32 %v1313_v19, 0.0  ;;  %v15636_v19 = vld [vmem:[#allocation4_spill] sm:$0xff] }
 0x238   :  { %v1973_v20 = vadd.f32 %v9788_v53, %v11930_v37  ;;  %v1967_v6 = vpop.f32.mrb[173].mxu0  ;;  %9950 = vmatmul.mubr.msk.f32.gmra.mrb[22].mxu0 %vm2615_vm1, %v2385_v46 }
 0x239   :  { %v1968_v54 = vadd.f32 %v11930_v37, %v1967_v6  ;;  %9952 = vmatprep.mubr.msk.f32.mxu0 %vm2615_vm1, %v2386_v51  ;;  %10162 = vmatprep.mubr.msk.f32.mxu1 %vm2615_vm1, %v2526_v30  ;;  %v2398_v33 = vmax.f32 %v1318_v5, 0.0 }
 0x23a   :  { %10163 = vmatmul.mubr.msk.f32.gmra.mrb[46].mxu1 %vm2615_vm1, %v2527_v35  ;;  %v2529_v34 = vmax.f32 %v1973_v20, 0.0  ;;  %v1323_v35 = vadd.f32 %v11429_v32, %v11930_v37  ;;  %v1328_v20 = vadd.f32 %v11930_v37, %v11443_v41 }
 0x23b   :  { %v2528_v23 = vmax.f32 %v1968_v54, 0.0  ;;  %v9791_v59 = vpop.f32.mrb[174].mxu0 }
 0x23c   :  { %v1983_v62 = vadd.f32 %v9791_v59, %v11930_v37  ;;  %v1977_v39 = vpop.f32.mrb[175].mxu0  ;;  %9953 = vmatmul.mubr.msk.f32.gmra.mrb[24].mxu0 %vm2615_vm1, %v2387_v50  ;;  %v2399_v32 = vmax.f32 %v1323_v35, 0.0  ;;  %v2400_v41 = vmax.f32 %v1328_v20, 0.0  ;;  %v1338_v59 = vadd.f32 %v11930_v37, %v11455_v49  ;;  %v15638_v20 = vld [vmem:[#allocation6_spill] sm:$0xff] }
 0x23d   :  { %v1978_v21 = vadd.f32 %v11930_v37, %v1977_v39  ;;  %9955 = vmatprep.mubr.msk.f32.mxu0 %vm2615_vm1, %v2388_v57  ;;  %10165 = vmatprep.mubr.msk.f32.mxu1 %vm2615_vm1, %v2528_v23  ;;  %v1333_v23 = vadd.f32 %v11441_v40, %v11930_v37 }
 0x23e   :  { %10166 = vmatmul.mubr.msk.f32.gmra.mrb[48].mxu1 %vm2615_vm1, %v2529_v34  ;;  %v2531_v22 = vmax.f32 %v1983_v62, 0.0  ;;  %v2402_v49 = vmax.f32 %v1338_v59, 0.0 }
 0x23f   :  { %v2530_v29 = vmax.f32 %v1978_v21, 0.0  ;;  %v9794_v52 = vpop.f32.mrb[176].mxu0  ;;  %v2401_v40 = vmax.f32 %v1333_v23, 0.0 }
 0x240   :  { %v1993_v10 = vadd.f32 %v9794_v52, %v11930_v37  ;;  %v1987_v38 = vpop.f32.mrb[177].mxu0  ;;  %9956 = vmatmul.mubr.msk.f32.gmra.mrb[26].mxu0 %vm2615_vm1, %v2389_v56 }
 0x241   :  { %v1988_v27 = vadd.f32 %v11930_v37, %v1987_v38  ;;  %9958 = vmatprep.mubr.msk.f32.mxu0 %vm2615_vm1, %v2390_v1  ;;  %10168 = vmatprep.mubr.msk.f32.mxu1 %vm2615_vm1, %v2530_v29  ;;  %v1343_v1 = vadd.f32 %v11453_v48, %v11930_v37 }
 0x242   :  { %10169 = vmatmul.mubr.msk.f32.gmra.mrb[50].mxu1 %vm2615_vm1, %v2531_v22  ;;  %v2533_v28 = vmax.f32 %v1993_v10, 0.0 }
 0x243   :  { %v2532_v15 = vmax.f32 %v1988_v27, 0.0  ;;  %v9797_v4 = vpop.f32.mrb[178].mxu0  ;;  %v2403_v48 = vmax.f32 %v1343_v1, 0.0 }
 0x244   :  { %v2003_v13 = vadd.f32 %v9797_v4, %v11930_v37  ;;  %v1997_v2 = vpop.f32.mrb[179].mxu0  ;;  %9959 = vmatmul.mubr.msk.f32.gmra.mrb[28].mxu0 %vm2615_vm1, %v2391_v0  ;;  %v1353_v0 = vadd.f32 %v11465_v60, %v11930_v37 }
 0x245   :  { %v1998_v58 = vadd.f32 %v11930_v37, %v1997_v2  ;;  %9961 = vmatprep.mubr.msk.f32.mxu0 %vm2615_vm1, %v2392_v9  ;;  %10171 = vmatprep.mubr.msk.f32.mxu1 %vm2615_vm1, %v2532_v15  ;;  %v1358_v9 = vadd.f32 %v11930_v37, %v15633_v43 }
 0x246   :  { %10172 = vmatmul.mubr.msk.f32.gmra.mrb[52].mxu1 %vm2615_vm1, %v2533_v28  ;;  %v2535_v31 = vmax.f32 %v2003_v13, 0.0  ;;  %v2405_v60 = vmax.f32 %v1353_v0, 0.0  ;;  %v15643_v0 = vld [vmem:[#allocation13_spill] sm:$0xff] }
 0x247   :  { %v2534_v47 = vmax.f32 %v1998_v58, 0.0  ;;  %v9800_v7 = vpop.f32.mrb[180].mxu0  ;;  %v15634_v58 = vld [vmem:[#allocation2_spill] sm:$0xff]  ;;  %v2406_v42 = vmax.f32 %v1358_v9, 0.0 }
 0x248   :  { %v2013_v55 = vadd.f32 %v9800_v7, %v11930_v37  ;;  %v2007_v14 = vpop.f32.mrb[181].mxu0  ;;  %9962 = vmatmul.mubr.msk.f32.gmra.mrb[30].mxu0 %vm2615_vm1, %v2393_v8  ;;  %v1363_v8 = vadd.f32 %v15634_v58, %v11930_v37  ;;  %v15645_v58 = vld [vmem:[#allocation15_spill] sm:$0xff] }
 0x249   :  { %v2008_v63 = vadd.f32 %v11930_v37, %v2007_v14  ;;  %9964 = vmatprep.mubr.msk.f32.mxu0 %vm2615_vm1, %v2394_v17  ;;  %10174 = vmatprep.mubr.msk.f32.mxu1 %vm2615_vm1, %v2534_v47  ;;  %v15635_v17 = vld [vmem:[#allocation5_spill] sm:$0xff] }
 0x24a   :  { %10175 = vmatmul.mubr.msk.f32.gmra.mrb[54].mxu1 %vm2615_vm1, %v2535_v31  ;;  %v2537_v51 = vmax.f32 %v2013_v55, 0.0  ;;  %v1368_v26 = vadd.f32 %v11930_v37, %v15635_v17 }
 0x24b   :  { %v2536_v46 = vmax.f32 %v2008_v63, 0.0  ;;  %v9803_v45 = vpop.f32.mrb[182].mxu0 }
 0x24c   :  { %v2023_v44 = vadd.f32 %v9803_v45, %v11930_v37  ;;  %v2017_v30 = vpop.f32.mrb[183].mxu0  ;;  %9965 = vmatmul.mubr.msk.f32.gmra.mrb[32].mxu0 %vm2615_vm1, %v2395_v16  ;;  %v2407_v16 = vmax.f32 %v1363_v8, 0.0  ;;  %v2408_v5 = vmax.f32 %v1368_v26, 0.0 }
 0x24d   :  { %v2018_v53 = vadd.f32 %v11930_v37, %v2017_v30  ;;  %9967 = vmatprep.mubr.msk.f32.mxu0 %vm2615_vm1, %v2396_v25  ;;  %10177 = vmatprep.mubr.msk.f32.mxu1 %vm2615_vm1, %v2536_v46  ;;  %v1373_v25 = vadd.f32 %v15636_v19, %v11930_v37  ;;  %v15637_v46 = vld [vmem:[#allocation7_spill] sm:$0xff]  ;;  %v15647_v19 = vld [vmem:[#allocation17_spill] sm:$0xff] }
 0x24e   :  { %10178 = vmatmul.mubr.msk.f32.gmra.mrb[56].mxu1 %vm2615_vm1, %v2537_v51  ;;  %v2539_v50 = vmax.f32 %v2023_v44, 0.0  ;;  %v1378_v45 = vadd.f32 %v11930_v37, %v15637_v46 }
 0x24f   :  { %v2538_v6 = vmax.f32 %v2018_v53, 0.0  ;;  %v9806_v54 = vpop.f32.mrb[184].mxu0 }
 0x250   :  { %v2033_v18 = vadd.f32 %v9806_v54, %v11930_v37  ;;  %v2027_v57 = vpop.f32.mrb[185].mxu0  ;;  %9968 = vmatmul.mubr.msk.f32.gmra.mrb[34].mxu0 %vm2615_vm1, %v2397_v24  ;;  %v2410_v54 = vmax.f32 %v1378_v45, 0.0 }
 0x251   :  { %v2028_v11 = vadd.f32 %v11930_v37, %v2027_v57  ;;  %9970 = vmatprep.mubr.msk.f32.mxu0 %vm2615_vm1, %v2398_v33  ;;  %10180 = vmatprep.mubr.msk.f32.mxu1 %vm2615_vm1, %v2538_v6  ;;  %v2409_v33 = vmax.f32 %v1373_v25, 0.0  ;;  %v1383_v6 = vadd.f32 %v15638_v20, %v11930_v37  ;;  %v15649_v20 = vld [vmem:[#allocation19_spill] sm:$0xff] }
 0x252   :  { %10181 = vmatmul.mubr.msk.f32.gmra.mrb[58].mxu1 %vm2615_vm1, %v2539_v50  ;;  %v2541_v39 = vmax.f32 %v2033_v18, 0.0  ;;  %v15639_v50 = vld [vmem:[#allocation9_spill] sm:$0xff] }
 0x253   :  { %v2540_v34 = vmax.f32 %v2028_v11, 0.0  ;;  %v9809_v62 = vpop.f32.mrb[186].mxu0  ;;  %v1388_v18 = vadd.f32 %v11930_v37, %v15639_v50 }
 0x254   :  { %v2043_v21 = vadd.f32 %v9809_v62, %v11930_v37  ;;  %v2037_v56 = vpop.f32.mrb[187].mxu0  ;;  %9971 = vmatmul.mubr.msk.f32.gmra.mrb[36].mxu0 %vm2615_vm1, %v2399_v32  ;;  %v15640_v62 = vld [vmem:[#allocation8_spill] sm:$0xff] }
 0x255   :  { %v2038_v3 = vadd.f32 %v11930_v37, %v2037_v56  ;;  %9973 = vmatprep.mubr.msk.f32.mxu0 %vm2615_vm1, %v2400_v41  ;;  %10183 = vmatprep.mubr.msk.f32.mxu1 %vm2615_vm1, %v2540_v34  ;;  %v2411_v34 = vmax.f32 %v1383_v6, 0.0  ;;  %v15641_v56 = vld [vmem:[#allocation11_spill] sm:$0xff] }
 0x256   :  { %10184 = vmatmul.mubr.msk.f32.gmra.mrb[60].mxu1 %vm2615_vm1, %v2541_v39  ;;  %v2543_v22 = vmax.f32 %v2043_v21, 0.0  ;;  %v1393_v39 = vadd.f32 %v15640_v62, %v11930_v37  ;;  %v2412_v21 = vmax.f32 %v1388_v18, 0.0  ;;  %v15651_v62 = vld [vmem:[#allocation21_spill] sm:$0xff] }
 0x257   :  { %v2542_v29 = vmax.f32 %v2038_v3, 0.0  ;;  %v9812_v52 = vpop.f32.mrb[188].mxu0  ;;  %v1398_v3 = vadd.f32 %v11930_v37, %v15641_v56 }
 0x258   :  { %v2053_v10 = vadd.f32 %v9812_v52, %v11930_v37  ;;  %v2047_v38 = vpop.f32.mrb[189].mxu0  ;;  %9974 = vmatmul.mubr.msk.f32.gmra.mrb[38].mxu0 %vm2615_vm1, %v2401_v40 }
 0x259   :  { %v2048_v27 = vadd.f32 %v11930_v37, %v2047_v38  ;;  %9976 = vmatprep.mubr.msk.f32.mxu0 %vm2615_vm1, %v2402_v49  ;;  %10186 = vmatprep.mubr.msk.f32.mxu1 %vm2615_vm1, %v2542_v29  ;;  %v15642_v38 = vld [vmem:[#allocation10_spill] sm:$0xff] }
 0x25a   :  { %10187 = vmatmul.mubr.msk.f32.gmra.mrb[62].mxu1 %vm2615_vm1, %v2543_v22  ;;  %v2545_v4 = vmax.f32 %v2053_v10, 0.0  ;;  %v2413_v22 = vmax.f32 %v1393_v39, 0.0  ;;  %v12330_v10 = vld [vmem:[%s15554_s3] ss:$0 sm:$0xff] }
 0x25b   :  { %v2544_v12 = vmax.f32 %v2048_v27, 0.0  ;;  %v9815_v15 = vpop.f32.mrb[190].mxu0  ;;  %v1403_v27 = vadd.f32 %v12330_v10, %v15642_v38  ;;  %v1418_v8 = vadd.f32 %v12330_v10, %v15645_v58  ;;  %v1428_v25 = vadd.f32 %v12330_v10, %v15647_v19  ;;  %v15653_v38 = vld [vmem:[#allocation23_spill] sm:$0xff] }
 0x25c   :  { %v2063_v28 = vadd.f32 %v9815_v15, %v11930_v37  ;;  %v2057_v13 = vpop.f32.mrb[191].mxu0  ;;  %9977 = vmatmul.mubr.msk.f32.gmra.mrb[40].mxu0 %vm2615_vm1, %v2403_v48  ;;  %v2414_v48 = vmax.f32 %v1398_v3, 0.0  ;;  %v1438_v6 = vadd.f32 %v12330_v10, %v15649_v20  ;;  %v1448_v39 = vadd.f32 %v12330_v10, %v15651_v62 }
 0x25d   :  { %v2058_v2 = vadd.f32 %v11930_v37, %v2057_v13  ;;  %9979 = vmatprep.mubr.msk.f32.mxu0 %vm2615_vm1, %v2404_v61  ;;  %10189 = vmatprep.mubr.msk.f32.mxu1 %vm2615_vm1, %v2544_v12  ;;  %v1408_v61 = vadd.f32 %v12330_v10, %v15643_v0  ;;  %v15644_v13 = vld [vmem:[#allocation12_spill] sm:$0xff] }
 0x25e   :  { %10190 = vmatmul.mubr.msk.f32.gmra.mrb[64].mxu1 %vm2615_vm1, %v2545_v4  ;;  %v2547_v31 = vmax.f32 %v2063_v28, 0.0  ;;  %v2415_v28 = vmax.f32 %v1403_v27, 0.0  ;;  %v1458_v27 = vadd.f32 %v12330_v10, %v15653_v38 }
 0x25f   :  { %v2546_v47 = vmax.f32 %v2058_v2, 0.0  ;;  %v9818_v7 = vpop.f32.mrb[192].mxu0  ;;  %v1413_v2 = vadd.f32 %v12330_v10, %v15644_v13  ;;  %v15655_v13 = vld [vmem:[#allocation25_spill] sm:$0xff] }
 0x260   :  { %v2073_v55 = vadd.f32 %v9818_v7, %v11930_v37  ;;  %v2067_v14 = vpop.f32.mrb[193].mxu0  ;;  %9980 = vmatmul.mubr.msk.f32.gmra.mrb[42].mxu0 %vm2615_vm1, %v2405_v60  ;;  %v2416_v60 = vmax.f32 %v1408_v61, 0.0 }
 0x261   :  { %v2068_v63 = vadd.f32 %v11930_v37, %v2067_v14  ;;  %9982 = vmatprep.mubr.msk.f32.mxu0 %vm2615_vm1, %v2406_v42  ;;  %10192 = vmatprep.mubr.msk.f32.mxu1 %vm2615_vm1, %v2546_v47  ;;  %v15646_v14 = vld [vmem:[#allocation14_spill] sm:$0xff] }
 0x262   :  { %10193 = vmatmul.mubr.msk.f32.gmra.mrb[66].mxu1 %vm2615_vm1, %v2547_v31  ;;  %v2549_v30 = vmax.f32 %v2073_v55, 0.0  ;;  %v2417_v55 = vmax.f32 %v1413_v2, 0.0  ;;  %v1468_v2 = vadd.f32 %v12330_v10, %v15655_v13 }
 0x263   :  { %v2548_v51 = vmax.f32 %v2068_v63, 0.0  ;;  %v9821_v44 = vpop.f32.mrb[194].mxu0  ;;  %v1423_v63 = vadd.f32 %v12330_v10, %v15646_v14  ;;  %v15657_v14 = vld [vmem:[#allocation27_spill] sm:$0xff] }
 0x264   :  { %v2083_v53 = vadd.f32 %v9821_v44, %v11930_v37  ;;  %v2077_v24 = vpop.f32.mrb[195].mxu0  ;;  %9983 = vmatmul.mubr.msk.f32.gmra.mrb[44].mxu0 %vm2615_vm1, %v2407_v16  ;;  %v2418_v16 = vmax.f32 %v1418_v8, 0.0 }
 0x265   :  { %v2078_v35 = vadd.f32 %v11930_v37, %v2077_v24  ;;  %9985 = vmatprep.mubr.msk.f32.mxu0 %vm2615_vm1, %v2408_v5  ;;  %10195 = vmatprep.mubr.msk.f32.mxu1 %vm2615_vm1, %v2548_v51  ;;  %v15648_v24 = vld [vmem:[#allocation16_spill] sm:$0xff] }
 0x266   :  { %10196 = vmatmul.mubr.msk.f32.gmra.mrb[68].mxu1 %vm2615_vm1, %v2549_v30  ;;  %v2551_v32 = vmax.f32 %v2083_v53, 0.0  ;;  %v2419_v53 = vmax.f32 %v1423_v63, 0.0  ;;  %v1478_v63 = vadd.f32 %v12330_v10, %v15657_v14 }
 0x267   :  { %v2550_v57 = vmax.f32 %v2078_v35, 0.0  ;;  %v9824_v11 = vpop.f32.mrb[196].mxu0  ;;  %v1433_v35 = vadd.f32 %v12330_v10, %v15648_v24  ;;  %v15659_v24 = vld [vmem:[#allocation29_spill] sm:$0xff] }
 0x268   :  { %v2093_v23 = vadd.f32 %v9824_v11, %v11930_v37  ;;  %v2087_v41 = vpop.f32.mrb[197].mxu0  ;;  %9986 = vmatmul.mubr.msk.f32.gmra.mrb[46].mxu0 %vm2615_vm1, %v2409_v33  ;;  %v2420_v33 = vmax.f32 %v1428_v25, 0.0 }
 0x269   :  { %v2088_v59 = vadd.f32 %v11930_v37, %v2087_v41  ;;  %9988 = vmatprep.mubr.msk.f32.mxu0 %vm2615_vm1, %v2410_v54  ;;  %10198 = vmatprep.mubr.msk.f32.mxu1 %vm2615_vm1, %v2550_v57  ;;  %v15650_v41 = vld [vmem:[#allocation18_spill] sm:$0xff] }
 0x26a   :  { %10199 = vmatmul.mubr.msk.f32.gmra.mrb[70].mxu1 %vm2615_vm1, %v2551_v32  ;;  %v2553_v49 = vmax.f32 %v2093_v23, 0.0  ;;  %v2421_v23 = vmax.f32 %v1433_v35, 0.0  ;;  %v1488_v35 = vadd.f32 %v12330_v10, %v15659_v24 }
 0x26b   :  { %v2552_v40 = vmax.f32 %v2088_v59, 0.0  ;;  %v9827_v1 = vpop.f32.mrb[198].mxu0  ;;  %v1443_v59 = vadd.f32 %v12330_v10, %v15650_v41  ;;  %v15661_v41 = vld [vmem:[#allocation31_spill] sm:$0xff] }
 0x26c   :  { %v2103_v36 = vadd.f32 %v9827_v1, %v11930_v37  ;;  %v2097_v29 = vpop.f32.mrb[199].mxu0  ;;  %9989 = vmatmul.mubr.msk.f32.gmra.mrb[48].mxu0 %vm2615_vm1, %v2411_v34  ;;  %v2422_v34 = vmax.f32 %v1438_v6, 0.0 }
 0x26d   :  { %v2098_v52 = vadd.f32 %v11930_v37, %v2097_v29  ;;  %9991 = vmatprep.mubr.msk.f32.mxu0 %vm2615_vm1, %v2412_v21  ;;  %10201 = vmatprep.mubr.msk.f32.mxu1 %vm2615_vm1, %v2552_v40  ;;  %v15652_v29 = vld [vmem:[#allocation20_spill] sm:$0xff] }
 0x26e   :  { %10202 = vmatmul.mubr.msk.f32.gmra.mrb[72].mxu1 %vm2615_vm1, %v2553_v49  ;;  %v2555_v9 = vmax.f32 %v2103_v36, 0.0  ;;  %v2423_v36 = vmax.f32 %v1443_v59, 0.0  ;;  %v1498_v59 = vadd.f32 %v12330_v10, %v15661_v41 }
 0x26f   :  { %v2554_v37 = vmax.f32 %v2098_v52, 0.0  ;;  %v9830_v43 = vpop.f32.mrb[200].mxu0  ;;  %v1453_v52 = vadd.f32 %v12330_v10, %v15652_v29  ;;  %v15663_v29 = vld [vmem:[#allocation33_spill] sm:$0xff] }
 0x270   :  { %v2113_v12 = vadd.f32 %v12330_v10, %v9830_v43  ;;  %v2107_v15 = vpop.f32.mrb[201].mxu0  ;;  %9992 = vmatmul.mubr.msk.f32.gmra.mrb[50].mxu0 %vm2615_vm1, %v2413_v22  ;;  %v2424_v22 = vmax.f32 %v1448_v39, 0.0 }
 0x271   :  { %v2108_v4 = vadd.f32 %v12330_v10, %v2107_v15  ;;  %9994 = vmatprep.mubr.msk.f32.mxu0 %vm2615_vm1, %v2414_v48  ;;  %10204 = vmatprep.mubr.msk.f32.mxu1 %vm2615_vm1, %v2554_v37  ;;  %v15654_v15 = vld [vmem:[#allocation22_spill] sm:$0xff] }
 0x272   :  { %10205 = vmatmul.mubr.msk.f32.gmra.mrb[74].mxu1 %vm2615_vm1, %v2555_v9  ;;  %v2557_v26 = vmax.f32 %v2113_v12, 0.0  ;;  %v2425_v12 = vmax.f32 %v1453_v52, 0.0  ;;  %v1508_v52 = vadd.f32 %v12330_v10, %v15663_v29 }
 0x273   :  { %v2556_v42 = vmax.f32 %v2108_v4, 0.0  ;;  %v9833_v17 = vpop.f32.mrb[202].mxu0  ;;  %v1463_v4 = vadd.f32 %v12330_v10, %v15654_v15  ;;  %v15665_v15 = vld [vmem:[#allocation35_spill] sm:$0xff] }
 0x274   :  { %v2123_v47 = vadd.f32 %v12330_v10, %v9833_v17  ;;  %v2117_v7 = vpop.f32.mrb[203].mxu0  ;;  %9995 = vmatmul.mubr.msk.f32.gmra.mrb[52].mxu0 %vm2615_vm1, %v2415_v28  ;;  %v2426_v28 = vmax.f32 %v1458_v27, 0.0 }
 0x275   :  { %v2118_v31 = vadd.f32 %v12330_v10, %v2117_v7  ;;  %9997 = vmatprep.mubr.msk.f32.mxu0 %vm2615_vm1, %v2416_v60  ;;  %10207 = vmatprep.mubr.msk.f32.mxu1 %vm2615_vm1, %v2556_v42  ;;  %v15656_v7 = vld [vmem:[#allocation24_spill] sm:$0xff] }
 0x276   :  { %10208 = vmatmul.mubr.msk.f32.gmra.mrb[76].mxu1 %vm2615_vm1, %v2557_v26  ;;  %v2559_v45 = vmax.f32 %v2123_v47, 0.0  ;;  %v2427_v47 = vmax.f32 %v1463_v4, 0.0  ;;  %v1518_v4 = vadd.f32 %v12330_v10, %v15665_v15 }
 0x277   :  { %v2558_v5 = vmax.f32 %v2118_v31, 0.0  ;;  %v9836_v46 = vpop.f32.mrb[204].mxu0  ;;  %v1473_v31 = vadd.f32 %v12330_v10, %v15656_v7  ;;  %v15667_v7 = vld [vmem:[#allocation37_spill] sm:$0xff] }
 0x278   :  { %v2133_v51 = vadd.f32 %v12330_v10, %v9836_v46  ;;  %v2127_v44 = vpop.f32.mrb[205].mxu0  ;;  %9998 = vmatmul.mubr.msk.f32.gmra.mrb[54].mxu0 %vm2615_vm1, %v2417_v55  ;;  %v2428_v55 = vmax.f32 %v1468_v2, 0.0 }
 0x279   :  { %v2128_v30 = vadd.f32 %v12330_v10, %v2127_v44  ;;  %10000 = vmatprep.mubr.msk.f32.mxu0 %vm2615_vm1, %v2418_v16  ;;  %10210 = vmatprep.mubr.msk.f32.mxu1 %vm2615_vm1, %v2558_v5  ;;  %v15658_v44 = vld [vmem:[#allocation26_spill] sm:$0xff] }
 0x27a   :  { %10211 = vmatmul.mubr.msk.f32.gmra.mrb[78].mxu1 %vm2615_vm1, %v2559_v45  ;;  %v2561_v18 = vmax.f32 %v2133_v51, 0.0  ;;  %v2429_v51 = vmax.f32 %v1473_v31, 0.0  ;;  %v1528_v31 = vadd.f32 %v12330_v10, %v15667_v7 }
 0x27b   :  { %v2560_v54 = vmax.f32 %v2128_v30, 0.0  ;;  %v9839_v50 = vpop.f32.mrb[206].mxu0  ;;  %v1483_v30 = vadd.f32 %v12330_v10, %v15658_v44  ;;  %v15669_v44 = vld [vmem:[#allocation39_spill] sm:$0xff] }
 0x27c   :  { %v2143_v57 = vadd.f32 %v12330_v10, %v9839_v50  ;;  %v2137_v11 = vpop.f32.mrb[207].mxu0  ;;  %10001 = vmatmul.mubr.msk.f32.gmra.mrb[56].mxu0 %vm2615_vm1, %v2419_v53  ;;  %v2430_v53 = vmax.f32 %v1478_v63, 0.0 }
 0x27d   :  { %v2138_v32 = vadd.f32 %v12330_v10, %v2137_v11  ;;  %10003 = vmatprep.mubr.msk.f32.mxu0 %vm2615_vm1, %v2420_v33  ;;  %10213 = vmatprep.mubr.msk.f32.mxu1 %vm2615_vm1, %v2560_v54  ;;  %v15660_v11 = vld [vmem:[#allocation28_spill] sm:$0xff] }
 0x27e   :  { %10214 = vmatmul.mubr.msk.f32.gmra.mrb[80].mxu1 %vm2615_vm1, %v2561_v18  ;;  %v2563_v3 = vmax.f32 %v2143_v57, 0.0  ;;  %v2431_v57 = vmax.f32 %v1483_v30, 0.0  ;;  %v1538_v30 = vadd.f32 %v12330_v10, %v15669_v44 }
 0x27f   :  { %v2562_v21 = vmax.f32 %v2138_v32, 0.0  ;;  %v9842_v56 = vpop.f32.mrb[208].mxu0  ;;  %v1493_v32 = vadd.f32 %v12330_v10, %v15660_v11  ;;  %v15671_v11 = vld [vmem:[#allocation41_spill] sm:$0xff] }
 0x280   :  { %v2153_v40 = vadd.f32 %v12330_v10, %v9842_v56  ;;  %v2147_v1 = vpop.f32.mrb[209].mxu0  ;;  %10004 = vmatmul.mubr.msk.f32.gmra.mrb[58].mxu0 %vm2615_vm1, %v2421_v23  ;;  %v2432_v23 = vmax.f32 %v1488_v35, 0.0 }
 0x281   :  { %v2148_v49 = vadd.f32 %v12330_v10, %v2147_v1  ;;  %10006 = vmatprep.mubr.msk.f32.mxu0 %vm2615_vm1, %v2422_v34  ;;  %10216 = vmatprep.mubr.msk.f32.mxu1 %vm2615_vm1, %v2562_v21  ;;  %v15662_v1 = vld [vmem:[#allocation30_spill] sm:$0xff] }
 0x282   :  { %10217 = vmatmul.mubr.msk.f32.gmra.mrb[82].mxu1 %vm2615_vm1, %v2563_v3  ;;  %v2565_v61 = vmax.f32 %v2153_v40, 0.0  ;;  %v2433_v40 = vmax.f32 %v1493_v32, 0.0  ;;  %v1548_v32 = vadd.f32 %v12330_v10, %v15671_v11 }
 0x283   :  { %v2564_v48 = vmax.f32 %v2148_v49, 0.0  ;;  %v9845_v0 = vpop.f32.mrb[210].mxu0  ;;  %v1503_v49 = vadd.f32 %v12330_v10, %v15662_v1  ;;  %v15673_v1 = vld [vmem:[#allocation43_spill] sm:$0xff] }
 0x284   :  { %v2163_v37 = vadd.f32 %v12330_v10, %v9845_v0  ;;  %v2157_v43 = vpop.f32.mrb[211].mxu0  ;;  %10007 = vmatmul.mubr.msk.f32.gmra.mrb[60].mxu0 %vm2615_vm1, %v2423_v36  ;;  %v2434_v36 = vmax.f32 %v1498_v59, 0.0 }
 0x285   :  { %v2158_v9 = vadd.f32 %v12330_v10, %v2157_v43  ;;  %10009 = vmatprep.mubr.msk.f32.mxu0 %vm2615_vm1, %v2424_v22  ;;  %10219 = vmatprep.mubr.msk.f32.mxu1 %vm2615_vm1, %v2564_v48  ;;  %v15664_v43 = vld [vmem:[#allocation32_spill] sm:$0xff] }
 0x286   :  { %10220 = vmatmul.mubr.msk.f32.gmra.mrb[84].mxu1 %vm2615_vm1, %v2565_v61  ;;  %v2567_v8 = vmax.f32 %v2163_v37, 0.0  ;;  %v2435_v37 = vmax.f32 %v1503_v49, 0.0  ;;  %v1558_v49 = vadd.f32 %v12330_v10, %v15673_v1 }
 0x287   :  { %v2566_v60 = vmax.f32 %v2158_v9, 0.0  ;;  %v9848_v58 = vpop.f32.mrb[212].mxu0  ;;  %v1513_v9 = vadd.f32 %v12330_v10, %v15664_v43  ;;  %v15675_v43 = vld [vmem:[#allocation45_spill] sm:$0xff] }
 0x288   :  { %v2173_v42 = vadd.f32 %v12330_v10, %v9848_v58  ;;  %v2167_v17 = vpop.f32.mrb[213].mxu0  ;;  %10010 = vmatmul.mubr.msk.f32.gmra.mrb[62].mxu0 %vm2615_vm1, %v2425_v12  ;;  %v2436_v12 = vmax.f32 %v1508_v52, 0.0 }
 0x289   :  { %v2168_v26 = vadd.f32 %v12330_v10, %v2167_v17  ;;  %10012 = vmatprep.mubr.msk.f32.mxu0 %vm2615_vm1, %v2426_v28  ;;  %10222 = vmatprep.mubr.msk.f32.mxu1 %vm2615_vm1, %v2566_v60  ;;  %v15666_v17 = vld [vmem:[#allocation34_spill] sm:$0xff] }
 0x28a   :  { %10223 = vmatmul.mubr.msk.f32.gmra.mrb[86].mxu1 %vm2615_vm1, %v2567_v8  ;;  %v2569_v25 = vmax.f32 %v2173_v42, 0.0  ;;  %v2437_v42 = vmax.f32 %v1513_v9, 0.0  ;;  %v1568_v9 = vadd.f32 %v12330_v10, %v15675_v43 }
 0x28b   :  { %v2568_v16 = vmax.f32 %v2168_v26, 0.0  ;;  %v9851_v19 = vpop.f32.mrb[214].mxu0  ;;  %v1523_v26 = vadd.f32 %v12330_v10, %v15666_v17 }
 0x28c   :  { %v2183_v5 = vadd.f32 %v12330_v10, %v9851_v19  ;;  %v2177_v46 = vpop.f32.mrb[215].mxu0  ;;  %10013 = vmatmul.mubr.msk.f32.gmra.mrb[64].mxu0 %vm2615_vm1, %v2427_v47  ;;  %v2438_v47 = vmax.f32 %v1518_v4, 0.0 }
 0x28d   :  { %v2178_v45 = vadd.f32 %v12330_v10, %v2177_v46  ;;  %10015 = vmatprep.mubr.msk.f32.mxu0 %vm2615_vm1, %v2428_v55  ;;  %10225 = vmatprep.mubr.msk.f32.mxu1 %vm2615_vm1, %v2568_v16  ;;  %v15668_v46 = vld [vmem:[#allocation36_spill] sm:$0xff] }
 0x28e   :  { %10226 = vmatmul.mubr.msk.f32.gmra.mrb[88].mxu1 %vm2615_vm1, %v2569_v25  ;;  %v2571_v6 = vmax.f32 %v2183_v5, 0.0  ;;  %v2439_v5 = vmax.f32 %v1523_v26, 0.0  ;;  %v2448_v26 = vmax.f32 %v1568_v9, 0.0 }
 0x28f   :  { %v2570_v33 = vmax.f32 %v2178_v45, 0.0  ;;  %v9854_v20 = vpop.f32.mrb[216].mxu0  ;;  %v1533_v45 = vadd.f32 %v12330_v10, %v15668_v46  ;;  %v15678_v46 = vld [vmem:[#allocation46_spill] sm:$0xff] }
 0x290   :  { %v2193_v54 = vadd.f32 %v12330_v10, %v9854_v20  ;;  %v2187_v50 = vpop.f32.mrb[217].mxu0  ;;  %10016 = vmatmul.mubr.msk.f32.gmra.mrb[66].mxu0 %vm2615_vm1, %v2429_v51  ;;  %v2440_v51 = vmax.f32 %v1528_v31, 0.0 }
 0x291   :  { %v2188_v18 = vadd.f32 %v12330_v10, %v2187_v50  ;;  %10018 = vmatprep.mubr.msk.f32.mxu0 %vm2615_vm1, %v2430_v53  ;;  %10228 = vmatprep.mubr.msk.f32.mxu1 %vm2615_vm1, %v2570_v33  ;;  %v15670_v50 = vld [vmem:[#allocation38_spill] sm:$0xff] }
 0x292   :  { %10229 = vmatmul.mubr.msk.f32.gmra.mrb[90].mxu1 %vm2615_vm1, %v2571_v6  ;;  %v2573_v39 = vmax.f32 %v2193_v54, 0.0  ;;  %v2441_v54 = vmax.f32 %v1533_v45, 0.0  ;;  %v1583_v45 = vadd.f32 %v12330_v10, %v15678_v46  ;;  %v15687_v46 = vld [vmem:[#allocation57_spill] sm:$0xff] }
 0x293   :  { %v2572_v34 = vmax.f32 %v2188_v18, 0.0  ;;  %v9857_v62 = vpop.f32.mrb[218].mxu0  ;;  %v1543_v18 = vadd.f32 %v12330_v10, %v15670_v50 }
 0x294   :  { %v2203_v21 = vadd.f32 %v12330_v10, %v9857_v62  ;;  %v2197_v56 = vpop.f32.mrb[219].mxu0  ;;  %10019 = vmatmul.mubr.msk.f32.gmra.mrb[68].mxu0 %vm2615_vm1, %v2431_v57  ;;  %v2442_v57 = vmax.f32 %v1538_v30, 0.0  ;;  %v15679_v30 = vld [vmem:[#allocation49_spill] sm:$0xff] }
 0x295   :  { %v2198_v3 = vadd.f32 %v12330_v10, %v2197_v56  ;;  %10021 = vmatprep.mubr.msk.f32.mxu0 %vm2615_vm1, %v2432_v23  ;;  %10231 = vmatprep.mubr.msk.f32.mxu1 %vm2615_vm1, %v2572_v34  ;;  %v15672_v56 = vld [vmem:[#allocation40_spill] sm:$0xff] }
 0x296   :  { %10232 = vmatmul.mubr.msk.f32.gmra.mrb[92].mxu1 %vm2615_vm1, %v2573_v39  ;;  %v2575_v27 = vmax.f32 %v2203_v21, 0.0  ;;  %v2443_v21 = vmax.f32 %v1543_v18, 0.0  ;;  %v2451_v18 = vmax.f32 %v1583_v45, 0.0  ;;  %v1628_v45 = vadd.f32 %v12330_v10, %v15687_v46 }
 0x297   :  { %v2574_v22 = vmax.f32 %v2198_v3, 0.0  ;;  %v9860_v38 = vpop.f32.mrb[220].mxu0  ;;  %v1553_v3 = vadd.f32 %v12330_v10, %v15672_v56 }
 0x298   :  { %v2213_v48 = vadd.f32 %v12330_v10, %v9860_v38  ;;  %v2207_v0 = vpop.f32.mrb[221].mxu0  ;;  %10022 = vmatmul.mubr.msk.f32.gmra.mrb[70].mxu0 %vm2615_vm1, %v2433_v40  ;;  %v2444_v40 = vmax.f32 %v1548_v32, 0.0 }
 0x299   :  { %v2208_v61 = vadd.f32 %v12330_v10, %v2207_v0  ;;  %10024 = vmatprep.mubr.msk.f32.mxu0 %vm2615_vm1, %v2434_v36  ;;  %10234 = vmatprep.mubr.msk.f32.mxu1 %vm2615_vm1, %v2574_v22  ;;  %v15674_v0 = vld [vmem:[#allocation42_spill] sm:$0xff] }
 0x29a   :  { %10235 = vmatmul.mubr.msk.f32.gmra.mrb[94].mxu1 %vm2615_vm1, %v2575_v27  ;;  %v2577_v2 = vmax.f32 %v2213_v48, 0.0  ;;  %v2445_v48 = vmax.f32 %v1553_v3, 0.0 }
 0x29b   :  { %v2576_v28 = vmax.f32 %v2208_v61, 0.0  ;;  %v9863_v13 = vpop.f32.mrb[222].mxu0  ;;  %v1563_v61 = vadd.f32 %v12330_v10, %v15674_v0 }
 0x29c   :  { %v2223_v60 = vadd.f32 %v12330_v10, %v9863_v13  ;;  %v2217_v58 = vpop.f32.mrb[223].mxu0  ;;  %10025 = vmatmul.mubr.msk.f32.gmra.mrb[72].mxu0 %vm2615_vm1, %v2435_v37  ;;  %v2446_v37 = vmax.f32 %v1558_v49, 0.0  ;;  %v15682_v49 = vld [vmem:[#allocation50_spill] sm:$0xff] }
 0x29d   :  { %v2218_v8 = vadd.f32 %v12330_v10, %v2217_v58  ;;  %10027 = vmatprep.mubr.msk.f32.mxu0 %vm2615_vm1, %v2436_v12  ;;  %10237 = vmatprep.mubr.msk.f32.mxu1 %vm2615_vm1, %v2576_v28  ;;  %v2447_v58 = vmax.f32 %v1563_v61, 0.0 }
 0x29e   :  { %10238 = vmatmul.mubr.msk.f32.gmra.mrb[96].mxu1 %vm2615_vm1, %v2577_v2  ;;  %v2579_v63 = vmax.f32 %v2223_v60, 0.0 }
 0x29f   :  { %v2578_v55 = vmax.f32 %v2218_v8, 0.0  ;;  %v9866_v14 = vpop.f32.mrb[224].mxu0  ;;  %v15676_v8 = vld [vmem:[#allocation44_spill] sm:$0xff] }
 0x2a0   :  { %v2233_v16 = vadd.f32 %v12330_v10, %v9866_v14  ;;  %v2227_v19 = vpop.f32.mrb[225].mxu0  ;;  %10028 = vmatmul.mubr.msk.f32.gmra.mrb[74].mxu0 %vm2615_vm1, %v2437_v42  ;;  %v1573_v42 = vadd.f32 %v12330_v10, %v15676_v8 }
 0x2a1   :  { %v2228_v25 = vadd.f32 %v12330_v10, %v2227_v19  ;;  %10030 = vmatprep.mubr.msk.f32.mxu0 %vm2615_vm1, %v2438_v47  ;;  %10240 = vmatprep.mubr.msk.f32.mxu1 %vm2615_vm1, %v2578_v55  ;;  %v15677_v47 = vld [vmem:[#allocation47_spill] sm:$0xff] }
 0x2a2   :  { %10241 = vmatmul.mubr.msk.f32.gmra.mrb[98].mxu1 %vm2615_vm1, %v2579_v63  ;;  %v2581_v35 = vmax.f32 %v2233_v16, 0.0  ;;  %v1578_v7 = vadd.f32 %v12330_v10, %v15677_v47 }
 0x2a3   :  { %v2580_v53 = vmax.f32 %v2228_v25, 0.0  ;;  %v9869_v24 = vpop.f32.mrb[226].mxu0 }
 0x2a4   :  { %v2243_v33 = vadd.f32 %v12330_v10, %v9869_v24  ;;  %v2237_v20 = vpop.f32.mrb[227].mxu0  ;;  %10031 = vmatmul.mubr.msk.f32.gmra.mrb[76].mxu0 %vm2615_vm1, %v2439_v5  ;;  %v2449_v5 = vmax.f32 %v1573_v42, 0.0  ;;  %v2450_v44 = vmax.f32 %v1578_v7, 0.0 }
 0x2a5   :  { %v2238_v6 = vadd.f32 %v12330_v10, %v2237_v20  ;;  %10033 = vmatprep.mubr.msk.f32.mxu0 %vm2615_vm1, %v2440_v51  ;;  %10243 = vmatprep.mubr.msk.f32.mxu1 %vm2615_vm1, %v2580_v53  ;;  %v1588_v53 = vadd.f32 %v12330_v10, %v15679_v30 }
 0x2a6   :  { %10244 = vmatmul.mubr.msk.f32.gmra.mrb[100].mxu1 %vm2615_vm1, %v2581_v35  ;;  %v2583_v59 = vmax.f32 %v2243_v33, 0.0 }
 0x2a7   :  { %v2582_v23 = vmax.f32 %v2238_v6, 0.0  ;;  %v9872_v41 = vpop.f32.mrb[228].mxu0 }
 0x2a8   :  { %v2253_v34 = vadd.f32 %v12330_v10, %v9872_v41  ;;  %v2247_v62 = vpop.f32.mrb[229].mxu0  ;;  %10034 = vmatmul.mubr.msk.f32.gmra.mrb[78].mxu0 %vm2615_vm1, %v2441_v54  ;;  %v15681_v41 = vld [vmem:[#allocation51_spill] sm:$0xff] }
 0x2a9   :  { %v2248_v39 = vadd.f32 %v12330_v10, %v2247_v62  ;;  %10036 = vmatprep.mubr.msk.f32.mxu0 %vm2615_vm1, %v2442_v57  ;;  %10246 = vmatprep.mubr.msk.f32.mxu1 %vm2615_vm1, %v2582_v23  ;;  %v15680_v57 = vld [vmem:[#allocation48_spill] sm:$0xff]  ;;  %v2452_v23 = vmax.f32 %v1588_v53, 0.0 }
 0x2aa   :  { %10247 = vmatmul.mubr.msk.f32.gmra.mrb[102].mxu1 %vm2615_vm1, %v2583_v59  ;;  %v2585_v52 = vmax.f32 %v2253_v34, 0.0  ;;  %v1593_v11 = vadd.f32 %v12330_v10, %v15680_v57  ;;  %v1598_v59 = vadd.f32 %v12330_v10, %v15681_v41 }
 0x2ab   :  { %v2584_v36 = vmax.f32 %v2248_v39, 0.0  ;;  %v9875_v29 = vpop.f32.mrb[230].mxu0 }
 0x2ac   :  { %v2263_v22 = vadd.f32 %v12330_v10, %v9875_v29  ;;  %v2257_v38 = vpop.f32.mrb[231].mxu0  ;;  %10037 = vmatmul.mubr.msk.f32.gmra.mrb[80].mxu0 %vm2615_vm1, %v2443_v21  ;;  %v2453_v1 = vmax.f32 %v1593_v11, 0.0  ;;  %v2460_v11 = vmax.f32 %v1628_v45, 0.0 }
 0x2ad   :  { %v2258_v27 = vadd.f32 %v12330_v10, %v2257_v38  ;;  %10039 = vmatprep.mubr.msk.f32.mxu0 %vm2615_vm1, %v2444_v40  ;;  %10249 = vmatprep.mubr.msk.f32.mxu1 %vm2615_vm1, %v2584_v36  ;;  %v1603_v36 = vadd.f32 %v12330_v10, %v15682_v49  ;;  %v15690_v49 = vld [vmem:[#allocation58_spill] sm:$0xff] }
 0x2ae   :  { %10250 = vmatmul.mubr.msk.f32.gmra.mrb[104].mxu1 %vm2615_vm1, %v2585_v52  ;;  %v2587_v4 = vmax.f32 %v2263_v22, 0.0  ;;  %v2454_v52 = vmax.f32 %v1598_v59, 0.0  ;;  %v15683_v22 = vld [vmem:[#allocation53_spill] sm:$0xff] }
 0x2af   :  { %v2586_v12 = vmax.f32 %v2258_v27, 0.0  ;;  %v9878_v15 = vpop.f32.mrb[232].mxu0  ;;  %v1608_v38 = vadd.f32 %v12330_v10, %v15683_v22 }
 0x2b0   :  { %v2273_v28 = vadd.f32 %v12330_v10, %v9878_v15  ;;  %v2267_v13 = vpop.f32.mrb[233].mxu0  ;;  %10040 = vmatmul.mubr.msk.f32.gmra.mrb[82].mxu0 %vm2615_vm1, %v2445_v48  ;;  %v15684_v15 = vld [vmem:[#allocation52_spill] sm:$0xff] }
 0x2b1   :  { %v2268_v2 = vadd.f32 %v12330_v10, %v2267_v13  ;;  %10042 = vmatprep.mubr.msk.f32.mxu0 %vm2615_vm1, %v2446_v37  ;;  %v12501_v60 = vpop.f32.mrb[0].mxu1  ;;  %10252 = vmatprep.mubr.msk.f32.mxu1 %vm2615_vm1, %v2586_v12  ;;  %v2455_v12 = vmax.f32 %v1603_v36, 0.0  ;;  %v2456_v13 = vmax.f32 %v1608_v38, 0.0  ;;  %v1643_v36 = vadd.f32 %v12330_v10, %v15690_v49  ;;  %v15691_v38 = vld [vmem:[#allocation61_spill] sm:$0xff] }
 0x2b2   :  { %v12506_v17 = vpop.f32.mrb[1].mxu1  ;;  %10253 = vmatmul.mubr.msk.f32.gmra.mrb[106].mxu1 %vm2615_vm1, %v2587_v4  ;;  %v2589_v14 = vmax.f32 %v2273_v28, 0.0  ;;  %v1613_v4 = vadd.f32 %v12330_v10, %v15684_v15 }
 0x2b3   :  { %v2588_v31 = vmax.f32 %v2268_v2, 0.0  ;;  %v9881_v55 = vpop.f32.mrb[234].mxu0  ;;  %v15685_v2 = vld [vmem:[#allocation55_spill] sm:$0xff] }
 0x2b4   :  { %v2283_v63 = vadd.f32 %v12330_v10, %v9881_v55  ;;  %v2277_v16 = vpop.f32.mrb[235].mxu0  ;;  %10043 = vmatmul.mubr.msk.f32.gmra.mrb[84].mxu0 %vm2615_vm1, %v2447_v58  ;;  %v1618_v58 = vadd.f32 %v12330_v10, %v15685_v2 }
 0x2b5   :  { %v2278_v19 = vadd.f32 %v12330_v10, %v2277_v16  ;;  %10045 = vmatprep.mubr.msk.f32.mxu0 %vm2615_vm1, %v2448_v26  ;;  %v12515_v25 = vpop.f32.mrb[2].mxu1  ;;  %10255 = vmatprep.mubr.msk.f32.mxu1 %vm2615_vm1, %v2588_v31 }
 0x2b6   :  { %v12520_v51 = vpop.f32.mrb[3].mxu1  ;;  %10256 = vmatmul.mubr.msk.f32.gmra.mrb[108].mxu1 %vm2615_vm1, %v2589_v14  ;;  %v2591_v33 = vmax.f32 %v2283_v63, 0.0  ;;  %v2457_v14 = vmax.f32 %v1613_v4, 0.0  ;;  %v15686_v63 = vld [vmem:[#allocation54_spill] sm:$0xff]  ;;  %v2463_v4 = vmax.f32 %v1643_v36, 0.0 }
 0x2b7   :  { %v2590_v24 = vmax.f32 %v2278_v19, 0.0  ;;  %v9884_v35 = vpop.f32.mrb[236].mxu0  ;;  %v1623_v16 = vadd.f32 %v12330_v10, %v15686_v63 }
 0x2b8   :  { %v2293_v20 = vadd.f32 %v12330_v10, %v9884_v35  ;;  %v2287_v6 = vpop.f32.mrb[237].mxu0  ;;  %10046 = vmatmul.mubr.msk.f32.gmra.mrb[86].mxu0 %vm2615_vm1, %v2449_v5  ;;  %v2458_v5 = vmax.f32 %v1618_v58, 0.0 }
 0x2b9   :  { %v2288_v54 = vadd.f32 %v12330_v10, %v2287_v6  ;;  %10048 = vmatprep.mubr.msk.f32.mxu0 %vm2615_vm1, %v2450_v44  ;;  %v12529_v50 = vpop.f32.mrb[4].mxu1  ;;  %10258 = vmatprep.mubr.msk.f32.mxu1 %vm2615_vm1, %v2590_v24  ;;  %v2459_v6 = vmax.f32 %v1623_v16, 0.0 }
 0x2ba   :  { %v12534_v32 = vpop.f32.mrb[5].mxu1  ;;  %10259 = vmatmul.mubr.msk.f32.gmra.mrb[110].mxu1 %vm2615_vm1, %v2591_v33  ;;  %v2593_v39 = vmax.f32 %v2293_v20, 0.0 }
 0x2bb   :  { %v2592_v34 = vmax.f32 %v2288_v54, 0.0  ;;  %v9887_v62 = vpop.f32.mrb[238].mxu0  ;;  %v15688_v54 = vld [vmem:[#allocation56_spill] sm:$0xff] }
 0x2bc   :  { %v2303_v21 = vadd.f32 %v12330_v10, %v9887_v62  ;;  %v2297_v56 = vpop.f32.mrb[239].mxu0  ;;  %10049 = vmatmul.mubr.msk.f32.gmra.mrb[88].mxu0 %vm2615_vm1, %v2451_v18  ;;  %v1633_v18 = vadd.f32 %v12330_v10, %v15688_v54 }
 0x2bd   :  { %v2298_v3 = vadd.f32 %v12330_v10, %v2297_v56  ;;  %10051 = vmatprep.mubr.msk.f32.mxu0 %vm2615_vm1, %v2452_v23  ;;  %v12543_v40 = vpop.f32.mrb[6].mxu1  ;;  %10261 = vmatprep.mubr.msk.f32.mxu1 %vm2615_vm1, %v2592_v34  ;;  %v15689_v23 = vld [vmem:[#allocation59_spill] sm:$0xff] }
 0x2be   :  { %v12548_v29 = vpop.f32.mrb[7].mxu1  ;;  %10262 = vmatmul.mubr.msk.f32.gmra.mrb[112].mxu1 %vm2615_vm1, %v2593_v39  ;;  %v2595_v0 = vmax.f32 %v2303_v21, 0.0  ;;  %v1638_v41 = vadd.f32 %v12330_v10, %v15689_v23 }
 0x2bf   :  { %v2594_v27 = vmax.f32 %v2298_v3, 0.0  ;;  %v9890_v48 = vpop.f32.mrb[240].mxu0 }
 0x2c0   :  { %v2313_v61 = vadd.f32 %v12330_v10, %v9890_v48  ;;  %v2307_v37 = vpop.f32.mrb[241].mxu0  ;;  %10052 = vmatmul.mubr.msk.f32.gmra.mrb[90].mxu0 %vm2615_vm1, %v2453_v1  ;;  %v2461_v1 = vmax.f32 %v1633_v18, 0.0  ;;  %v2462_v22 = vmax.f32 %v1638_v41, 0.0 }
 0x2c1   :  { %v2308_v43 = vadd.f32 %v12330_v10, %v2307_v37  ;;  %10054 = vmatprep.mubr.msk.f32.mxu0 %vm2615_vm1, %v2454_v52  ;;  %v12557_v9 = vpop.f32.mrb[8].mxu1  ;;  %10264 = vmatprep.mubr.msk.f32.mxu1 %vm2615_vm1, %v2594_v27  ;;  %v1648_v27 = vadd.f32 %v12330_v10, %v15691_v38 }
 0x2c2   :  { %v12562_v28 = vpop.f32.mrb[9].mxu1  ;;  %10265 = vmatmul.mubr.msk.f32.gmra.mrb[114].mxu1 %vm2615_vm1, %v2595_v0  ;;  %v2597_v26 = vmax.f32 %v2313_v61, 0.0 }
 0x2c3   :  { %v2596_v8 = vmax.f32 %v2308_v43, 0.0  ;;  %v9893_v42 = vpop.f32.mrb[242].mxu0 }
 0x2c4   :  { %v2323_v47 = vadd.f32 %v12330_v10, %v9893_v42  ;;  %v2317_v7 = vpop.f32.mrb[243].mxu0  ;;  %10055 = vmatmul.mubr.msk.f32.gmra.mrb[92].mxu0 %vm2615_vm1, %v2455_v12  ;;  %v15693_v42 = vld [vmem:[#allocation63_spill] sm:$0xff] }
 0x2c5   :  { %v2318_v31 = vadd.f32 %v12330_v10, %v2317_v7  ;;  %10057 = vmatprep.mubr.msk.f32.mxu0 %vm2615_vm1, %v2456_v13  ;;  %v12571_v55 = vpop.f32.mrb[10].mxu1  ;;  %10267 = vmatprep.mubr.msk.f32.mxu1 %vm2615_vm1, %v2596_v8  ;;  %v15692_v13 = vld [vmem:[#allocation60_spill] sm:$0xff]  ;;  %v2464_v8 = vmax.f32 %v1648_v27, 0.0 }
 0x2c6   :  { %v12576_v19 = vpop.f32.mrb[11].mxu1  ;;  %10268 = vmatmul.mubr.msk.f32.gmra.mrb[116].mxu1 %vm2615_vm1, %v2597_v26  ;;  %v2599_v53 = vmax.f32 %v2323_v47, 0.0  ;;  %v1653_v2 = vadd.f32 %v12330_v10, %v15692_v13  ;;  %v1658_v26 = vadd.f32 %v12330_v10, %v15693_v42  ;;  %v12626_v47 = vld [vmem:[%s15555_s5] ss:$0 sm:$0xff] }
 0x2c7   :  { %v2598_v44 = vmax.f32 %v2318_v31, 0.0  ;;  %v9896_v30 = vpop.f32.mrb[244].mxu0 }
 0x2c8   :  { %v2333_v24 = vadd.f32 %v12330_v10, %v9896_v30  ;;  %v2327_v35 = vpop.f32.mrb[245].mxu0  ;;  %10058 = vmatmul.mubr.msk.f32.gmra.mrb[94].mxu0 %vm2615_vm1, %v2457_v14  ;;  %v2465_v45 = vmax.f32 %v1653_v2, 0.0  ;;  %v15699_v2 = vld [vmem:[#allocation69_spill] sm:$0xff] }
 0x2c9   :  { %v2328_v33 = vadd.f32 %v12330_v10, %v2327_v35  ;;  %10060 = vmatprep.mubr.msk.f32.mxu0 %vm2615_vm1, %v2458_v5  ;;  %v12585_v20 = vpop.f32.mrb[12].mxu1  ;;  %10270 = vmatprep.mubr.msk.f32.mxu1 %vm2615_vm1, %v2598_v44  ;;  %v15694_v44 = vld [vmem:[#allocation62_spill] sm:$0xff]  ;;  %v15695_v35 = vld [vmem:[#allocation65_spill] sm:$0xff] }
 0x2ca   :  { %v12590_v57 = vpop.f32.mrb[13].mxu1  ;;  %10271 = vmatmul.mubr.msk.f32.gmra.mrb[118].mxu1 %vm2615_vm1, %v2599_v53  ;;  %v2601_v62 = vmax.f32 %v2333_v24, 0.0  ;;  %v1663_v30 = vadd.f32 %v12330_v10, %v15694_v44  ;;  %v2466_v24 = vmax.f32 %v1658_v26, 0.0 }
 0x2cb   :  { %v2600_v59 = vmax.f32 %v2328_v33, 0.0  ;;  %v9899_v34 = vpop.f32.mrb[246].mxu0  ;;  %v1668_v33 = vadd.f32 %v12330_v10, %v15695_v35  ;;  %v15701_v35 = vld [vmem:[#allocation71_spill] sm:$0xff] }
 0x2cc   :  { %v2343_v39 = vadd.f32 %v12330_v10, %v9899_v34  ;;  %v2337_v21 = vpop.f32.mrb[247].mxu0  ;;  %10061 = vmatmul.mubr.msk.f32.gmra.mrb[96].mxu0 %vm2615_vm1, %v2459_v6  ;;  %v2467_v34 = vmax.f32 %v1663_v30, 0.0 }
 0x2cd   :  { %v2338_v56 = vadd.f32 %v12330_v10, %v2337_v21  ;;  %10063 = vmatprep.mubr.msk.f32.mxu0 %vm2615_vm1, %v2460_v11  ;;  %v12599_v3 = vpop.f32.mrb[14].mxu1  ;;  %10273 = vmatprep.mubr.msk.f32.mxu1 %vm2615_vm1, %v2600_v59 }
 0x2ce   :  { %v12604_v52 = vpop.f32.mrb[15].mxu1  ;;  %10274 = vmatmul.mubr.msk.f32.gmra.mrb[120].mxu1 %vm2615_vm1, %v2601_v62  ;;  %v2603_v61 = vmax.f32 %v2343_v39, 0.0  ;;  %v15696_v62 = vld [vmem:[#allocation64_spill] sm:$0xff] }
 0x2cf   :  { %v2602_v48 = vmax.f32 %v2338_v56, 0.0  ;;  %v9902_v0 = vpop.f32.mrb[248].mxu0  ;;  %v1673_v39 = vadd.f32 %v12330_v10, %v15696_v62  ;;  %v2468_v56 = vmax.f32 %v1668_v33, 0.0  ;;  %v1698_v33 = vadd.f32 %v12330_v10, %v15701_v35 }
 0x2d0   :  { %v2353_v37 = vadd.f32 %v12330_v10, %v9902_v0  ;;  %v2347_v43 = vpop.f32.mrb[249].mxu0  ;;  %10064 = vmatmul.mubr.msk.f32.gmra.mrb[98].mxu0 %vm2615_vm1, %v2461_v1  ;;  %v15697_v1 = vld [vmem:[#allocation67_spill] sm:$0xff] }
 0x2d1   :  { %v2348_v12 = vadd.f32 %v12330_v10, %v2347_v43  ;;  %10066 = vmatprep.mubr.msk.f32.mxu0 %vm2615_vm1, %v2462_v22  ;;  %v12613_v15 = vpop.f32.mrb[16].mxu1  ;;  %10276 = vmatprep.mubr.msk.f32.mxu1 %vm2615_vm1, %v2602_v48  ;;  %v1678_v49 = vadd.f32 %v12330_v10, %v15697_v1  ;;  %v15698_v43 = vld [vmem:[#allocation66_spill] sm:$0xff] }
 0x2d2   :  { %v12618_v58 = vpop.f32.mrb[17].mxu1  ;;  %10277 = vmatmul.mubr.msk.f32.gmra.mrb[122].mxu1 %vm2615_vm1, %v2603_v61  ;;  %v2605_v14 = vmax.f32 %v2353_v37, 0.0  ;;  %v2469_v37 = vmax.f32 %v1673_v39, 0.0  ;;  %v15702_v39 = vld [vmem:[#allocation70_spill] sm:$0xff] }
 0x2d3   :  { %v2604_v7 = vmax.f32 %v2348_v12, 0.0  ;;  %v9909_v31 = vpop.f32.mrb[250].mxu0  ;;  %v1683_v12 = vadd.f32 %v12330_v10, %v15698_v43  ;;  %v2470_v13 = vmax.f32 %v1678_v49, 0.0  ;;  %v2474_v49 = vmax.f32 %v1698_v33, 0.0 }
 0x2d4   :  { %v3438_v63 = vadd.f32 %v9909_v31, %v12626_v47  ;;  %v3432_v16 = vpop.f32.mrb[251].mxu0  ;;  %10067 = vmatmul.mubr.msk.f32.gmra.mrb[100].mxu0 %vm2615_vm1, %v2463_v4 }
 0x2d5   :  { %v3433_v5 = vadd.f32 %v12626_v47, %v3432_v16  ;;  %10069 = vmatprep.mubr.msk.f32.mxu0 %vm2615_vm1, %v2464_v8  ;;  %v12632_v46 = vpop.f32.mrb[18].mxu1  ;;  %10279 = vmatprep.mubr.msk.f32.mxu1 %vm2615_vm1, %v2604_v7  ;;  %v1688_v8 = vadd.f32 %v12330_v10, %v15699_v2  ;;  %v15704_v2 = vld [vmem:[#allocation72_spill] sm:$0xff] }
 0x2d6   :  { %v12637_v53 = vpop.f32.mrb[19].mxu1  ;;  %10280 = vmatmul.mubr.msk.f32.gmra.mrb[124].mxu1 %vm2615_vm1, %v2605_v14  ;;  %v4682_v18 = vmax.f32 %v3438_v63, 0.0 }
 0x2d7   :  { %v4681_v6 = vmax.f32 %v3433_v5, 0.0  ;;  %v9912_v54 = vpop.f32.mrb[252].mxu0  ;;  %v2471_v5 = vmax.f32 %v1683_v12, 0.0 }
 0x2d8   :  { %v3448_v11 = vadd.f32 %v9912_v54, %v12626_v47  ;;  %v3442_v23 = vpop.f32.mrb[253].mxu0  ;;  %10070 = vmatmul.mubr.msk.f32.gmra.mrb[102].mxu0 %vm2615_vm1, %v2465_v45  ;;  %v15700_v45 = vld [vmem:[#allocation68_spill] sm:$0xff] }
 0x2d9   :  { %v3443_v41 = vadd.f32 %v12626_v47, %v3442_v23  ;;  %10072 = vmatprep.mubr.msk.f32.mxu0 %vm2615_vm1, %v2466_v24  ;;  %v12646_v59 = vpop.f32.mrb[20].mxu1  ;;  %10284 = vmatprep.mubr.msk.f32.mxu1 %vm4932_vm2, %v4681_v6  ;;  %v1693_v44 = vadd.f32 %v12330_v10, %v15700_v45  ;;  %v2472_v24 = vmax.f32 %v1688_v8, 0.0  ;;  %v1713_v8 = vadd.f32 %v12330_v10, %v15704_v2 }
 0x2da   :  { %v12651_v21 = vpop.f32.mrb[21].mxu1  ;;  %10285 = vmatmul.mubr.msk.f32.vlgmr.msra.gmra.mrb[126].mxu1 %vm4932_vm2, %v4682_v18  ;;  %v4684_v38 = vmax.f32 %v3448_v11, 0.0 }
 0x2db   :  { %v4683_v36 = vmax.f32 %v3443_v41, 0.0  ;;  %v9915_v22 = vpop.f32.mrb[254].mxu0  ;;  %v2473_v62 = vmax.f32 %v1693_v44, 0.0  ;;  %v2477_v33 = vmax.f32 %v1713_v8, 0.0 }
 0x2dc   :  { %v3458_v27 = vadd.f32 %v9915_v22, %v12626_v47  ;;  %v3452_v48 = vpop.f32.mrb[255].mxu0  ;;  %10073 = vmatmul.mubr.msk.f32.gmra.mrb[104].mxu0 %vm2615_vm1, %v2467_v34 }
 0x2dd   :  { %v3453_v0 = vadd.f32 %v12626_v47, %v3452_v48  ;;  %10075 = vmatprep.mubr.msk.f32.mxu0 %vm2615_vm1, %v2468_v56  ;;  %v12660_v61 = vpop.f32.mrb[22].mxu1  ;;  %10287 = vmatprep.mubr.msk.f32.mxu1 %vm4932_vm2, %v4683_v36  ;;  %v1703_v56 = vadd.f32 %v12330_v10, %v15702_v39  ;;  %v15703_v36 = vld [vmem:[#allocation73_spill] sm:$0xff] }
 0x2de   :  { %v12665_v4 = vpop.f32.mrb[23].mxu1  ;;  %10288 = vmatmul.mubr.msk.f32.gmra.mrb[128].mxu1 %vm4932_vm2, %v4684_v38  ;;  %v4686_v7 = vmax.f32 %v3458_v27, 0.0  ;;  %v1708_v22 = vadd.f32 %v12330_v10, %v15703_v36 }
 0x2df   :  { %v4685_v42 = vmax.f32 %v3453_v0, 0.0  ;;  %v9918_v26 = vpop.f32.mrb[0].mxu0 }
 0x2e0   :  { %v3468_v31 = vadd.f32 %v9918_v26, %v12626_v47  ;;  %v3462_v14 = vpop.f32.mrb[1].mxu0  ;;  %10076 = vmatmul.mubr.msk.f32.gmra.mrb[106].mxu0 %vm2615_vm1, %v2469_v37  ;;  %v2476_v26 = vmax.f32 %v1708_v22, 0.0 }
 0x2e1   :  { %v3463_v63 = vadd.f32 %v12626_v47, %v3462_v14  ;;  %10078 = vmatprep.mubr.msk.f32.mxu0 %vm2615_vm1, %v2470_v13  ;;  %v12674_v16 = vpop.f32.mrb[24].mxu1  ;;  %10290 = vmatprep.mubr.msk.f32.mxu1 %vm4932_vm2, %v4685_v42  ;;  %v2475_v13 = vmax.f32 %v1703_v56, 0.0 }
 0x2e2   :  { %v12679_v30 = vpop.f32.mrb[25].mxu1  ;;  %10291 = vmatmul.mubr.msk.f32.gmra.mrb[130].mxu1 %vm4932_vm2, %v4686_v7  ;;  %v4688_v18 = vmax.f32 %v3468_v31, 0.0  ;;  %v15705_v7 = vld [vmem:[#allocation75_spill] sm:$0xff] }
 0x2e3   :  { %v4687_v6 = vmax.f32 %v3463_v63, 0.0  ;;  %v9921_v54 = vpop.f32.mrb[2].mxu0  ;;  %v1718_v31 = vadd.f32 %v12330_v10, %v15705_v7 }
 0x2e4   :  { %v3478_v11 = vadd.f32 %v9921_v54, %v12626_v47  ;;  %v3472_v23 = vpop.f32.mrb[3].mxu0  ;;  %10079 = vmatmul.mubr.msk.f32.gmra.mrb[108].mxu0 %vm2615_vm1, %v2471_v5 }
 0x2e5   :  { %v3473_v41 = vadd.f32 %v12626_v47, %v3472_v23  ;;  %10081 = vmatprep.mubr.msk.f32.mxu0 %vm2615_vm1, %v2472_v24  ;;  %v12688_v34 = vpop.f32.mrb[26].mxu1  ;;  %10293 = vmatprep.mubr.msk.f32.mxu1 %vm4932_vm2, %v4687_v6  ;;  %v15706_v6 = vld [vmem:[#allocation74_spill] sm:$0xff] }
 0x2e6   :  { %v12693_v1 = vpop.f32.mrb[27].mxu1  ;;  %10294 = vmatmul.mubr.msk.f32.gmra.mrb[132].mxu1 %vm4932_vm2, %v4688_v18  ;;  %v4690_v48 = vmax.f32 %v3478_v11, 0.0  ;;  %v1723_v54 = vadd.f32 %v12330_v10, %v15706_v6  ;;  %v2478_v11 = vmax.f32 %v1718_v31, 0.0 }
 0x2e7   :  { %v4689_v38 = vmax.f32 %v3473_v41, 0.0  ;;  %v9924_v27 = vpop.f32.mrb[4].mxu0 }
 0x2e8   :  { %v3488_v0 = vadd.f32 %v9924_v27, %v12626_v47  ;;  %v3482_v37 = vpop.f32.mrb[5].mxu0  ;;  %10082 = vmatmul.mubr.msk.f32.gmra.mrb[110].mxu0 %vm2615_vm1, %v2473_v62  ;;  %v2479_v10 = vmax.f32 %v1723_v54, 0.0 }
 0x2e9   :  { %v3483_v43 = vadd.f32 %v12626_v47, %v3482_v37  ;;  %10084 = vmatprep.mubr.msk.f32.mxu0 %vm2615_vm1, %v2474_v49  ;;  %v12702_v12 = vpop.f32.mrb[28].mxu1  ;;  %10296 = vmatprep.mubr.msk.f32.mxu1 %vm4932_vm2, %v4689_v38 }
 0x2ea   :  { %v12707_v42 = vpop.f32.mrb[29].mxu1  ;;  %10297 = vmatmul.mubr.msk.f32.gmra.mrb[134].mxu1 %vm4932_vm2, %v4690_v48  ;;  %v4692_v5 = vmax.f32 %v3488_v0, 0.0 }
 0x2eb   :  { %v4691_v14 = vmax.f32 %v3483_v43, 0.0  ;;  %v9927_v63 = vpop.f32.mrb[6].mxu0 }
 0x2ec   :  { %v3498_v45 = vadd.f32 %v9927_v63, %v12626_v47  ;;  %v3492_v44 = vpop.f32.mrb[7].mxu0  ;;  %10085 = vmatmul.mubr.msk.f32.gmra.mrb[112].mxu0 %vm2615_vm1, %v2475_v13 }
 0x2ed   :  { %v3493_v24 = vadd.f32 %v12626_v47, %v3492_v44  ;;  %10087 = vmatprep.mubr.msk.f32.mxu0 %vm2615_vm1, %v2476_v26  ;;  %v12716_v35 = vpop.f32.mrb[30].mxu1  ;;  %10299 = vmatprep.mubr.msk.f32.mxu1 %vm4932_vm2, %v4691_v14 }
 0x2ee   :  { %v12721_v18 = vpop.f32.mrb[31].mxu1  ;;  %10300 = vmatmul.mubr.msk.f32.gmra.mrb[136].mxu1 %vm4932_vm2, %v4692_v5  ;;  %v4694_v62 = vmax.f32 %v3498_v45, 0.0 }
 0x2ef   :  { %v4693_v23 = vmax.f32 %v3493_v24, 0.0  ;;  %v9930_v41 = vpop.f32.mrb[8].mxu0 }
 0x2f0   :  { %v3508_v39 = vadd.f32 %v9930_v41, %v12626_v47  ;;  %v3502_v56 = vpop.f32.mrb[9].mxu0  ;;  %10088 = vmatmul.mubr.msk.f32.gmra.mrb[114].mxu0 %vm2615_vm1, %v2477_v33 }
 0x2f1   :  { %v3503_v49 = vadd.f32 %v12626_v47, %v3502_v56  ;;  %10090 = vmatprep.mubr.msk.f32.mxu0 %vm2615_vm1, %v2478_v11  ;;  %v12728_v36 = vpop.f32.mrb[32].mxu1  ;;  %10302 = vmatprep.mubr.msk.f32.mxu1 %vm4932_vm2, %v4693_v23 }
 0x2f2   :  { %v12731_v22 = vpop.f32.mrb[33].mxu1  ;;  %10303 = vmatmul.mubr.msk.f32.gmra.mrb[138].mxu1 %vm4932_vm2, %v4694_v62  ;;  %v4696_v48 = vmax.f32 %v3508_v39, 0.0 }
 0x2f3   :  { %v4695_v38 = vmax.f32 %v3503_v49, 0.0  ;;  %v9933_v27 = vpop.f32.mrb[10].mxu0 }
 0x2f4   :  { %v3518_v0 = vadd.f32 %v9933_v27, %v12626_v47  ;;  %v3512_v37 = vpop.f32.mrb[11].mxu0  ;;  %10091 = vmatmul.mubr.msk.f32.gmra.mrb[116].mxu0 %vm2615_vm1, %v2479_v10 }
 0x2f5   :  { %v3513_v43 = vadd.f32 %v12626_v47, %v3512_v37  ;;  %v12737_v13 = vpop.f32.mrb[34].mxu1  ;;  %10305 = vmatprep.mubr.msk.f32.mxu1 %vm4932_vm2, %v4695_v38 }
 0x2f6   :  { %v12740_v2 = vpop.f32.mrb[35].mxu1  ;;  %10306 = vmatmul.mubr.msk.f32.gmra.mrb[140].mxu1 %vm4932_vm2, %v4696_v48  ;;  %v4698_v7 = vmax.f32 %v3518_v0, 0.0 }
 0x2f7   :  { %v4697_v8 = vmax.f32 %v3513_v43, 0.0  ;;  %v9936_v26 = vpop.f32.mrb[12].mxu0 }
 0x2f8   :  { %v3528_v31 = vadd.f32 %v9936_v26, %v12626_v47  ;;  %v3522_v14 = vpop.f32.mrb[13].mxu0 }
 0x2f9   :  { %v3523_v63 = vadd.f32 %v12626_v47, %v3522_v14  ;;  %v12745_v5 = vpop.f32.mrb[36].mxu1  ;;  %10308 = vmatprep.mubr.msk.f32.mxu1 %vm4932_vm2, %v4697_v8 }
 0x2fa   :  { %v12748_v45 = vpop.f32.mrb[37].mxu1  ;;  %10309 = vmatmul.mubr.msk.f32.gmra.mrb[142].mxu1 %vm4932_vm2, %v4698_v7  ;;  %v4700_v33 = vmax.f32 %v3528_v31, 0.0 }
 0x2fb   :  { %v4699_v44 = vmax.f32 %v3523_v63, 0.0  ;;  %v9939_v24 = vpop.f32.mrb[14].mxu0 }
 0x2fc   :  { %v3538_v6 = vadd.f32 %v9939_v24, %v12626_v47  ;;  %v3532_v54 = vpop.f32.mrb[15].mxu0 }
 0x2fd   :  { %v3533_v11 = vadd.f32 %v12626_v47, %v3532_v54  ;;  %v12753_v23 = vpop.f32.mrb[38].mxu1  ;;  %10311 = vmatprep.mubr.msk.f32.mxu1 %vm4932_vm2, %v4699_v44 }
 0x2fe   :  { %v12756_v41 = vpop.f32.mrb[39].mxu1  ;;  %10312 = vmatmul.mubr.msk.f32.gmra.mrb[144].mxu1 %vm4932_vm2, %v4700_v33  ;;  %v4702_v56 = vmax.f32 %v3538_v6, 0.0 }
 0x2ff   :  { %v4701_v62 = vmax.f32 %v3533_v11, 0.0  ;;  %v9942_v39 = vpop.f32.mrb[16].mxu0 }
 0x300   :  { %v3548_v49 = vadd.f32 %v9942_v39, %v12626_v47  ;;  %v3542_v10 = vpop.f32.mrb[17].mxu0 }
 0x301   :  { %v3543_v38 = vadd.f32 %v12626_v47, %v3542_v10  ;;  %v12761_v27 = vpop.f32.mrb[40].mxu1  ;;  %10314 = vmatprep.mubr.msk.f32.mxu1 %vm4932_vm2, %v4701_v62 }
 0x302   :  { %v12764_v48 = vpop.f32.mrb[41].mxu1  ;;  %10315 = vmatmul.mubr.msk.f32.gmra.mrb[146].mxu1 %vm4932_vm2, %v4702_v56  ;;  %v4704_v43 = vmax.f32 %v3548_v49, 0.0 }
 0x303   :  { %v4703_v0 = vmax.f32 %v3543_v38, 0.0  ;;  %v9945_v37 = vpop.f32.mrb[18].mxu0 }
 0x304   :  { %v3558_v8 = vadd.f32 %v9945_v37, %v12626_v47  ;;  %v3552_v26 = vpop.f32.mrb[19].mxu0 }
 0x305   :  { %v3553_v7 = vadd.f32 %v12626_v47, %v3552_v26  ;;  %v12769_v31 = vpop.f32.mrb[42].mxu1  ;;  %10317 = vmatprep.mubr.msk.f32.mxu1 %vm4932_vm2, %v4703_v0 }
 0x306   :  { %v12772_v14 = vpop.f32.mrb[43].mxu1  ;;  %10318 = vmatmul.mubr.msk.f32.gmra.mrb[148].mxu1 %vm4932_vm2, %v4704_v43  ;;  %v4706_v24 = vmax.f32 %v3558_v8, 0.0 }
 0x307   :  { %v4705_v63 = vmax.f32 %v3553_v7, 0.0  ;;  %v9948_v44 = vpop.f32.mrb[20].mxu0 }
 0x308   :  { %v3568_v33 = vadd.f32 %v9948_v44, %v12626_v47  ;;  %v3562_v6 = vpop.f32.mrb[21].mxu0 }
 0x309   :  { %v3563_v54 = vadd.f32 %v12626_v47, %v3562_v6  ;;  %v12777_v11 = vpop.f32.mrb[44].mxu1  ;;  %10320 = vmatprep.mubr.msk.f32.mxu1 %vm4932_vm2, %v4705_v63 }
 0x30a   :  { %15707 = vst [vmem:[#allocation3_spill] sm:$0xff] %v12777_v11  ;;  %v12780_v62 = vpop.f32.mrb[45].mxu1  ;;  %10321 = vmatmul.mubr.msk.f32.gmra.mrb[150].mxu1 %vm4932_vm2, %v4706_v24  ;;  %v4708_v49 = vmax.f32 %v3568_v33, 0.0 }
 0x30b   :  { %v4707_v39 = vmax.f32 %v3563_v54, 0.0  ;;  %v9951_v56 = vpop.f32.mrb[22].mxu0 }
 0x30c   :  { %v3578_v10 = vadd.f32 %v9951_v56, %v12626_v47  ;;  %v3572_v38 = vpop.f32.mrb[23].mxu0 }
 0x30d   :  { %v3573_v0 = vadd.f32 %v12626_v47, %v3572_v38  ;;  %v12785_v37 = vpop.f32.mrb[46].mxu1  ;;  %10323 = vmatprep.mubr.msk.f32.mxu1 %vm4932_vm2, %v4707_v39 }
 0x30e   :  { %15708 = vst [vmem:[#allocation2_spill] sm:$0xff] %v12785_v37  ;;  %v12788_v43 = vpop.f32.mrb[47].mxu1  ;;  %10324 = vmatmul.mubr.msk.f32.gmra.mrb[152].mxu1 %vm4932_vm2, %v4708_v49  ;;  %v4710_v7 = vmax.f32 %v3578_v10, 0.0 }
 0x30f   :  { %15709 = vst [vmem:[#allocation5_spill] sm:$0xff] %v12788_v43  ;;  %v4709_v8 = vmax.f32 %v3573_v0, 0.0  ;;  %v9954_v26 = vpop.f32.mrb[24].mxu0 }
 0x310   :  { %v3588_v63 = vadd.f32 %v9954_v26, %v12626_v47  ;;  %v3582_v44 = vpop.f32.mrb[25].mxu0 }
 0x311   :  { %v3583_v24 = vadd.f32 %v12626_v47, %v3582_v44  ;;  %v12793_v33 = vpop.f32.mrb[48].mxu1  ;;  %10326 = vmatprep.mubr.msk.f32.mxu1 %vm4932_vm2, %v4709_v8 }
 0x312   :  { %15710 = vst [vmem:[#allocation4_spill] sm:$0xff] %v12793_v33  ;;  %v12796_v6 = vpop.f32.mrb[49].mxu1  ;;  %10327 = vmatmul.mubr.msk.f32.gmra.mrb[154].mxu1 %vm4932_vm2, %v4710_v7  ;;  %v4712_v56 = vmax.f32 %v3588_v63, 0.0 }
 0x313   :  { %15711 = vst [vmem:[#allocation7_spill] sm:$0xff] %v12796_v6  ;;  %v4711_v54 = vmax.f32 %v3583_v24, 0.0  ;;  %v9957_v39 = vpop.f32.mrb[26].mxu0 }
 0x314   :  { %v3598_v49 = vadd.f32 %v9957_v39, %v12626_v47  ;;  %v3592_v38 = vpop.f32.mrb[27].mxu0 }
 0x315   :  { %v3593_v10 = vadd.f32 %v12626_v47, %v3592_v38  ;;  %v12801_v0 = vpop.f32.mrb[50].mxu1  ;;  %10329 = vmatprep.mubr.msk.f32.mxu1 %vm4932_vm2, %v4711_v54 }
 0x316   :  { %15712 = vst [vmem:[#allocation6_spill] sm:$0xff] %v12801_v0  ;;  %v12804_v26 = vpop.f32.mrb[51].mxu1  ;;  %10330 = vmatmul.mubr.msk.f32.gmra.mrb[156].mxu1 %vm4932_vm2, %v4712_v56  ;;  %v4714_v33 = vmax.f32 %v3598_v49, 0.0 }
 0x317   :  { %15713 = vst [vmem:[#allocation9_spill] sm:$0xff] %v12804_v26  ;;  %v4713_v8 = vmax.f32 %v3593_v10, 0.0  ;;  %v9960_v44 = vpop.f32.mrb[28].mxu0 }
 0x318   :  { %v3608_v7 = vadd.f32 %v9960_v44, %v12626_v47  ;;  %v3602_v24 = vpop.f32.mrb[29].mxu0 }
 0x319   :  { %v3603_v63 = vadd.f32 %v12626_v47, %v3602_v24  ;;  %v12809_v39 = vpop.f32.mrb[52].mxu1  ;;  %10332 = vmatprep.mubr.msk.f32.mxu1 %vm4932_vm2, %v4713_v8 }
 0x31a   :  { %15714 = vst [vmem:[#allocation8_spill] sm:$0xff] %v12809_v39  ;;  %v12812_v38 = vpop.f32.mrb[53].mxu1  ;;  %10333 = vmatmul.mubr.msk.f32.gmra.mrb[158].mxu1 %vm4932_vm2, %v4714_v33  ;;  %v4716_v26 = vmax.f32 %v3608_v7, 0.0 }
 0x31b   :  { %15715 = vst [vmem:[#allocation11_spill] sm:$0xff] %v12812_v38  ;;  %v4715_v54 = vmax.f32 %v3603_v63, 0.0  ;;  %v9963_v0 = vpop.f32.mrb[30].mxu0 }
 0x31c   :  { %v3618_v56 = vadd.f32 %v9963_v0, %v12626_v47  ;;  %v3612_v10 = vpop.f32.mrb[31].mxu0 }
 0x31d   :  { %v3613_v49 = vadd.f32 %v12626_v47, %v3612_v10  ;;  %v12817_v44 = vpop.f32.mrb[54].mxu1  ;;  %10335 = vmatprep.mubr.msk.f32.mxu1 %vm4932_vm2, %v4715_v54 }
 0x31e   :  { %15716 = vst [vmem:[#allocation10_spill] sm:$0xff] %v12817_v44  ;;  %v12820_v24 = vpop.f32.mrb[55].mxu1  ;;  %10336 = vmatmul.mubr.msk.f32.gmra.mrb[160].mxu1 %vm4932_vm2, %v4716_v26  ;;  %v4718_v38 = vmax.f32 %v3618_v56, 0.0 }
 0x31f   :  { %15717 = vst [vmem:[#allocation13_spill] sm:$0xff] %v12820_v24  ;;  %v4717_v8 = vmax.f32 %v3613_v49, 0.0  ;;  %v9966_v39 = vpop.f32.mrb[32].mxu0 }
 0x320   :  { %v3628_v33 = vadd.f32 %v9966_v39, %v12626_v47  ;;  %v3622_v63 = vpop.f32.mrb[33].mxu0 }
 0x321   :  { %v3623_v7 = vadd.f32 %v12626_v47, %v3622_v63  ;;  %v12825_v0 = vpop.f32.mrb[56].mxu1  ;;  %10338 = vmatprep.mubr.msk.f32.mxu1 %vm4932_vm2, %v4717_v8 }
 0x322   :  { %15718 = vst [vmem:[#allocation12_spill] sm:$0xff] %v12825_v0  ;;  %v12828_v10 = vpop.f32.mrb[57].mxu1  ;;  %10339 = vmatmul.mubr.msk.f32.gmra.mrb[162].mxu1 %vm4932_vm2, %v4718_v38  ;;  %v4720_v24 = vmax.f32 %v3628_v33, 0.0 }
 0x323   :  { %15719 = vst [vmem:[#allocation15_spill] sm:$0xff] %v12828_v10  ;;  %v4719_v54 = vmax.f32 %v3623_v7, 0.0  ;;  %v9969_v44 = vpop.f32.mrb[34].mxu0 }
 0x324   :  { %v3638_v26 = vadd.f32 %v9969_v44, %v12626_v47  ;;  %v3632_v49 = vpop.f32.mrb[35].mxu0 }
 0x325   :  { %v3633_v56 = vadd.f32 %v12626_v47, %v3632_v49  ;;  %v12833_v39 = vpop.f32.mrb[58].mxu1  ;;  %10341 = vmatprep.mubr.msk.f32.mxu1 %vm4932_vm2, %v4719_v54 }
 0x326   :  { %15720 = vst [vmem:[#allocation14_spill] sm:$0xff] %v12833_v39  ;;  %v12836_v63 = vpop.f32.mrb[59].mxu1  ;;  %10342 = vmatmul.mubr.msk.f32.gmra.mrb[164].mxu1 %vm4932_vm2, %v4720_v24  ;;  %v4722_v10 = vmax.f32 %v3638_v26, 0.0 }
 0x327   :  { %15721 = vst [vmem:[#allocation17_spill] sm:$0xff] %v12836_v63  ;;  %v4721_v8 = vmax.f32 %v3633_v56, 0.0  ;;  %v9972_v0 = vpop.f32.mrb[36].mxu0 }
 0x328   :  { %v3648_v38 = vadd.f32 %v9972_v0, %v12626_v47  ;;  %v3642_v7 = vpop.f32.mrb[37].mxu0 }
 0x329   :  { %v3643_v33 = vadd.f32 %v12626_v47, %v3642_v7  ;;  %v12841_v44 = vpop.f32.mrb[60].mxu1  ;;  %10344 = vmatprep.mubr.msk.f32.mxu1 %vm4932_vm2, %v4721_v8 }
 0x32a   :  { %15722 = vst [vmem:[#allocation16_spill] sm:$0xff] %v12841_v44  ;;  %v12844_v49 = vpop.f32.mrb[61].mxu1  ;;  %10345 = vmatmul.mubr.msk.f32.gmra.mrb[166].mxu1 %vm4932_vm2, %v4722_v10  ;;  %v4724_v63 = vmax.f32 %v3648_v38, 0.0 }
 0x32b   :  { %15723 = vst [vmem:[#allocation19_spill] sm:$0xff] %v12844_v49  ;;  %v4723_v54 = vmax.f32 %v3643_v33, 0.0  ;;  %v9975_v39 = vpop.f32.mrb[38].mxu0 }
 0x32c   :  { %v3658_v24 = vadd.f32 %v9975_v39, %v12626_v47  ;;  %v3652_v56 = vpop.f32.mrb[39].mxu0 }
 0x32d   :  { %v3653_v26 = vadd.f32 %v12626_v47, %v3652_v56  ;;  %v12849_v0 = vpop.f32.mrb[62].mxu1  ;;  %10347 = vmatprep.mubr.msk.f32.mxu1 %vm4932_vm2, %v4723_v54 }
 0x32e   :  { %15724 = vst [vmem:[#allocation18_spill] sm:$0xff] %v12849_v0  ;;  %v12852_v7 = vpop.f32.mrb[63].mxu1  ;;  %10348 = vmatmul.mubr.msk.f32.gmra.mrb[168].mxu1 %vm4932_vm2, %v4724_v63  ;;  %v4726_v49 = vmax.f32 %v3658_v24, 0.0 }
 0x32f   :  { %15725 = vst [vmem:[#allocation21_spill] sm:$0xff] %v12852_v7  ;;  %v4725_v8 = vmax.f32 %v3653_v26, 0.0  ;;  %v9978_v44 = vpop.f32.mrb[40].mxu0 }
 0x330   :  { %v3668_v10 = vadd.f32 %v9978_v44, %v12626_v47  ;;  %v3662_v33 = vpop.f32.mrb[41].mxu0 }
 0x331   :  { %v3663_v38 = vadd.f32 %v12626_v47, %v3662_v33  ;;  %v12857_v39 = vpop.f32.mrb[64].mxu1  ;;  %10350 = vmatprep.mubr.msk.f32.mxu1 %vm4932_vm2, %v4725_v8 }
 0x332   :  { %15726 = vst [vmem:[#allocation20_spill] sm:$0xff] %v12857_v39  ;;  %v12860_v56 = vpop.f32.mrb[65].mxu1  ;;  %10351 = vmatmul.mubr.msk.f32.gmra.mrb[170].mxu1 %vm4932_vm2, %v4726_v49  ;;  %v4728_v7 = vmax.f32 %v3668_v10, 0.0 }
 0x333   :  { %15727 = vst [vmem:[#allocation23_spill] sm:$0xff] %v12860_v56  ;;  %v4727_v54 = vmax.f32 %v3663_v38, 0.0  ;;  %v9981_v0 = vpop.f32.mrb[42].mxu0 }
 0x334   :  { %v3678_v63 = vadd.f32 %v9981_v0, %v12626_v47  ;;  %v3672_v26 = vpop.f32.mrb[43].mxu0 }
 0x335   :  { %v3673_v24 = vadd.f32 %v12626_v47, %v3672_v26  ;;  %v12865_v44 = vpop.f32.mrb[66].mxu1  ;;  %10353 = vmatprep.mubr.msk.f32.mxu1 %vm4932_vm2, %v4727_v54 }
 0x336   :  { %15728 = vst [vmem:[#allocation22_spill] sm:$0xff] %v12865_v44  ;;  %v12868_v33 = vpop.f32.mrb[67].mxu1  ;;  %10354 = vmatmul.mubr.msk.f32.gmra.mrb[172].mxu1 %vm4932_vm2, %v4728_v7  ;;  %v4730_v56 = vmax.f32 %v3678_v63, 0.0 }
 0x337   :  { %15729 = vst [vmem:[#allocation25_spill] sm:$0xff] %v12868_v33  ;;  %v4729_v8 = vmax.f32 %v3673_v24, 0.0  ;;  %v9984_v39 = vpop.f32.mrb[44].mxu0 }
 0x338   :  { %v3688_v49 = vadd.f32 %v9984_v39, %v12626_v47  ;;  %v3682_v38 = vpop.f32.mrb[45].mxu0 }
 0x339   :  { %v3683_v10 = vadd.f32 %v12626_v47, %v3682_v38  ;;  %v12873_v0 = vpop.f32.mrb[68].mxu1  ;;  %10356 = vmatprep.mubr.msk.f32.mxu1 %vm4932_vm2, %v4729_v8 }
 0x33a   :  { %15730 = vst [vmem:[#allocation24_spill] sm:$0xff] %v12873_v0  ;;  %v12876_v26 = vpop.f32.mrb[69].mxu1  ;;  %10357 = vmatmul.mubr.msk.f32.gmra.mrb[174].mxu1 %vm4932_vm2, %v4730_v56  ;;  %v4732_v33 = vmax.f32 %v3688_v49, 0.0 }
 0x33b   :  { %15731 = vst [vmem:[#allocation27_spill] sm:$0xff] %v12876_v26  ;;  %v4731_v54 = vmax.f32 %v3683_v10, 0.0  ;;  %v9987_v44 = vpop.f32.mrb[46].mxu0 }
 0x33c   :  { %v3698_v7 = vadd.f32 %v9987_v44, %v12626_v47  ;;  %v3692_v24 = vpop.f32.mrb[47].mxu0 }
 0x33d   :  { %v3693_v63 = vadd.f32 %v12626_v47, %v3692_v24  ;;  %v12881_v39 = vpop.f32.mrb[70].mxu1  ;;  %10359 = vmatprep.mubr.msk.f32.mxu1 %vm4932_vm2, %v4731_v54 }
 0x33e   :  { %15732 = vst [vmem:[#allocation26_spill] sm:$0xff] %v12881_v39  ;;  %v12884_v38 = vpop.f32.mrb[71].mxu1  ;;  %10360 = vmatmul.mubr.msk.f32.gmra.mrb[176].mxu1 %vm4932_vm2, %v4732_v33  ;;  %v4734_v26 = vmax.f32 %v3698_v7, 0.0 }
 0x33f   :  { %15733 = vst [vmem:[#allocation29_spill] sm:$0xff] %v12884_v38  ;;  %v4733_v8 = vmax.f32 %v3693_v63, 0.0  ;;  %v9990_v0 = vpop.f32.mrb[48].mxu0 }
 0x340   :  { %v3708_v56 = vadd.f32 %v9990_v0, %v12626_v47  ;;  %v3702_v10 = vpop.f32.mrb[49].mxu0 }
 0x341   :  { %v3703_v49 = vadd.f32 %v12626_v47, %v3702_v10  ;;  %v12889_v44 = vpop.f32.mrb[72].mxu1  ;;  %10362 = vmatprep.mubr.msk.f32.mxu1 %vm4932_vm2, %v4733_v8 }
 0x342   :  { %15734 = vst [vmem:[#allocation28_spill] sm:$0xff] %v12889_v44  ;;  %v12892_v24 = vpop.f32.mrb[73].mxu1  ;;  %10363 = vmatmul.mubr.msk.f32.gmra.mrb[178].mxu1 %vm4932_vm2, %v4734_v26  ;;  %v4736_v38 = vmax.f32 %v3708_v56, 0.0 }
 0x343   :  { %15735 = vst [vmem:[#allocation31_spill] sm:$0xff] %v12892_v24  ;;  %v4735_v54 = vmax.f32 %v3703_v49, 0.0  ;;  %v9993_v39 = vpop.f32.mrb[50].mxu0 }
 0x344   :  { %v3718_v33 = vadd.f32 %v9993_v39, %v12626_v47  ;;  %v3712_v63 = vpop.f32.mrb[51].mxu0 }
 0x345   :  { %v3713_v7 = vadd.f32 %v12626_v47, %v3712_v63  ;;  %v12897_v0 = vpop.f32.mrb[74].mxu1  ;;  %10365 = vmatprep.mubr.msk.f32.mxu1 %vm4932_vm2, %v4735_v54 }
 0x346   :  { %15736 = vst [vmem:[#allocation30_spill] sm:$0xff] %v12897_v0  ;;  %v12900_v10 = vpop.f32.mrb[75].mxu1  ;;  %10366 = vmatmul.mubr.msk.f32.gmra.mrb[180].mxu1 %vm4932_vm2, %v4736_v38  ;;  %v4738_v24 = vmax.f32 %v3718_v33, 0.0 }
 0x347   :  { %15737 = vst [vmem:[#allocation33_spill] sm:$0xff] %v12900_v10  ;;  %v4737_v8 = vmax.f32 %v3713_v7, 0.0  ;;  %v9996_v44 = vpop.f32.mrb[52].mxu0 }
 0x348   :  { %v3728_v26 = vadd.f32 %v9996_v44, %v12626_v47  ;;  %v3722_v49 = vpop.f32.mrb[53].mxu0 }
 0x349   :  { %v3723_v56 = vadd.f32 %v12626_v47, %v3722_v49  ;;  %v12905_v39 = vpop.f32.mrb[76].mxu1  ;;  %10368 = vmatprep.mubr.msk.f32.mxu1 %vm4932_vm2, %v4737_v8 }
 0x34a   :  { %15738 = vst [vmem:[#allocation32_spill] sm:$0xff] %v12905_v39  ;;  %v12908_v63 = vpop.f32.mrb[77].mxu1  ;;  %10369 = vmatmul.mubr.msk.f32.gmra.mrb[182].mxu1 %vm4932_vm2, %v4738_v24  ;;  %v4740_v10 = vmax.f32 %v3728_v26, 0.0 }
 0x34b   :  { %15739 = vst [vmem:[#allocation35_spill] sm:$0xff] %v12908_v63  ;;  %v4739_v54 = vmax.f32 %v3723_v56, 0.0  ;;  %v9999_v0 = vpop.f32.mrb[54].mxu0 }
 0x34c   :  { %v3738_v38 = vadd.f32 %v9999_v0, %v12626_v47  ;;  %v3732_v7 = vpop.f32.mrb[55].mxu0 }
 0x34d   :  { %v3733_v33 = vadd.f32 %v12626_v47, %v3732_v7  ;;  %v12913_v44 = vpop.f32.mrb[78].mxu1  ;;  %10371 = vmatprep.mubr.msk.f32.mxu1 %vm4932_vm2, %v4739_v54 }
 0x34e   :  { %15740 = vst [vmem:[#allocation34_spill] sm:$0xff] %v12913_v44  ;;  %v12916_v49 = vpop.f32.mrb[79].mxu1  ;;  %10372 = vmatmul.mubr.msk.f32.gmra.mrb[184].mxu1 %vm4932_vm2, %v4740_v10  ;;  %v4742_v63 = vmax.f32 %v3738_v38, 0.0 }
 0x34f   :  { %15741 = vst [vmem:[#allocation37_spill] sm:$0xff] %v12916_v49  ;;  %v4741_v8 = vmax.f32 %v3733_v33, 0.0  ;;  %v10002_v39 = vpop.f32.mrb[56].mxu0 }
 0x350   :  { %v3748_v24 = vadd.f32 %v10002_v39, %v12626_v47  ;;  %v3742_v56 = vpop.f32.mrb[57].mxu0 }
 0x351   :  { %v3743_v26 = vadd.f32 %v12626_v47, %v3742_v56  ;;  %v12921_v0 = vpop.f32.mrb[80].mxu1  ;;  %10374 = vmatprep.mubr.msk.f32.mxu1 %vm4932_vm2, %v4741_v8 }
 0x352   :  { %15742 = vst [vmem:[#allocation36_spill] sm:$0xff] %v12921_v0  ;;  %v12924_v7 = vpop.f32.mrb[81].mxu1  ;;  %10375 = vmatmul.mubr.msk.f32.gmra.mrb[186].mxu1 %vm4932_vm2, %v4742_v63  ;;  %v4744_v49 = vmax.f32 %v3748_v24, 0.0 }
 0x353   :  { %15743 = vst [vmem:[#allocation39_spill] sm:$0xff] %v12924_v7  ;;  %v4743_v54 = vmax.f32 %v3743_v26, 0.0  ;;  %v10005_v44 = vpop.f32.mrb[58].mxu0 }
 0x354   :  { %v3758_v10 = vadd.f32 %v10005_v44, %v12626_v47  ;;  %v3752_v33 = vpop.f32.mrb[59].mxu0 }
 0x355   :  { %v3753_v38 = vadd.f32 %v12626_v47, %v3752_v33  ;;  %v12929_v39 = vpop.f32.mrb[82].mxu1  ;;  %10377 = vmatprep.mubr.msk.f32.mxu1 %vm4932_vm2, %v4743_v54 }
 0x356   :  { %15744 = vst [vmem:[#allocation38_spill] sm:$0xff] %v12929_v39  ;;  %v12932_v56 = vpop.f32.mrb[83].mxu1  ;;  %10378 = vmatmul.mubr.msk.f32.gmra.mrb[188].mxu1 %vm4932_vm2, %v4744_v49  ;;  %v4746_v7 = vmax.f32 %v3758_v10, 0.0 }
 0x357   :  { %15745 = vst [vmem:[#allocation41_spill] sm:$0xff] %v12932_v56  ;;  %v4745_v8 = vmax.f32 %v3753_v38, 0.0  ;;  %v10008_v0 = vpop.f32.mrb[60].mxu0 }
 0x358   :  { %v3768_v63 = vadd.f32 %v10008_v0, %v12626_v47  ;;  %v3762_v26 = vpop.f32.mrb[61].mxu0 }
 0x359   :  { %v3763_v24 = vadd.f32 %v12626_v47, %v3762_v26  ;;  %v12937_v44 = vpop.f32.mrb[84].mxu1  ;;  %10380 = vmatprep.mubr.msk.f32.mxu1 %vm4932_vm2, %v4745_v8 }
 0x35a   :  { %15746 = vst [vmem:[#allocation40_spill] sm:$0xff] %v12937_v44  ;;  %v12940_v33 = vpop.f32.mrb[85].mxu1  ;;  %10381 = vmatmul.mubr.msk.f32.gmra.mrb[190].mxu1 %vm4932_vm2, %v4746_v7  ;;  %v4748_v56 = vmax.f32 %v3768_v63, 0.0 }
 0x35b   :  { %15747 = vst [vmem:[#allocation43_spill] sm:$0xff] %v12940_v33  ;;  %v4747_v54 = vmax.f32 %v3763_v24, 0.0  ;;  %v10011_v39 = vpop.f32.mrb[62].mxu0 }
 0x35c   :  { %v3778_v49 = vadd.f32 %v10011_v39, %v12626_v47  ;;  %v3772_v38 = vpop.f32.mrb[63].mxu0 }
 0x35d   :  { %v3773_v10 = vadd.f32 %v12626_v47, %v3772_v38  ;;  %v12945_v0 = vpop.f32.mrb[86].mxu1  ;;  %10383 = vmatprep.mubr.msk.f32.mxu1 %vm4932_vm2, %v4747_v54 }
 0x35e   :  { %15748 = vst [vmem:[#allocation42_spill] sm:$0xff] %v12945_v0  ;;  %v12948_v26 = vpop.f32.mrb[87].mxu1  ;;  %10384 = vmatmul.mubr.msk.f32.gmra.mrb[192].mxu1 %vm4932_vm2, %v4748_v56  ;;  %v4750_v33 = vmax.f32 %v3778_v49, 0.0 }
 0x35f   :  { %15749 = vst [vmem:[#allocation45_spill] sm:$0xff] %v12948_v26  ;;  %v4749_v8 = vmax.f32 %v3773_v10, 0.0  ;;  %v10014_v44 = vpop.f32.mrb[64].mxu0 }
 0x360   :  { %v3788_v7 = vadd.f32 %v10014_v44, %v12626_v47  ;;  %v3782_v24 = vpop.f32.mrb[65].mxu0 }
 0x361   :  { %v3783_v63 = vadd.f32 %v12626_v47, %v3782_v24  ;;  %v12953_v39 = vpop.f32.mrb[88].mxu1  ;;  %10386 = vmatprep.mubr.msk.f32.mxu1 %vm4932_vm2, %v4749_v8 }
 0x362   :  { %15750 = vst [vmem:[#allocation44_spill] sm:$0xff] %v12953_v39  ;;  %v12956_v38 = vpop.f32.mrb[89].mxu1  ;;  %10387 = vmatmul.mubr.msk.f32.gmra.mrb[194].mxu1 %vm4932_vm2, %v4750_v33  ;;  %v4752_v26 = vmax.f32 %v3788_v7, 0.0 }
 0x363   :  { %15751 = vst [vmem:[#allocation47_spill] sm:$0xff] %v12956_v38  ;;  %v4751_v54 = vmax.f32 %v3783_v63, 0.0  ;;  %v10017_v0 = vpop.f32.mrb[66].mxu0 }
 0x364   :  { %v3798_v56 = vadd.f32 %v10017_v0, %v12626_v47  ;;  %v3792_v10 = vpop.f32.mrb[67].mxu0 }
 0x365   :  { %v3793_v49 = vadd.f32 %v12626_v47, %v3792_v10  ;;  %v12961_v44 = vpop.f32.mrb[90].mxu1  ;;  %10389 = vmatprep.mubr.msk.f32.mxu1 %vm4932_vm2, %v4751_v54 }
 0x366   :  { %15752 = vst [vmem:[#allocation46_spill] sm:$0xff] %v12961_v44  ;;  %v12964_v24 = vpop.f32.mrb[91].mxu1  ;;  %10390 = vmatmul.mubr.msk.f32.gmra.mrb[196].mxu1 %vm4932_vm2, %v4752_v26  ;;  %v4754_v38 = vmax.f32 %v3798_v56, 0.0 }
 0x367   :  { %15753 = vst [vmem:[#allocation49_spill] sm:$0xff] %v12964_v24  ;;  %v4753_v8 = vmax.f32 %v3793_v49, 0.0  ;;  %v10020_v39 = vpop.f32.mrb[68].mxu0 }
 0x368   :  { %v3808_v33 = vadd.f32 %v10020_v39, %v12626_v47  ;;  %v3802_v63 = vpop.f32.mrb[69].mxu0 }
 0x369   :  { %v3803_v7 = vadd.f32 %v12626_v47, %v3802_v63  ;;  %v12969_v0 = vpop.f32.mrb[92].mxu1  ;;  %10392 = vmatprep.mubr.msk.f32.mxu1 %vm4932_vm2, %v4753_v8 }
 0x36a   :  { %15754 = vst [vmem:[#allocation48_spill] sm:$0xff] %v12969_v0  ;;  %v12972_v10 = vpop.f32.mrb[93].mxu1  ;;  %10393 = vmatmul.mubr.msk.f32.gmra.mrb[198].mxu1 %vm4932_vm2, %v4754_v38  ;;  %v4756_v24 = vmax.f32 %v3808_v33, 0.0 }
 0x36b   :  { %15755 = vst [vmem:[#allocation51_spill] sm:$0xff] %v12972_v10  ;;  %v4755_v54 = vmax.f32 %v3803_v7, 0.0  ;;  %v10023_v44 = vpop.f32.mrb[70].mxu0 }
 0x36c   :  { %v3818_v26 = vadd.f32 %v10023_v44, %v12626_v47  ;;  %v3812_v49 = vpop.f32.mrb[71].mxu0 }
 0x36d   :  { %v3813_v56 = vadd.f32 %v12626_v47, %v3812_v49  ;;  %v12977_v39 = vpop.f32.mrb[94].mxu1  ;;  %10395 = vmatprep.mubr.msk.f32.mxu1 %vm4932_vm2, %v4755_v54 }
 0x36e   :  { %15756 = vst [vmem:[#allocation50_spill] sm:$0xff] %v12977_v39  ;;  %v12980_v63 = vpop.f32.mrb[95].mxu1  ;;  %10396 = vmatmul.mubr.msk.f32.gmra.mrb[200].mxu1 %vm4932_vm2, %v4756_v24  ;;  %v4758_v10 = vmax.f32 %v3818_v26, 0.0 }
 0x36f   :  { %15757 = vst [vmem:[#allocation53_spill] sm:$0xff] %v12980_v63  ;;  %v4757_v8 = vmax.f32 %v3813_v56, 0.0  ;;  %v10026_v0 = vpop.f32.mrb[72].mxu0 }
 0x370   :  { %v3828_v38 = vadd.f32 %v10026_v0, %v12626_v47  ;;  %v3822_v7 = vpop.f32.mrb[73].mxu0 }
 0x371   :  { %v3823_v33 = vadd.f32 %v12626_v47, %v3822_v7  ;;  %v12985_v44 = vpop.f32.mrb[96].mxu1  ;;  %10398 = vmatprep.mubr.msk.f32.mxu1 %vm4932_vm2, %v4757_v8 }
 0x372   :  { %15758 = vst [vmem:[#allocation52_spill] sm:$0xff] %v12985_v44  ;;  %v12988_v49 = vpop.f32.mrb[97].mxu1  ;;  %10399 = vmatmul.mubr.msk.f32.gmra.mrb[202].mxu1 %vm4932_vm2, %v4758_v10  ;;  %v4760_v63 = vmax.f32 %v3828_v38, 0.0 }
 0x373   :  { %15759 = vst [vmem:[#allocation55_spill] sm:$0xff] %v12988_v49  ;;  %v4759_v54 = vmax.f32 %v3823_v33, 0.0  ;;  %v10029_v39 = vpop.f32.mrb[74].mxu0 }
 0x374   :  { %v3838_v24 = vadd.f32 %v10029_v39, %v12626_v47  ;;  %v3832_v56 = vpop.f32.mrb[75].mxu0 }
 0x375   :  { %v3833_v26 = vadd.f32 %v12626_v47, %v3832_v56  ;;  %v12993_v0 = vpop.f32.mrb[98].mxu1  ;;  %10401 = vmatprep.mubr.msk.f32.mxu1 %vm4932_vm2, %v4759_v54 }
 0x376   :  { %15760 = vst [vmem:[#allocation54_spill] sm:$0xff] %v12993_v0  ;;  %v12996_v7 = vpop.f32.mrb[99].mxu1  ;;  %10402 = vmatmul.mubr.msk.f32.gmra.mrb[204].mxu1 %vm4932_vm2, %v4760_v63  ;;  %v4762_v49 = vmax.f32 %v3838_v24, 0.0 }
 0x377   :  { %15761 = vst [vmem:[#allocation57_spill] sm:$0xff] %v12996_v7  ;;  %v4761_v8 = vmax.f32 %v3833_v26, 0.0  ;;  %v10032_v44 = vpop.f32.mrb[76].mxu0 }
 0x378   :  { %v3848_v10 = vadd.f32 %v10032_v44, %v12626_v47  ;;  %v3842_v33 = vpop.f32.mrb[77].mxu0 }
 0x379   :  { %v3843_v38 = vadd.f32 %v12626_v47, %v3842_v33  ;;  %v13001_v39 = vpop.f32.mrb[100].mxu1  ;;  %10404 = vmatprep.mubr.msk.f32.mxu1 %vm4932_vm2, %v4761_v8 }
 0x37a   :  { %15762 = vst [vmem:[#allocation56_spill] sm:$0xff] %v13001_v39  ;;  %v13004_v56 = vpop.f32.mrb[101].mxu1  ;;  %10405 = vmatmul.mubr.msk.f32.gmra.mrb[206].mxu1 %vm4932_vm2, %v4762_v49  ;;  %v4764_v7 = vmax.f32 %v3848_v10, 0.0 }
 0x37b   :  { %15763 = vst [vmem:[#allocation59_spill] sm:$0xff] %v13004_v56  ;;  %v4763_v54 = vmax.f32 %v3843_v38, 0.0  ;;  %v10035_v0 = vpop.f32.mrb[78].mxu0 }
 0x37c   :  { %v3858_v63 = vadd.f32 %v10035_v0, %v12626_v47  ;;  %v3852_v26 = vpop.f32.mrb[79].mxu0 }
 0x37d   :  { %v3853_v24 = vadd.f32 %v12626_v47, %v3852_v26  ;;  %v13009_v44 = vpop.f32.mrb[102].mxu1  ;;  %10407 = vmatprep.mubr.msk.f32.mxu1 %vm4932_vm2, %v4763_v54 }
 0x37e   :  { %15764 = vst [vmem:[#allocation58_spill] sm:$0xff] %v13009_v44  ;;  %v13012_v33 = vpop.f32.mrb[103].mxu1  ;;  %10408 = vmatmul.mubr.msk.f32.gmra.mrb[208].mxu1 %vm4932_vm2, %v4764_v7  ;;  %v4766_v56 = vmax.f32 %v3858_v63, 0.0 }
 0x37f   :  { %15765 = vst [vmem:[#allocation61_spill] sm:$0xff] %v13012_v33  ;;  %v4765_v8 = vmax.f32 %v3853_v24, 0.0  ;;  %v10038_v39 = vpop.f32.mrb[80].mxu0 }
 0x380   :  { %v3868_v49 = vadd.f32 %v10038_v39, %v12626_v47  ;;  %v3862_v38 = vpop.f32.mrb[81].mxu0 }
 0x381   :  { %v3863_v10 = vadd.f32 %v12626_v47, %v3862_v38  ;;  %v13017_v0 = vpop.f32.mrb[104].mxu1  ;;  %10410 = vmatprep.mubr.msk.f32.mxu1 %vm4932_vm2, %v4765_v8 }
 0x382   :  { %15766 = vst [vmem:[#allocation60_spill] sm:$0xff] %v13017_v0  ;;  %v13020_v26 = vpop.f32.mrb[105].mxu1  ;;  %10411 = vmatmul.mubr.msk.f32.gmra.mrb[210].mxu1 %vm4932_vm2, %v4766_v56  ;;  %v4768_v33 = vmax.f32 %v3868_v49, 0.0 }
 0x383   :  { %15767 = vst [vmem:[#allocation63_spill] sm:$0xff] %v13020_v26  ;;  %v4767_v54 = vmax.f32 %v3863_v10, 0.0  ;;  %v10041_v44 = vpop.f32.mrb[82].mxu0 }
 0x384   :  { %v3878_v7 = vadd.f32 %v10041_v44, %v12626_v47  ;;  %v3872_v24 = vpop.f32.mrb[83].mxu0 }
 0x385   :  { %v3873_v63 = vadd.f32 %v12626_v47, %v3872_v24  ;;  %v13025_v39 = vpop.f32.mrb[106].mxu1  ;;  %10413 = vmatprep.mubr.msk.f32.mxu1 %vm4932_vm2, %v4767_v54 }
 0x386   :  { %15768 = vst [vmem:[#allocation62_spill] sm:$0xff] %v13025_v39  ;;  %v13028_v38 = vpop.f32.mrb[107].mxu1  ;;  %10414 = vmatmul.mubr.msk.f32.gmra.mrb[212].mxu1 %vm4932_vm2, %v4768_v33  ;;  %v4770_v26 = vmax.f32 %v3878_v7, 0.0 }
 0x387   :  { %15769 = vst [vmem:[#allocation65_spill] sm:$0xff] %v13028_v38  ;;  %v4769_v8 = vmax.f32 %v3873_v63, 0.0  ;;  %v10044_v0 = vpop.f32.mrb[84].mxu0 }
 0x388   :  { %v3888_v56 = vadd.f32 %v10044_v0, %v12626_v47  ;;  %v3882_v10 = vpop.f32.mrb[85].mxu0  ;;  %v13043_v0 = vld [vmem:[%s15555_s5] ss:$0 sm:$0xff] }
 0x389   :  { %v3883_v49 = vadd.f32 %v12626_v47, %v3882_v10  ;;  %v13033_v44 = vpop.f32.mrb[108].mxu1  ;;  %10416 = vmatprep.mubr.msk.f32.mxu1 %vm4932_vm2, %v4769_v8 }
 0x38a   :  { %15770 = vst [vmem:[#allocation64_spill] sm:$0xff] %v13033_v44  ;;  %v13036_v24 = vpop.f32.mrb[109].mxu1  ;;  %10417 = vmatmul.mubr.msk.f32.gmra.mrb[214].mxu1 %vm4932_vm2, %v4770_v26  ;;  %v4772_v38 = vmax.f32 %v3888_v56, 0.0 }
 0x38b   :  { %15771 = vst [vmem:[#allocation67_spill] sm:$0xff] %v13036_v24  ;;  %v4771_v54 = vmax.f32 %v3883_v49, 0.0  ;;  %v10047_v39 = vpop.f32.mrb[86].mxu0 }
 0x38c   :  { %v3898_v33 = vadd.f32 %v10047_v39, %v12626_v47  ;;  %v3892_v63 = vpop.f32.mrb[87].mxu0 }
 0x38d   :  { %v3893_v7 = vadd.f32 %v13043_v0, %v3892_v63  ;;  %v13046_v10 = vpop.f32.mrb[110].mxu1  ;;  %10419 = vmatprep.mubr.msk.f32.mxu1 %vm4932_vm2, %v4771_v54 }
 0x38e   :  { %15772 = vst [vmem:[#allocation66_spill] sm:$0xff] %v13046_v10  ;;  %v13049_v8 = vpop.f32.mrb[111].mxu1  ;;  %10420 = vmatmul.mubr.msk.f32.gmra.mrb[216].mxu1 %vm4932_vm2, %v4772_v38  ;;  %v4774_v49 = vmax.f32 %v3898_v33, 0.0 }
 0x38f   :  { %15773 = vst [vmem:[#allocation69_spill] sm:$0xff] %v13049_v8  ;;  %v4773_v26 = vmax.f32 %v3893_v7, 0.0  ;;  %v10050_v56 = vpop.f32.mrb[88].mxu0 }
 0x390   :  { %v3908_v47 = vadd.f32 %v13043_v0, %v10050_v56  ;;  %v3902_v39 = vpop.f32.mrb[89].mxu0 }
 0x391   :  { %v3903_v44 = vadd.f32 %v13043_v0, %v3902_v39  ;;  %v13054_v24 = vpop.f32.mrb[112].mxu1  ;;  %10422 = vmatprep.mubr.msk.f32.mxu1 %vm4932_vm2, %v4773_v26 }
 0x392   :  { %15774 = vst [vmem:[#allocation68_spill] sm:$0xff] %v13054_v24  ;;  %v13057_v63 = vpop.f32.mrb[113].mxu1  ;;  %10423 = vmatmul.mubr.msk.f32.gmra.mrb[218].mxu1 %vm4932_vm2, %v4774_v49  ;;  %v4776_v8 = vmax.f32 %v3908_v47, 0.0 }
 0x393   :  { %15775 = vst [vmem:[#allocation71_spill] sm:$0xff] %v13057_v63  ;;  %v4775_v54 = vmax.f32 %v3903_v44, 0.0  ;;  %v10053_v10 = vpop.f32.mrb[90].mxu0 }
 0x394   :  { %v3918_v38 = vadd.f32 %v13043_v0, %v10053_v10  ;;  %v3912_v7 = vpop.f32.mrb[91].mxu0 }
 0x395   :  { %v3913_v33 = vadd.f32 %v13043_v0, %v3912_v7  ;;  %v13062_v56 = vpop.f32.mrb[114].mxu1  ;;  %10425 = vmatprep.mubr.msk.f32.mxu1 %vm4932_vm2, %v4775_v54 }
 0x396   :  { %15776 = vst [vmem:[#allocation70_spill] sm:$0xff] %v13062_v56  ;;  %v13065_v39 = vpop.f32.mrb[115].mxu1  ;;  %10426 = vmatmul.mubr.msk.f32.gmra.mrb[220].mxu1 %vm4932_vm2, %v4776_v8  ;;  %v4778_v63 = vmax.f32 %v3918_v38, 0.0 }
 0x397   :  { %15777 = vst [vmem:[#allocation73_spill] sm:$0xff] %v13065_v39  ;;  %v4777_v26 = vmax.f32 %v3913_v33, 0.0  ;;  %v10056_v24 = vpop.f32.mrb[92].mxu0 }
 0x398   :  { %v3928_v44 = vadd.f32 %v13043_v0, %v10056_v24  ;;  %v3922_v49 = vpop.f32.mrb[93].mxu0 }
 0x399   :  { %v3923_v47 = vadd.f32 %v13043_v0, %v3922_v49  ;;  %v13070_v10 = vpop.f32.mrb[116].mxu1  ;;  %10428 = vmatprep.mubr.msk.f32.mxu1 %vm4932_vm2, %v4777_v26 }
 0x39a   :  { %15778 = vst [vmem:[#allocation72_spill] sm:$0xff] %v13070_v10  ;;  %v13073_v7 = vpop.f32.mrb[117].mxu1  ;;  %10429 = vmatmul.mubr.msk.f32.gmra.mrb[222].mxu1 %vm4932_vm2, %v4778_v63  ;;  %v4780_v39 = vmax.f32 %v3928_v44, 0.0 }
 0x39b   :  { %15779 = vst [vmem:[#allocation75_spill] sm:$0xff] %v13073_v7  ;;  %v4779_v54 = vmax.f32 %v3923_v47, 0.0  ;;  %v10059_v56 = vpop.f32.mrb[94].mxu0 }
 0x39c   :  { %v3938_v8 = vadd.f32 %v13043_v0, %v10059_v56  ;;  %v3932_v33 = vpop.f32.mrb[95].mxu0 }
 0x39d   :  { %v3933_v38 = vadd.f32 %v13043_v0, %v3932_v33  ;;  %v13078_v24 = vpop.f32.mrb[118].mxu1  ;;  %10431 = vmatprep.mubr.msk.f32.mxu1 %vm4932_vm2, %v4779_v54 }
 0x39e   :  { %15780 = vst [vmem:[#allocation74_spill] sm:$0xff] %v13078_v24  ;;  %v13081_v49 = vpop.f32.mrb[119].mxu1  ;;  %10432 = vmatmul.mubr.msk.f32.gmra.mrb[224].mxu1 %vm4932_vm2, %v4780_v39  ;;  %v4782_v7 = vmax.f32 %v3938_v8, 0.0 }
 0x39f   :  { %15781 = vst [vmem:[#allocation76_spill] sm:$0xff] %v13081_v49  ;;  %v4781_v26 = vmax.f32 %v3933_v38, 0.0  ;;  %v10062_v10 = vpop.f32.mrb[96].mxu0 }
 0x3a0   :  { %v3948_v63 = vadd.f32 %v13043_v0, %v10062_v10  ;;  %v3942_v47 = vpop.f32.mrb[97].mxu0 }
 0x3a1   :  { %v3943_v44 = vadd.f32 %v13043_v0, %v3942_v47  ;;  %v13086_v56 = vpop.f32.mrb[120].mxu1  ;;  %10434 = vmatprep.mubr.msk.f32.mxu1 %vm4932_vm2, %v4781_v26 }
 0x3a2   :  { %15782 = vst [vmem:[#allocation77_spill] sm:$0xff] %v13086_v56  ;;  %v13089_v33 = vpop.f32.mrb[121].mxu1  ;;  %10435 = vmatmul.mubr.msk.f32.gmra.mrb[226].mxu1 %vm4932_vm2, %v4782_v7  ;;  %v4784_v49 = vmax.f32 %v3948_v63, 0.0 }
 0x3a3   :  { %15783 = vst [vmem:[#allocation78_spill] sm:$0xff] %v13089_v33  ;;  %v4783_v54 = vmax.f32 %v3943_v44, 0.0  ;;  %v10065_v24 = vpop.f32.mrb[98].mxu0 }
 0x3a4   :  { %v3958_v39 = vadd.f32 %v13043_v0, %v10065_v24  ;;  %v3952_v38 = vpop.f32.mrb[99].mxu0 }
 0x3a5   :  { %v3953_v8 = vadd.f32 %v13043_v0, %v3952_v38  ;;  %v13094_v10 = vpop.f32.mrb[122].mxu1  ;;  %10437 = vmatprep.mubr.msk.f32.mxu1 %vm4932_vm2, %v4783_v54 }
 0x3a6   :  { %15784 = vst [vmem:[#allocation79_spill] sm:$0xff] %v13094_v10  ;;  %v13097_v47 = vpop.f32.mrb[123].mxu1  ;;  %10438 = vmatmul.mubr.msk.f32.gmra.mrb[228].mxu1 %vm4932_vm2, %v4784_v49  ;;  %v4786_v33 = vmax.f32 %v3958_v39, 0.0  ;;  %v6999_v49 = vld [vmem:[%s15556_s0 + $0x8] sm:$0xff] }
 0x3a7   :  { %15785 = vst [vmem:[#allocation80_spill] sm:$0xff] %v13097_v47  ;;  %v4785_v26 = vmax.f32 %v3953_v8, 0.0  ;;  %v10068_v56 = vpop.f32.mrb[100].mxu0 }
 0x3a8   :  { %v3968_v7 = vadd.f32 %v13043_v0, %v10068_v56  ;;  %v3962_v44 = vpop.f32.mrb[101].mxu0 }
 0x3a9   :  { %v3963_v63 = vadd.f32 %v13043_v0, %v3962_v44  ;;  %v13102_v24 = vpop.f32.mrb[124].mxu1  ;;  %10440 = vmatprep.mubr.msk.f32.mxu1 %vm4932_vm2, %v4785_v26  ;;  %v6998_v44 = vld [vmem:[%s15556_s0] sm:$0xff] }
 0x3aa   :  { %15786 = vst [vmem:[#allocation81_spill] sm:$0xff] %v13102_v24  ;;  %v13105_v38 = vpop.f32.mrb[125].mxu1  ;;  %10441 = vmatmul.mubr.msk.f32.gmra.mrb[230].mxu1 %vm4932_vm2, %v4786_v33  ;;  %v4788_v39 = vmax.f32 %v3968_v7, 0.0  ;;  %v13119_v33 = vld [vmem:[%s15557_s7] ss:$0 sm:$0xff] }
 0x3ab   :  { %15787 = vst [vmem:[#allocation82_spill] sm:$0xff] %v13105_v38  ;;  %v4787_v54 = vmax.f32 %v3963_v63, 0.0  ;;  %v10071_v10 = vpop.f32.mrb[102].mxu0 }
 0x3ac   :  { %v3978_v56 = vadd.f32 %v13043_v0, %v10071_v10  ;;  %v3972_v8 = vpop.f32.mrb[103].mxu0 }
 0x3ad   :  { %v3973_v26 = vadd.f32 %v13043_v0, %v3972_v8  ;;  %v10286_v24 = vpop.f32.mrb[126].mxu1  ;;  %10443 = vmatprep.mubr.msk.f32.mxu1 %vm4932_vm2, %v4787_v54  ;;  %v7001_v8 = vld [vmem:[%s15556_s0 + $0x18] sm:$0xff] }
 0x3ae   :  { %v7249_v63 = vadd.f32 %v10286_v24, %v6999_v49  ;;  %v5749_v38 = vpop.f32.mrb[127].mxu1  ;;  %10444 = vmatmul.mubr.msk.f32.gmra.mrb[232].mxu1 %vm4932_vm2, %v4788_v39  ;;  %v4790_v6 = vmax.f32 %v3978_v56, 0.0  ;;  %v7000_v24 = vld [vmem:[%s15556_s0 + $0x10] sm:$0xff] }
 0x3af   :  { %v4789_v10 = vmax.f32 %v3973_v26, 0.0  ;;  %v7248_v7 = vadd.f32 %v6998_v44, %v5749_v38  ;;  %v10074_v47 = vpop.f32.mrb[104].mxu0  ;;  %v7003_v26 = vld [vmem:[%s15556_s0 + $0x28] sm:$0xff] }
 0x3b0   :  { %v7506_v37 = vadd.f32 %v13119_v33, %v7249_v63  ;;  %v3988_v43 = vadd.f32 %v13043_v0, %v10074_v47  ;;  %v3982_v11 = vpop.f32.mrb[105].mxu0 }
 0x3b1   :  { %v7505_v54 = vadd.f32 %v13119_v33, %v7248_v7  ;;  %v3983_v49 = vadd.f32 %v13043_v0, %v3982_v11  ;;  %v10289_v38 = vpop.f32.mrb[128].mxu1  ;;  %10446 = vmatprep.mubr.msk.f32.mxu1 %vm4932_vm2, %v4789_v10 }
 0x3b2   :  { %7757 = vst.msk [vmem:[%s15558_s8 + $0x8] sm:$0xff] %vm7755_vm3, %v7506_v37  ;;  %v7251_v39 = vadd.f32 %v10289_v38, %v7001_v8  ;;  %v5759_v56 = vpop.f32.mrb[129].mxu1  ;;  %10447 = vmatmul.mubr.msk.f32.gmra.mrb[234].mxu1 %vm4932_vm2, %v4790_v6  ;;  %v4792_v63 = vmax.f32 %v3988_v43, 0.0  ;;  %v7002_v6 = vld [vmem:[%s15556_s0 + $0x20] sm:$0xff] }
 0x3b3   :  { %7756 = vst.msk [vmem:[%s15558_s8] sm:$0xff] %vm7755_vm3, %v7505_v54  ;;  %v4791_v47 = vmax.f32 %v3983_v49, 0.0  ;;  %v7250_v44 = vadd.f32 %v7000_v24, %v5759_v56  ;;  %v10077_v11 = vpop.f32.mrb[106].mxu0 }
 0x3b4   :  { %v7508_v10 = vadd.f32 %v13119_v33, %v7251_v39  ;;  %v3998_v37 = vadd.f32 %v13043_v0, %v10077_v11  ;;  %v3992_v7 = vpop.f32.mrb[107].mxu0 }
 0x3b5   :  { %v7507_v8 = vadd.f32 %v13119_v33, %v7250_v44  ;;  %v3993_v54 = vadd.f32 %v13043_v0, %v3992_v7  ;;  %v10292_v24 = vpop.f32.mrb[130].mxu1  ;;  %10449 = vmatprep.mubr.msk.f32.mxu1 %vm4932_vm2, %v4791_v47  ;;  %v7005_v47 = vld [vmem:[%s15556_s0 + $0x38] sm:$0xff] }
 0x3b6   :  { %7759 = vst.msk [vmem:[%s15558_s8 + $0x18] sm:$0xff] %vm7755_vm3, %v7508_v10  ;;  %v7253_v43 = vadd.f32 %v10292_v24, %v7003_v26  ;;  %v5769_v49 = vpop.f32.mrb[131].mxu1  ;;  %10450 = vmatmul.mubr.msk.f32.gmra.mrb[236].mxu1 %vm4932_vm2, %v4792_v63  ;;  %v4794_v44 = vmax.f32 %v3998_v37, 0.0  ;;  %v7004_v63 = vld [vmem:[%s15556_s0 + $0x30] sm:$0xff] }
 0x3b7   :  { %7758 = vst.msk [vmem:[%s15558_s8 + $0x10] sm:$0xff] %vm7755_vm3, %v7507_v8  ;;  %v4793_v38 = vmax.f32 %v3993_v54, 0.0  ;;  %v7252_v39 = vadd.f32 %v7002_v6, %v5769_v49  ;;  %v10080_v56 = vpop.f32.mrb[108].mxu0 }
 0x3b8   :  { %v7510_v11 = vadd.f32 %v13119_v33, %v7253_v43  ;;  %v4008_v26 = vadd.f32 %v13043_v0, %v10080_v56  ;;  %v4002_v10 = vpop.f32.mrb[109].mxu0 }
 0x3b9   :  { %v7509_v7 = vadd.f32 %v13119_v33, %v7252_v39  ;;  %v4003_v8 = vadd.f32 %v13043_v0, %v4002_v10  ;;  %v10295_v6 = vpop.f32.mrb[132].mxu1  ;;  %10452 = vmatprep.mubr.msk.f32.mxu1 %vm4932_vm2, %v4793_v38  ;;  %v7007_v38 = vld [vmem:[%s15556_s0 + $0x48] sm:$0xff] }
 0x3ba   :  { %7761 = vst.msk [vmem:[%s15558_s8 + $0x28] sm:$0xff] %vm7755_vm3, %v7510_v11  ;;  %v7255_v37 = vadd.f32 %v10295_v6, %v7005_v47  ;;  %v5779_v54 = vpop.f32.mrb[133].mxu1  ;;  %10453 = vmatmul.mubr.msk.f32.gmra.mrb[238].mxu1 %vm4932_vm2, %v4794_v44  ;;  %v4796_v39 = vmax.f32 %v4008_v26, 0.0  ;;  %v7006_v44 = vld [vmem:[%s15556_s0 + $0x40] sm:$0xff] }
 0x3bb   :  { %7760 = vst.msk [vmem:[%s15558_s8 + $0x20] sm:$0xff] %vm7755_vm3, %v7509_v7  ;;  %v4795_v24 = vmax.f32 %v4003_v8, 0.0  ;;  %v7254_v43 = vadd.f32 %v7004_v63, %v5779_v54  ;;  %v10083_v49 = vpop.f32.mrb[110].mxu0 }
 0x3bc   :  { %v7512_v56 = vadd.f32 %v13119_v33, %v7255_v37  ;;  %v4018_v47 = vadd.f32 %v13043_v0, %v10083_v49  ;;  %v4012_v11 = vpop.f32.mrb[111].mxu0 }
 0x3bd   :  { %v7511_v10 = vadd.f32 %v13119_v33, %v7254_v43  ;;  %v4013_v7 = vadd.f32 %v13043_v0, %v4012_v11  ;;  %v10298_v63 = vpop.f32.mrb[134].mxu1  ;;  %10455 = vmatprep.mubr.msk.f32.mxu1 %vm4932_vm2, %v4795_v24  ;;  %v7009_v24 = vld [vmem:[%s15556_s0 + $0x58] sm:$0xff] }
 0x3be   :  { %7763 = vst.msk [vmem:[%s15558_s8 + $0x38] sm:$0xff] %vm7755_vm3, %v7512_v56  ;;  %v7257_v26 = vadd.f32 %v10298_v63, %v7007_v38  ;;  %v5789_v8 = vpop.f32.mrb[135].mxu1  ;;  %10456 = vmatmul.mubr.msk.f32.gmra.mrb[240].mxu1 %vm4932_vm2, %v4796_v39  ;;  %v4798_v43 = vmax.f32 %v4018_v47, 0.0  ;;  %v7008_v39 = vld [vmem:[%s15556_s0 + $0x50] sm:$0xff] }
 0x3bf   :  { %7762 = vst.msk [vmem:[%s15558_s8 + $0x30] sm:$0xff] %vm7755_vm3, %v7511_v10  ;;  %v4797_v6 = vmax.f32 %v4013_v7, 0.0  ;;  %v7256_v37 = vadd.f32 %v7006_v44, %v5789_v8  ;;  %v10086_v54 = vpop.f32.mrb[112].mxu0 }
 0x3c0   :  { %v7514_v49 = vadd.f32 %v13119_v33, %v7257_v26  ;;  %v4028_v38 = vadd.f32 %v13043_v0, %v10086_v54  ;;  %v4022_v56 = vpop.f32.mrb[113].mxu0 }
 0x3c1   :  { %v7513_v11 = vadd.f32 %v13119_v33, %v7256_v37  ;;  %v4023_v10 = vadd.f32 %v13043_v0, %v4022_v56  ;;  %v10301_v44 = vpop.f32.mrb[136].mxu1  ;;  %10458 = vmatprep.mubr.msk.f32.mxu1 %vm4932_vm2, %v4797_v6  ;;  %v7011_v6 = vld [vmem:[%s15556_s0 + $0x68] sm:$0xff] }
 0x3c2   :  { %7765 = vst.msk [vmem:[%s15558_s8 + $0x48] sm:$0xff] %vm7755_vm3, %v7514_v49  ;;  %v7259_v47 = vadd.f32 %v10301_v44, %v7009_v24  ;;  %v5799_v7 = vpop.f32.mrb[137].mxu1  ;;  %10459 = vmatmul.mubr.msk.f32.gmra.mrb[242].mxu1 %vm4932_vm2, %v4798_v43  ;;  %v4800_v37 = vmax.f32 %v4028_v38, 0.0  ;;  %v7010_v43 = vld [vmem:[%s15556_s0 + $0x60] sm:$0xff] }
 0x3c3   :  { %7764 = vst.msk [vmem:[%s15558_s8 + $0x40] sm:$0xff] %vm7755_vm3, %v7513_v11  ;;  %v4799_v63 = vmax.f32 %v4023_v10, 0.0  ;;  %v7258_v26 = vadd.f32 %v7008_v39, %v5799_v7  ;;  %v10089_v8 = vpop.f32.mrb[114].mxu0 }
 0x3c4   :  { %v7516_v54 = vadd.f32 %v13119_v33, %v7259_v47  ;;  %v4038_v24 = vadd.f32 %v13043_v0, %v10089_v8  ;;  %v4032_v49 = vpop.f32.mrb[115].mxu0 }
 0x3c5   :  { %v7515_v56 = vadd.f32 %v13119_v33, %v7258_v26  ;;  %v4033_v11 = vadd.f32 %v13043_v0, %v4032_v49  ;;  %v10304_v39 = vpop.f32.mrb[138].mxu1  ;;  %10461 = vmatprep.mubr.msk.f32.mxu1 %vm4932_vm2, %v4799_v63  ;;  %v7013_v63 = vld [vmem:[%s15556_s0 + $0x78] sm:$0xff]  ;;  %v4053_v49 = vadd.f32 %v13043_v0, %v12506_v17 }
 0x3c6   :  { %7767 = vst.msk [vmem:[%s15558_s8 + $0x58] sm:$0xff] %vm7755_vm3, %v7516_v54  ;;  %v7261_v38 = vadd.f32 %v10304_v39, %v7011_v6  ;;  %v5809_v10 = vpop.f32.mrb[139].mxu1  ;;  %10462 = vmatmul.mubr.msk.f32.gmra.mrb[244].mxu1 %vm4932_vm2, %v4800_v37  ;;  %v4802_v26 = vmax.f32 %v4038_v24, 0.0  ;;  %v7012_v37 = vld [vmem:[%s15556_s0 + $0x70] sm:$0xff] }
 0x3c7   :  { %7766 = vst.msk [vmem:[%s15558_s8 + $0x50] sm:$0xff] %vm7755_vm3, %v7515_v56  ;;  %v4801_v44 = vmax.f32 %v4033_v11, 0.0  ;;  %v7260_v47 = vadd.f32 %v7010_v43, %v5809_v10  ;;  %v10092_v7 = vpop.f32.mrb[116].mxu0  ;;  %v7015_v10 = vld [vmem:[%s15556_s0 + $0x88] sm:$0xff] }
 0x3c8   :  { %v7518_v8 = vadd.f32 %v13119_v33, %v7261_v38  ;;  %v4048_v6 = vadd.f32 %v13043_v0, %v10092_v7  ;;  %v4042_v54 = vpop.f32.mrb[117].mxu0 }
 0x3c9   :  { %v7517_v43 = vadd.f32 %v13119_v33, %v7260_v47  ;;  %v4043_v56 = vadd.f32 %v13043_v0, %v4042_v54  ;;  %v10307_v11 = vpop.f32.mrb[140].mxu1  ;;  %10464 = vmatprep.mubr.msk.f32.mxu1 %vm4932_vm2, %v4801_v44  ;;  %v4058_v44 = vadd.f32 %v13043_v0, %v12501_v60 }
 0x3ca   :  { %7769 = vst.msk [vmem:[%s15558_s8 + $0x68] sm:$0xff] %vm7755_vm3, %v7518_v8  ;;  %v7263_v24 = vadd.f32 %v10307_v11, %v7013_v63  ;;  %v5819_v39 = vpop.f32.mrb[141].mxu1  ;;  %10465 = vmatmul.mubr.msk.f32.gmra.mrb[246].mxu1 %vm4932_vm2, %v4802_v26  ;;  %v4804_v47 = vmax.f32 %v4048_v6, 0.0  ;;  %v7014_v63 = vld [vmem:[%s15556_s0 + $0x80] sm:$0xff]  ;;  %v4805_v26 = vmax.f32 %v4053_v49, 0.0  ;;  %v4063_v8 = vadd.f32 %v13043_v0, %v12520_v51  ;;  %v7017_v49 = vld [vmem:[%s15556_s0 + $0x98] sm:$0xff] }
 0x3cb   :  { %7768 = vst.msk [vmem:[%s15558_s8 + $0x60] sm:$0xff] %vm7755_vm3, %v7517_v43  ;;  %v4803_v17 = vmax.f32 %v4043_v56, 0.0  ;;  %v7262_v38 = vadd.f32 %v7012_v37, %v5819_v39  ;;  %v4806_v43 = vmax.f32 %v4058_v44, 0.0  ;;  %v4068_v56 = vadd.f32 %v13043_v0, %v12515_v25 }
 0x3cc   :  { %v7520_v7 = vadd.f32 %v13119_v33, %v7263_v24  ;;  %v7016_v24 = vld [vmem:[%s15556_s0 + $0x90] sm:$0xff]  ;;  %v4807_v39 = vmax.f32 %v4063_v8, 0.0  ;;  %v7018_v8 = vld [vmem:[%s15556_s0 + $0xa0] sm:$0xff] }
 0x3cd   :  { %v7519_v54 = vadd.f32 %v13119_v33, %v7262_v38  ;;  %v10310_v37 = vpop.f32.mrb[142].mxu1  ;;  %10467 = vmatprep.mubr.msk.f32.mxu1 %vm4932_vm2, %v4803_v17  ;;  %v4073_v17 = vadd.f32 %v13043_v0, %v12534_v32  ;;  %v7019_v32 = vld [vmem:[%s15556_s0 + $0xa8] sm:$0xff] }
 0x3ce   :  { %7771 = vst.msk [vmem:[%s15558_s8 + $0x78] sm:$0xff] %vm7755_vm3, %v7520_v7  ;;  %v7265_v60 = vadd.f32 %v10310_v37, %v7015_v10  ;;  %v5829_v6 = vpop.f32.mrb[143].mxu1  ;;  %10468 = vmatmul.mubr.msk.f32.gmra.mrb[248].mxu1 %vm4932_vm2, %v4804_v47  ;;  %v4808_v7 = vmax.f32 %v4068_v56, 0.0  ;;  %v4083_v37 = vadd.f32 %v13043_v0, %v12548_v29  ;;  %v7021_v29 = vld [vmem:[%s15556_s0 + $0xb8] sm:$0xff]  ;;  %v4088_v56 = vadd.f32 %v13043_v0, %v12543_v40 }
 0x3cf   :  { %7770 = vst.msk [vmem:[%s15558_s8 + $0x70] sm:$0xff] %vm7755_vm3, %v7519_v54  ;;  %v7264_v51 = vadd.f32 %v7014_v63, %v5829_v6  ;;  %10470 = vmatprep.mubr.msk.f32.mxu1 %vm4932_vm2, %v4805_v26  ;;  %v4078_v63 = vadd.f32 %v13043_v0, %v12529_v50  ;;  %v4809_v54 = vmax.f32 %v4073_v17, 0.0  ;;  %v4093_v17 = vadd.f32 %v13043_v0, %v12562_v28  ;;  %v7023_v28 = vld [vmem:[%s15556_s0 + $0xc8] sm:$0xff] }
 0x3d0   :  { %v7522_v11 = vadd.f32 %v13119_v33, %v7265_v60 }
 0x3d1   :  { %v7521_v38 = vadd.f32 %v13119_v33, %v7264_v51  ;;  %v10313_v10 = vpop.f32.mrb[144].mxu1 }
 0x3d2   :  { %7773 = vst.msk [vmem:[%s15558_s8 + $0x88] sm:$0xff] %vm7755_vm3, %v7522_v11  ;;  %v7267_v44 = vadd.f32 %v10313_v10, %v7017_v49  ;;  %v5839_v25 = vpop.f32.mrb[145].mxu1  ;;  %10471 = vmatmul.mubr.msk.f32.gmra.mrb[250].mxu1 %vm4932_vm2, %v4806_v43  ;;  %v4810_v43 = vmax.f32 %v4078_v63, 0.0  ;;  %v7022_v63 = vld [vmem:[%s15556_s0 + $0xc0] sm:$0xff] }
 0x3d3   :  { %7772 = vst.msk [vmem:[%s15558_s8 + $0x80] sm:$0xff] %vm7755_vm3, %v7521_v38  ;;  %v7266_v47 = vadd.f32 %v7016_v24, %v5839_v25  ;;  %10473 = vmatprep.mubr.msk.f32.mxu1 %vm4932_vm2, %v4807_v39  ;;  %v7020_v24 = vld [vmem:[%s15556_s0 + $0xb0] sm:$0xff]  ;;  %v4811_v39 = vmax.f32 %v4083_v37, 0.0 }
 0x3d4   :  { %v7524_v26 = vadd.f32 %v13119_v33, %v7267_v44 }
 0x3d5   :  { %v7523_v60 = vadd.f32 %v13119_v33, %v7266_v47  ;;  %v10316_v6 = vpop.f32.mrb[146].mxu1  ;;  %v4812_v47 = vmax.f32 %v4088_v56, 0.0  ;;  %v4113_v56 = vadd.f32 %v13043_v0, %v12590_v57  ;;  %v7027_v57 = vld [vmem:[%s15556_s0 + $0xe8] sm:$0xff] }
 0x3d6   :  { %7775 = vst.msk [vmem:[%s15558_s8 + $0x98] sm:$0xff] %vm7755_vm3, %v7524_v26  ;;  %v7269_v51 = vadd.f32 %v10316_v6, %v7019_v32  ;;  %v5849_v50 = vpop.f32.mrb[147].mxu1  ;;  %10474 = vmatmul.mubr.msk.f32.gmra.mrb[252].mxu1 %vm4932_vm2, %v4808_v7  ;;  %v4098_v32 = vadd.f32 %v13043_v0, %v12557_v9  ;;  %v4813_v26 = vmax.f32 %v4093_v17, 0.0 }
 0x3d7   :  { %7774 = vst.msk [vmem:[%s15558_s8 + $0x90] sm:$0xff] %vm7755_vm3, %v7523_v60  ;;  %v7268_v49 = vadd.f32 %v7018_v8, %v5849_v50  ;;  %10476 = vmatprep.mubr.msk.f32.mxu1 %vm4932_vm2, %v4809_v54  ;;  %v4103_v8 = vadd.f32 %v13043_v0, %v12576_v19  ;;  %v7025_v19 = vld [vmem:[%s15556_s0 + $0xd8] sm:$0xff]  ;;  %v4108_v50 = vadd.f32 %v13043_v0, %v12571_v55 }
 0x3d8   :  { %v7526_v11 = vadd.f32 %v13119_v33, %v7269_v51  ;;  %v4814_v51 = vmax.f32 %v4098_v32, 0.0 }
 0x3d9   :  { %v7525_v38 = vadd.f32 %v13119_v33, %v7268_v49  ;;  %v10319_v10 = vpop.f32.mrb[148].mxu1 }
 0x3da   :  { %7777 = vst.msk [vmem:[%s15558_s8 + $0xa8] sm:$0xff] %vm7755_vm3, %v7526_v11  ;;  %v7271_v44 = vadd.f32 %v10319_v10, %v7021_v29  ;;  %v5859_v40 = vpop.f32.mrb[149].mxu1  ;;  %10477 = vmatmul.mubr.msk.f32.gmra.mrb[254].mxu1 %vm4932_vm2, %v4810_v43  ;;  %v7024_v29 = vld [vmem:[%s15556_s0 + $0xd0] sm:$0xff]  ;;  %v4815_v43 = vmax.f32 %v4103_v8, 0.0  ;;  %v4118_v10 = vadd.f32 %v13043_v0, %v12585_v20  ;;  %v4128_v8 = vadd.f32 %v13043_v0, %v12599_v3 }
 0x3db   :  { %7776 = vst.msk [vmem:[%s15558_s8 + $0xa0] sm:$0xff] %vm7755_vm3, %v7525_v38  ;;  %v7270_v25 = vadd.f32 %v7020_v24, %v5859_v40  ;;  %10479 = vmatprep.mubr.msk.f32.mxu1 %vm4932_vm2, %v4811_v39  ;;  %v4816_v38 = vmax.f32 %v4108_v50, 0.0  ;;  %v7026_v40 = vld [vmem:[%s15556_s0 + $0xe0] sm:$0xff] }
 0x3dc   :  { %v7528_v7 = vadd.f32 %v13119_v33, %v7271_v44 }
 0x3dd   :  { %v7527_v54 = vadd.f32 %v13119_v33, %v7270_v25  ;;  %v10322_v37 = vpop.f32.mrb[150].mxu1  ;;  %v4817_v25 = vmax.f32 %v4113_v56, 0.0  ;;  %v7030_v56 = vld [vmem:[%s15556_s0 + $0x100] sm:$0xff] }
 0x3de   :  { %7779 = vst.msk [vmem:[%s15558_s8 + $0xb8] sm:$0xff] %vm7755_vm3, %v7528_v7  ;;  %v7273_v60 = vadd.f32 %v10322_v37, %v7023_v28  ;;  %v5869_v9 = vpop.f32.mrb[151].mxu1  ;;  %10480 = vmatmul.mubr.msk.f32.gmra.mrb[0].mxu1 %vm4932_vm2, %v4812_v47  ;;  %v4123_v28 = vadd.f32 %v13043_v0, %v12604_v52  ;;  %v7029_v52 = vld [vmem:[%s15556_s0 + $0xf8] sm:$0xff]  ;;  %v7028_v37 = vld [vmem:[%s15556_s0 + $0xf0] sm:$0xff] }
 0x3df   :  { %7778 = vst.msk [vmem:[%s15558_s8 + $0xb0] sm:$0xff] %vm7755_vm3, %v7527_v54  ;;  %v7272_v6 = vadd.f32 %v7022_v63, %v5869_v9  ;;  %10482 = vmatprep.mubr.msk.f32.mxu1 %vm4932_vm2, %v4813_v26  ;;  %v4818_v26 = vmax.f32 %v4118_v10, 0.0  ;;  %v4133_v9 = vadd.f32 %v13043_v0, %v12618_v58  ;;  %v7031_v58 = vld [vmem:[%s15556_s0 + $0x108] sm:$0xff]  ;;  %v4148_v10 = vadd.f32 %v13043_v0, %v12632_v46 }
 0x3e0   :  { %v7530_v49 = vadd.f32 %v13119_v33, %v7273_v60  ;;  %v4819_v60 = vmax.f32 %v4123_v28, 0.0  ;;  %v4153_v28 = vadd.f32 %v13043_v0, %v12651_v21  ;;  %v7035_v21 = vld [vmem:[%s15556_s0 + $0x128] sm:$0xff] }
 0x3e1   :  { %v7529_v11 = vadd.f32 %v13119_v33, %v7272_v6  ;;  %v10325_v24 = vpop.f32.mrb[152].mxu1 }
 0x3e2   :  { %7781 = vst.msk [vmem:[%s15558_s8 + $0xc8] sm:$0xff] %vm7755_vm3, %v7530_v49  ;;  %v7275_v39 = vadd.f32 %v10325_v24, %v7025_v19  ;;  %v5879_v55 = vpop.f32.mrb[153].mxu1  ;;  %10483 = vmatmul.mubr.msk.f32.gmra.mrb[2].mxu1 %vm4932_vm2, %v4814_v51  ;;  %v4820_v49 = vmax.f32 %v4128_v8, 0.0  ;;  %v4143_v24 = vadd.f32 %v13043_v0, %v12637_v53  ;;  %v7033_v53 = vld [vmem:[%s15556_s0 + $0x118] sm:$0xff]  ;;  %v7034_v8 = vld [vmem:[%s15556_s0 + $0x120] sm:$0xff] }
 0x3e3   :  { %7780 = vst.msk [vmem:[%s15558_s8 + $0xc0] sm:$0xff] %vm7755_vm3, %v7529_v11  ;;  %v7274_v17 = vadd.f32 %v7024_v29, %v5879_v55  ;;  %10485 = vmatprep.mubr.msk.f32.mxu1 %vm4932_vm2, %v4815_v43  ;;  %v4138_v29 = vadd.f32 %v13043_v0, %v12613_v15  ;;  %v4821_v11 = vmax.f32 %v4133_v9, 0.0 }
 0x3e4   :  { %v7532_v44 = vadd.f32 %v13119_v33, %v7275_v39 }
 0x3e5   :  { %v7531_v47 = vadd.f32 %v13119_v33, %v7274_v17  ;;  %v10328_v32 = vpop.f32.mrb[154].mxu1 }
 0x3e6   :  { %7783 = vst.msk [vmem:[%s15558_s8 + $0xd8] sm:$0xff] %vm7755_vm3, %v7532_v44  ;;  %v7277_v7 = vadd.f32 %v10328_v32, %v7027_v57  ;;  %v5889_v20 = vpop.f32.mrb[155].mxu1  ;;  %10486 = vmatmul.mubr.msk.f32.gmra.mrb[4].mxu1 %vm4932_vm2, %v4816_v38  ;;  %v4822_v38 = vmax.f32 %v4138_v29, 0.0  ;;  %v4173_v29 = vadd.f32 %v13043_v0, %v12679_v30  ;;  %v7039_v30 = vld [vmem:[%s15556_s0 + $0x148] sm:$0xff] }
 0x3e7   :  { %7782 = vst.msk [vmem:[%s15558_s8 + $0xd0] sm:$0xff] %vm7755_vm3, %v7531_v47  ;;  %v7276_v63 = vadd.f32 %v7026_v40, %v5889_v20  ;;  %10488 = vmatprep.mubr.msk.f32.mxu1 %vm4932_vm2, %v4817_v25  ;;  %v7032_v40 = vld [vmem:[%s15556_s0 + $0x110] sm:$0xff]  ;;  %v4823_v25 = vmax.f32 %v4143_v24, 0.0 }
 0x3e8   :  { %v7534_v54 = vadd.f32 %v13119_v33, %v7277_v7 }
 0x3e9   :  { %v7533_v6 = vadd.f32 %v13119_v33, %v7276_v63  ;;  %v10331_v19 = vpop.f32.mrb[156].mxu1  ;;  %v4824_v63 = vmax.f32 %v4148_v10, 0.0 }
 0x3ea   :  { %7785 = vst.msk [vmem:[%s15558_s8 + $0xe8] sm:$0xff] %vm7755_vm3, %v7534_v54  ;;  %v7279_v51 = vadd.f32 %v10331_v19, %v7029_v52  ;;  %v5899_v3 = vpop.f32.mrb[157].mxu1  ;;  %10489 = vmatmul.mubr.msk.f32.gmra.mrb[6].mxu1 %vm4932_vm2, %v4818_v26  ;;  %v4158_v52 = vadd.f32 %v13043_v0, %v12646_v59  ;;  %v4825_v54 = vmax.f32 %v4153_v28, 0.0  ;;  %v4188_v28 = vadd.f32 %v13043_v0, %v12688_v34 }
 0x3eb   :  { %7784 = vst.msk [vmem:[%s15558_s8 + $0xe0] sm:$0xff] %vm7755_vm3, %v7533_v6  ;;  %v7278_v50 = vadd.f32 %v7028_v37, %v5899_v3  ;;  %10491 = vmatprep.mubr.msk.f32.mxu1 %vm4932_vm2, %v4819_v60  ;;  %v4163_v37 = vadd.f32 %v13043_v0, %v12665_v4  ;;  %v7037_v4 = vld [vmem:[%s15556_s0 + $0x138] sm:$0xff]  ;;  %v4168_v3 = vadd.f32 %v13043_v0, %v12660_v61 }
 0x3ec   :  { %v7536_v43 = vadd.f32 %v13119_v33, %v7279_v51  ;;  %v4826_v51 = vmax.f32 %v4158_v52, 0.0 }
 0x3ed   :  { %v7535_v39 = vadd.f32 %v13119_v33, %v7278_v50  ;;  %v10334_v55 = vpop.f32.mrb[158].mxu1 }
 0x3ee   :  { %7787 = vst.msk [vmem:[%s15558_s8 + $0xf8] sm:$0xff] %vm7755_vm3, %v7536_v43  ;;  %v7281_v17 = vadd.f32 %v10334_v55, %v7031_v58  ;;  %v5909_v15 = vpop.f32.mrb[159].mxu1  ;;  %10492 = vmatmul.mubr.msk.f32.gmra.mrb[8].mxu1 %vm4932_vm2, %v4820_v49  ;;  %v7036_v58 = vld [vmem:[%s15556_s0 + $0x130] sm:$0xff]  ;;  %v4827_v49 = vmax.f32 %v4163_v37, 0.0  ;;  %v4178_v55 = vadd.f32 %v13043_v0, %v12674_v16  ;;  %v7042_v37 = vld [vmem:[%s15556_s0 + $0x160] sm:$0xff] }
 0x3ef   :  { %7786 = vst.msk [vmem:[%s15558_s8 + $0xf0] sm:$0xff] %vm7755_vm3, %v7535_v39  ;;  %v7280_v57 = vadd.f32 %v7030_v56, %v5909_v15  ;;  %10494 = vmatprep.mubr.msk.f32.mxu1 %vm4932_vm2, %v4821_v11  ;;  %v4828_v39 = vmax.f32 %v4168_v3, 0.0  ;;  %v7038_v15 = vld [vmem:[%s15556_s0 + $0x140] sm:$0xff]  ;;  %v4208_v3 = vadd.f32 %v13043_v0, %v12716_v35 }
 0x3f0   :  { %v7538_v44 = vadd.f32 %v13119_v33, %v7281_v17 }
 0x3f1   :  { %v7537_v47 = vadd.f32 %v13119_v33, %v7280_v57  ;;  %v10337_v32 = vpop.f32.mrb[160].mxu1  ;;  %v4829_v57 = vmax.f32 %v4173_v29, 0.0  ;;  %v4213_v29 = vadd.f32 %v13043_v0, %v12731_v22  ;;  %v7047_v22 = vld [vmem:[%s15556_s0 + $0x188] sm:$0xff] }
 0x3f2   :  { %7789 = vst.msk [vmem:[%s15558_s8 + $0x108] sm:$0xff] %vm7755_vm3, %v7538_v44  ;;  %v7283_v7 = vadd.f32 %v10337_v32, %v7033_v53  ;;  %v5919_v46 = vpop.f32.mrb[161].mxu1  ;;  %10495 = vmatmul.mubr.msk.f32.gmra.mrb[10].mxu1 %vm4932_vm2, %v4822_v38  ;;  %v4183_v53 = vadd.f32 %v13043_v0, %v12693_v1  ;;  %v7041_v1 = vld [vmem:[%s15556_s0 + $0x158] sm:$0xff]  ;;  %v7040_v32 = vld [vmem:[%s15556_s0 + $0x150] sm:$0xff] }
 0x3f3   :  { %7788 = vst.msk [vmem:[%s15558_s8 + $0x100] sm:$0xff] %vm7755_vm3, %v7537_v47  ;;  %v7282_v20 = vadd.f32 %v7032_v40, %v5919_v46  ;;  %10497 = vmatprep.mubr.msk.f32.mxu1 %vm4932_vm2, %v4823_v25  ;;  %v4830_v25 = vmax.f32 %v4178_v55, 0.0  ;;  %v4193_v46 = vadd.f32 %v13043_v0, %v12707_v42  ;;  %v7043_v42 = vld [vmem:[%s15556_s0 + $0x168] sm:$0xff]  ;;  %v7046_v55 = vld [vmem:[%s15556_s0 + $0x180] sm:$0xff] }
 0x3f4   :  { %v7540_v26 = vadd.f32 %v13119_v33, %v7283_v7  ;;  %v4831_v7 = vmax.f32 %v4183_v53, 0.0 }
 0x3f5   :  { %v7539_v60 = vadd.f32 %v13119_v33, %v7282_v20  ;;  %v10340_v9 = vpop.f32.mrb[162].mxu1 }
 0x3f6   :  { %7791 = vst.msk [vmem:[%s15558_s8 + $0x118] sm:$0xff] %vm7755_vm3, %v7540_v26  ;;  %v7285_v6 = vadd.f32 %v10340_v9, %v7035_v21  ;;  %v5929_v59 = vpop.f32.mrb[163].mxu1  ;;  %10498 = vmatmul.mubr.msk.f32.gmra.mrb[12].mxu1 %vm4932_vm2, %v4824_v63  ;;  %v4832_v26 = vmax.f32 %v4188_v28, 0.0  ;;  %v4203_v9 = vadd.f32 %v13043_v0, %v12721_v18  ;;  %v7045_v18 = vld [vmem:[%s15556_s0 + $0x178] sm:$0xff]  ;;  %v4233_v28 = vadd.f32 %v13043_v0, %v12748_v45  ;;  %v7051_v45 = vld [vmem:[%s15556_s0 + $0x1a8] sm:$0xff] }
 0x3f7   :  { %7790 = vst.msk [vmem:[%s15558_s8 + $0x110] sm:$0xff] %vm7755_vm3, %v7539_v60  ;;  %v7284_v19 = vadd.f32 %v7034_v8, %v5929_v59  ;;  %10500 = vmatprep.mubr.msk.f32.mxu1 %vm4932_vm2, %v4825_v54  ;;  %v4198_v8 = vadd.f32 %v13043_v0, %v12702_v12  ;;  %v4833_v60 = vmax.f32 %v4193_v46, 0.0 }
 0x3f8   :  { %v7542_v50 = vadd.f32 %v13119_v33, %v7285_v6 }
 0x3f9   :  { %v7541_v43 = vadd.f32 %v13119_v33, %v7284_v19  ;;  %v10343_v56 = vpop.f32.mrb[164].mxu1 }
 0x3fa   :  { %7793 = vst.msk [vmem:[%s15558_s8 + $0x128] sm:$0xff] %vm7755_vm3, %v7542_v50  ;;  %v7287_v11 = vadd.f32 %v10343_v56, %v7037_v4  ;;  %v5939_v61 = vpop.f32.mrb[165].mxu1  ;;  %10501 = vmatmul.mubr.msk.f32.gmra.mrb[14].mxu1 %vm4932_vm2, %v4826_v51  ;;  %v4834_v51 = vmax.f32 %v4198_v8, 0.0 }
 0x3fb   :  { %7792 = vst.msk [vmem:[%s15558_s8 + $0x120] sm:$0xff] %vm7755_vm3, %v7541_v43  ;;  %v7286_v24 = vadd.f32 %v7036_v58, %v5939_v61  ;;  %10503 = vmatprep.mubr.msk.f32.mxu1 %vm4932_vm2, %v4827_v49  ;;  %v7044_v58 = vld [vmem:[%s15556_s0 + $0x170] sm:$0xff]  ;;  %v4835_v49 = vmax.f32 %v4203_v9, 0.0 }
 0x3fc   :  { %v7544_v17 = vadd.f32 %v13119_v33, %v7287_v11 }
 0x3fd   :  { %v7543_v38 = vadd.f32 %v13119_v33, %v7286_v24  ;;  %v10346_v10 = vpop.f32.mrb[166].mxu1  ;;  %v4836_v24 = vmax.f32 %v4208_v3, 0.0 }
 0x3fe   :  { %7795 = vst.msk [vmem:[%s15558_s8 + $0x138] sm:$0xff] %vm7755_vm3, %v7544_v17  ;;  %v7289_v44 = vadd.f32 %v10346_v10, %v7039_v30  ;;  %v5949_v16 = vpop.f32.mrb[167].mxu1  ;;  %10504 = vmatmul.mubr.msk.f32.gmra.mrb[16].mxu1 %vm4932_vm2, %v4828_v39  ;;  %v4218_v30 = vadd.f32 %v13043_v0, %v12728_v36  ;;  %v4837_v17 = vmax.f32 %v4213_v29, 0.0  ;;  %v7054_v29 = vld [vmem:[%s15556_s0 + $0x1c0] sm:$0xff] }
 0x3ff   :  { %7794 = vst.msk [vmem:[%s15558_s8 + $0x130] sm:$0xff] %vm7755_vm3, %v7543_v38  ;;  %v7288_v40 = vadd.f32 %v7038_v15, %v5949_v16  ;;  %10506 = vmatprep.mubr.msk.f32.mxu1 %vm4932_vm2, %v4829_v57  ;;  %v4223_v15 = vadd.f32 %v13043_v0, %v12740_v2  ;;  %v7049_v2 = vld [vmem:[%s15556_s0 + $0x198] sm:$0xff]  ;;  %v4228_v16 = vadd.f32 %v13043_v0, %v12737_v13 }
 0x400   :  { %v7546_v47 = vadd.f32 %v13119_v33, %v7289_v44  ;;  %v4838_v44 = vmax.f32 %v4218_v30, 0.0 }
 0x401   :  { %v7545_v20 = vadd.f32 %v13119_v33, %v7288_v40  ;;  %v10349_v21 = vpop.f32.mrb[168].mxu1  ;;  %v4840_v0 = vmax.f32 %v4228_v16, 0.0 }
 0x402   :  { %7797 = vst.msk [vmem:[%s15558_s8 + $0x148] sm:$0xff] %vm7755_vm3, %v7546_v47  ;;  %v7291_v63 = vadd.f32 %v10349_v21, %v7041_v1  ;;  %v5959_v34 = vpop.f32.mrb[169].mxu1  ;;  %10507 = vmatmul.mubr.msk.f32.gmra.mrb[18].mxu1 %vm4932_vm2, %v4830_v25  ;;  %v7048_v1 = vld [vmem:[%s15556_s0 + $0x190] sm:$0xff]  ;;  %v4839_v25 = vmax.f32 %v4223_v15, 0.0 }
 0x403   :  { %7796 = vst.msk [vmem:[%s15558_s8 + $0x140] sm:$0xff] %vm7755_vm3, %v7545_v20  ;;  %v7290_v52 = vadd.f32 %v7040_v32, %v5959_v34  ;;  %10509 = vmatprep.mubr.msk.f32.mxu1 %vm4932_vm2, %v4831_v7  ;;  %v13668_v20 = vld [vmem:[%s15555_s5] ss:$0 sm:$0xff] }
 0x404   :  { %v7548_v54 = vadd.f32 %v13119_v33, %v7291_v63  ;;  %v4238_v21 = vadd.f32 %v13668_v20, %v12745_v5  ;;  %v7050_v34 = vld [vmem:[%s15556_s0 + $0x1a0] sm:$0xff]  ;;  %v4248_v9 = vadd.f32 %v13668_v20, %v12753_v23  ;;  %v4268_v30 = vadd.f32 %v13668_v20, %v12769_v31 }
 0x405   :  { %v7547_v6 = vadd.f32 %v13119_v33, %v7290_v52  ;;  %v10352_v59 = vpop.f32.mrb[170].mxu1  ;;  %v4841_v52 = vmax.f32 %v4233_v28, 0.0  ;;  %v4273_v15 = vadd.f32 %v13668_v20, %v12780_v62  ;;  %v7059_v62 = vld [vmem:[%s15556_s0 + $0x1e8] sm:$0xff] }
 0x406   :  { %7799 = vst.msk [vmem:[%s15558_s8 + $0x158] sm:$0xff] %vm7755_vm3, %v7548_v54  ;;  %v7293_v19 = vadd.f32 %v10352_v59, %v7043_v42  ;;  %v5969_v12 = vpop.f32.mrb[171].mxu1  ;;  %10510 = vmatmul.mubr.msk.f32.gmra.mrb[20].mxu1 %vm4932_vm2, %v4832_v26  ;;  %v4243_v42 = vadd.f32 %v13668_v20, %v12756_v41  ;;  %v7053_v41 = vld [vmem:[%s15556_s0 + $0x1b8] sm:$0xff]  ;;  %v7052_v59 = vld [vmem:[%s15556_s0 + $0x1b0] sm:$0xff] }
 0x407   :  { %7798 = vst.msk [vmem:[%s15558_s8 + $0x150] sm:$0xff] %vm7755_vm3, %v7547_v6  ;;  %v7292_v4 = vadd.f32 %v7042_v37, %v5969_v12  ;;  %10512 = vmatprep.mubr.msk.f32.mxu1 %vm4932_vm2, %v4833_v60  ;;  %v4842_v60 = vmax.f32 %v4238_v21, 0.0  ;;  %v4253_v12 = vadd.f32 %v13668_v20, %v12764_v48  ;;  %v7055_v48 = vld [vmem:[%s15556_s0 + $0x1c8] sm:$0xff]  ;;  %v15790_v21 = vld [vmem:[#allocation2_spill] sm:$0xff] }
 0x408   :  { %v7550_v50 = vadd.f32 %v13119_v33, %v7293_v19  ;;  %v4843_v19 = vmax.f32 %v4243_v42, 0.0 }
 0x409   :  { %v7549_v43 = vadd.f32 %v13119_v33, %v7292_v4  ;;  %v10355_v56 = vpop.f32.mrb[172].mxu1 }
 0x40a   :  { %7801 = vst.msk [vmem:[%s15558_s8 + $0x168] sm:$0xff] %vm7755_vm3, %v7550_v50  ;;  %v7295_v11 = vadd.f32 %v10355_v56, %v7045_v18  ;;  %v5979_v35 = vpop.f32.mrb[173].mxu1  ;;  %10513 = vmatmul.mubr.msk.f32.gmra.mrb[22].mxu1 %vm4932_vm2, %v4834_v51  ;;  %v4844_v50 = vmax.f32 %v4248_v9, 0.0  ;;  %v4263_v56 = vadd.f32 %v13668_v20, %v12772_v14  ;;  %v7057_v14 = vld [vmem:[%s15556_s0 + $0x1d8] sm:$0xff]  ;;  %v7063_v9 = vld [vmem:[%s15556_s0 + $0x208] sm:$0xff] }
 0x40b   :  { %7800 = vst.msk [vmem:[%s15558_s8 + $0x160] sm:$0xff] %vm7755_vm3, %v7549_v43  ;;  %v7294_v61 = vadd.f32 %v7044_v58, %v5979_v35  ;;  %10515 = vmatprep.mubr.msk.f32.mxu1 %vm4932_vm2, %v4835_v49  ;;  %v4258_v58 = vadd.f32 %v13668_v20, %v12761_v27  ;;  %v4845_v43 = vmax.f32 %v4253_v12, 0.0 }
 0x40c   :  { %v7552_v39 = vadd.f32 %v13119_v33, %v7295_v11 }
 0x40d   :  { %v7551_v57 = vadd.f32 %v13119_v33, %v7294_v61  ;;  %v10358_v53 = vpop.f32.mrb[174].mxu1 }
 0x40e   :  { %7803 = vst.msk [vmem:[%s15558_s8 + $0x178] sm:$0xff] %vm7755_vm3, %v7552_v39  ;;  %v7297_v38 = vadd.f32 %v10358_v53, %v7047_v22  ;;  %v5989_v36 = vpop.f32.mrb[175].mxu1  ;;  %10516 = vmatmul.mubr.msk.f32.gmra.mrb[24].mxu1 %vm4932_vm2, %v4836_v24  ;;  %v4846_v24 = vmax.f32 %v4258_v58, 0.0 }
 0x40f   :  { %7802 = vst.msk [vmem:[%s15558_s8 + $0x170] sm:$0xff] %vm7755_vm3, %v7551_v57  ;;  %v7296_v10 = vadd.f32 %v7046_v55, %v5989_v36  ;;  %10518 = vmatprep.mubr.msk.f32.mxu1 %vm4932_vm2, %v4837_v17  ;;  %v7056_v55 = vld [vmem:[%s15556_s0 + $0x1d0] sm:$0xff]  ;;  %v4847_v17 = vmax.f32 %v4263_v56, 0.0  ;;  %v15794_v56 = vld [vmem:[#allocation6_spill] sm:$0xff] }
 0x410   :  { %v7554_v40 = vadd.f32 %v13119_v33, %v7297_v38 }
 0x411   :  { %v7553_v47 = vadd.f32 %v13119_v33, %v7296_v10  ;;  %v10361_v32 = vpop.f32.mrb[176].mxu1  ;;  %v4848_v10 = vmax.f32 %v4268_v30, 0.0 }
 0x412   :  { %7805 = vst.msk [vmem:[%s15558_s8 + $0x188] sm:$0xff] %vm7755_vm3, %v7554_v40  ;;  %v7299_v7 = vadd.f32 %v10361_v32, %v7049_v2  ;;  %v5999_v13 = vpop.f32.mrb[177].mxu1  ;;  %10519 = vmatmul.mubr.msk.f32.gmra.mrb[26].mxu1 %vm4932_vm2, %v4838_v44  ;;  %v15788_v2 = vld [vmem:[#allocation3_spill] sm:$0xff]  ;;  %v7058_v40 = vld [vmem:[%s15556_s0 + $0x1e0] sm:$0xff] }
 0x413   :  { %7804 = vst.msk [vmem:[%s15558_s8 + $0x180] sm:$0xff] %vm7755_vm3, %v7553_v47  ;;  %v7298_v46 = vadd.f32 %v7048_v1, %v5999_v13  ;;  %10521 = vmatprep.mubr.msk.f32.mxu1 %vm4932_vm2, %v4839_v25  ;;  %v4278_v44 = vadd.f32 %v13668_v20, %v15788_v2  ;;  %v4849_v1 = vmax.f32 %v4273_v15, 0.0  ;;  %v15789_v25 = vld [vmem:[#allocation5_spill] sm:$0xff]  ;;  %v7067_v15 = vld [vmem:[%s15556_s0 + $0x228] sm:$0xff] }
 0x414   :  { %v7556_v63 = vadd.f32 %v13119_v33, %v7299_v7  ;;  %v4283_v28 = vadd.f32 %v13668_v20, %v15789_v25 }
 0x415   :  { %v7555_v26 = vadd.f32 %v13119_v33, %v7298_v46  ;;  %v10364_v8 = vpop.f32.mrb[178].mxu1 }
 0x416   :  { %7807 = vst.msk [vmem:[%s15558_s8 + $0x198] sm:$0xff] %vm7755_vm3, %v7556_v63  ;;  %v7301_v54 = vadd.f32 %v10364_v8, %v7051_v45  ;;  %v6009_v5 = vpop.f32.mrb[179].mxu1  ;;  %10522 = vmatmul.mubr.msk.f32.gmra.mrb[28].mxu1 %vm4932_vm2, %v4840_v0  ;;  %v7061_v45 = vld [vmem:[%s15556_s0 + $0x1f8] sm:$0xff]  ;;  %v4850_v0 = vmax.f32 %v4278_v44, 0.0  ;;  %v4288_v63 = vadd.f32 %v13668_v20, %v15790_v21  ;;  %v4851_v42 = vmax.f32 %v4283_v28, 0.0 }
 0x417   :  { %7806 = vst.msk [vmem:[%s15558_s8 + $0x190] sm:$0xff] %vm7755_vm3, %v7555_v26  ;;  %v7300_v37 = vadd.f32 %v7050_v34, %v6009_v5  ;;  %10524 = vmatprep.mubr.msk.f32.mxu1 %vm4932_vm2, %v4841_v52  ;;  %v7060_v52 = vld [vmem:[%s15556_s0 + $0x1f0] sm:$0xff]  ;;  %v15791_v26 = vld [vmem:[#allocation7_spill] sm:$0xff]  ;;  %v7069_v28 = vld [vmem:[%s15556_s0 + $0x238] sm:$0xff] }
 0x418   :  { %v7558_v6 = vadd.f32 %v13119_v33, %v7301_v54  ;;  %v4293_v8 = vadd.f32 %v13668_v20, %v15791_v26  ;;  %v13791_v54 = vld [vmem:[%s15557_s7] ss:$0 sm:$0xff] }
 0x419   :  { %v7557_v4 = vadd.f32 %v13119_v33, %v7300_v37  ;;  %v10367_v18 = vpop.f32.mrb[180].mxu1 }
 0x41a   :  { %7809 = vst.msk [vmem:[%s15558_s8 + $0x1a8] sm:$0xff] %vm7755_vm3, %v7558_v6  ;;  %v7303_v51 = vadd.f32 %v10367_v18, %v7053_v41  ;;  %v6019_v23 = vpop.f32.mrb[181].mxu1  ;;  %10525 = vmatmul.mubr.msk.f32.gmra.mrb[30].mxu1 %vm4932_vm2, %v4842_v60  ;;  %v4852_v6 = vmax.f32 %v4288_v63, 0.0  ;;  %v4853_v18 = vmax.f32 %v4293_v8, 0.0  ;;  %v7071_v8 = vld [vmem:[%s15556_s0 + $0x248] sm:$0xff] }
 0x41b   :  { %7808 = vst.msk [vmem:[%s15558_s8 + $0x1a0] sm:$0xff] %vm7755_vm3, %v7557_v4  ;;  %v7302_v3 = vadd.f32 %v7052_v59, %v6019_v23  ;;  %10527 = vmatprep.mubr.msk.f32.mxu1 %vm4932_vm2, %v4843_v19  ;;  %v15792_v59 = vld [vmem:[#allocation4_spill] sm:$0xff]  ;;  %v7062_v4 = vld [vmem:[%s15556_s0 + $0x200] sm:$0xff] }
 0x41c   :  { %v7560_v49 = vadd.f32 %v13119_v33, %v7303_v51  ;;  %v4298_v19 = vadd.f32 %v13668_v20, %v15792_v59  ;;  %v15793_v51 = vld [vmem:[#allocation9_spill] sm:$0xff] }
 0x41d   :  { %v7559_v11 = vadd.f32 %v13119_v33, %v7302_v3  ;;  %v10370_v35 = vpop.f32.mrb[182].mxu1  ;;  %v4303_v23 = vadd.f32 %v13668_v20, %v15793_v51 }
 0x41e   :  { %7811 = vst.msk [vmem:[%s15558_s8 + $0x1b8] sm:$0xff] %vm7755_vm3, %v7560_v49  ;;  %v7305_v61 = vadd.f32 %v10370_v35, %v7055_v48  ;;  %v6029_v27 = vpop.f32.mrb[183].mxu1  ;;  %10528 = vmatmul.mubr.msk.f32.gmra.mrb[32].mxu1 %vm4932_vm2, %v4844_v50 }
 0x41f   :  { %7810 = vst.msk [vmem:[%s15558_s8 + $0x1b0] sm:$0xff] %vm7755_vm3, %v7559_v11  ;;  %v7304_v22 = vadd.f32 %v7054_v29, %v6029_v27  ;;  %10530 = vmatprep.mubr.msk.f32.mxu1 %vm4932_vm2, %v4845_v43  ;;  %v7065_v29 = vld [vmem:[%s15556_s0 + $0x218] sm:$0xff]  ;;  %v4854_v43 = vmax.f32 %v4298_v19, 0.0  ;;  %v4308_v11 = vadd.f32 %v13668_v20, %v15794_v56  ;;  %v4855_v27 = vmax.f32 %v4303_v23, 0.0 }
 0x420   :  { %v7562_v39 = vadd.f32 %v13119_v33, %v7305_v61  ;;  %v7064_v61 = vld [vmem:[%s15556_s0 + $0x210] sm:$0xff]  ;;  %v7073_v23 = vld [vmem:[%s15556_s0 + $0x258] sm:$0xff] }
 0x421   :  { %v7561_v57 = vadd.f32 %v13119_v33, %v7304_v22  ;;  %v10373_v53 = vpop.f32.mrb[184].mxu1  ;;  %v15795_v22 = vld [vmem:[#allocation11_spill] sm:$0xff] }
 0x422   :  { %7813 = vst.msk [vmem:[%s15558_s8 + $0x1c8] sm:$0xff] %vm7755_vm3, %v7562_v39  ;;  %v7307_v38 = vadd.f32 %v10373_v53, %v7057_v14  ;;  %v6039_v31 = vpop.f32.mrb[185].mxu1  ;;  %10531 = vmatmul.mubr.msk.f32.gmra.mrb[34].mxu1 %vm4932_vm2, %v4846_v24  ;;  %v4313_v14 = vadd.f32 %v13668_v20, %v15795_v22  ;;  %v15796_v53 = vld [vmem:[#allocation8_spill] sm:$0xff] }
 0x423   :  { %7812 = vst.msk [vmem:[%s15558_s8 + $0x1c0] sm:$0xff] %vm7755_vm3, %v7561_v57  ;;  %v7306_v36 = vadd.f32 %v7056_v55, %v6039_v31  ;;  %10533 = vmatprep.mubr.msk.f32.mxu1 %vm4932_vm2, %v4847_v17  ;;  %v4856_v57 = vmax.f32 %v4308_v11, 0.0 }
 0x424   :  { %v7564_v16 = vadd.f32 %v13119_v33, %v7307_v38  ;;  %v4318_v38 = vadd.f32 %v13668_v20, %v15796_v53 }
 0x425   :  { %v7563_v47 = vadd.f32 %v13119_v33, %v7306_v36  ;;  %v10376_v32 = vpop.f32.mrb[186].mxu1  ;;  %v7066_v36 = vld [vmem:[%s15556_s0 + $0x220] sm:$0xff] }
 0x426   :  { %7815 = vst.msk [vmem:[%s15558_s8 + $0x1d8] sm:$0xff] %vm7755_vm3, %v7564_v16  ;;  %v7309_v7 = vadd.f32 %v10376_v32, %v7059_v62  ;;  %v6049_v13 = vpop.f32.mrb[187].mxu1  ;;  %10534 = vmatmul.mubr.msk.f32.gmra.mrb[36].mxu1 %vm4932_vm2, %v4848_v10  ;;  %v4857_v62 = vmax.f32 %v4313_v14, 0.0  ;;  %v15797_v10 = vld [vmem:[#allocation13_spill] sm:$0xff]  ;;  %v15798_v32 = vld [vmem:[#allocation10_spill] sm:$0xff]  ;;  %v7075_v14 = vld [vmem:[%s15556_s0 + $0x268] sm:$0xff] }
 0x427   :  { %7814 = vst.msk [vmem:[%s15558_s8 + $0x1d0] sm:$0xff] %vm7755_vm3, %v7563_v47  ;;  %v7308_v46 = vadd.f32 %v7058_v40, %v6049_v13  ;;  %10536 = vmatprep.mubr.msk.f32.mxu1 %vm4932_vm2, %v4849_v1  ;;  %v4323_v2 = vadd.f32 %v13668_v20, %v15797_v10  ;;  %v4858_v47 = vmax.f32 %v4318_v38, 0.0 }
 0x428   :  { %v7566_v34 = vadd.f32 %v13119_v33, %v7309_v7  ;;  %v4328_v7 = vadd.f32 %v13668_v20, %v15798_v32 }
 0x429   :  { %v7565_v5 = vadd.f32 %v13791_v54, %v7308_v46  ;;  %v10379_v37 = vpop.f32.mrb[188].mxu1  ;;  %v7068_v46 = vld [vmem:[%s15556_s0 + $0x230] sm:$0xff] }
 0x42a   :  { %7817 = vst.msk [vmem:[%s15558_s8 + $0x1e8] sm:$0xff] %vm7755_vm3, %v7566_v34  ;;  %v7311_v33 = vadd.f32 %v10379_v37, %v7061_v45  ;;  %v6059_v41 = vpop.f32.mrb[189].mxu1  ;;  %10537 = vmatmul.mubr.msk.f32.gmra.mrb[38].mxu1 %vm4932_vm2, %v4850_v0  ;;  %v4859_v45 = vmax.f32 %v4323_v2, 0.0  ;;  %v15799_v0 = vld [vmem:[#allocation15_spill] sm:$0xff]  ;;  %v15800_v37 = vld [vmem:[#allocation12_spill] sm:$0xff]  ;;  %v7077_v2 = vld [vmem:[%s15556_s0 + $0x278] sm:$0xff] }
 0x42b   :  { %7816 = vst.msk [vmem:[%s15558_s8 + $0x1e0] sm:$0xff] %vm7755_vm3, %v7565_v5  ;;  %v7310_v60 = vadd.f32 %v7060_v52, %v6059_v41  ;;  %10539 = vmatprep.mubr.msk.f32.mxu1 %vm4932_vm2, %v4851_v42  ;;  %v4333_v21 = vadd.f32 %v13668_v20, %v15799_v0  ;;  %v4860_v5 = vmax.f32 %v4328_v7, 0.0 }
 0x42c   :  { %v7568_v12 = vadd.f32 %v13791_v54, %v7311_v33  ;;  %v4338_v33 = vadd.f32 %v13668_v20, %v15800_v37 }
 0x42d   :  { %v7567_v3 = vadd.f32 %v13791_v54, %v7310_v60  ;;  %v10382_v48 = vpop.f32.mrb[190].mxu1  ;;  %v7070_v60 = vld [vmem:[%s15556_s0 + $0x240] sm:$0xff] }
 0x42e   :  { %7819 = vst.msk [vmem:[%s15558_s8 + $0x1f8] sm:$0xff] %vm7755_vm3, %v7568_v12  ;;  %v7313_v50 = vadd.f32 %v10382_v48, %v7063_v9  ;;  %v6069_v58 = vpop.f32.mrb[191].mxu1  ;;  %10540 = vmatmul.mubr.msk.f32.gmra.mrb[40].mxu1 %vm4932_vm2, %v4852_v6  ;;  %v4861_v9 = vmax.f32 %v4333_v21, 0.0  ;;  %v15801_v6 = vld [vmem:[#allocation17_spill] sm:$0xff]  ;;  %v15802_v48 = vld [vmem:[#allocation14_spill] sm:$0xff]  ;;  %v7079_v21 = vld [vmem:[%s15556_s0 + $0x288] sm:$0xff] }
 0x42f   :  { %7818 = vst.msk [vmem:[%s15558_s8 + $0x1f0] sm:$0xff] %vm7755_vm3, %v7567_v3  ;;  %v7312_v49 = vadd.f32 %v7062_v4, %v6069_v58  ;;  %10542 = vmatprep.mubr.msk.f32.mxu1 %vm4932_vm2, %v4853_v18  ;;  %v4343_v59 = vadd.f32 %v13668_v20, %v15801_v6  ;;  %v4862_v3 = vmax.f32 %v4338_v33, 0.0 }
 0x430   :  { %v7570_v35 = vadd.f32 %v13791_v54, %v7313_v50  ;;  %v4348_v50 = vadd.f32 %v13668_v20, %v15802_v48 }
 0x431   :  { %v7569_v24 = vadd.f32 %v13791_v54, %v7312_v49  ;;  %v10385_v30 = vpop.f32.mrb[192].mxu1  ;;  %v7072_v49 = vld [vmem:[%s15556_s0 + $0x250] sm:$0xff] }
 0x432   :  { %7821 = vst.msk [vmem:[%s15558_s8 + $0x208] sm:$0xff] %vm7755_vm3, %v7570_v35  ;;  %v7315_v39 = vadd.f32 %v10385_v30, %v7065_v29  ;;  %v6079_v55 = vpop.f32.mrb[193].mxu1  ;;  %10543 = vmatmul.mubr.msk.f32.gmra.mrb[42].mxu1 %vm4932_vm2, %v4854_v43  ;;  %v4863_v29 = vmax.f32 %v4343_v59, 0.0  ;;  %v15803_v43 = vld [vmem:[#allocation19_spill] sm:$0xff]  ;;  %v15804_v30 = vld [vmem:[#allocation16_spill] sm:$0xff]  ;;  %v7081_v59 = vld [vmem:[%s15556_s0 + $0x298] sm:$0xff] }
 0x433   :  { %7820 = vst.msk [vmem:[%s15558_s8 + $0x200] sm:$0xff] %vm7755_vm3, %v7569_v24  ;;  %v7314_v17 = vadd.f32 %v7064_v61, %v6079_v55  ;;  %10545 = vmatprep.mubr.msk.f32.mxu1 %vm4932_vm2, %v4855_v27  ;;  %v4353_v56 = vadd.f32 %v13668_v20, %v15803_v43  ;;  %v4864_v24 = vmax.f32 %v4348_v50, 0.0 }
 0x434   :  { %v7572_v31 = vadd.f32 %v13791_v54, %v7315_v39  ;;  %v4358_v39 = vadd.f32 %v13668_v20, %v15804_v30 }
 0x435   :  { %v7571_v44 = vadd.f32 %v13791_v54, %v7314_v17  ;;  %v10388_v16 = vpop.f32.mrb[194].mxu1  ;;  %v7074_v17 = vld [vmem:[%s15556_s0 + $0x260] sm:$0xff] }
 0x436   :  { %7823 = vst.msk [vmem:[%s15558_s8 + $0x218] sm:$0xff] %vm7755_vm3, %v7572_v31  ;;  %v7317_v40 = vadd.f32 %v10388_v16, %v7067_v15  ;;  %v6089_v1 = vpop.f32.mrb[195].mxu1  ;;  %10546 = vmatmul.mubr.msk.f32.gmra.mrb[44].mxu1 %vm4932_vm2, %v4856_v57  ;;  %v4865_v15 = vmax.f32 %v4353_v56, 0.0  ;;  %v15805_v57 = vld [vmem:[#allocation21_spill] sm:$0xff]  ;;  %v15806_v16 = vld [vmem:[#allocation18_spill] sm:$0xff]  ;;  %v7083_v56 = vld [vmem:[%s15556_s0 + $0x2a8] sm:$0xff] }
 0x437   :  { %7822 = vst.msk [vmem:[%s15558_s8 + $0x210] sm:$0xff] %vm7755_vm3, %v7571_v44  ;;  %v7316_v25 = vadd.f32 %v7066_v36, %v6089_v1  ;;  %10548 = vmatprep.mubr.msk.f32.mxu1 %vm4932_vm2, %v4857_v62  ;;  %v4363_v53 = vadd.f32 %v13668_v20, %v15805_v57  ;;  %v4866_v44 = vmax.f32 %v4358_v39, 0.0 }
 0x438   :  { %v7574_v13 = vadd.f32 %v13791_v54, %v7317_v40  ;;  %v4368_v40 = vadd.f32 %v13668_v20, %v15806_v16 }
 0x439   :  { %v7573_v63 = vadd.f32 %v13791_v54, %v7316_v25  ;;  %v10391_v34 = vpop.f32.mrb[196].mxu1  ;;  %v7076_v25 = vld [vmem:[%s15556_s0 + $0x270] sm:$0xff] }
 0x43a   :  { %7825 = vst.msk [vmem:[%s15558_s8 + $0x228] sm:$0xff] %vm7755_vm3, %v7574_v13  ;;  %v7319_v52 = vadd.f32 %v10391_v34, %v7069_v28  ;;  %v6099_v42 = vpop.f32.mrb[197].mxu1  ;;  %10549 = vmatmul.mubr.msk.f32.gmra.mrb[46].mxu1 %vm4932_vm2, %v4858_v47  ;;  %v4867_v28 = vmax.f32 %v4363_v53, 0.0  ;;  %v15807_v47 = vld [vmem:[#allocation23_spill] sm:$0xff]  ;;  %v15808_v34 = vld [vmem:[#allocation20_spill] sm:$0xff]  ;;  %v7085_v53 = vld [vmem:[%s15556_s0 + $0x2b8] sm:$0xff] }
 0x43b   :  { %7824 = vst.msk [vmem:[%s15558_s8 + $0x220] sm:$0xff] %vm7755_vm3, %v7573_v63  ;;  %v7318_v26 = vadd.f32 %v7068_v46, %v6099_v42  ;;  %10551 = vmatprep.mubr.msk.f32.mxu1 %vm4932_vm2, %v4859_v45  ;;  %v4373_v32 = vadd.f32 %v13668_v20, %v15807_v47  ;;  %v4868_v63 = vmax.f32 %v4368_v40, 0.0 }
 0x43c   :  { %v7576_v41 = vadd.f32 %v13791_v54, %v7319_v52  ;;  %v4378_v52 = vadd.f32 %v13668_v20, %v15808_v34 }
 0x43d   :  { %v7575_v19 = vadd.f32 %v13791_v54, %v7318_v26  ;;  %v10394_v12 = vpop.f32.mrb[198].mxu1  ;;  %v7078_v26 = vld [vmem:[%s15556_s0 + $0x280] sm:$0xff] }
 0x43e   :  { %7827 = vst.msk [vmem:[%s15558_s8 + $0x238] sm:$0xff] %vm7755_vm3, %v7576_v41  ;;  %v7321_v4 = vadd.f32 %v10394_v12, %v7071_v8  ;;  %v6109_v18 = vpop.f32.mrb[199].mxu1  ;;  %10552 = vmatmul.mubr.msk.f32.gmra.mrb[48].mxu1 %vm4932_vm2, %v4860_v5  ;;  %v4869_v8 = vmax.f32 %v4373_v32, 0.0  ;;  %v15809_v5 = vld [vmem:[#allocation25_spill] sm:$0xff]  ;;  %v15810_v12 = vld [vmem:[#allocation22_spill] sm:$0xff]  ;;  %v7087_v32 = vld [vmem:[%s15556_s0 + $0x2c8] sm:$0xff] }
 0x43f   :  { %7826 = vst.msk [vmem:[%s15558_s8 + $0x230] sm:$0xff] %vm7755_vm3, %v7575_v19  ;;  %v7320_v51 = vadd.f32 %v7070_v60, %v6109_v18  ;;  %10554 = vmatprep.mubr.msk.f32.mxu1 %vm4932_vm2, %v4861_v9  ;;  %v4383_v37 = vadd.f32 %v13668_v20, %v15809_v5  ;;  %v4870_v19 = vmax.f32 %v4378_v52, 0.0 }
 0x440   :  { %v7578_v58 = vadd.f32 %v13791_v54, %v7321_v4  ;;  %v4388_v4 = vadd.f32 %v13668_v20, %v15810_v12 }
 0x441   :  { %v7577_v11 = vadd.f32 %v13791_v54, %v7320_v51  ;;  %v10397_v35 = vpop.f32.mrb[200].mxu1  ;;  %v7080_v51 = vld [vmem:[%s15556_s0 + $0x290] sm:$0xff] }
 0x442   :  { %7829 = vst.msk [vmem:[%s15558_s8 + $0x248] sm:$0xff] %vm7755_vm3, %v7578_v58  ;;  %v7323_v61 = vadd.f32 %v10397_v35, %v7073_v23  ;;  %v6119_v27 = vpop.f32.mrb[201].mxu1  ;;  %10555 = vmatmul.mubr.msk.f32.gmra.mrb[50].mxu1 %vm4932_vm2, %v4862_v3  ;;  %v4871_v23 = vmax.f32 %v4383_v37, 0.0  ;;  %v15811_v3 = vld [vmem:[#allocation27_spill] sm:$0xff]  ;;  %v15812_v35 = vld [vmem:[#allocation24_spill] sm:$0xff]  ;;  %v7089_v37 = vld [vmem:[%s15556_s0 + $0x2d8] sm:$0xff] }
 0x443   :  { %7828 = vst.msk [vmem:[%s15558_s8 + $0x240] sm:$0xff] %vm7755_vm3, %v7577_v11  ;;  %v7322_v22 = vadd.f32 %v7072_v49, %v6119_v27  ;;  %10557 = vmatprep.mubr.msk.f32.mxu1 %vm4932_vm2, %v4863_v29  ;;  %v4393_v48 = vadd.f32 %v13668_v20, %v15811_v3  ;;  %v4872_v11 = vmax.f32 %v4388_v4, 0.0 }
 0x444   :  { %v7580_v55 = vadd.f32 %v13791_v54, %v7323_v61  ;;  %v4398_v61 = vadd.f32 %v13668_v20, %v15812_v35 }
 0x445   :  { %v7579_v38 = vadd.f32 %v13791_v54, %v7322_v22  ;;  %v10400_v31 = vpop.f32.mrb[202].mxu1  ;;  %v7082_v22 = vld [vmem:[%s15556_s0 + $0x2a0] sm:$0xff] }
 0x446   :  { %7831 = vst.msk [vmem:[%s15558_s8 + $0x258] sm:$0xff] %vm7755_vm3, %v7580_v55  ;;  %v7325_v36 = vadd.f32 %v10400_v31, %v7075_v14  ;;  %v6129_v62 = vpop.f32.mrb[203].mxu1  ;;  %10558 = vmatmul.mubr.msk.f32.gmra.mrb[52].mxu1 %vm4932_vm2, %v4864_v24  ;;  %v4873_v14 = vmax.f32 %v4393_v48, 0.0  ;;  %v15813_v24 = vld [vmem:[#allocation29_spill] sm:$0xff]  ;;  %v15814_v31 = vld [vmem:[#allocation26_spill] sm:$0xff]  ;;  %v7091_v48 = vld [vmem:[%s15556_s0 + $0x2e8] sm:$0xff] }
 0x447   :  { %7830 = vst.msk [vmem:[%s15558_s8 + $0x250] sm:$0xff] %vm7755_vm3, %v7579_v38  ;;  %v7324_v10 = vadd.f32 %v7074_v17, %v6129_v62  ;;  %10560 = vmatprep.mubr.msk.f32.mxu1 %vm4932_vm2, %v4865_v15  ;;  %v4403_v30 = vadd.f32 %v13668_v20, %v15813_v24  ;;  %v4874_v38 = vmax.f32 %v4398_v61, 0.0 }
 0x448   :  { %v7582_v1 = vadd.f32 %v13791_v54, %v7325_v36  ;;  %v4408_v36 = vadd.f32 %v13668_v20, %v15814_v31 }
 0x449   :  { %v7581_v7 = vadd.f32 %v13791_v54, %v7324_v10  ;;  %v10403_v13 = vpop.f32.mrb[204].mxu1  ;;  %v7084_v10 = vld [vmem:[%s15556_s0 + $0x2b0] sm:$0xff] }
 0x44a   :  { %7833 = vst.msk [vmem:[%s15558_s8 + $0x268] sm:$0xff] %vm7755_vm3, %v7582_v1  ;;  %v7327_v46 = vadd.f32 %v10403_v13, %v7077_v2  ;;  %v6139_v45 = vpop.f32.mrb[205].mxu1  ;;  %10561 = vmatmul.mubr.msk.f32.gmra.mrb[54].mxu1 %vm4932_vm2, %v4866_v44  ;;  %v4875_v2 = vmax.f32 %v4403_v30, 0.0  ;;  %v15815_v44 = vld [vmem:[#allocation31_spill] sm:$0xff]  ;;  %v15816_v13 = vld [vmem:[#allocation28_spill] sm:$0xff]  ;;  %v7093_v30 = vld [vmem:[%s15556_s0 + $0x2f8] sm:$0xff] }
 0x44b   :  { %7832 = vst.msk [vmem:[%s15558_s8 + $0x260] sm:$0xff] %vm7755_vm3, %v7581_v7  ;;  %v7326_v0 = vadd.f32 %v7076_v25, %v6139_v45  ;;  %10563 = vmatprep.mubr.msk.f32.mxu1 %vm4932_vm2, %v4867_v28  ;;  %v4413_v16 = vadd.f32 %v13668_v20, %v15815_v44  ;;  %v4876_v7 = vmax.f32 %v4408_v36, 0.0 }
 0x44c   :  { %v7584_v42 = vadd.f32 %v13791_v54, %v7327_v46  ;;  %v4418_v46 = vadd.f32 %v13668_v20, %v15816_v13 }
 0x44d   :  { %v7583_v33 = vadd.f32 %v13791_v54, %v7326_v0  ;;  %v10406_v41 = vpop.f32.mrb[206].mxu1  ;;  %v7086_v0 = vld [vmem:[%s15556_s0 + $0x2c0] sm:$0xff] }
 0x44e   :  { %7835 = vst.msk [vmem:[%s15558_s8 + $0x278] sm:$0xff] %vm7755_vm3, %v7584_v42  ;;  %v7329_v60 = vadd.f32 %v10406_v41, %v7079_v21  ;;  %v6149_v9 = vpop.f32.mrb[207].mxu1  ;;  %10564 = vmatmul.mubr.msk.f32.gmra.mrb[56].mxu1 %vm4932_vm2, %v4868_v63  ;;  %v4877_v21 = vmax.f32 %v4413_v16, 0.0  ;;  %v15817_v63 = vld [vmem:[#allocation33_spill] sm:$0xff]  ;;  %v15818_v41 = vld [vmem:[#allocation30_spill] sm:$0xff]  ;;  %v7095_v16 = vld [vmem:[%s15556_s0 + $0x308] sm:$0xff] }
 0x44f   :  { %7834 = vst.msk [vmem:[%s15558_s8 + $0x270] sm:$0xff] %vm7755_vm3, %v7583_v33  ;;  %v7328_v6 = vadd.f32 %v7078_v26, %v6149_v9  ;;  %10566 = vmatprep.mubr.msk.f32.mxu1 %vm4932_vm2, %v4869_v8  ;;  %v4423_v34 = vadd.f32 %v13668_v20, %v15817_v63  ;;  %v4878_v33 = vmax.f32 %v4418_v46, 0.0 }
 0x450   :  { %v7586_v18 = vadd.f32 %v13791_v54, %v7329_v60  ;;  %v4428_v60 = vadd.f32 %v13668_v20, %v15818_v41 }
 0x451   :  { %v7585_v50 = vadd.f32 %v13791_v54, %v7328_v6  ;;  %v10409_v58 = vpop.f32.mrb[208].mxu1  ;;  %v7088_v6 = vld [vmem:[%s15556_s0 + $0x2d0] sm:$0xff] }
 0x452   :  { %7837 = vst.msk [vmem:[%s15558_s8 + $0x288] sm:$0xff] %vm7755_vm3, %v7586_v18  ;;  %v7331_v49 = vadd.f32 %v10409_v58, %v7081_v59  ;;  %v6159_v29 = vpop.f32.mrb[209].mxu1  ;;  %10567 = vmatmul.mubr.msk.f32.gmra.mrb[58].mxu1 %vm4932_vm2, %v4870_v19  ;;  %v4879_v59 = vmax.f32 %v4423_v34, 0.0  ;;  %v15819_v19 = vld [vmem:[#allocation35_spill] sm:$0xff]  ;;  %v15820_v58 = vld [vmem:[#allocation32_spill] sm:$0xff]  ;;  %v7097_v34 = vld [vmem:[%s15556_s0 + $0x318] sm:$0xff] }
 0x453   :  { %7836 = vst.msk [vmem:[%s15558_s8 + $0x280] sm:$0xff] %vm7755_vm3, %v7585_v50  ;;  %v7330_v43 = vadd.f32 %v7080_v51, %v6159_v29  ;;  %10569 = vmatprep.mubr.msk.f32.mxu1 %vm4932_vm2, %v4871_v23  ;;  %v4433_v12 = vadd.f32 %v13668_v20, %v15819_v19  ;;  %v4880_v50 = vmax.f32 %v4428_v60, 0.0 }
 0x454   :  { %v7588_v27 = vadd.f32 %v13791_v54, %v7331_v49  ;;  %v4438_v49 = vadd.f32 %v13668_v20, %v15820_v58 }
 0x455   :  { %v7587_v39 = vadd.f32 %v13791_v54, %v7330_v43  ;;  %v10412_v55 = vpop.f32.mrb[210].mxu1  ;;  %v7090_v43 = vld [vmem:[%s15556_s0 + $0x2e0] sm:$0xff] }
 0x456   :  { %7839 = vst.msk [vmem:[%s15558_s8 + $0x298] sm:$0xff] %vm7755_vm3, %v7588_v27  ;;  %v7333_v17 = vadd.f32 %v10412_v55, %v7083_v56  ;;  %v6169_v15 = vpop.f32.mrb[211].mxu1  ;;  %10570 = vmatmul.mubr.msk.f32.gmra.mrb[60].mxu1 %vm4932_vm2, %v4872_v11  ;;  %v4881_v56 = vmax.f32 %v4433_v12, 0.0  ;;  %v15821_v11 = vld [vmem:[#allocation37_spill] sm:$0xff]  ;;  %v15822_v55 = vld [vmem:[#allocation34_spill] sm:$0xff]  ;;  %v7099_v12 = vld [vmem:[%s15556_s0 + $0x328] sm:$0xff] }
 0x457   :  { %7838 = vst.msk [vmem:[%s15558_s8 + $0x290] sm:$0xff] %vm7755_vm3, %v7587_v39  ;;  %v7332_v57 = vadd.f32 %v7082_v22, %v6169_v15  ;;  %10572 = vmatprep.mubr.msk.f32.mxu1 %vm4932_vm2, %v4873_v14  ;;  %v4443_v35 = vadd.f32 %v13668_v20, %v15821_v11  ;;  %v4882_v39 = vmax.f32 %v4438_v49, 0.0 }
 0x458   :  { %v7590_v62 = vadd.f32 %v13791_v54, %v7333_v17  ;;  %v4448_v17 = vadd.f32 %v13668_v20, %v15822_v55 }
 0x459   :  { %v7589_v40 = vadd.f32 %v13791_v54, %v7332_v57  ;;  %v10415_v1 = vpop.f32.mrb[212].mxu1  ;;  %v7092_v57 = vld [vmem:[%s15556_s0 + $0x2f0] sm:$0xff] }
 0x45a   :  { %7841 = vst.msk [vmem:[%s15558_s8 + $0x2a8] sm:$0xff] %vm7755_vm3, %v7590_v62  ;;  %v7335_v25 = vadd.f32 %v10415_v1, %v7085_v53  ;;  %v6179_v28 = vpop.f32.mrb[213].mxu1  ;;  %10573 = vmatmul.mubr.msk.f32.gmra.mrb[62].mxu1 %vm4932_vm2, %v4874_v38  ;;  %v4883_v53 = vmax.f32 %v4443_v35, 0.0  ;;  %v15823_v38 = vld [vmem:[#allocation39_spill] sm:$0xff]  ;;  %v15824_v1 = vld [vmem:[#allocation36_spill] sm:$0xff]  ;;  %v7101_v35 = vld [vmem:[%s15556_s0 + $0x338] sm:$0xff] }
 0x45b   :  { %7840 = vst.msk [vmem:[%s15558_s8 + $0x2a0] sm:$0xff] %vm7755_vm3, %v7589_v40  ;;  %v7334_v47 = vadd.f32 %v7084_v10, %v6179_v28  ;;  %10575 = vmatprep.mubr.msk.f32.mxu1 %vm4932_vm2, %v4875_v2  ;;  %v4453_v31 = vadd.f32 %v13668_v20, %v15823_v38  ;;  %v4884_v40 = vmax.f32 %v4448_v17, 0.0 }
 0x45c   :  { %v7592_v45 = vadd.f32 %v13791_v54, %v7335_v25  ;;  %v4458_v25 = vadd.f32 %v13668_v20, %v15824_v1 }
 0x45d   :  { %v7591_v52 = vadd.f32 %v13791_v54, %v7334_v47  ;;  %v10418_v42 = vpop.f32.mrb[214].mxu1  ;;  %v7094_v47 = vld [vmem:[%s15556_s0 + $0x300] sm:$0xff] }
 0x45e   :  { %7843 = vst.msk [vmem:[%s15558_s8 + $0x2b8] sm:$0xff] %vm7755_vm3, %v7592_v45  ;;  %v7337_v26 = vadd.f32 %v10418_v42, %v7087_v32  ;;  %v6189_v8 = vpop.f32.mrb[215].mxu1  ;;  %10576 = vmatmul.mubr.msk.f32.gmra.mrb[64].mxu1 %vm4932_vm2, %v4876_v7  ;;  %v4885_v32 = vmax.f32 %v4453_v31, 0.0  ;;  %v15825_v7 = vld [vmem:[#allocation41_spill] sm:$0xff]  ;;  %v15826_v42 = vld [vmem:[#allocation38_spill] sm:$0xff]  ;;  %v7103_v31 = vld [vmem:[%s15556_s0 + $0x348] sm:$0xff] }
 0x45f   :  { %7842 = vst.msk [vmem:[%s15558_s8 + $0x2b0] sm:$0xff] %vm7755_vm3, %v7591_v52  ;;  %v7336_v5 = vadd.f32 %v7086_v0, %v6189_v8  ;;  %10578 = vmatprep.mubr.msk.f32.mxu1 %vm4932_vm2, %v4877_v21  ;;  %v4463_v13 = vadd.f32 %v13668_v20, %v15825_v7  ;;  %v4886_v52 = vmax.f32 %v4458_v25, 0.0 }
 0x460   :  { %v7594_v9 = vadd.f32 %v13791_v54, %v7337_v26  ;;  %v4468_v26 = vadd.f32 %v13668_v20, %v15826_v42 }
 0x461   :  { %v7593_v4 = vadd.f32 %v13791_v54, %v7336_v5  ;;  %v10421_v18 = vpop.f32.mrb[216].mxu1  ;;  %v7096_v5 = vld [vmem:[%s15556_s0 + $0x310] sm:$0xff] }
 0x462   :  { %7845 = vst.msk [vmem:[%s15558_s8 + $0x2c8] sm:$0xff] %vm7755_vm3, %v7594_v9  ;;  %v7339_v51 = vadd.f32 %v10421_v18, %v7089_v37  ;;  %v6199_v23 = vpop.f32.mrb[217].mxu1  ;;  %10579 = vmatmul.mubr.msk.f32.gmra.mrb[66].mxu1 %vm4932_vm2, %v4878_v33  ;;  %v4887_v37 = vmax.f32 %v4463_v13, 0.0  ;;  %v15827_v33 = vld [vmem:[#allocation43_spill] sm:$0xff]  ;;  %v15828_v18 = vld [vmem:[#allocation40_spill] sm:$0xff]  ;;  %v7105_v13 = vld [vmem:[%s15556_s0 + $0x358] sm:$0xff] }
 0x463   :  { %7844 = vst.msk [vmem:[%s15558_s8 + $0x2c0] sm:$0xff] %vm7755_vm3, %v7593_v4  ;;  %v7338_v3 = vadd.f32 %v7088_v6, %v6199_v23  ;;  %10581 = vmatprep.mubr.msk.f32.mxu1 %vm4932_vm2, %v4879_v59  ;;  %v4473_v41 = vadd.f32 %v13668_v20, %v15827_v33  ;;  %v4888_v4 = vmax.f32 %v4468_v26, 0.0 }
 0x464   :  { %v7596_v29 = vadd.f32 %v13791_v54, %v7339_v51  ;;  %v4478_v51 = vadd.f32 %v13668_v20, %v15828_v18 }
 0x465   :  { %v7595_v61 = vadd.f32 %v13791_v54, %v7338_v3  ;;  %v10424_v27 = vpop.f32.mrb[218].mxu1  ;;  %v7098_v3 = vld [vmem:[%s15556_s0 + $0x320] sm:$0xff] }
 0x466   :  { %7847 = vst.msk [vmem:[%s15558_s8 + $0x2d8] sm:$0xff] %vm7755_vm3, %v7596_v29  ;;  %v7341_v22 = vadd.f32 %v10424_v27, %v7091_v48  ;;  %v6209_v14 = vpop.f32.mrb[219].mxu1  ;;  %10582 = vmatmul.mubr.msk.f32.gmra.mrb[68].mxu1 %vm4932_vm2, %v4880_v50  ;;  %v4889_v48 = vmax.f32 %v4473_v41, 0.0  ;;  %v15829_v50 = vld [vmem:[#allocation45_spill] sm:$0xff]  ;;  %v15830_v27 = vld [vmem:[#allocation42_spill] sm:$0xff]  ;;  %v7107_v41 = vld [vmem:[%s15556_s0 + $0x368] sm:$0xff] }
 0x467   :  { %7846 = vst.msk [vmem:[%s15558_s8 + $0x2d0] sm:$0xff] %vm7755_vm3, %v7595_v61  ;;  %v7340_v24 = vadd.f32 %v7090_v43, %v6209_v14  ;;  %10584 = vmatprep.mubr.msk.f32.mxu1 %vm4932_vm2, %v4881_v56  ;;  %v4483_v58 = vadd.f32 %v13668_v20, %v15829_v50  ;;  %v4890_v61 = vmax.f32 %v4478_v51, 0.0 }
 0x468   :  { %v7598_v15 = vadd.f32 %v13791_v54, %v7341_v22  ;;  %v4488_v22 = vadd.f32 %v13668_v20, %v15830_v27 }
 0x469   :  { %v7597_v36 = vadd.f32 %v13791_v54, %v7340_v24  ;;  %v10427_v62 = vpop.f32.mrb[220].mxu1  ;;  %v7100_v24 = vld [vmem:[%s15556_s0 + $0x330] sm:$0xff] }
 0x46a   :  { %7849 = vst.msk [vmem:[%s15558_s8 + $0x2e8] sm:$0xff] %vm7755_vm3, %v7598_v15  ;;  %v7343_v10 = vadd.f32 %v10427_v62, %v7093_v30  ;;  %v6219_v2 = vpop.f32.mrb[221].mxu1  ;;  %10585 = vmatmul.mubr.msk.f32.gmra.mrb[70].mxu1 %vm4932_vm2, %v4882_v39  ;;  %v4891_v30 = vmax.f32 %v4483_v58, 0.0  ;;  %v15831_v39 = vld [vmem:[#allocation47_spill] sm:$0xff]  ;;  %v15832_v62 = vld [vmem:[#allocation44_spill] sm:$0xff]  ;;  %v7109_v58 = vld [vmem:[%s15556_s0 + $0x378] sm:$0xff] }
 0x46b   :  { %7848 = vst.msk [vmem:[%s15558_s8 + $0x2e0] sm:$0xff] %vm7755_vm3, %v7597_v36  ;;  %v7342_v44 = vadd.f32 %v7092_v57, %v6219_v2  ;;  %10587 = vmatprep.mubr.msk.f32.mxu1 %vm4932_vm2, %v4883_v53  ;;  %v4493_v55 = vadd.f32 %v13668_v20, %v15831_v39  ;;  %v4892_v36 = vmax.f32 %v4488_v22, 0.0 }
 0x46c   :  { %v7600_v28 = vadd.f32 %v13791_v54, %v7343_v10  ;;  %v4498_v10 = vadd.f32 %v13668_v20, %v15832_v62 }
 0x46d   :  { %v7599_v46 = vadd.f32 %v13791_v54, %v7342_v44  ;;  %v10430_v45 = vpop.f32.mrb[222].mxu1  ;;  %v7102_v44 = vld [vmem:[%s15556_s0 + $0x340] sm:$0xff] }
 0x46e   :  { %7851 = vst.msk [vmem:[%s15558_s8 + $0x2f8] sm:$0xff] %vm7755_vm3, %v7600_v28  ;;  %v7345_v0 = vadd.f32 %v10430_v45, %v7095_v16  ;;  %v6229_v21 = vpop.f32.mrb[223].mxu1  ;;  %10588 = vmatmul.mubr.msk.f32.gmra.mrb[72].mxu1 %vm4932_vm2, %v4884_v40  ;;  %v4893_v16 = vmax.f32 %v4493_v55, 0.0  ;;  %v15833_v40 = vld [vmem:[#allocation49_spill] sm:$0xff]  ;;  %v15834_v45 = vld [vmem:[#allocation46_spill] sm:$0xff]  ;;  %v7111_v55 = vld [vmem:[%s15556_s0 + $0x388] sm:$0xff] }
 0x46f   :  { %7850 = vst.msk [vmem:[%s15558_s8 + $0x2f0] sm:$0xff] %vm7755_vm3, %v7599_v46  ;;  %v7344_v63 = vadd.f32 %v7094_v47, %v6229_v21  ;;  %10590 = vmatprep.mubr.msk.f32.mxu1 %vm4932_vm2, %v4885_v32  ;;  %v4503_v1 = vadd.f32 %v13668_v20, %v15833_v40  ;;  %v4894_v46 = vmax.f32 %v4498_v10, 0.0 }
 0x470   :  { %v7602_v8 = vadd.f32 %v13791_v54, %v7345_v0  ;;  %v4508_v0 = vadd.f32 %v13668_v20, %v15834_v45 }
 0x471   :  { %v7601_v60 = vadd.f32 %v13791_v54, %v7344_v63  ;;  %v10433_v9 = vpop.f32.mrb[224].mxu1  ;;  %v7104_v63 = vld [vmem:[%s15556_s0 + $0x350] sm:$0xff] }
 0x472   :  { %7853 = vst.msk [vmem:[%s15558_s8 + $0x308] sm:$0xff] %vm7755_vm3, %v7602_v8  ;;  %v7347_v6 = vadd.f32 %v10433_v9, %v7097_v34  ;;  %v6239_v59 = vpop.f32.mrb[225].mxu1  ;;  %10591 = vmatmul.mubr.msk.f32.gmra.mrb[74].mxu1 %vm4932_vm2, %v4886_v52  ;;  %v4895_v34 = vmax.f32 %v4503_v1, 0.0  ;;  %v15835_v52 = vld [vmem:[#allocation51_spill] sm:$0xff]  ;;  %v15836_v9 = vld [vmem:[#allocation48_spill] sm:$0xff]  ;;  %v7113_v1 = vld [vmem:[%s15556_s0 + $0x398] sm:$0xff] }
 0x473   :  { %7852 = vst.msk [vmem:[%s15558_s8 + $0x300] sm:$0xff] %vm7755_vm3, %v7601_v60  ;;  %v7346_v19 = vadd.f32 %v7096_v5, %v6239_v59  ;;  %10593 = vmatprep.mubr.msk.f32.mxu1 %vm4932_vm2, %v4887_v37  ;;  %v4513_v42 = vadd.f32 %v13668_v20, %v15835_v52  ;;  %v4896_v60 = vmax.f32 %v4508_v0, 0.0 }
 0x474   :  { %v7604_v23 = vadd.f32 %v13791_v54, %v7347_v6  ;;  %v4518_v6 = vadd.f32 %v13668_v20, %v15836_v9 }
 0x475   :  { %v7603_v49 = vadd.f32 %v13791_v54, %v7346_v19  ;;  %v10436_v29 = vpop.f32.mrb[226].mxu1  ;;  %v7106_v19 = vld [vmem:[%s15556_s0 + $0x360] sm:$0xff] }
 0x476   :  { %7855 = vst.msk [vmem:[%s15558_s8 + $0x318] sm:$0xff] %vm7755_vm3, %v7604_v23  ;;  %v7349_v43 = vadd.f32 %v10436_v29, %v7099_v12  ;;  %v6249_v56 = vpop.f32.mrb[227].mxu1  ;;  %10594 = vmatmul.mubr.msk.f32.gmra.mrb[76].mxu1 %vm4932_vm2, %v4888_v4  ;;  %v4897_v12 = vmax.f32 %v4513_v42, 0.0  ;;  %v15837_v4 = vld [vmem:[#allocation53_spill] sm:$0xff]  ;;  %v15838_v29 = vld [vmem:[#allocation50_spill] sm:$0xff] }
 0x477   :  { %7854 = vst.msk [vmem:[%s15558_s8 + $0x310] sm:$0xff] %vm7755_vm3, %v7603_v49  ;;  %v7348_v11 = vadd.f32 %v7098_v3, %v6249_v56  ;;  %10596 = vmatprep.mubr.msk.f32.mxu1 %vm4932_vm2, %v4889_v48  ;;  %v4523_v18 = vadd.f32 %v13668_v20, %v15837_v4  ;;  %v4898_v49 = vmax.f32 %v4518_v6, 0.0 }
 0x478   :  { %v7606_v14 = vadd.f32 %v13791_v54, %v7349_v43  ;;  %v4528_v43 = vadd.f32 %v13668_v20, %v15838_v29 }
 0x479   :  { %v7605_v17 = vadd.f32 %v13791_v54, %v7348_v11  ;;  %v10439_v15 = vpop.f32.mrb[228].mxu1  ;;  %v7108_v11 = vld [vmem:[%s15556_s0 + $0x370] sm:$0xff] }
 0x47a   :  { %7857 = vst.msk [vmem:[%s15558_s8 + $0x328] sm:$0xff] %vm7755_vm3, %v7606_v14  ;;  %v7351_v57 = vadd.f32 %v10439_v15, %v7101_v35  ;;  %v6259_v53 = vpop.f32.mrb[229].mxu1  ;;  %10597 = vmatmul.mubr.msk.f32.gmra.mrb[78].mxu1 %vm4932_vm2, %v4890_v61  ;;  %v4899_v35 = vmax.f32 %v4523_v18, 0.0  ;;  %v15839_v61 = vld [vmem:[#allocation55_spill] sm:$0xff]  ;;  %v15840_v15 = vld [vmem:[#allocation52_spill] sm:$0xff]  ;;  %v7117_v18 = vld [vmem:[%s15556_s0 + $0x3b8] sm:$0xff] }
 0x47b   :  { %7856 = vst.msk [vmem:[%s15558_s8 + $0x320] sm:$0xff] %vm7755_vm3, %v7605_v17  ;;  %v7350_v38 = vadd.f32 %v7100_v24, %v6259_v53  ;;  %10599 = vmatprep.mubr.msk.f32.mxu1 %vm4932_vm2, %v4891_v30  ;;  %v4533_v27 = vadd.f32 %v13668_v20, %v15839_v61  ;;  %v4900_v17 = vmax.f32 %v4528_v43, 0.0 }
 0x47c   :  { %v7608_v2 = vadd.f32 %v13791_v54, %v7351_v57  ;;  %v4538_v57 = vadd.f32 %v13668_v20, %v15840_v15 }
 0x47d   :  { %v7607_v25 = vadd.f32 %v13791_v54, %v7350_v38  ;;  %v10442_v28 = vpop.f32.mrb[230].mxu1  ;;  %v7110_v38 = vld [vmem:[%s15556_s0 + $0x380] sm:$0xff] }
 0x47e   :  { %7859 = vst.msk [vmem:[%s15558_s8 + $0x338] sm:$0xff] %vm7755_vm3, %v7608_v2  ;;  %v7353_v47 = vadd.f32 %v10442_v28, %v7103_v31  ;;  %v6269_v32 = vpop.f32.mrb[231].mxu1  ;;  %10600 = vmatmul.mubr.msk.f32.gmra.mrb[80].mxu1 %vm4932_vm2, %v4892_v36  ;;  %v4901_v31 = vmax.f32 %v4533_v27, 0.0  ;;  %v15841_v36 = vld [vmem:[#allocation57_spill] sm:$0xff]  ;;  %v15842_v28 = vld [vmem:[#allocation54_spill] sm:$0xff]  ;;  %v7119_v27 = vld [vmem:[%s15556_s0 + $0x3c8] sm:$0xff] }
 0x47f   :  { %7858 = vst.msk [vmem:[%s15558_s8 + $0x330] sm:$0xff] %vm7755_vm3, %v7607_v25  ;;  %v7352_v7 = vadd.f32 %v7102_v44, %v6269_v32  ;;  %10602 = vmatprep.mubr.msk.f32.mxu1 %vm4932_vm2, %v4893_v16  ;;  %v4543_v62 = vadd.f32 %v13668_v20, %v15841_v36  ;;  %v4902_v25 = vmax.f32 %v4538_v57, 0.0 }
 0x480   :  { %v7610_v21 = vadd.f32 %v13791_v54, %v7353_v47  ;;  %v4548_v47 = vadd.f32 %v13668_v20, %v15842_v28 }
 0x481   :  { %v7609_v26 = vadd.f32 %v13791_v54, %v7352_v7  ;;  %v10445_v8 = vpop.f32.mrb[232].mxu1  ;;  %v7112_v7 = vld [vmem:[%s15556_s0 + $0x390] sm:$0xff] }
 0x482   :  { %7861 = vst.msk [vmem:[%s15558_s8 + $0x348] sm:$0xff] %vm7755_vm3, %v7610_v21  ;;  %v7355_v5 = vadd.f32 %v10445_v8, %v7105_v13  ;;  %v6279_v37 = vpop.f32.mrb[233].mxu1  ;;  %10603 = vmatmul.mubr.msk.f32.gmra.mrb[82].mxu1 %vm4932_vm2, %v4894_v46  ;;  %v4903_v13 = vmax.f32 %v4543_v62, 0.0  ;;  %v15843_v46 = vld [vmem:[#allocation59_spill] sm:$0xff]  ;;  %v4904_v42 = vmax.f32 %v4548_v47, 0.0  ;;  %v15844_v8 = vld [vmem:[#allocation56_spill] sm:$0xff] }
 0x483   :  { %7860 = vst.msk [vmem:[%s15558_s8 + $0x340] sm:$0xff] %vm7755_vm3, %v7609_v26  ;;  %v7354_v33 = vadd.f32 %v7104_v63, %v6279_v37  ;;  %10605 = vmatprep.mubr.msk.f32.mxu1 %vm4932_vm2, %v4895_v34  ;;  %v4553_v45 = vadd.f32 %v13668_v20, %v15843_v46  ;;  %v7115_v20 = vld [vmem:[%s15556_s0 + $0x3a8] sm:$0xff]  ;;  %v14382_v26 = vld [vmem:[%s15555_s5] ss:$0 sm:$0xff]  ;;  %v7121_v62 = vld [vmem:[%s15556_s0 + $0x3d8] sm:$0xff] }
 0x484   :  { %v7612_v59 = vadd.f32 %v13791_v54, %v7355_v5  ;;  %v4558_v5 = vadd.f32 %v14382_v26, %v15844_v8 }
 0x485   :  { %v7611_v51 = vadd.f32 %v13791_v54, %v7354_v33  ;;  %v10448_v23 = vpop.f32.mrb[234].mxu1  ;;  %v7114_v33 = vld [vmem:[%s15556_s0 + $0x3a0] sm:$0xff] }
 0x486   :  { %7863 = vst.msk [vmem:[%s15558_s8 + $0x358] sm:$0xff] %vm7755_vm3, %v7612_v59  ;;  %v7357_v3 = vadd.f32 %v10448_v23, %v7107_v41  ;;  %v6289_v48 = vpop.f32.mrb[235].mxu1  ;;  %10606 = vmatmul.mubr.msk.f32.gmra.mrb[84].mxu1 %vm4932_vm2, %v4896_v60  ;;  %v4905_v41 = vmax.f32 %v4553_v45, 0.0  ;;  %v15845_v60 = vld [vmem:[#allocation61_spill] sm:$0xff]  ;;  %v15846_v23 = vld [vmem:[#allocation58_spill] sm:$0xff]  ;;  %v7123_v45 = vld [vmem:[%s15556_s0 + $0x3e8] sm:$0xff] }
 0x487   :  { %7862 = vst.msk [vmem:[%s15558_s8 + $0x350] sm:$0xff] %vm7755_vm3, %v7611_v51  ;;  %v7356_v50 = vadd.f32 %v7106_v19, %v6289_v48  ;;  %10608 = vmatprep.mubr.msk.f32.mxu1 %vm4932_vm2, %v4897_v12  ;;  %v4563_v9 = vadd.f32 %v14382_v26, %v15845_v60  ;;  %v4906_v51 = vmax.f32 %v4558_v5, 0.0 }
 0x488   :  { %v7614_v56 = vadd.f32 %v13791_v54, %v7357_v3  ;;  %v4568_v3 = vadd.f32 %v14382_v26, %v15846_v23 }
 0x489   :  { %v7613_v22 = vadd.f32 %v13791_v54, %v7356_v50  ;;  %v10451_v14 = vpop.f32.mrb[236].mxu1  ;;  %v7116_v50 = vld [vmem:[%s15556_s0 + $0x3b0] sm:$0xff] }
 0x48a   :  { %7865 = vst.msk [vmem:[%s15558_s8 + $0x368] sm:$0xff] %vm7755_vm3, %v7614_v56  ;;  %v7359_v24 = vadd.f32 %v10451_v14, %v7109_v58  ;;  %v6299_v30 = vpop.f32.mrb[237].mxu1  ;;  %10609 = vmatmul.mubr.msk.f32.gmra.mrb[86].mxu1 %vm4932_vm2, %v4898_v49  ;;  %v4907_v58 = vmax.f32 %v4563_v9, 0.0  ;;  %v15847_v49 = vld [vmem:[#allocation63_spill] sm:$0xff]  ;;  %v15848_v14 = vld [vmem:[#allocation60_spill] sm:$0xff]  ;;  %v7125_v9 = vld [vmem:[%s15556_s0 + $0x3f8] sm:$0xff] }
 0x48b   :  { %7864 = vst.msk [vmem:[%s15558_s8 + $0x360] sm:$0xff] %vm7755_vm3, %v7613_v22  ;;  %v7358_v39 = vadd.f32 %v7108_v11, %v6299_v30  ;;  %10611 = vmatprep.mubr.msk.f32.mxu1 %vm4932_vm2, %v4899_v35  ;;  %v4573_v29 = vadd.f32 %v14382_v26, %v15847_v49  ;;  %v4908_v22 = vmax.f32 %v4568_v3, 0.0  ;;  %v14505_v3 = vld [vmem:[%s15557_s7] ss:$0 sm:$0xff] }
 0x48c   :  { %v7616_v53 = vadd.f32 %v13791_v54, %v7359_v24  ;;  %v4578_v24 = vadd.f32 %v14382_v26, %v15848_v14 }
 0x48d   :  { %v7615_v10 = vadd.f32 %v13791_v54, %v7358_v39  ;;  %v10454_v2 = vpop.f32.mrb[238].mxu1  ;;  %v7118_v39 = vld [vmem:[%s15556_s0 + $0x3c0] sm:$0xff] }
 0x48e   :  { %7867 = vst.msk [vmem:[%s15558_s8 + $0x378] sm:$0xff] %vm7755_vm3, %v7616_v53  ;;  %v7361_v44 = vadd.f32 %v10454_v2, %v7111_v55  ;;  %v6309_v16 = vpop.f32.mrb[239].mxu1  ;;  %10612 = vmatmul.mubr.msk.f32.gmra.mrb[88].mxu1 %vm4932_vm2, %v4900_v17  ;;  %v4909_v55 = vmax.f32 %v4573_v29, 0.0  ;;  %v15849_v17 = vld [vmem:[#allocation65_spill] sm:$0xff]  ;;  %v15850_v2 = vld [vmem:[#allocation62_spill] sm:$0xff]  ;;  %v7127_v29 = vld [vmem:[%s15556_s0 + $0x408] sm:$0xff] }
 0x48f   :  { %7866 = vst.msk [vmem:[%s15558_s8 + $0x370] sm:$0xff] %vm7755_vm3, %v7615_v10  ;;  %v7360_v40 = vadd.f32 %v7110_v38, %v6309_v16  ;;  %10614 = vmatprep.mubr.msk.f32.mxu1 %vm4932_vm2, %v4901_v31  ;;  %v4583_v15 = vadd.f32 %v14382_v26, %v15849_v17  ;;  %v4910_v10 = vmax.f32 %v4578_v24, 0.0 }
 0x490   :  { %v7618_v32 = vadd.f32 %v13791_v54, %v7361_v44  ;;  %v4588_v44 = vadd.f32 %v14382_v26, %v15850_v2 }
 0x491   :  { %v7617_v0 = vadd.f32 %v13791_v54, %v7360_v40  ;;  %v10457_v21 = vpop.f32.mrb[240].mxu1  ;;  %v7120_v40 = vld [vmem:[%s15556_s0 + $0x3d0] sm:$0xff] }
 0x492   :  { %7869 = vst.msk [vmem:[%s15558_s8 + $0x388] sm:$0xff] %vm7755_vm3, %v7618_v32  ;;  %v7363_v63 = vadd.f32 %v10457_v21, %v7113_v1  ;;  %v6319_v34 = vpop.f32.mrb[241].mxu1  ;;  %10615 = vmatmul.mubr.msk.f32.gmra.mrb[90].mxu1 %vm4932_vm2, %v4902_v25  ;;  %v4911_v1 = vmax.f32 %v4583_v15, 0.0  ;;  %v15851_v25 = vld [vmem:[#allocation67_spill] sm:$0xff]  ;;  %v15852_v21 = vld [vmem:[#allocation64_spill] sm:$0xff]  ;;  %v7129_v15 = vld [vmem:[%s15556_s0 + $0x418] sm:$0xff] }
 0x493   :  { %7868 = vst.msk [vmem:[%s15558_s8 + $0x380] sm:$0xff] %vm7755_vm3, %v7617_v0  ;;  %v7362_v52 = vadd.f32 %v7112_v7, %v6319_v34  ;;  %10617 = vmatprep.mubr.msk.f32.mxu1 %vm4932_vm2, %v4903_v13  ;;  %v4593_v28 = vadd.f32 %v14382_v26, %v15851_v25  ;;  %v4912_v0 = vmax.f32 %v4588_v44, 0.0 }
 0x494   :  { %v7620_v37 = vadd.f32 %v13791_v54, %v7363_v63  ;;  %v4598_v63 = vadd.f32 %v14382_v26, %v15852_v21 }
 0x495   :  { %v7619_v6 = vadd.f32 %v13791_v54, %v7362_v52  ;;  %v10460_v59 = vpop.f32.mrb[242].mxu1  ;;  %v7122_v52 = vld [vmem:[%s15556_s0 + $0x3e0] sm:$0xff] }
 0x496   :  { %7871 = vst.msk [vmem:[%s15558_s8 + $0x398] sm:$0xff] %vm7755_vm3, %v7620_v37  ;;  %v7365_v19 = vadd.f32 %v10460_v59, %v7115_v20  ;;  %v6329_v12 = vpop.f32.mrb[243].mxu1  ;;  %10618 = vmatmul.mubr.msk.f32.gmra.mrb[92].mxu1 %vm4932_vm2, %v4904_v42  ;;  %v4913_v20 = vmax.f32 %v4593_v28, 0.0  ;;  %v15853_v42 = vld [vmem:[#allocation69_spill] sm:$0xff]  ;;  %v15854_v59 = vld [vmem:[#allocation66_spill] sm:$0xff]  ;;  %v7131_v28 = vld [vmem:[%s15556_s0 + $0x428] sm:$0xff] }
 0x497   :  { %7870 = vst.msk [vmem:[%s15558_s8 + $0x390] sm:$0xff] %vm7755_vm3, %v7619_v6  ;;  %v7364_v4 = vadd.f32 %v7114_v33, %v6329_v12  ;;  %10620 = vmatprep.mubr.msk.f32.mxu1 %vm4932_vm2, %v4905_v41  ;;  %v4603_v8 = vadd.f32 %v14382_v26, %v15853_v42  ;;  %v4914_v6 = vmax.f32 %v4598_v63, 0.0 }
 0x498   :  { %v7622_v48 = vadd.f32 %v13791_v54, %v7365_v19  ;;  %v4608_v19 = vadd.f32 %v14382_v26, %v15854_v59 }
 0x499   :  { %v7621_v43 = vadd.f32 %v13791_v54, %v7364_v4  ;;  %v10463_v56 = vpop.f32.mrb[244].mxu1  ;;  %v7124_v4 = vld [vmem:[%s15556_s0 + $0x3f0] sm:$0xff] }
 0x49a   :  { %7873 = vst.msk [vmem:[%s15558_s8 + $0x3a8] sm:$0xff] %vm7755_vm3, %v7622_v48  ;;  %v7367_v11 = vadd.f32 %v10463_v56, %v7117_v18  ;;  %v6339_v35 = vpop.f32.mrb[245].mxu1  ;;  %10621 = vmatmul.mubr.msk.f32.gmra.mrb[94].mxu1 %vm4932_vm2, %v4906_v51  ;;  %v4915_v18 = vmax.f32 %v4603_v8, 0.0  ;;  %v15855_v51 = vld [vmem:[#allocation71_spill] sm:$0xff]  ;;  %v15856_v56 = vld [vmem:[#allocation68_spill] sm:$0xff]  ;;  %v7133_v8 = vld [vmem:[%s15556_s0 + $0x438] sm:$0xff] }
 0x49b   :  { %7872 = vst.msk [vmem:[%s15558_s8 + $0x3a0] sm:$0xff] %vm7755_vm3, %v7621_v43  ;;  %v7366_v61 = vadd.f32 %v7116_v50, %v6339_v35  ;;  %10623 = vmatprep.mubr.msk.f32.mxu1 %vm4932_vm2, %v4907_v58  ;;  %v4613_v23 = vadd.f32 %v14382_v26, %v15855_v51  ;;  %v4916_v43 = vmax.f32 %v4608_v19, 0.0 }
 0x49c   :  { %v7624_v30 = vadd.f32 %v13791_v54, %v7367_v11  ;;  %v4618_v11 = vadd.f32 %v14382_v26, %v15856_v56 }
 0x49d   :  { %v7623_v57 = vadd.f32 %v13791_v54, %v7366_v61  ;;  %v10466_v53 = vpop.f32.mrb[246].mxu1  ;;  %v7126_v61 = vld [vmem:[%s15556_s0 + $0x400] sm:$0xff] }
 0x49e   :  { %7875 = vst.msk [vmem:[%s15558_s8 + $0x3b8] sm:$0xff] %vm7755_vm3, %v7624_v30  ;;  %v7369_v38 = vadd.f32 %v10466_v53, %v7119_v27  ;;  %v6349_v31 = vpop.f32.mrb[247].mxu1  ;;  %10624 = vmatmul.mubr.msk.f32.gmra.mrb[96].mxu1 %vm4932_vm2, %v4908_v22  ;;  %v4917_v27 = vmax.f32 %v4613_v23, 0.0  ;;  %v15857_v22 = vld [vmem:[#allocation73_spill] sm:$0xff]  ;;  %v15858_v53 = vld [vmem:[#allocation70_spill] sm:$0xff]  ;;  %v7135_v23 = vld [vmem:[%s15556_s0 + $0x448] sm:$0xff] }
 0x49f   :  { %7874 = vst.msk [vmem:[%s15558_s8 + $0x3b0] sm:$0xff] %vm7755_vm3, %v7623_v57  ;;  %v7368_v36 = vadd.f32 %v7118_v39, %v6349_v31  ;;  %10626 = vmatprep.mubr.msk.f32.mxu1 %vm4932_vm2, %v4909_v55  ;;  %v4623_v14 = vadd.f32 %v14382_v26, %v15857_v22  ;;  %v4918_v57 = vmax.f32 %v4618_v11, 0.0 }
 0x4a0   :  { %v7626_v16 = vadd.f32 %v13791_v54, %v7369_v38  ;;  %v4628_v38 = vadd.f32 %v14382_v26, %v15858_v53 }
 0x4a1   :  { %v7625_v47 = vadd.f32 %v13791_v54, %v7368_v36  ;;  %v10469_v32 = vpop.f32.mrb[248].mxu1  ;;  %v7128_v36 = vld [vmem:[%s15556_s0 + $0x410] sm:$0xff] }
 0x4a2   :  { %7877 = vst.msk [vmem:[%s15558_s8 + $0x3c8] sm:$0xff] %vm7755_vm3, %v7626_v16  ;;  %v7371_v7 = vadd.f32 %v10469_v32, %v7121_v62  ;;  %v6359_v13 = vpop.f32.mrb[249].mxu1  ;;  %10627 = vmatmul.mubr.msk.f32.gmra.mrb[98].mxu1 %vm4932_vm2, %v4910_v10  ;;  %v4919_v62 = vmax.f32 %v4623_v14, 0.0  ;;  %v15859_v10 = vld [vmem:[#allocation75_spill] sm:$0xff]  ;;  %v15860_v32 = vld [vmem:[#allocation72_spill] sm:$0xff]  ;;  %v7137_v14 = vld [vmem:[%s15556_s0 + $0x458] sm:$0xff] }
 0x4a3   :  { %7876 = vst.msk [vmem:[%s15558_s8 + $0x3c0] sm:$0xff] %vm7755_vm3, %v7625_v47  ;;  %v7370_v46 = vadd.f32 %v7120_v40, %v6359_v13  ;;  %10629 = vmatprep.mubr.msk.f32.mxu1 %vm4932_vm2, %v4911_v1  ;;  %v4633_v2 = vadd.f32 %v14382_v26, %v15859_v10  ;;  %v4920_v47 = vmax.f32 %v4628_v38, 0.0 }
 0x4a4   :  { %v7628_v34 = vadd.f32 %v13791_v54, %v7371_v7  ;;  %v4638_v7 = vadd.f32 %v14382_v26, %v15860_v32 }
 0x4a5   :  { %v7627_v5 = vadd.f32 %v13791_v54, %v7370_v46  ;;  %v10472_v37 = vpop.f32.mrb[250].mxu1  ;;  %v7130_v46 = vld [vmem:[%s15556_s0 + $0x420] sm:$0xff] }
 0x4a6   :  { %7879 = vst.msk [vmem:[%s15558_s8 + $0x3d8] sm:$0xff] %vm7755_vm3, %v7628_v34  ;;  %v7373_v33 = vadd.f32 %v10472_v37, %v7123_v45  ;;  %v6369_v41 = vpop.f32.mrb[251].mxu1  ;;  %10630 = vmatmul.mubr.msk.f32.gmra.mrb[100].mxu1 %vm4932_vm2, %v4912_v0  ;;  %v4921_v45 = vmax.f32 %v4633_v2, 0.0  ;;  %v15861_v0 = vld [vmem:[#allocation76_spill] sm:$0xff]  ;;  %v15862_v37 = vld [vmem:[#allocation74_spill] sm:$0xff]  ;;  %v7139_v2 = vld [vmem:[%s15556_s0 + $0x468] sm:$0xff] }
 0x4a7   :  { %7878 = vst.msk [vmem:[%s15558_s8 + $0x3d0] sm:$0xff] %vm7755_vm3, %v7627_v5  ;;  %v7372_v60 = vadd.f32 %v7122_v52, %v6369_v41  ;;  %10632 = vmatprep.mubr.msk.f32.mxu1 %vm4932_vm2, %v4913_v20  ;;  %v4643_v21 = vadd.f32 %v14382_v26, %v15861_v0  ;;  %v4922_v5 = vmax.f32 %v4638_v7, 0.0 }
 0x4a8   :  { %v7630_v12 = vadd.f32 %v13791_v54, %v7373_v33  ;;  %v4648_v33 = vadd.f32 %v14382_v26, %v15862_v37  ;;  %v7142_v37 = vld [vmem:[%s15556_s0 + $0x480] sm:$0xff] }
 0x4a9   :  { %v7629_v48 = vadd.f32 %v14505_v3, %v7372_v60  ;;  %v10475_v50 = vpop.f32.mrb[252].mxu1  ;;  %v7132_v60 = vld [vmem:[%s15556_s0 + $0x430] sm:$0xff] }
 0x4aa   :  { %7881 = vst.msk [vmem:[%s15558_s8 + $0x3e8] sm:$0xff] %vm7755_vm3, %v7630_v12  ;;  %v7375_v54 = vadd.f32 %v10475_v50, %v7125_v9  ;;  %v6379_v58 = vpop.f32.mrb[253].mxu1  ;;  %10633 = vmatmul.mubr.msk.f32.gmra.mrb[102].mxu1 %vm4932_vm2, %v4914_v6  ;;  %v4923_v9 = vmax.f32 %v4643_v21, 0.0  ;;  %v15863_v6 = vld [vmem:[#allocation78_spill] sm:$0xff]  ;;  %v15864_v50 = vld [vmem:[#allocation77_spill] sm:$0xff]  ;;  %v7140_v21 = vld [vmem:[%s15556_s0 + $0x470] sm:$0xff] }
 0x4ab   :  { %7880 = vst.msk [vmem:[%s15558_s8 + $0x3e0] sm:$0xff] %vm7755_vm3, %v7629_v48  ;;  %v7374_v49 = vadd.f32 %v7124_v4, %v6379_v58  ;;  %10635 = vmatprep.mubr.msk.f32.mxu1 %vm4932_vm2, %v4915_v18  ;;  %v4653_v59 = vadd.f32 %v14382_v26, %v15863_v6  ;;  %v4924_v48 = vmax.f32 %v4648_v33, 0.0 }
 0x4ac   :  { %v7632_v35 = vadd.f32 %v14505_v3, %v7375_v54  ;;  %v4658_v54 = vadd.f32 %v14382_v26, %v15864_v50  ;;  %v7147_v50 = vld [vmem:[%s15556_s0 + $0x4a8] sm:$0xff] }
 0x4ad   :  { %v7631_v24 = vadd.f32 %v14505_v3, %v7374_v49  ;;  %v10478_v30 = vpop.f32.mrb[254].mxu1  ;;  %v7134_v49 = vld [vmem:[%s15556_s0 + $0x440] sm:$0xff] }
 0x4ae   :  { %7883 = vst.msk [vmem:[%s15558_s8 + $0x3f8] sm:$0xff] %vm7755_vm3, %v7632_v35  ;;  %v7377_v39 = vadd.f32 %v10478_v30, %v7127_v29  ;;  %v6389_v55 = vpop.f32.mrb[255].mxu1  ;;  %10636 = vmatmul.mubr.msk.f32.gmra.mrb[104].mxu1 %vm4932_vm2, %v4916_v43  ;;  %v4925_v29 = vmax.f32 %v4653_v59, 0.0  ;;  %v15865_v43 = vld [vmem:[#allocation80_spill] sm:$0xff]  ;;  %v15866_v30 = vld [vmem:[#allocation79_spill] sm:$0xff]  ;;  %v7145_v59 = vld [vmem:[%s15556_s0 + $0x498] sm:$0xff] }
 0x4af   :  { %7882 = vst.msk [vmem:[%s15558_s8 + $0x3f0] sm:$0xff] %vm7755_vm3, %v7631_v24  ;;  %v7376_v17 = vadd.f32 %v7126_v61, %v6389_v55  ;;  %10638 = vmatprep.mubr.msk.f32.mxu1 %vm4932_vm2, %v4917_v27  ;;  %v4663_v56 = vadd.f32 %v14382_v26, %v15865_v43  ;;  %v4926_v24 = vmax.f32 %v4658_v54, 0.0 }
 0x4b0   :  { %v7634_v31 = vadd.f32 %v14505_v3, %v7377_v39  ;;  %v4668_v39 = vadd.f32 %v14382_v26, %v15866_v30 }
 0x4b1   :  { %v7633_v44 = vadd.f32 %v14505_v3, %v7376_v17  ;;  %v10481_v16 = vpop.f32.mrb[0].mxu1  ;;  %v7136_v17 = vld [vmem:[%s15556_s0 + $0x450] sm:$0xff] }
 0x4b2   :  { %7885 = vst.msk [vmem:[%s15558_s8 + $0x408] sm:$0xff] %vm7755_vm3, %v7634_v31  ;;  %v7379_v40 = vadd.f32 %v10481_v16, %v7129_v15  ;;  %v6399_v1 = vpop.f32.mrb[1].mxu1  ;;  %10639 = vmatmul.mubr.msk.f32.gmra.mrb[106].mxu1 %vm4932_vm2, %v4918_v57  ;;  %v4927_v15 = vmax.f32 %v4663_v56, 0.0  ;;  %v15867_v57 = vld [vmem:[#allocation82_spill] sm:$0xff]  ;;  %v15868_v16 = vld [vmem:[#allocation81_spill] sm:$0xff] }
 0x4b3   :  { %7884 = vst.msk [vmem:[%s15558_s8 + $0x400] sm:$0xff] %vm7755_vm3, %v7633_v44  ;;  %v7378_v25 = vadd.f32 %v7128_v36, %v6399_v1  ;;  %10641 = vmatprep.mubr.msk.f32.mxu1 %vm4932_vm2, %v4919_v62  ;;  %v4673_v53 = vadd.f32 %v14382_v26, %v15867_v57  ;;  %v4928_v44 = vmax.f32 %v4668_v39, 0.0 }
 0x4b4   :  { %v7636_v13 = vadd.f32 %v14505_v3, %v7379_v40  ;;  %v4678_v40 = vadd.f32 %v14382_v26, %v15868_v16 }
 0x4b5   :  { %v7635_v63 = vadd.f32 %v14505_v3, %v7378_v25  ;;  %v10484_v34 = vpop.f32.mrb[2].mxu1  ;;  %v7138_v25 = vld [vmem:[%s15556_s0 + $0x460] sm:$0xff] }
 0x4b6   :  { %7887 = vst.msk [vmem:[%s15558_s8 + $0x418] sm:$0xff] %vm7755_vm3, %v7636_v13  ;;  %v7381_v52 = vadd.f32 %v10484_v34, %v7131_v28  ;;  %v6409_v20 = vpop.f32.mrb[3].mxu1  ;;  %10642 = vmatmul.mubr.msk.f32.gmra.mrb[108].mxu1 %vm4932_vm2, %v4920_v47  ;;  %v4929_v28 = vmax.f32 %v4673_v53, 0.0 }
 0x4b7   :  { %7886 = vst.msk [vmem:[%s15558_s8 + $0x410] sm:$0xff] %vm7755_vm3, %v7635_v63  ;;  %v7380_v42 = vadd.f32 %v7130_v46, %v6409_v20  ;;  %10644 = vmatprep.mubr.msk.f32.mxu1 %vm4932_vm2, %v4921_v45  ;;  %v7141_v46 = vld [vmem:[%s15556_s0 + $0x478] sm:$0xff]  ;;  %v4930_v45 = vmax.f32 %v4678_v40, 0.0 }
 0x4b8   :  { %v7638_v41 = vadd.f32 %v14505_v3, %v7381_v52 }
 0x4b9   :  { %v7637_v19 = vadd.f32 %v14505_v3, %v7380_v42  ;;  %v10487_v12 = vpop.f32.mrb[4].mxu1 }
 0x4ba   :  { %7889 = vst.msk [vmem:[%s15558_s8 + $0x428] sm:$0xff] %vm7755_vm3, %v7638_v41  ;;  %v7383_v4 = vadd.f32 %v10487_v12, %v7133_v8  ;;  %v6419_v18 = vpop.f32.mrb[5].mxu1  ;;  %10645 = vmatmul.mubr.msk.f32.gmra.mrb[110].mxu1 %vm4932_vm2, %v4922_v5  ;;  %v7143_v8 = vld [vmem:[%s15556_s0 + $0x488] sm:$0xff]  ;;  %v7144_v12 = vld [vmem:[%s15556_s0 + $0x490] sm:$0xff] }
 0x4bb   :  { %7888 = vst.msk [vmem:[%s15558_s8 + $0x420] sm:$0xff] %vm7755_vm3, %v7637_v19  ;;  %v7382_v51 = vadd.f32 %v7132_v60, %v6419_v18  ;;  %10647 = vmatprep.mubr.msk.f32.mxu1 %vm4932_vm2, %v4923_v9 }
 0x4bc   :  { %v7640_v58 = vadd.f32 %v14505_v3, %v7383_v4 }
 0x4bd   :  { %v7639_v11 = vadd.f32 %v14505_v3, %v7382_v51  ;;  %v10490_v35 = vpop.f32.mrb[6].mxu1 }
 0x4be   :  { %7891 = vst.msk [vmem:[%s15558_s8 + $0x438] sm:$0xff] %vm7755_vm3, %v7640_v58  ;;  %v7385_v61 = vadd.f32 %v10490_v35, %v7135_v23  ;;  %v6429_v27 = vpop.f32.mrb[7].mxu1  ;;  %10648 = vmatmul.mubr.msk.f32.gmra.mrb[112].mxu1 %vm4932_vm2, %v4924_v48  ;;  %v7146_v58 = vld [vmem:[%s15556_s0 + $0x4a0] sm:$0xff]  ;;  %v7149_v35 = vld [vmem:[%s15556_s0 + $0x4b8] sm:$0xff] }
 0x4bf   :  { %7890 = vst.msk [vmem:[%s15558_s8 + $0x430] sm:$0xff] %vm7755_vm3, %v7639_v11  ;;  %v7384_v22 = vadd.f32 %v7134_v49, %v6429_v27  ;;  %10650 = vmatprep.mubr.msk.f32.mxu1 %vm4932_vm2, %v4925_v29  ;;  %v7148_v27 = vld [vmem:[%s15556_s0 + $0x4b0] sm:$0xff] }
 0x4c0   :  { %v7642_v55 = vadd.f32 %v14505_v3, %v7385_v61 }
 0x4c1   :  { %v7641_v38 = vadd.f32 %v14505_v3, %v7384_v22  ;;  %v10493_v31 = vpop.f32.mrb[8].mxu1 }
 0x4c2   :  { %7893 = vst.msk [vmem:[%s15558_s8 + $0x448] sm:$0xff] %vm7755_vm3, %v7642_v55  ;;  %v7387_v36 = vadd.f32 %v10493_v31, %v7137_v14  ;;  %v6439_v62 = vpop.f32.mrb[9].mxu1  ;;  %10651 = vmatmul.mubr.msk.f32.gmra.mrb[114].mxu1 %vm4932_vm2, %v4926_v24  ;;  %v7151_v55 = vld [vmem:[%s15556_s0 + $0x4c8] sm:$0xff] }
 0x4c3   :  { %7892 = vst.msk [vmem:[%s15558_s8 + $0x440] sm:$0xff] %vm7755_vm3, %v7641_v38  ;;  %v7386_v10 = vadd.f32 %v7136_v17, %v6439_v62  ;;  %10653 = vmatprep.mubr.msk.f32.mxu1 %vm4932_vm2, %v4927_v15  ;;  %v7150_v15 = vld [vmem:[%s15556_s0 + $0x4c0] sm:$0xff]  ;;  %v7153_v62 = vld [vmem:[%s15556_s0 + $0x4d8] sm:$0xff] }
 0x4c4   :  { %v7644_v1 = vadd.f32 %v14505_v3, %v7387_v36 }
 0x4c5   :  { %v7643_v47 = vadd.f32 %v14505_v3, %v7386_v10  ;;  %v10496_v32 = vpop.f32.mrb[10].mxu1 }
 0x4c6   :  { %7895 = vst.msk [vmem:[%s15558_s8 + $0x458] sm:$0xff] %vm7755_vm3, %v7644_v1  ;;  %v7389_v7 = vadd.f32 %v10496_v32, %v7139_v2  ;;  %v6449_v13 = vpop.f32.mrb[11].mxu1  ;;  %10654 = vmatmul.mubr.msk.f32.gmra.mrb[116].mxu1 %vm4932_vm2, %v4928_v44  ;;  %v7152_v2 = vld [vmem:[%s15556_s0 + $0x4d0] sm:$0xff]  ;;  %v7154_v32 = vld [vmem:[%s15556_s0 + $0x4e0] sm:$0xff] }
 0x4c7   :  { %7894 = vst.msk [vmem:[%s15558_s8 + $0x450] sm:$0xff] %vm7755_vm3, %v7643_v47  ;;  %v7388_v26 = vadd.f32 %v7138_v25, %v6449_v13  ;;  %10656 = vmatprep.mubr.msk.f32.mxu1 %vm4932_vm2, %v4929_v28  ;;  %v7155_v28 = vld [vmem:[%s15556_s0 + $0x4e8] sm:$0xff] }
 0x4c8   :  { %v7646_v0 = vadd.f32 %v14505_v3, %v7389_v7 }
 0x4c9   :  { %v7645_v63 = vadd.f32 %v14505_v3, %v7388_v26  ;;  %v10499_v34 = vpop.f32.mrb[12].mxu1 }
 0x4ca   :  { %7897 = vst.msk [vmem:[%s15558_s8 + $0x468] sm:$0xff] %vm7755_vm3, %v7646_v0  ;;  %v7391_v52 = vadd.f32 %v10499_v34, %v7141_v46  ;;  %v6459_v20 = vpop.f32.mrb[13].mxu1  ;;  %10657 = vmatmul.mubr.msk.f32.gmra.mrb[118].mxu1 %vm4932_vm2, %v4930_v45  ;;  %v7157_v0 = vld [vmem:[%s15556_s0 + $0x4f8] sm:$0xff] }
 0x4cb   :  { %7896 = vst.msk [vmem:[%s15558_s8 + $0x460] sm:$0xff] %vm7755_vm3, %v7645_v63  ;;  %v7390_v42 = vadd.f32 %v7140_v21, %v6459_v20  ;;  %v7156_v63 = vld [vmem:[%s15556_s0 + $0x4f0] sm:$0xff] }
 0x4cc   :  { %v7648_v5 = vadd.f32 %v14505_v3, %v7391_v52 }
 0x4cd   :  { %v7647_v33 = vadd.f32 %v14505_v3, %v7390_v42  ;;  %v10502_v41 = vpop.f32.mrb[14].mxu1 }
 0x4ce   :  { %7899 = vst.msk [vmem:[%s15558_s8 + $0x478] sm:$0xff] %vm7755_vm3, %v7648_v5  ;;  %v7393_v60 = vadd.f32 %v10502_v41, %v7143_v8  ;;  %v6469_v9 = vpop.f32.mrb[15].mxu1  ;;  %v7159_v5 = vld [vmem:[%s15556_s0 + $0x508] sm:$0xff] }
 0x4cf   :  { %7898 = vst.msk [vmem:[%s15558_s8 + $0x470] sm:$0xff] %vm7755_vm3, %v7647_v33  ;;  %v7392_v6 = vadd.f32 %v7142_v37, %v6469_v9  ;;  %v7158_v33 = vld [vmem:[%s15556_s0 + $0x500] sm:$0xff] }
 0x4d0   :  { %v7650_v19 = vadd.f32 %v14505_v3, %v7393_v60 }
 0x4d1   :  { %v7649_v4 = vadd.f32 %v14505_v3, %v7392_v6  ;;  %v10505_v18 = vpop.f32.mrb[16].mxu1 }
 0x4d2   :  { %7901 = vst.msk [vmem:[%s15558_s8 + $0x488] sm:$0xff] %vm7755_vm3, %v7650_v19  ;;  %v7395_v51 = vadd.f32 %v10505_v18, %v7145_v59  ;;  %v6479_v23 = vpop.f32.mrb[17].mxu1  ;;  %v7161_v19 = vld [vmem:[%s15556_s0 + $0x518] sm:$0xff] }
 0x4d3   :  { %7900 = vst.msk [vmem:[%s15558_s8 + $0x480] sm:$0xff] %vm7755_vm3, %v7649_v4  ;;  %v7394_v48 = vadd.f32 %v7144_v12, %v6479_v23  ;;  %v7160_v4 = vld [vmem:[%s15556_s0 + $0x510] sm:$0xff] }
 0x4d4   :  { %v7652_v54 = vadd.f32 %v14505_v3, %v7395_v51 }
 0x4d5   :  { %v7651_v49 = vadd.f32 %v14505_v3, %v7394_v48  ;;  %v10508_v29 = vpop.f32.mrb[18].mxu1 }
 0x4d6   :  { %7903 = vst.msk [vmem:[%s15558_s8 + $0x498] sm:$0xff] %vm7755_vm3, %v7652_v54  ;;  %v7397_v43 = vadd.f32 %v10508_v29, %v7147_v50  ;;  %v6489_v56 = vpop.f32.mrb[19].mxu1  ;;  %v7163_v54 = vld [vmem:[%s15556_s0 + $0x528] sm:$0xff] }
 0x4d7   :  { %7902 = vst.msk [vmem:[%s15558_s8 + $0x490] sm:$0xff] %vm7755_vm3, %v7651_v49  ;;  %v7396_v11 = vadd.f32 %v7146_v58, %v6489_v56  ;;  %v7162_v49 = vld [vmem:[%s15556_s0 + $0x520] sm:$0xff] }
 0x4d8   :  { %v7654_v61 = vadd.f32 %v14505_v3, %v7397_v43 }
 0x4d9   :  { %v7653_v22 = vadd.f32 %v14505_v3, %v7396_v11  ;;  %v10511_v14 = vpop.f32.mrb[20].mxu1 }
 0x4da   :  { %7905 = vst.msk [vmem:[%s15558_s8 + $0x4a8] sm:$0xff] %vm7755_vm3, %v7654_v61  ;;  %v7399_v24 = vadd.f32 %v10511_v14, %v7149_v35  ;;  %v6499_v30 = vpop.f32.mrb[21].mxu1  ;;  %v7165_v61 = vld [vmem:[%s15556_s0 + $0x538] sm:$0xff] }
 0x4db   :  { %7904 = vst.msk [vmem:[%s15558_s8 + $0x4a0] sm:$0xff] %vm7755_vm3, %v7653_v22  ;;  %v7398_v39 = vadd.f32 %v7148_v27, %v6499_v30  ;;  %v7164_v22 = vld [vmem:[%s15556_s0 + $0x530] sm:$0xff] }
 0x4dc   :  { %v7656_v17 = vadd.f32 %v14505_v3, %v7399_v24 }
 0x4dd   :  { %v7655_v57 = vadd.f32 %v14505_v3, %v7398_v39  ;;  %v10514_v53 = vpop.f32.mrb[22].mxu1 }
 0x4de   :  { %7907 = vst.msk [vmem:[%s15558_s8 + $0x4b8] sm:$0xff] %vm7755_vm3, %v7656_v17  ;;  %v7401_v38 = vadd.f32 %v10514_v53, %v7151_v55  ;;  %v6509_v31 = vpop.f32.mrb[23].mxu1  ;;  %v7167_v17 = vld [vmem:[%s15556_s0 + $0x548] sm:$0xff] }
 0x4df   :  { %7906 = vst.msk [vmem:[%s15558_s8 + $0x4b0] sm:$0xff] %vm7755_vm3, %v7655_v57  ;;  %v7400_v36 = vadd.f32 %v7150_v15, %v6509_v31  ;;  %v7166_v57 = vld [vmem:[%s15556_s0 + $0x540] sm:$0xff] }
 0x4e0   :  { %v7658_v10 = vadd.f32 %v14505_v3, %v7401_v38 }
 0x4e1   :  { %v7657_v44 = vadd.f32 %v14505_v3, %v7400_v36  ;;  %v10517_v16 = vpop.f32.mrb[24].mxu1 }
 0x4e2   :  { %7909 = vst.msk [vmem:[%s15558_s8 + $0x4c8] sm:$0xff] %vm7755_vm3, %v7658_v10  ;;  %v7403_v40 = vadd.f32 %v10517_v16, %v7153_v62  ;;  %v6519_v1 = vpop.f32.mrb[25].mxu1  ;;  %v7169_v10 = vld [vmem:[%s15556_s0 + $0x558] sm:$0xff] }
 0x4e3   :  { %7908 = vst.msk [vmem:[%s15558_s8 + $0x4c0] sm:$0xff] %vm7755_vm3, %v7657_v44  ;;  %v7402_v25 = vadd.f32 %v7152_v2, %v6519_v1  ;;  %v7168_v44 = vld [vmem:[%s15556_s0 + $0x550] sm:$0xff] }
 0x4e4   :  { %v7660_v47 = vadd.f32 %v14505_v3, %v7403_v40 }
 0x4e5   :  { %v7659_v7 = vadd.f32 %v14505_v3, %v7402_v25  ;;  %v10520_v13 = vpop.f32.mrb[26].mxu1 }
 0x4e6   :  { %7911 = vst.msk [vmem:[%s15558_s8 + $0x4d8] sm:$0xff] %vm7755_vm3, %v7660_v47  ;;  %v7405_v26 = vadd.f32 %v10520_v13, %v7155_v28  ;;  %v6529_v46 = vpop.f32.mrb[27].mxu1  ;;  %v7171_v47 = vld [vmem:[%s15556_s0 + $0x568] sm:$0xff] }
 0x4e7   :  { %7910 = vst.msk [vmem:[%s15558_s8 + $0x4d0] sm:$0xff] %vm7755_vm3, %v7659_v7  ;;  %v7404_v45 = vadd.f32 %v7154_v32, %v6529_v46  ;;  %v7170_v7 = vld [vmem:[%s15556_s0 + $0x560] sm:$0xff] }
 0x4e8   :  { %v7662_v21 = vadd.f32 %v14505_v3, %v7405_v26 }
 0x4e9   :  { %v7661_v34 = vadd.f32 %v14505_v3, %v7404_v45  ;;  %v10523_v52 = vpop.f32.mrb[28].mxu1 }
 0x4ea   :  { %7913 = vst.msk [vmem:[%s15558_s8 + $0x4e8] sm:$0xff] %vm7755_vm3, %v7662_v21  ;;  %v7407_v20 = vadd.f32 %v10523_v52, %v7157_v0  ;;  %v6539_v42 = vpop.f32.mrb[29].mxu1  ;;  %v7173_v21 = vld [vmem:[%s15556_s0 + $0x578] sm:$0xff] }
 0x4eb   :  { %7912 = vst.msk [vmem:[%s15558_s8 + $0x4e0] sm:$0xff] %vm7755_vm3, %v7661_v34  ;;  %v7406_v8 = vadd.f32 %v7156_v63, %v6539_v42  ;;  %v7172_v34 = vld [vmem:[%s15556_s0 + $0x570] sm:$0xff] }
 0x4ec   :  { %v7664_v37 = vadd.f32 %v14505_v3, %v7407_v20 }
 0x4ed   :  { %v7663_v41 = vadd.f32 %v14505_v3, %v7406_v8  ;;  %v10526_v60 = vpop.f32.mrb[30].mxu1 }
 0x4ee   :  { %7915 = vst.msk [vmem:[%s15558_s8 + $0x4f8] sm:$0xff] %vm7755_vm3, %v7664_v37  ;;  %v7409_v9 = vadd.f32 %v10526_v60, %v7159_v5  ;;  %v6549_v6 = vpop.f32.mrb[31].mxu1  ;;  %v7175_v37 = vld [vmem:[%s15556_s0 + $0x588] sm:$0xff] }
 0x4ef   :  { %7914 = vst.msk [vmem:[%s15558_s8 + $0x4f0] sm:$0xff] %vm7755_vm3, %v7663_v41  ;;  %v7408_v59 = vadd.f32 %v7158_v33, %v6549_v6  ;;  %v7174_v41 = vld [vmem:[%s15556_s0 + $0x580] sm:$0xff] }
 0x4f0   :  { %v7666_v12 = vadd.f32 %v14505_v3, %v7409_v9 }
 0x4f1   :  { %v7665_v18 = vadd.f32 %v14505_v3, %v7408_v59  ;;  %v10529_v51 = vpop.f32.mrb[32].mxu1 }
 0x4f2   :  { %7917 = vst.msk [vmem:[%s15558_s8 + $0x508] sm:$0xff] %vm7755_vm3, %v7666_v12  ;;  %v7411_v23 = vadd.f32 %v10529_v51, %v7161_v19  ;;  %v6559_v48 = vpop.f32.mrb[33].mxu1  ;;  %v7177_v12 = vld [vmem:[%s15556_s0 + $0x598] sm:$0xff] }
 0x4f3   :  { %7916 = vst.msk [vmem:[%s15558_s8 + $0x500] sm:$0xff] %vm7755_vm3, %v7665_v18  ;;  %v7410_v50 = vadd.f32 %v7160_v4, %v6559_v48  ;;  %v7176_v18 = vld [vmem:[%s15556_s0 + $0x590] sm:$0xff] }
 0x4f4   :  { %v7668_v58 = vadd.f32 %v14505_v3, %v7411_v23 }
 0x4f5   :  { %v7667_v29 = vadd.f32 %v14505_v3, %v7410_v50  ;;  %v10532_v43 = vpop.f32.mrb[34].mxu1 }
 0x4f6   :  { %7919 = vst.msk [vmem:[%s15558_s8 + $0x518] sm:$0xff] %vm7755_vm3, %v7668_v58  ;;  %v7413_v56 = vadd.f32 %v10532_v43, %v7163_v54  ;;  %v6569_v11 = vpop.f32.mrb[35].mxu1  ;;  %v7179_v58 = vld [vmem:[%s15556_s0 + $0x5a8] sm:$0xff] }
 0x4f7   :  { %7918 = vst.msk [vmem:[%s15558_s8 + $0x510] sm:$0xff] %vm7755_vm3, %v7667_v29  ;;  %v7412_v35 = vadd.f32 %v7162_v49, %v6569_v11  ;;  %v7178_v29 = vld [vmem:[%s15556_s0 + $0x5a0] sm:$0xff] }
 0x4f8   :  { %v7670_v27 = vadd.f32 %v14505_v3, %v7413_v56 }
 0x4f9   :  { %v7669_v14 = vadd.f32 %v14505_v3, %v7412_v35  ;;  %v10535_v24 = vpop.f32.mrb[36].mxu1 }
 0x4fa   :  { %7921 = vst.msk [vmem:[%s15558_s8 + $0x528] sm:$0xff] %vm7755_vm3, %v7670_v27  ;;  %v7415_v30 = vadd.f32 %v10535_v24, %v7165_v61  ;;  %v6579_v39 = vpop.f32.mrb[37].mxu1  ;;  %v7181_v27 = vld [vmem:[%s15556_s0 + $0x5b8] sm:$0xff] }
 0x4fb   :  { %7920 = vst.msk [vmem:[%s15558_s8 + $0x520] sm:$0xff] %vm7755_vm3, %v7669_v14  ;;  %v7414_v55 = vadd.f32 %v7164_v22, %v6579_v39  ;;  %v7180_v14 = vld [vmem:[%s15556_s0 + $0x5b0] sm:$0xff] }
 0x4fc   :  { %v7672_v15 = vadd.f32 %v14505_v3, %v7415_v30 }
 0x4fd   :  { %v7671_v53 = vadd.f32 %v14505_v3, %v7414_v55  ;;  %v10538_v38 = vpop.f32.mrb[38].mxu1 }
 0x4fe   :  { %7923 = vst.msk [vmem:[%s15558_s8 + $0x538] sm:$0xff] %vm7755_vm3, %v7672_v15  ;;  %v7417_v31 = vadd.f32 %v10538_v38, %v7167_v17  ;;  %v6589_v36 = vpop.f32.mrb[39].mxu1  ;;  %v7183_v15 = vld [vmem:[%s15556_s0 + $0x5c8] sm:$0xff] }
 0x4ff   :  { %7922 = vst.msk [vmem:[%s15558_s8 + $0x530] sm:$0xff] %vm7755_vm3, %v7671_v53  ;;  %v7416_v62 = vadd.f32 %v7166_v57, %v6589_v36  ;;  %v7182_v53 = vld [vmem:[%s15556_s0 + $0x5c0] sm:$0xff] }
 0x500   :  { %v7674_v2 = vadd.f32 %v14505_v3, %v7417_v31 }
 0x501   :  { %v7673_v16 = vadd.f32 %v14505_v3, %v7416_v62  ;;  %v10541_v40 = vpop.f32.mrb[40].mxu1 }
 0x502   :  { %7925 = vst.msk [vmem:[%s15558_s8 + $0x548] sm:$0xff] %vm7755_vm3, %v7674_v2  ;;  %v7419_v1 = vadd.f32 %v10541_v40, %v7169_v10  ;;  %v6599_v25 = vpop.f32.mrb[41].mxu1  ;;  %v7185_v2 = vld [vmem:[%s15556_s0 + $0x5d8] sm:$0xff] }
 0x503   :  { %7924 = vst.msk [vmem:[%s15558_s8 + $0x540] sm:$0xff] %vm7755_vm3, %v7673_v16  ;;  %v7418_v28 = vadd.f32 %v7168_v44, %v6599_v25  ;;  %v7184_v16 = vld [vmem:[%s15556_s0 + $0x5d0] sm:$0xff] }
 0x504   :  { %v7676_v32 = vadd.f32 %v14505_v3, %v7419_v1 }
 0x505   :  { %v7675_v13 = vadd.f32 %v14505_v3, %v7418_v28  ;;  %v10544_v26 = vpop.f32.mrb[42].mxu1 }
 0x506   :  { %7927 = vst.msk [vmem:[%s15558_s8 + $0x558] sm:$0xff] %vm7755_vm3, %v7676_v32  ;;  %v7421_v46 = vadd.f32 %v10544_v26, %v7171_v47  ;;  %v6609_v45 = vpop.f32.mrb[43].mxu1  ;;  %v7187_v32 = vld [vmem:[%s15556_s0 + $0x5e8] sm:$0xff] }
 0x507   :  { %7926 = vst.msk [vmem:[%s15558_s8 + $0x550] sm:$0xff] %vm7755_vm3, %v7675_v13  ;;  %v7420_v0 = vadd.f32 %v7170_v7, %v6609_v45  ;;  %v7186_v13 = vld [vmem:[%s15556_s0 + $0x5e0] sm:$0xff] }
 0x508   :  { %v7678_v63 = vadd.f32 %v14505_v3, %v7421_v46 }
 0x509   :  { %v7677_v52 = vadd.f32 %v14505_v3, %v7420_v0  ;;  %v10547_v20 = vpop.f32.mrb[44].mxu1 }
 0x50a   :  { %7929 = vst.msk [vmem:[%s15558_s8 + $0x568] sm:$0xff] %vm7755_vm3, %v7678_v63  ;;  %v7423_v42 = vadd.f32 %v10547_v20, %v7173_v21  ;;  %v6619_v8 = vpop.f32.mrb[45].mxu1  ;;  %v7189_v63 = vld [vmem:[%s15556_s0 + $0x5f8] sm:$0xff] }
 0x50b   :  { %7928 = vst.msk [vmem:[%s15558_s8 + $0x560] sm:$0xff] %vm7755_vm3, %v7677_v52  ;;  %v7422_v5 = vadd.f32 %v7172_v34, %v6619_v8  ;;  %v7188_v52 = vld [vmem:[%s15556_s0 + $0x5f0] sm:$0xff] }
 0x50c   :  { %v7680_v33 = vadd.f32 %v14505_v3, %v7423_v42 }
 0x50d   :  { %v7679_v60 = vadd.f32 %v14505_v3, %v7422_v5  ;;  %v10550_v9 = vpop.f32.mrb[46].mxu1 }
 0x50e   :  { %7931 = vst.msk [vmem:[%s15558_s8 + $0x578] sm:$0xff] %vm7755_vm3, %v7680_v33  ;;  %v7425_v6 = vadd.f32 %v10550_v9, %v7175_v37  ;;  %v6629_v59 = vpop.f32.mrb[47].mxu1  ;;  %v7191_v33 = vld [vmem:[%s15556_s0 + $0x608] sm:$0xff] }
 0x50f   :  { %7930 = vst.msk [vmem:[%s15558_s8 + $0x570] sm:$0xff] %vm7755_vm3, %v7679_v60  ;;  %v7424_v19 = vadd.f32 %v7174_v41, %v6629_v59  ;;  %v7190_v60 = vld [vmem:[%s15556_s0 + $0x600] sm:$0xff] }
 0x510   :  { %v7682_v4 = vadd.f32 %v14505_v3, %v7425_v6 }
 0x511   :  { %v7681_v51 = vadd.f32 %v14505_v3, %v7424_v19  ;;  %v10553_v23 = vpop.f32.mrb[48].mxu1 }
 0x512   :  { %7933 = vst.msk [vmem:[%s15558_s8 + $0x588] sm:$0xff] %vm7755_vm3, %v7682_v4  ;;  %v7427_v48 = vadd.f32 %v10553_v23, %v7177_v12  ;;  %v6639_v50 = vpop.f32.mrb[49].mxu1  ;;  %v7193_v4 = vld [vmem:[%s15556_s0 + $0x618] sm:$0xff] }
 0x513   :  { %7932 = vst.msk [vmem:[%s15558_s8 + $0x580] sm:$0xff] %vm7755_vm3, %v7681_v51  ;;  %v7426_v54 = vadd.f32 %v7176_v18, %v6639_v50  ;;  %v7192_v51 = vld [vmem:[%s15556_s0 + $0x610] sm:$0xff] }
 0x514   :  { %v7684_v49 = vadd.f32 %v14505_v3, %v7427_v48 }
 0x515   :  { %v7683_v43 = vadd.f32 %v14505_v3, %v7426_v54  ;;  %v10556_v56 = vpop.f32.mrb[50].mxu1 }
 0x516   :  { %7935 = vst.msk [vmem:[%s15558_s8 + $0x598] sm:$0xff] %vm7755_vm3, %v7684_v49  ;;  %v7429_v11 = vadd.f32 %v10556_v56, %v7179_v58  ;;  %v6649_v35 = vpop.f32.mrb[51].mxu1  ;;  %v7195_v49 = vld [vmem:[%s15556_s0 + $0x628] sm:$0xff] }
 0x517   :  { %7934 = vst.msk [vmem:[%s15558_s8 + $0x590] sm:$0xff] %vm7755_vm3, %v7683_v43  ;;  %v7428_v61 = vadd.f32 %v7178_v29, %v6649_v35  ;;  %v7194_v43 = vld [vmem:[%s15556_s0 + $0x620] sm:$0xff] }
 0x518   :  { %v7686_v22 = vadd.f32 %v14505_v3, %v7429_v11 }
 0x519   :  { %v7685_v24 = vadd.f32 %v14505_v3, %v7428_v61  ;;  %v10559_v30 = vpop.f32.mrb[52].mxu1 }
 0x51a   :  { %7937 = vst.msk [vmem:[%s15558_s8 + $0x5a8] sm:$0xff] %vm7755_vm3, %v7686_v22  ;;  %v7431_v39 = vadd.f32 %v10559_v30, %v7181_v27  ;;  %v6659_v55 = vpop.f32.mrb[53].mxu1  ;;  %v7197_v22 = vld [vmem:[%s15556_s0 + $0x638] sm:$0xff] }
 0x51b   :  { %7936 = vst.msk [vmem:[%s15558_s8 + $0x5a0] sm:$0xff] %vm7755_vm3, %v7685_v24  ;;  %v7430_v17 = vadd.f32 %v7180_v14, %v6659_v55  ;;  %v7196_v24 = vld [vmem:[%s15556_s0 + $0x630] sm:$0xff] }
 0x51c   :  { %v7688_v57 = vadd.f32 %v14505_v3, %v7431_v39 }
 0x51d   :  { %v7687_v38 = vadd.f32 %v14505_v3, %v7430_v17  ;;  %v10562_v31 = vpop.f32.mrb[54].mxu1 }
 0x51e   :  { %7939 = vst.msk [vmem:[%s15558_s8 + $0x5b8] sm:$0xff] %vm7755_vm3, %v7688_v57  ;;  %v7433_v36 = vadd.f32 %v10562_v31, %v7183_v15  ;;  %v6669_v62 = vpop.f32.mrb[55].mxu1  ;;  %v7199_v57 = vld [vmem:[%s15556_s0 + $0x648] sm:$0xff] }
 0x51f   :  { %7938 = vst.msk [vmem:[%s15558_s8 + $0x5b0] sm:$0xff] %vm7755_vm3, %v7687_v38  ;;  %v7432_v10 = vadd.f32 %v7182_v53, %v6669_v62  ;;  %v7198_v38 = vld [vmem:[%s15556_s0 + $0x640] sm:$0xff] }
 0x520   :  { %v7690_v44 = vadd.f32 %v14505_v3, %v7433_v36 }
 0x521   :  { %v7689_v40 = vadd.f32 %v14505_v3, %v7432_v10  ;;  %v10565_v1 = vpop.f32.mrb[56].mxu1 }
 0x522   :  { %7941 = vst.msk [vmem:[%s15558_s8 + $0x5c8] sm:$0xff] %vm7755_vm3, %v7690_v44  ;;  %v7435_v25 = vadd.f32 %v10565_v1, %v7185_v2  ;;  %v6679_v28 = vpop.f32.mrb[57].mxu1  ;;  %v7201_v44 = vld [vmem:[%s15556_s0 + $0x658] sm:$0xff] }
 0x523   :  { %7940 = vst.msk [vmem:[%s15558_s8 + $0x5c0] sm:$0xff] %vm7755_vm3, %v7689_v40  ;;  %v7434_v47 = vadd.f32 %v7184_v16, %v6679_v28  ;;  %v7200_v40 = vld [vmem:[%s15556_s0 + $0x650] sm:$0xff] }
 0x524   :  { %v7692_v7 = vadd.f32 %v14505_v3, %v7435_v25 }
 0x525   :  { %v7691_v26 = vadd.f32 %v14505_v3, %v7434_v47  ;;  %v10568_v46 = vpop.f32.mrb[58].mxu1 }
 0x526   :  { %7943 = vst.msk [vmem:[%s15558_s8 + $0x5d8] sm:$0xff] %vm7755_vm3, %v7692_v7  ;;  %v7437_v45 = vadd.f32 %v10568_v46, %v7187_v32  ;;  %v6689_v0 = vpop.f32.mrb[59].mxu1  ;;  %v7203_v7 = vld [vmem:[%s15556_s0 + $0x668] sm:$0xff] }
 0x527   :  { %7942 = vst.msk [vmem:[%s15558_s8 + $0x5d0] sm:$0xff] %vm7755_vm3, %v7691_v26  ;;  %v7436_v21 = vadd.f32 %v7186_v13, %v6689_v0  ;;  %v7202_v26 = vld [vmem:[%s15556_s0 + $0x660] sm:$0xff] }
 0x528   :  { %v7694_v34 = vadd.f32 %v14505_v3, %v7437_v45 }
 0x529   :  { %v7693_v20 = vadd.f32 %v14505_v3, %v7436_v21  ;;  %v10571_v42 = vpop.f32.mrb[60].mxu1 }
 0x52a   :  { %7945 = vst.msk [vmem:[%s15558_s8 + $0x5e8] sm:$0xff] %vm7755_vm3, %v7694_v34  ;;  %v7439_v8 = vadd.f32 %v10571_v42, %v7189_v63  ;;  %v6699_v5 = vpop.f32.mrb[61].mxu1  ;;  %v7205_v34 = vld [vmem:[%s15556_s0 + $0x678] sm:$0xff] }
 0x52b   :  { %7944 = vst.msk [vmem:[%s15558_s8 + $0x5e0] sm:$0xff] %vm7755_vm3, %v7693_v20  ;;  %v7438_v37 = vadd.f32 %v7188_v52, %v6699_v5  ;;  %v7204_v20 = vld [vmem:[%s15556_s0 + $0x670] sm:$0xff] }
 0x52c   :  { %v7696_v41 = vadd.f32 %v14505_v3, %v7439_v8 }
 0x52d   :  { %v7695_v9 = vadd.f32 %v14505_v3, %v7438_v37  ;;  %v10574_v6 = vpop.f32.mrb[62].mxu1 }
 0x52e   :  { %7947 = vst.msk [vmem:[%s15558_s8 + $0x5f8] sm:$0xff] %vm7755_vm3, %v7696_v41  ;;  %v7441_v59 = vadd.f32 %v10574_v6, %v7191_v33  ;;  %v6709_v19 = vpop.f32.mrb[63].mxu1  ;;  %v7207_v41 = vld [vmem:[%s15556_s0 + $0x688] sm:$0xff] }
 0x52f   :  { %7946 = vst.msk [vmem:[%s15558_s8 + $0x5f0] sm:$0xff] %vm7755_vm3, %v7695_v9  ;;  %v7440_v12 = vadd.f32 %v7190_v60, %v6709_v19  ;;  %v7206_v9 = vld [vmem:[%s15556_s0 + $0x680] sm:$0xff] }
 0x530   :  { %v7698_v18 = vadd.f32 %v14505_v3, %v7441_v59 }
 0x531   :  { %v7697_v23 = vadd.f32 %v14505_v3, %v7440_v12  ;;  %v10577_v48 = vpop.f32.mrb[64].mxu1 }
 0x532   :  { %7949 = vst.msk [vmem:[%s15558_s8 + $0x608] sm:$0xff] %vm7755_vm3, %v7698_v18  ;;  %v7443_v50 = vadd.f32 %v10577_v48, %v7193_v4  ;;  %v6719_v54 = vpop.f32.mrb[65].mxu1  ;;  %v7209_v18 = vld [vmem:[%s15556_s0 + $0x698] sm:$0xff] }
 0x533   :  { %7948 = vst.msk [vmem:[%s15558_s8 + $0x600] sm:$0xff] %vm7755_vm3, %v7697_v23  ;;  %v7442_v58 = vadd.f32 %v7192_v51, %v6719_v54  ;;  %v7208_v23 = vld [vmem:[%s15556_s0 + $0x690] sm:$0xff] }
 0x534   :  { %v7700_v29 = vadd.f32 %v14505_v3, %v7443_v50 }
 0x535   :  { %v7699_v56 = vadd.f32 %v14505_v3, %v7442_v58  ;;  %v10580_v11 = vpop.f32.mrb[66].mxu1 }
 0x536   :  { %7951 = vst.msk [vmem:[%s15558_s8 + $0x618] sm:$0xff] %vm7755_vm3, %v7700_v29  ;;  %v7445_v35 = vadd.f32 %v10580_v11, %v7195_v49  ;;  %v6729_v61 = vpop.f32.mrb[67].mxu1  ;;  %v7211_v29 = vld [vmem:[%s15556_s0 + $0x6a8] sm:$0xff] }
 0x537   :  { %7950 = vst.msk [vmem:[%s15558_s8 + $0x610] sm:$0xff] %vm7755_vm3, %v7699_v56  ;;  %v7444_v27 = vadd.f32 %v7194_v43, %v6729_v61  ;;  %v7210_v56 = vld [vmem:[%s15556_s0 + $0x6a0] sm:$0xff] }
 0x538   :  { %v7702_v14 = vadd.f32 %v14505_v3, %v7445_v35 }
 0x539   :  { %v7701_v30 = vadd.f32 %v14505_v3, %v7444_v27  ;;  %v10583_v39 = vpop.f32.mrb[68].mxu1 }
 0x53a   :  { %7953 = vst.msk [vmem:[%s15558_s8 + $0x628] sm:$0xff] %vm7755_vm3, %v7702_v14  ;;  %v7447_v55 = vadd.f32 %v10583_v39, %v7197_v22  ;;  %v6739_v17 = vpop.f32.mrb[69].mxu1  ;;  %v7213_v14 = vld [vmem:[%s15556_s0 + $0x6b8] sm:$0xff] }
 0x53b   :  { %7952 = vst.msk [vmem:[%s15558_s8 + $0x620] sm:$0xff] %vm7755_vm3, %v7701_v30  ;;  %v7446_v15 = vadd.f32 %v7196_v24, %v6739_v17  ;;  %v7212_v30 = vld [vmem:[%s15556_s0 + $0x6b0] sm:$0xff] }
 0x53c   :  { %v7704_v53 = vadd.f32 %v14505_v3, %v7447_v55 }
 0x53d   :  { %v7703_v31 = vadd.f32 %v14505_v3, %v7446_v15  ;;  %v10586_v36 = vpop.f32.mrb[70].mxu1 }
 0x53e   :  { %7955 = vst.msk [vmem:[%s15558_s8 + $0x638] sm:$0xff] %vm7755_vm3, %v7704_v53  ;;  %v7449_v62 = vadd.f32 %v10586_v36, %v7199_v57  ;;  %v6749_v10 = vpop.f32.mrb[71].mxu1  ;;  %v7215_v53 = vld [vmem:[%s15556_s0 + $0x6c8] sm:$0xff] }
 0x53f   :  { %7954 = vst.msk [vmem:[%s15558_s8 + $0x630] sm:$0xff] %vm7755_vm3, %v7703_v31  ;;  %v7448_v2 = vadd.f32 %v7198_v38, %v6749_v10  ;;  %v7214_v31 = vld [vmem:[%s15556_s0 + $0x6c0] sm:$0xff] }
 0x540   :  { %v7706_v16 = vadd.f32 %v14505_v3, %v7449_v62 }
 0x541   :  { %v7705_v1 = vadd.f32 %v14505_v3, %v7448_v2  ;;  %v10589_v25 = vpop.f32.mrb[72].mxu1 }
 0x542   :  { %7957 = vst.msk [vmem:[%s15558_s8 + $0x648] sm:$0xff] %vm7755_vm3, %v7706_v16  ;;  %v7451_v28 = vadd.f32 %v10589_v25, %v7201_v44  ;;  %v6759_v47 = vpop.f32.mrb[73].mxu1  ;;  %v7217_v16 = vld [vmem:[%s15556_s0 + $0x6d8] sm:$0xff] }
 0x543   :  { %7956 = vst.msk [vmem:[%s15558_s8 + $0x640] sm:$0xff] %vm7755_vm3, %v7705_v1  ;;  %v7450_v32 = vadd.f32 %v7200_v40, %v6759_v47  ;;  %v7216_v1 = vld [vmem:[%s15556_s0 + $0x6d0] sm:$0xff] }
 0x544   :  { %v7708_v13 = vadd.f32 %v14505_v3, %v7451_v28 }
 0x545   :  { %v7707_v46 = vadd.f32 %v14505_v3, %v7450_v32  ;;  %v10592_v45 = vpop.f32.mrb[74].mxu1 }
 0x546   :  { %7959 = vst.msk [vmem:[%s15558_s8 + $0x658] sm:$0xff] %vm7755_vm3, %v7708_v13  ;;  %v7453_v0 = vadd.f32 %v10592_v45, %v7203_v7  ;;  %v6769_v21 = vpop.f32.mrb[75].mxu1  ;;  %v7219_v13 = vld [vmem:[%s15556_s0 + $0x6e8] sm:$0xff] }
 0x547   :  { %7958 = vst.msk [vmem:[%s15558_s8 + $0x650] sm:$0xff] %vm7755_vm3, %v7707_v46  ;;  %v7452_v63 = vadd.f32 %v7202_v26, %v6769_v21  ;;  %v7218_v46 = vld [vmem:[%s15556_s0 + $0x6e0] sm:$0xff] }
 0x548   :  { %v7710_v52 = vadd.f32 %v14505_v3, %v7453_v0 }
 0x549   :  { %v7709_v42 = vadd.f32 %v14505_v3, %v7452_v63  ;;  %v10595_v8 = vpop.f32.mrb[76].mxu1 }
 0x54a   :  { %7961 = vst.msk [vmem:[%s15558_s8 + $0x668] sm:$0xff] %vm7755_vm3, %v7710_v52  ;;  %v7455_v5 = vadd.f32 %v10595_v8, %v7205_v34  ;;  %v6779_v37 = vpop.f32.mrb[77].mxu1  ;;  %v7221_v52 = vld [vmem:[%s15556_s0 + $0x6f8] sm:$0xff] }
 0x54b   :  { %7960 = vst.msk [vmem:[%s15558_s8 + $0x660] sm:$0xff] %vm7755_vm3, %v7709_v42  ;;  %v7454_v33 = vadd.f32 %v7204_v20, %v6779_v37  ;;  %v7220_v42 = vld [vmem:[%s15556_s0 + $0x6f0] sm:$0xff] }
 0x54c   :  { %v7712_v60 = vadd.f32 %v14505_v3, %v7455_v5 }
 0x54d   :  { %v7711_v6 = vadd.f32 %v14505_v3, %v7454_v33  ;;  %v10598_v59 = vpop.f32.mrb[78].mxu1 }
 0x54e   :  { %7963 = vst.msk [vmem:[%s15558_s8 + $0x678] sm:$0xff] %vm7755_vm3, %v7712_v60  ;;  %v7457_v19 = vadd.f32 %v10598_v59, %v7207_v41  ;;  %v6789_v12 = vpop.f32.mrb[79].mxu1  ;;  %v7223_v60 = vld [vmem:[%s15556_s0 + $0x708] sm:$0xff] }
 0x54f   :  { %7962 = vst.msk [vmem:[%s15558_s8 + $0x670] sm:$0xff] %vm7755_vm3, %v7711_v6  ;;  %v7456_v4 = vadd.f32 %v7206_v9, %v6789_v12  ;;  %v7222_v6 = vld [vmem:[%s15556_s0 + $0x700] sm:$0xff] }
 0x550   :  { %v7714_v51 = vadd.f32 %v14505_v3, %v7457_v19 }
 0x551   :  { %v7713_v48 = vadd.f32 %v14505_v3, %v7456_v4  ;;  %v10601_v50 = vpop.f32.mrb[80].mxu1 }
 0x552   :  { %7965 = vst.msk [vmem:[%s15558_s8 + $0x688] sm:$0xff] %vm7755_vm3, %v7714_v51  ;;  %v7459_v54 = vadd.f32 %v10601_v50, %v7209_v18  ;;  %v6799_v58 = vpop.f32.mrb[81].mxu1  ;;  %v7225_v51 = vld [vmem:[%s15556_s0 + $0x718] sm:$0xff] }
 0x553   :  { %7964 = vst.msk [vmem:[%s15558_s8 + $0x680] sm:$0xff] %vm7755_vm3, %v7713_v48  ;;  %v7458_v49 = vadd.f32 %v7208_v23, %v6799_v58  ;;  %v7224_v48 = vld [vmem:[%s15556_s0 + $0x710] sm:$0xff] }
 0x554   :  { %v7716_v43 = vadd.f32 %v14505_v3, %v7459_v54 }
 0x555   :  { %v7715_v11 = vadd.f32 %v14505_v3, %v7458_v49  ;;  %v10604_v35 = vpop.f32.mrb[82].mxu1 }
 0x556   :  { %7967 = vst.msk [vmem:[%s15558_s8 + $0x698] sm:$0xff] %vm7755_vm3, %v7716_v43  ;;  %v7461_v61 = vadd.f32 %v10604_v35, %v7211_v29  ;;  %v6809_v27 = vpop.f32.mrb[83].mxu1  ;;  %v7227_v43 = vld [vmem:[%s15556_s0 + $0x728] sm:$0xff] }
 0x557   :  { %7966 = vst.msk [vmem:[%s15558_s8 + $0x690] sm:$0xff] %vm7755_vm3, %v7715_v11  ;;  %v7460_v22 = vadd.f32 %v7210_v56, %v6809_v27  ;;  %v7226_v11 = vld [vmem:[%s15556_s0 + $0x720] sm:$0xff] }
 0x558   :  { %v7718_v24 = vadd.f32 %v14505_v3, %v7461_v61 }
 0x559   :  { %v7717_v39 = vadd.f32 %v14505_v3, %v7460_v22  ;;  %v10607_v55 = vpop.f32.mrb[84].mxu1 }
 0x55a   :  { %7969 = vst.msk [vmem:[%s15558_s8 + $0x6a8] sm:$0xff] %vm7755_vm3, %v7718_v24  ;;  %v7463_v17 = vadd.f32 %v10607_v55, %v7213_v14  ;;  %v6819_v15 = vpop.f32.mrb[85].mxu1  ;;  %v7229_v24 = vld [vmem:[%s15556_s0 + $0x738] sm:$0xff] }
 0x55b   :  { %7968 = vst.msk [vmem:[%s15558_s8 + $0x6a0] sm:$0xff] %vm7755_vm3, %v7717_v39  ;;  %v7462_v57 = vadd.f32 %v7212_v30, %v6819_v15  ;;  %v7228_v39 = vld [vmem:[%s15556_s0 + $0x730] sm:$0xff] }
 0x55c   :  { %v7720_v38 = vadd.f32 %v14505_v3, %v7463_v17 }
 0x55d   :  { %v7719_v36 = vadd.f32 %v14505_v3, %v7462_v57  ;;  %v10610_v62 = vpop.f32.mrb[86].mxu1 }
 0x55e   :  { %7971 = vst.msk [vmem:[%s15558_s8 + $0x6b8] sm:$0xff] %vm7755_vm3, %v7720_v38  ;;  %v7465_v10 = vadd.f32 %v10610_v62, %v7215_v53  ;;  %v6829_v2 = vpop.f32.mrb[87].mxu1  ;;  %v7231_v38 = vld [vmem:[%s15556_s0 + $0x748] sm:$0xff] }
 0x55f   :  { %7970 = vst.msk [vmem:[%s15558_s8 + $0x6b0] sm:$0xff] %vm7755_vm3, %v7719_v36  ;;  %v7464_v44 = vadd.f32 %v7214_v31, %v6829_v2  ;;  %v7230_v36 = vld [vmem:[%s15556_s0 + $0x740] sm:$0xff] }
 0x560   :  { %v7722_v40 = vadd.f32 %v14505_v3, %v7465_v10 }
 0x561   :  { %v7721_v25 = vadd.f32 %v14505_v3, %v7464_v44  ;;  %v10613_v28 = vpop.f32.mrb[88].mxu1  ;;  %v15301_v3 = vld [vmem:[%s15557_s7] ss:$0 sm:$0xff] }
 0x562   :  { %7973 = vst.msk [vmem:[%s15558_s8 + $0x6c8] sm:$0xff] %vm7755_vm3, %v7722_v40  ;;  %v7467_v47 = vadd.f32 %v10613_v28, %v7217_v16  ;;  %v6839_v32 = vpop.f32.mrb[89].mxu1  ;;  %v7233_v40 = vld [vmem:[%s15556_s0 + $0x758] sm:$0xff] }
 0x563   :  { %7972 = vst.msk [vmem:[%s15558_s8 + $0x6c0] sm:$0xff] %vm7755_vm3, %v7721_v25  ;;  %v7466_v7 = vadd.f32 %v7216_v1, %v6839_v32  ;;  %v7232_v25 = vld [vmem:[%s15556_s0 + $0x750] sm:$0xff] }
 0x564   :  { %v7724_v26 = vadd.f32 %v15301_v3, %v7467_v47 }
 0x565   :  { %v7723_v45 = vadd.f32 %v15301_v3, %v7466_v7  ;;  %v10616_v0 = vpop.f32.mrb[90].mxu1 }
 0x566   :  { %7975 = vst.msk [vmem:[%s15558_s8 + $0x6d8] sm:$0xff] %vm7755_vm3, %v7724_v26  ;;  %v7469_v21 = vadd.f32 %v10616_v0, %v7219_v13  ;;  %v6849_v63 = vpop.f32.mrb[91].mxu1  ;;  %v7235_v26 = vld [vmem:[%s15556_s0 + $0x768] sm:$0xff] }
 0x567   :  { %7974 = vst.msk [vmem:[%s15558_s8 + $0x6d0] sm:$0xff] %vm7755_vm3, %v7723_v45  ;;  %v7468_v34 = vadd.f32 %v7218_v46, %v6849_v63  ;;  %v7234_v45 = vld [vmem:[%s15556_s0 + $0x760] sm:$0xff] }
 0x568   :  { %v7726_v20 = vadd.f32 %v15301_v3, %v7469_v21 }
 0x569   :  { %v7725_v8 = vadd.f32 %v15301_v3, %v7468_v34  ;;  %v10619_v5 = vpop.f32.mrb[92].mxu1 }
 0x56a   :  { %7977 = vst.msk [vmem:[%s15558_s8 + $0x6e8] sm:$0xff] %vm7755_vm3, %v7726_v20  ;;  %v7471_v37 = vadd.f32 %v10619_v5, %v7221_v52  ;;  %v6859_v33 = vpop.f32.mrb[93].mxu1  ;;  %v7237_v20 = vld [vmem:[%s15556_s0 + $0x778] sm:$0xff] }
 0x56b   :  { %7976 = vst.msk [vmem:[%s15558_s8 + $0x6e0] sm:$0xff] %vm7755_vm3, %v7725_v8  ;;  %v7470_v41 = vadd.f32 %v7220_v42, %v6859_v33  ;;  %v7236_v8 = vld [vmem:[%s15556_s0 + $0x770] sm:$0xff] }
 0x56c   :  { %v7728_v9 = vadd.f32 %v15301_v3, %v7471_v37 }
 0x56d   :  { %v7727_v59 = vadd.f32 %v15301_v3, %v7470_v41  ;;  %v10622_v19 = vpop.f32.mrb[94].mxu1 }
 0x56e   :  { %7979 = vst.msk [vmem:[%s15558_s8 + $0x6f8] sm:$0xff] %vm7755_vm3, %v7728_v9  ;;  %v7473_v12 = vadd.f32 %v10622_v19, %v7223_v60  ;;  %v6869_v4 = vpop.f32.mrb[95].mxu1  ;;  %v7239_v9 = vld [vmem:[%s15556_s0 + $0x788] sm:$0xff] }
 0x56f   :  { %7978 = vst.msk [vmem:[%s15558_s8 + $0x6f0] sm:$0xff] %vm7755_vm3, %v7727_v59  ;;  %v7472_v18 = vadd.f32 %v7222_v6, %v6869_v4  ;;  %v7238_v59 = vld [vmem:[%s15556_s0 + $0x780] sm:$0xff] }
 0x570   :  { %v7730_v23 = vadd.f32 %v15301_v3, %v7473_v12 }
 0x571   :  { %v7729_v50 = vadd.f32 %v15301_v3, %v7472_v18  ;;  %v10625_v54 = vpop.f32.mrb[96].mxu1 }
 0x572   :  { %7981 = vst.msk [vmem:[%s15558_s8 + $0x708] sm:$0xff] %vm7755_vm3, %v7730_v23  ;;  %v7475_v58 = vadd.f32 %v10625_v54, %v7225_v51  ;;  %v6879_v49 = vpop.f32.mrb[97].mxu1  ;;  %v7241_v23 = vld [vmem:[%s15556_s0 + $0x798] sm:$0xff] }
 0x573   :  { %7980 = vst.msk [vmem:[%s15558_s8 + $0x700] sm:$0xff] %vm7755_vm3, %v7729_v50  ;;  %v7474_v29 = vadd.f32 %v7224_v48, %v6879_v49  ;;  %v7240_v50 = vld [vmem:[%s15556_s0 + $0x790] sm:$0xff] }
 0x574   :  { %v7732_v56 = vadd.f32 %v15301_v3, %v7475_v58 }
 0x575   :  { %v7731_v35 = vadd.f32 %v15301_v3, %v7474_v29  ;;  %v10628_v61 = vpop.f32.mrb[98].mxu1 }
 0x576   :  { %7983 = vst.msk [vmem:[%s15558_s8 + $0x718] sm:$0xff] %vm7755_vm3, %v7732_v56  ;;  %v7477_v27 = vadd.f32 %v10628_v61, %v7227_v43  ;;  %v6889_v22 = vpop.f32.mrb[99].mxu1  ;;  %v7243_v56 = vld [vmem:[%s15556_s0 + $0x7a8] sm:$0xff] }
 0x577   :  { %7982 = vst.msk [vmem:[%s15558_s8 + $0x710] sm:$0xff] %vm7755_vm3, %v7731_v35  ;;  %v7476_v14 = vadd.f32 %v7226_v11, %v6889_v22  ;;  %v7242_v35 = vld [vmem:[%s15556_s0 + $0x7a0] sm:$0xff] }
 0x578   :  { %v7734_v30 = vadd.f32 %v15301_v3, %v7477_v27 }
 0x579   :  { %v7733_v55 = vadd.f32 %v15301_v3, %v7476_v14  ;;  %v10631_v17 = vpop.f32.mrb[100].mxu1 }
 0x57a   :  { %7985 = vst.msk [vmem:[%s15558_s8 + $0x728] sm:$0xff] %vm7755_vm3, %v7734_v30  ;;  %v7479_v15 = vadd.f32 %v10631_v17, %v7229_v24  ;;  %v6899_v57 = vpop.f32.mrb[101].mxu1  ;;  %v7245_v30 = vld [vmem:[%s15556_s0 + $0x7b8] sm:$0xff] }
 0x57b   :  { %7984 = vst.msk [vmem:[%s15558_s8 + $0x720] sm:$0xff] %vm7755_vm3, %v7733_v55  ;;  %v7478_v53 = vadd.f32 %v7228_v39, %v6899_v57  ;;  %v7244_v55 = vld [vmem:[%s15556_s0 + $0x7b0] sm:$0xff] }
 0x57c   :  { %v7736_v31 = vadd.f32 %v15301_v3, %v7479_v15 }
 0x57d   :  { %v7735_v62 = vadd.f32 %v15301_v3, %v7478_v53  ;;  %v10634_v10 = vpop.f32.mrb[102].mxu1 }
 0x57e   :  { %7987 = vst.msk [vmem:[%s15558_s8 + $0x738] sm:$0xff] %vm7755_vm3, %v7736_v31  ;;  %v7481_v2 = vadd.f32 %v10634_v10, %v7231_v38  ;;  %v6909_v44 = vpop.f32.mrb[103].mxu1  ;;  %v7247_v31 = vld [vmem:[%s15556_s0 + $0x7c8] sm:$0xff] }
 0x57f   :  { %7986 = vst.msk [vmem:[%s15558_s8 + $0x730] sm:$0xff] %vm7755_vm3, %v7735_v62  ;;  %v7480_v16 = vadd.f32 %v7230_v36, %v6909_v44  ;;  %v7246_v62 = vld [vmem:[%s15556_s0 + $0x7c0] sm:$0xff] }
 0x580   :  { %v7738_v1 = vadd.f32 %v15301_v3, %v7481_v2 }
 0x581   :  { %v7737_v28 = vadd.f32 %v15301_v3, %v7480_v16  ;;  %v10637_v47 = vpop.f32.mrb[104].mxu1 }
 0x582   :  { %7989 = vst.msk [vmem:[%s15558_s8 + $0x748] sm:$0xff] %vm7755_vm3, %v7738_v1  ;;  %v7483_v32 = vadd.f32 %v10637_v47, %v7233_v40  ;;  %v6919_v7 = vpop.f32.mrb[105].mxu1 }
 0x583   :  { %7988 = vst.msk [vmem:[%s15558_s8 + $0x740] sm:$0xff] %vm7755_vm3, %v7737_v28  ;;  %v7482_v13 = vadd.f32 %v7232_v25, %v6919_v7 }
 0x584   :  { %v7740_v46 = vadd.f32 %v15301_v3, %v7483_v32 }
 0x585   :  { %v7739_v0 = vadd.f32 %v15301_v3, %v7482_v13  ;;  %v10640_v21 = vpop.f32.mrb[106].mxu1 }
 0x586   :  { %7991 = vst.msk [vmem:[%s15558_s8 + $0x758] sm:$0xff] %vm7755_vm3, %v7740_v46  ;;  %v7485_v63 = vadd.f32 %v10640_v21, %v7235_v26  ;;  %v6929_v34 = vpop.f32.mrb[107].mxu1 }
 0x587   :  { %7990 = vst.msk [vmem:[%s15558_s8 + $0x750] sm:$0xff] %vm7755_vm3, %v7739_v0  ;;  %v7484_v52 = vadd.f32 %v7234_v45, %v6929_v34 }
 0x588   :  { %v7742_v42 = vadd.f32 %v15301_v3, %v7485_v63 }
 0x589   :  { %v7741_v5 = vadd.f32 %v15301_v3, %v7484_v52  ;;  %v10643_v37 = vpop.f32.mrb[108].mxu1 }
 0x58a   :  { %7993 = vst.msk [vmem:[%s15558_s8 + $0x768] sm:$0xff] %vm7755_vm3, %v7742_v42  ;;  %v7487_v33 = vadd.f32 %v10643_v37, %v7237_v20  ;;  %v6939_v41 = vpop.f32.mrb[109].mxu1 }
 0x58b   :  { %7992 = vst.msk [vmem:[%s15558_s8 + $0x760] sm:$0xff] %vm7755_vm3, %v7741_v5  ;;  %v7486_v60 = vadd.f32 %v7236_v8, %v6939_v41 }
 0x58c   :  { %v7744_v6 = vadd.f32 %v15301_v3, %v7487_v33 }
 0x58d   :  { %v7743_v19 = vadd.f32 %v15301_v3, %v7486_v60  ;;  %v10646_v12 = vpop.f32.mrb[110].mxu1 }
 0x58e   :  { %7995 = vst.msk [vmem:[%s15558_s8 + $0x778] sm:$0xff] %vm7755_vm3, %v7744_v6  ;;  %v7489_v4 = vadd.f32 %v10646_v12, %v7239_v9  ;;  %v6949_v18 = vpop.f32.mrb[111].mxu1 }
 0x58f   :  { %7994 = vst.msk [vmem:[%s15558_s8 + $0x770] sm:$0xff] %vm7755_vm3, %v7743_v19  ;;  %v7488_v51 = vadd.f32 %v7238_v59, %v6949_v18 }
 0x590   :  { %v7746_v48 = vadd.f32 %v15301_v3, %v7489_v4 }
 0x591   :  { %v7745_v54 = vadd.f32 %v15301_v3, %v7488_v51  ;;  %v10649_v58 = vpop.f32.mrb[112].mxu1 }
 0x592   :  { %7997 = vst.msk [vmem:[%s15558_s8 + $0x788] sm:$0xff] %vm7755_vm3, %v7746_v48  ;;  %v7491_v49 = vadd.f32 %v10649_v58, %v7241_v23  ;;  %v6959_v29 = vpop.f32.mrb[113].mxu1 }
 0x593   :  { %7996 = vst.msk [vmem:[%s15558_s8 + $0x780] sm:$0xff] %vm7755_vm3, %v7745_v54  ;;  %v7490_v43 = vadd.f32 %v7240_v50, %v6959_v29 }
 0x594   :  { %v7748_v11 = vadd.f32 %v15301_v3, %v7491_v49 }
 0x595   :  { %v7747_v61 = vadd.f32 %v15301_v3, %v7490_v43  ;;  %v10652_v27 = vpop.f32.mrb[114].mxu1 }
 0x596   :  { %7999 = vst.msk [vmem:[%s15558_s8 + $0x798] sm:$0xff] %vm7755_vm3, %v7748_v11  ;;  %v7493_v22 = vadd.f32 %v10652_v27, %v7243_v56  ;;  %v6969_v14 = vpop.f32.mrb[115].mxu1 }
 0x597   :  { %7998 = vst.msk [vmem:[%s15558_s8 + $0x790] sm:$0xff] %vm7755_vm3, %v7747_v61  ;;  %v7492_v24 = vadd.f32 %v7242_v35, %v6969_v14 }
 0x598   :  { %v7750_v39 = vadd.f32 %v15301_v3, %v7493_v22 }
 0x599   :  { %v7749_v17 = vadd.f32 %v15301_v3, %v7492_v24  ;;  %v10655_v15 = vpop.f32.mrb[116].mxu1 }
 0x59a   :  { %8001 = vst.msk [vmem:[%s15558_s8 + $0x7a8] sm:$0xff] %vm7755_vm3, %v7750_v39  ;;  %v7495_v57 = vadd.f32 %v10655_v15, %v7245_v30  ;;  %v6979_v53 = vpop.f32.mrb[117].mxu1 }
 0x59b   :  { %8000 = vst.msk [vmem:[%s15558_s8 + $0x7a0] sm:$0xff] %vm7755_vm3, %v7749_v17  ;;  %v7494_v38 = vadd.f32 %v7244_v55, %v6979_v53 }
 0x59c   :  { %v7752_v36 = vadd.f32 %v15301_v3, %v7495_v57 }
 0x59d   :  { %v7751_v10 = vadd.f32 %v15301_v3, %v7494_v38  ;;  %v10658_v2 = vpop.f32.mrb[118].mxu1 }
 0x59e   :  { %8003 = vst.msk [vmem:[%s15558_s8 + $0x7b8] sm:$0xff] %vm7755_vm3, %v7752_v36  ;;  %v7497_v44 = vadd.f32 %v10658_v2, %v7247_v31  ;;  %v6989_v16 = vpop.f32.mrb[119].mxu1 }
 0x59f   :  { %8002 = vst.msk [vmem:[%s15558_s8 + $0x7b0] sm:$0xff] %vm7755_vm3, %v7751_v10  ;;  %v7496_v40 = vadd.f32 %v7246_v62, %v6989_v16 }
 0x5a0   :  { %v7754_v1 = vadd.f32 %v15301_v3, %v7497_v44 }
 0x5a1   :  { %v7753_v25 = vadd.f32 %v15301_v3, %v7496_v40 }
 0x5a2   :  { %8005 = vst.msk [vmem:[%s15558_s8 + $0x7c8] sm:$0xff] %vm7755_vm3, %v7754_v1 }
 0x5a3   :  { %8004 = vst.msk [vmem:[%s15558_s8 + $0x7c0] sm:$0xff] %vm7755_vm3, %v7753_v25 }

</bundles_post_ra>
